<compile_context>
chip_gen: v5e
topology: v5e:2x2
jax: 0.10.0
libtpu: 0.0.40
codegen_flags: <defaults>
</compile_context>

<pallas_src>
import jax
import jax.numpy as jnp
from jax import lax
from jax.experimental import pallas as pl
from jax.experimental.pallas import tpu as pltpu

# ----------------------------------------------------------------------------
# Config (mirrors BiLstmCrf.__init__ args; hidden_dim shrunk 300 -> 32 so the
# demo stays tiny; the math/semantics are identical).
# ----------------------------------------------------------------------------
VOCAB_SIZE = 50
EMBED_DIM = 16
HIDDEN_DIM = 32          # bidirectional => HIDDEN_DIM // 2 = 16 per direction
TAG_NUM = 5
NUM_LAYERS = 2
PAD_INDEX = 0
SEQ_LEN = 8
BATCH = 2


# ============================ fused Pallas kernel =============================

def _fused_bilstm_crf_kernel(
        x_ref, m_ref,
        w_ih0f_ref, w_hh0f_ref, b0f_ref,
        w_ih0b_ref, w_hh0b_ref, b0b_ref,
        w_ih1f_ref, w_hh1f_ref, b1f_ref,
        w_ih1b_ref, w_hh1b_ref, b1b_ref,
        h2l_w_ref, h2l_b_ref,
        trans_t_ref, start_ref, end_ref,
        em_ref, bp_ref, fscore_ref):
    """2-layer BiLSTM + linear + CRF Viterbi forward recursion, fully in VMEM."""
    S, B, _ = x_ref.shape
    H = w_hh0f_ref.shape[0]          # per-direction hidden size
    T = trans_t_ref.shape[0]         # number of tags

    # Everything is VMEM-resident; materialize per-timestep inputs once.
    xs = [x_ref[t] for t in range(S)]          # each (B, E)
    ms = [m_ref[t] for t in range(S)]          # each (B, 1) in {0., 1.}

    def lstm_direction(in_parts, w_x_parts, w_hh, b, reverse):
        """One LSTM direction, unrolled over time.

        in_parts : list of length S; in_parts[t] is a tuple of (B, k) inputs
        w_x_parts: matching tuple of (k, 4H) input weights
        """
        h = jnp.zeros((B, H), jnp.float32)
        c = jnp.zeros((B, H), jnp.float32)
        outs = [None] * S
        order = range(S - 1, -1, -1) if reverse else range(S)
        for t in order:
            m = ms[t]
            gates = b                                   # (1, 4H) -> broadcast
            for xp, w in zip(in_parts[t], w_x_parts):
                gates = gates + jnp.dot(xp, w, preferred_element_type=jnp.float32)
            gates = gates + jnp.dot(h, w_hh, preferred_element_type=jnp.float32)
            i = jax.nn.sigmoid(gates[:, 0 * H:1 * H])
            f = jax.nn.sigmoid(gates[:, 1 * H:2 * H])
            g = jnp.tanh(gates[:, 2 * H:3 * H])
            o = jax.nn.sigmoid(gates[:, 3 * H:4 * H])
            c_new = f * c + i * g
            h_new = o * jnp.tanh(c_new)
            # pack_padded_sequence: state only advances on valid steps;
            # pad_packed_sequence: padded outputs are zero-filled.
            c = m * c_new + (1.0 - m) * c
            h = m * h_new + (1.0 - m) * h
            outs[t] = m * h_new
        return outs

    # ---- layer 0 (input: embeddings) -----------------------------------------
    in0 = [(xs[t],) for t in range(S)]
    out0f = lstm_direction(in0, (w_ih0f_ref[...],), w_hh0f_ref[...],
                           b0f_ref[...], reverse=False)
    out0b = lstm_direction(in0, (w_ih0b_ref[...],), w_hh0b_ref[...],
                           b0b_ref[...], reverse=True)

    # ---- layer 1 (input: [fwd ; bwd] of layer 0) ------------------------------
    # Feed the two halves as separate matmul operands (== concat @ stacked weight).
    in1 = [(out0f[t], out0b[t]) for t in range(S)]
    out1f = lstm_direction(in1, (w_ih1f_ref[0:H, :], w_ih1f_ref[H:2 * H, :]),
                           w_hh1f_ref[...], b1f_ref[...], reverse=False)
    out1b = lstm_direction(in1, (w_ih1b_ref[0:H, :], w_ih1b_ref[H:2 * H, :]),
                           w_hh1b_ref[...], b1b_ref[...], reverse=True)
    # TODO(synk): inter-layer dropout skipped (inference / eval semantics).

    # ---- hidden2label linear, fused into the same kernel ----------------------
    hw_f = h2l_w_ref[0:H, :]          # rows for the fwd half
    hw_b = h2l_w_ref[H:2 * H, :]      # rows for the bwd half
    hb = h2l_b_ref[...]               # (1, T)
    ems = []
    for t in range(S):
        e = (jnp.dot(out1f[t], hw_f, preferred_element_type=jnp.float32)
             + jnp.dot(out1b[t], hw_b, preferred_element_type=jnp.float32)
             + hb)                                        # (B, T)
        em_ref[t] = e
        ems.append(e)

    # ---- CRF Viterbi forward recursion (torchcrf semantics) -------------------
    trans_t = trans_t_ref[...]          # trans_t[j, i] = transitions[i, j]
    score = start_ref[...] + ems[0]     # (B, T)
    bp_ref[0] = jnp.zeros((B, T), jnp.int32)
    for t in range(1, S):
        # ns[b, j, i] = score[b, i] + transitions[i, j] + emissions[t, b, j]
        ns = score[:, None, :] + trans_t[None, :, :] + ems[t][:, :, None]  # (B,T_to,T_from)
        best = jnp.max(ns, axis=-1, keepdims=True)                         # (B, T, 1)
        # first-occurrence argmax via iota (robust Mosaic lowering)
        from_iota = lax.broadcasted_iota(jnp.int32, ns.shape, 2)
        idx = jnp.min(jnp.where(ns >= best, from_iota, T), axis=-1).astype(jnp.int32)
        score = jnp.where(ms[t] > 0.0, best[..., 0], score)
        bp_ref[t] = idx
    fscore_ref[...] = score + end_ref[...]


def _fused_forward(feats, mask_f, params):
    """One pallas_call for the whole (LSTM x2 layers x2 dirs + linear + Viterbi) pipe."""
    S, B, _ = feats.shape
    l0, l1 = params["lstm"]
    args = (
        feats, mask_f,
        l0["fwd"]["w_ih"], l0["fwd"]["w_hh"], l0["fwd"]["b"].reshape(1, -1),
        l0["bwd"]["w_ih"], l0["bwd"]["w_hh"], l0["bwd"]["b"].reshape(1, -1),
        l1["fwd"]["w_ih"], l1["fwd"]["w_hh"], l1["fwd"]["b"].reshape(1, -1),
        l1["bwd"]["w_ih"], l1["bwd"]["w_hh"], l1["bwd"]["b"].reshape(1, -1),
        params["h2l_w"], params["h2l_b"].reshape(1, -1),
        params["crf_trans"].T,
        params["crf_start"].reshape(1, -1),
        params["crf_end"].reshape(1, -1),
    )
    vmem = pl.BlockSpec(memory_space=pltpu.MemorySpace.VMEM)
    emissions, bp, fscore = pl.pallas_call(
        _fused_bilstm_crf_kernel,
        out_shape=(jax.ShapeDtypeStruct((S, B, TAG_NUM), jnp.float32),   # emissions
                   jax.ShapeDtypeStruct((S, B, TAG_NUM), jnp.int32),     # backpointers
                   jax.ShapeDtypeStruct((B, TAG_NUM), jnp.float32)),     # final scores
        in_specs=[vmem] * len(args),
        out_specs=(vmem, vmem, vmem),
    )(*args)
    return emissions, bp, fscore


# ============================ plain-JAX glue ==================================

def viterbi_backtrack(bp, final_score, lengths):
    """Per-batch backtracking (tiny scalar/gather work) — plain JAX."""
    S, B, T = bp.shape
    last_tag = jnp.argmax(final_score, axis=-1).astype(jnp.int32)    # (B,)
    seq_end = lengths.astype(jnp.int32) - 1                          # (B,)
    barange = jnp.arange(B)

    def step(tag, t):
        prev = bp[t, barange, tag]
        new_tag = jnp.where(t <= seq_end, prev, tag)
        return new_tag, tag          # emit tags[t], carry tags[t-1]

    ts = jnp.arange(S - 1, 0, -1)
    tag0, ys = lax.scan(step, last_tag, ts)
    tags = jnp.concatenate([tag0[None, :], ys[::-1]], axis=0)        # (S, B)
    return tags


def init_params(key):
    keys = iter(jax.random.split(key, 32))

    def nrm(shape, scale=0.1):
        return (scale * jax.random.normal(next(keys), shape)).astype(jnp.float32)

    params = {"embedding": nrm((VOCAB_SIZE, EMBED_DIM), 0.5)}
    H = HIDDEN_DIM // 2
    lstm, in_dim = [], EMBED_DIM
    for _ in range(NUM_LAYERS):
        layer_p = {}
        for direction in ("fwd", "bwd"):
            layer_p[direction] = {"w_ih": nrm((in_dim, 4 * H)),
                                  "w_hh": nrm((H, 4 * H)),
                                  "b": nrm((4 * H,))}
        lstm.append(layer_p)
        in_dim = 2 * H
    params["lstm"] = lstm
    params["h2l_w"] = nrm((HIDDEN_DIM, TAG_NUM))
    params["h2l_b"] = nrm((TAG_NUM,))
    params["crf_start"] = nrm((TAG_NUM,))
    params["crf_end"] = nrm((TAG_NUM,))
    params["crf_trans"] = nrm((TAG_NUM, TAG_NUM))
    return params


def bilstm_crf_forward(params, x, sent_lengths):
    """Equivalent of BiLstmCrf.forward(x, sent_lengths)."""
    mask_f = (x != PAD_INDEX).astype(jnp.float32)[:, :, None]        # (S, B, 1)
    feats = params["embedding"][x]                                   # (S, B, E) gather (glue)
    emissions, bp, fscore = _fused_forward(feats, mask_f, params)
    tags = viterbi_backtrack(bp, fscore, sent_lengths)               # (S, B)
    return tags, emissions


if __name__ == "__main__":
    key = jax.random.PRNGKey(0)
    pkey, dkey = jax.random.split(key)
    params = init_params(pkey)

    # lengths sorted descending (pack_padded_sequence enforce_sorted=True)
    sent_lengths = jnp.array([SEQ_LEN, 5], dtype=jnp.int32)
    toks = jax.random.randint(dkey, (SEQ_LEN, BATCH), 1, VOCAB_SIZE, dtype=jnp.int32)
    pos = jnp.arange(SEQ_LEN)[:, None]
    x = jnp.where(pos < sent_lengths[None, :], toks, PAD_INDEX)      # (S, B)

    tags, emissions = jax.jit(bilstm_crf_forward)(params, x, sent_lengths)
    tags = jax.block_until_ready(tags)
    emissions = jax.block_until_ready(emissions)

    # present like CRF.decode: list of per-sentence best tag sequences
    decoded = [tags[: int(sent_lengths[b]), b].tolist() for b in range(BATCH)]
    assert emissions.shape == (SEQ_LEN, BATCH, TAG_NUM)
    assert all(len(d) == int(l) for d, l in zip(decoded, sent_lengths))
    assert bool(jnp.all(jnp.isfinite(emissions)))
    print("KERNEL_OK")
</pallas_src>

<mosaic_0001>
module attributes {stable_mosaic.version = 11 : i64} {
  func.func @_fused_bilstm_crf_kernel(%arg0: memref<8x2x16xf32, #tpu.memory_space<vmem>>, %arg1: memref<8x2x1xf32, #tpu.memory_space<vmem>>, %arg2: memref<16x64xf32, #tpu.memory_space<vmem>>, %arg3: memref<16x64xf32, #tpu.memory_space<vmem>>, %arg4: memref<1x64xf32, #tpu.memory_space<vmem>>, %arg5: memref<16x64xf32, #tpu.memory_space<vmem>>, %arg6: memref<16x64xf32, #tpu.memory_space<vmem>>, %arg7: memref<1x64xf32, #tpu.memory_space<vmem>>, %arg8: memref<32x64xf32, #tpu.memory_space<vmem>>, %arg9: memref<16x64xf32, #tpu.memory_space<vmem>>, %arg10: memref<1x64xf32, #tpu.memory_space<vmem>>, %arg11: memref<32x64xf32, #tpu.memory_space<vmem>>, %arg12: memref<16x64xf32, #tpu.memory_space<vmem>>, %arg13: memref<1x64xf32, #tpu.memory_space<vmem>>, %arg14: memref<32x5xf32, #tpu.memory_space<vmem>>, %arg15: memref<1x5xf32, #tpu.memory_space<vmem>>, %arg16: memref<5x5xf32, #tpu.memory_space<vmem>>, %arg17: memref<1x5xf32, #tpu.memory_space<vmem>>, %arg18: memref<1x5xf32, #tpu.memory_space<vmem>>, %arg19: memref<8x2x5xf32, #tpu.memory_space<vmem>>, %arg20: memref<8x2x5xi32, #tpu.memory_space<vmem>>, %arg21: memref<2x5xf32, #tpu.memory_space<vmem>>) attributes {dimension_semantics = [], scalar_prefetch = 0 : i64, scratch_operands = 0 : i64, tpu.core_type = #tpu.core_type<tc>} {
    %c0 = arith.constant 0 : index
    %c0_0 = arith.constant 0 : index
    %c0_1 = arith.constant 0 : index
    %0 = vector.load %arg0[%c0, %c0_0, %c0_1] : memref<8x2x16xf32, #tpu.memory_space<vmem>>, vector<1x2x16xf32>
    %1 = vector.shape_cast %0 : vector<1x2x16xf32> to vector<2x16xf32>
    %c1 = arith.constant 1 : index
    %c0_2 = arith.constant 0 : index
    %c0_3 = arith.constant 0 : index
    %2 = vector.load %arg0[%c1, %c0_2, %c0_3] : memref<8x2x16xf32, #tpu.memory_space<vmem>>, vector<1x2x16xf32>
    %3 = vector.shape_cast %2 : vector<1x2x16xf32> to vector<2x16xf32>
    %c2 = arith.constant 2 : index
    %c0_4 = arith.constant 0 : index
    %c0_5 = arith.constant 0 : index
    %4 = vector.load %arg0[%c2, %c0_4, %c0_5] : memref<8x2x16xf32, #tpu.memory_space<vmem>>, vector<1x2x16xf32>
    %5 = vector.shape_cast %4 : vector<1x2x16xf32> to vector<2x16xf32>
    %c3 = arith.constant 3 : index
    %c0_6 = arith.constant 0 : index
    %c0_7 = arith.constant 0 : index
    %6 = vector.load %arg0[%c3, %c0_6, %c0_7] : memref<8x2x16xf32, #tpu.memory_space<vmem>>, vector<1x2x16xf32>
    %7 = vector.shape_cast %6 : vector<1x2x16xf32> to vector<2x16xf32>
    %c4 = arith.constant 4 : index
    %c0_8 = arith.constant 0 : index
    %c0_9 = arith.constant 0 : index
    %8 = vector.load %arg0[%c4, %c0_8, %c0_9] : memref<8x2x16xf32, #tpu.memory_space<vmem>>, vector<1x2x16xf32>
    %9 = vector.shape_cast %8 : vector<1x2x16xf32> to vector<2x16xf32>
    %c5 = arith.constant 5 : index
    %c0_10 = arith.constant 0 : index
    %c0_11 = arith.constant 0 : index
    %10 = vector.load %arg0[%c5, %c0_10, %c0_11] : memref<8x2x16xf32, #tpu.memory_space<vmem>>, vector<1x2x16xf32>
    %11 = vector.shape_cast %10 : vector<1x2x16xf32> to vector<2x16xf32>
    %c6 = arith.constant 6 : index
    %c0_12 = arith.constant 0 : index
    %c0_13 = arith.constant 0 : index
    %12 = vector.load %arg0[%c6, %c0_12, %c0_13] : memref<8x2x16xf32, #tpu.memory_space<vmem>>, vector<1x2x16xf32>
    %13 = vector.shape_cast %12 : vector<1x2x16xf32> to vector<2x16xf32>
    %c7 = arith.constant 7 : index
    %c0_14 = arith.constant 0 : index
    %c0_15 = arith.constant 0 : index
    %14 = vector.load %arg0[%c7, %c0_14, %c0_15] : memref<8x2x16xf32, #tpu.memory_space<vmem>>, vector<1x2x16xf32>
    %15 = vector.shape_cast %14 : vector<1x2x16xf32> to vector<2x16xf32>
    %c0_16 = arith.constant 0 : index
    %c0_17 = arith.constant 0 : index
    %c0_18 = arith.constant 0 : index
    %16 = vector.load %arg1[%c0_16, %c0_17, %c0_18] : memref<8x2x1xf32, #tpu.memory_space<vmem>>, vector<1x2x1xf32>
    %17 = vector.shape_cast %16 : vector<1x2x1xf32> to vector<2x1xf32>
    %c1_19 = arith.constant 1 : index
    %c0_20 = arith.constant 0 : index
    %c0_21 = arith.constant 0 : index
    %18 = vector.load %arg1[%c1_19, %c0_20, %c0_21] : memref<8x2x1xf32, #tpu.memory_space<vmem>>, vector<1x2x1xf32>
    %19 = vector.shape_cast %18 : vector<1x2x1xf32> to vector<2x1xf32>
    %c2_22 = arith.constant 2 : index
    %c0_23 = arith.constant 0 : index
    %c0_24 = arith.constant 0 : index
    %20 = vector.load %arg1[%c2_22, %c0_23, %c0_24] : memref<8x2x1xf32, #tpu.memory_space<vmem>>, vector<1x2x1xf32>
    %21 = vector.shape_cast %20 : vector<1x2x1xf32> to vector<2x1xf32>
    %c3_25 = arith.constant 3 : index
    %c0_26 = arith.constant 0 : index
    %c0_27 = arith.constant 0 : index
    %22 = vector.load %arg1[%c3_25, %c0_26, %c0_27] : memref<8x2x1xf32, #tpu.memory_space<vmem>>, vector<1x2x1xf32>
    %23 = vector.shape_cast %22 : vector<1x2x1xf32> to vector<2x1xf32>
    %c4_28 = arith.constant 4 : index
    %c0_29 = arith.constant 0 : index
    %c0_30 = arith.constant 0 : index
    %24 = vector.load %arg1[%c4_28, %c0_29, %c0_30] : memref<8x2x1xf32, #tpu.memory_space<vmem>>, vector<1x2x1xf32>
    %25 = vector.shape_cast %24 : vector<1x2x1xf32> to vector<2x1xf32>
    %c5_31 = arith.constant 5 : index
    %c0_32 = arith.constant 0 : index
    %c0_33 = arith.constant 0 : index
    %26 = vector.load %arg1[%c5_31, %c0_32, %c0_33] : memref<8x2x1xf32, #tpu.memory_space<vmem>>, vector<1x2x1xf32>
    %27 = vector.shape_cast %26 : vector<1x2x1xf32> to vector<2x1xf32>
    %c6_34 = arith.constant 6 : index
    %c0_35 = arith.constant 0 : index
    %c0_36 = arith.constant 0 : index
    %28 = vector.load %arg1[%c6_34, %c0_35, %c0_36] : memref<8x2x1xf32, #tpu.memory_space<vmem>>, vector<1x2x1xf32>
    %29 = vector.shape_cast %28 : vector<1x2x1xf32> to vector<2x1xf32>
    %c7_37 = arith.constant 7 : index
    %c0_38 = arith.constant 0 : index
    %c0_39 = arith.constant 0 : index
    %30 = vector.load %arg1[%c7_37, %c0_38, %c0_39] : memref<8x2x1xf32, #tpu.memory_space<vmem>>, vector<1x2x1xf32>
    %31 = vector.shape_cast %30 : vector<1x2x1xf32> to vector<2x1xf32>
    %c0_40 = arith.constant 0 : index
    %c0_41 = arith.constant 0 : index
    %32 = vector.load %arg2[%c0_40, %c0_41] : memref<16x64xf32, #tpu.memory_space<vmem>>, vector<16x64xf32>
    %c0_42 = arith.constant 0 : index
    %c0_43 = arith.constant 0 : index
    %33 = vector.load %arg3[%c0_42, %c0_43] : memref<16x64xf32, #tpu.memory_space<vmem>>, vector<16x64xf32>
    %c0_44 = arith.constant 0 : index
    %c0_45 = arith.constant 0 : index
    %34 = vector.load %arg4[%c0_44, %c0_45] : memref<1x64xf32, #tpu.memory_space<vmem>>, vector<1x64xf32>
    %cst = arith.constant 0.000000e+00 : f32
    %35 = vector.broadcast %cst : f32 to vector<2x16xf32>
    %cst_46 = arith.constant 0.000000e+00 : f32
    %36 = vector.broadcast %cst_46 : f32 to vector<2x16xf32>
    %cst_47 = arith.constant dense<0.000000e+00> : vector<2x64xf32>
    %37 = tpu.matmul %1, %32, %cst_47 {dimension_numbers = #tpu.dot_dimension_numbers<[1], [0], [0], [1], [0, 0, 1, 1], [], []>} : vector<2x16xf32>, vector<16x64xf32>, vector<2x64xf32> -> vector<2x64xf32>
    %38 = vector.broadcast %34 : vector<1x64xf32> to vector<2x64xf32>
    %39 = arith.addf %38, %37 : vector<2x64xf32>
    %cst_48 = arith.constant dense<0.000000e+00> : vector<2x64xf32>
    %40 = tpu.matmul %35, %33, %cst_48 {dimension_numbers = #tpu.dot_dimension_numbers<[1], [0], [0], [1], [0, 0, 1, 1], [], []>} : vector<2x16xf32>, vector<16x64xf32>, vector<2x64xf32> -> vector<2x64xf32>
    %41 = arith.addf %39, %40 : vector<2x64xf32>
    %42 = vector.extract_strided_slice %41 {offsets = [0, 0], sizes = [2, 16], strides = [1, 1]} : vector<2x64xf32> to vector<2x16xf32>
    %43 = arith.negf %42 : vector<2x16xf32>
    %44 = math.exp %43 : vector<2x16xf32>
    %cst_49 = arith.constant 1.000000e+00 : f32
    %45 = vector.broadcast %cst_49 : f32 to vector<2x16xf32>
    %46 = arith.addf %45, %44 : vector<2x16xf32>
    %47 = arith.divf %45, %46 : vector<2x16xf32>
    %48 = vector.extract_strided_slice %41 {offsets = [0, 16], sizes = [2, 16], strides = [1, 1]} : vector<2x64xf32> to vector<2x16xf32>
    %49 = arith.negf %48 : vector<2x16xf32>
    %50 = math.exp %49 : vector<2x16xf32>
    %cst_50 = arith.constant 1.000000e+00 : f32
    %51 = vector.broadcast %cst_50 : f32 to vector<2x16xf32>
    %52 = arith.addf %51, %50 : vector<2x16xf32>
    %53 = arith.divf %51, %52 : vector<2x16xf32>
    %54 = vector.extract_strided_slice %41 {offsets = [0, 32], sizes = [2, 16], strides = [1, 1]} : vector<2x64xf32> to vector<2x16xf32>
    %55 = math.tanh %54 : vector<2x16xf32>
    %56 = vector.extract_strided_slice %41 {offsets = [0, 48], sizes = [2, 16], strides = [1, 1]} : vector<2x64xf32> to vector<2x16xf32>
    %57 = arith.negf %56 : vector<2x16xf32>
    %58 = math.exp %57 : vector<2x16xf32>
    %cst_51 = arith.constant 1.000000e+00 : f32
    %59 = vector.broadcast %cst_51 : f32 to vector<2x16xf32>
    %60 = arith.addf %59, %58 : vector<2x16xf32>
    %61 = arith.divf %59, %60 : vector<2x16xf32>
    %62 = arith.mulf %53, %36 : vector<2x16xf32>
    %63 = arith.mulf %47, %55 : vector<2x16xf32>
    %64 = arith.addf %62, %63 : vector<2x16xf32>
    %65 = math.tanh %64 : vector<2x16xf32>
    %66 = arith.mulf %61, %65 : vector<2x16xf32>
    %67 = vector.broadcast %17 : vector<2x1xf32> to vector<2x16xf32>
    %68 = arith.mulf %67, %64 : vector<2x16xf32>
    %cst_52 = arith.constant 1.000000e+00 : f32
    %69 = vector.broadcast %cst_52 : f32 to vector<2x1xf32>
    %70 = arith.subf %69, %17 : vector<2x1xf32>
    %71 = vector.broadcast %70 : vector<2x1xf32> to vector<2x16xf32>
    %72 = arith.mulf %71, %36 : vector<2x16xf32>
    %73 = arith.addf %68, %72 : vector<2x16xf32>
    %74 = vector.broadcast %17 : vector<2x1xf32> to vector<2x16xf32>
    %75 = arith.mulf %74, %66 : vector<2x16xf32>
    %cst_53 = arith.constant 1.000000e+00 : f32
    %76 = vector.broadcast %cst_53 : f32 to vector<2x1xf32>
    %77 = arith.subf %76, %17 : vector<2x1xf32>
    %78 = vector.broadcast %77 : vector<2x1xf32> to vector<2x16xf32>
    %79 = arith.mulf %78, %35 : vector<2x16xf32>
    %80 = arith.addf %75, %79 : vector<2x16xf32>
    %81 = vector.broadcast %17 : vector<2x1xf32> to vector<2x16xf32>
    %82 = arith.mulf %81, %66 : vector<2x16xf32>
    %cst_54 = arith.constant dense<0.000000e+00> : vector<2x64xf32>
    %83 = tpu.matmul %3, %32, %cst_54 {dimension_numbers = #tpu.dot_dimension_numbers<[1], [0], [0], [1], [0, 0, 1, 1], [], []>} : vector<2x16xf32>, vector<16x64xf32>, vector<2x64xf32> -> vector<2x64xf32>
    %84 = vector.broadcast %34 : vector<1x64xf32> to vector<2x64xf32>
    %85 = arith.addf %84, %83 : vector<2x64xf32>
    %cst_55 = arith.constant dense<0.000000e+00> : vector<2x64xf32>
    %86 = tpu.matmul %80, %33, %cst_55 {dimension_numbers = #tpu.dot_dimension_numbers<[1], [0], [0], [1], [0, 0, 1, 1], [], []>} : vector<2x16xf32>, vector<16x64xf32>, vector<2x64xf32> -> vector<2x64xf32>
    %87 = arith.addf %85, %86 : vector<2x64xf32>
    %88 = vector.extract_strided_slice %87 {offsets = [0, 0], sizes = [2, 16], strides = [1, 1]} : vector<2x64xf32> to vector<2x16xf32>
    %89 = arith.negf %88 : vector<2x16xf32>
    %90 = math.exp %89 : vector<2x16xf32>
    %cst_56 = arith.constant 1.000000e+00 : f32
    %91 = vector.broadcast %cst_56 : f32 to vector<2x16xf32>
    %92 = arith.addf %91, %90 : vector<2x16xf32>
    %93 = arith.divf %91, %92 : vector<2x16xf32>
    %94 = vector.extract_strided_slice %87 {offsets = [0, 16], sizes = [2, 16], strides = [1, 1]} : vector<2x64xf32> to vector<2x16xf32>
    %95 = arith.negf %94 : vector<2x16xf32>
    %96 = math.exp %95 : vector<2x16xf32>
    %cst_57 = arith.constant 1.000000e+00 : f32
    %97 = vector.broadcast %cst_57 : f32 to vector<2x16xf32>
    %98 = arith.addf %97, %96 : vector<2x16xf32>
    %99 = arith.divf %97, %98 : vector<2x16xf32>
    %100 = vector.extract_strided_slice %87 {offsets = [0, 32], sizes = [2, 16], strides = [1, 1]} : vector<2x64xf32> to vector<2x16xf32>
    %101 = math.tanh %100 : vector<2x16xf32>
    %102 = vector.extract_strided_slice %87 {offsets = [0, 48], sizes = [2, 16], strides = [1, 1]} : vector<2x64xf32> to vector<2x16xf32>
    %103 = arith.negf %102 : vector<2x16xf32>
    %104 = math.exp %103 : vector<2x16xf32>
    %cst_58 = arith.constant 1.000000e+00 : f32
    %105 = vector.broadcast %cst_58 : f32 to vector<2x16xf32>
    %106 = arith.addf %105, %104 : vector<2x16xf32>
    %107 = arith.divf %105, %106 : vector<2x16xf32>
    %108 = arith.mulf %99, %73 : vector<2x16xf32>
    %109 = arith.mulf %93, %101 : vector<2x16xf32>
    %110 = arith.addf %108, %109 : vector<2x16xf32>
    %111 = math.tanh %110 : vector<2x16xf32>
    %112 = arith.mulf %107, %111 : vector<2x16xf32>
    %113 = vector.broadcast %19 : vector<2x1xf32> to vector<2x16xf32>
    %114 = arith.mulf %113, %110 : vector<2x16xf32>
    %cst_59 = arith.constant 1.000000e+00 : f32
    %115 = vector.broadcast %cst_59 : f32 to vector<2x1xf32>
    %116 = arith.subf %115, %19 : vector<2x1xf32>
    %117 = vector.broadcast %116 : vector<2x1xf32> to vector<2x16xf32>
    %118 = arith.mulf %117, %73 : vector<2x16xf32>
    %119 = arith.addf %114, %118 : vector<2x16xf32>
    %120 = vector.broadcast %19 : vector<2x1xf32> to vector<2x16xf32>
    %121 = arith.mulf %120, %112 : vector<2x16xf32>
    %cst_60 = arith.constant 1.000000e+00 : f32
    %122 = vector.broadcast %cst_60 : f32 to vector<2x1xf32>
    %123 = arith.subf %122, %19 : vector<2x1xf32>
    %124 = vector.broadcast %123 : vector<2x1xf32> to vector<2x16xf32>
    %125 = arith.mulf %124, %80 : vector<2x16xf32>
    %126 = arith.addf %121, %125 : vector<2x16xf32>
    %127 = vector.broadcast %19 : vector<2x1xf32> to vector<2x16xf32>
    %128 = arith.mulf %127, %112 : vector<2x16xf32>
    %cst_61 = arith.constant dense<0.000000e+00> : vector<2x64xf32>
    %129 = tpu.matmul %5, %32, %cst_61 {dimension_numbers = #tpu.dot_dimension_numbers<[1], [0], [0], [1], [0, 0, 1, 1], [], []>} : vector<2x16xf32>, vector<16x64xf32>, vector<2x64xf32> -> vector<2x64xf32>
    %130 = vector.broadcast %34 : vector<1x64xf32> to vector<2x64xf32>
    %131 = arith.addf %130, %129 : vector<2x64xf32>
    %cst_62 = arith.constant dense<0.000000e+00> : vector<2x64xf32>
    %132 = tpu.matmul %126, %33, %cst_62 {dimension_numbers = #tpu.dot_dimension_numbers<[1], [0], [0], [1], [0, 0, 1, 1], [], []>} : vector<2x16xf32>, vector<16x64xf32>, vector<2x64xf32> -> vector<2x64xf32>
    %133 = arith.addf %131, %132 : vector<2x64xf32>
    %134 = vector.extract_strided_slice %133 {offsets = [0, 0], sizes = [2, 16], strides = [1, 1]} : vector<2x64xf32> to vector<2x16xf32>
    %135 = arith.negf %134 : vector<2x16xf32>
    %136 = math.exp %135 : vector<2x16xf32>
    %cst_63 = arith.constant 1.000000e+00 : f32
    %137 = vector.broadcast %cst_63 : f32 to vector<2x16xf32>
    %138 = arith.addf %137, %136 : vector<2x16xf32>
    %139 = arith.divf %137, %138 : vector<2x16xf32>
    %140 = vector.extract_strided_slice %133 {offsets = [0, 16], sizes = [2, 16], strides = [1, 1]} : vector<2x64xf32> to vector<2x16xf32>
    %141 = arith.negf %140 : vector<2x16xf32>
    %142 = math.exp %141 : vector<2x16xf32>
    %cst_64 = arith.constant 1.000000e+00 : f32
    %143 = vector.broadcast %cst_64 : f32 to vector<2x16xf32>
    %144 = arith.addf %143, %142 : vector<2x16xf32>
    %145 = arith.divf %143, %144 : vector<2x16xf32>
    %146 = vector.extract_strided_slice %133 {offsets = [0, 32], sizes = [2, 16], strides = [1, 1]} : vector<2x64xf32> to vector<2x16xf32>
    %147 = math.tanh %146 : vector<2x16xf32>
    %148 = vector.extract_strided_slice %133 {offsets = [0, 48], sizes = [2, 16], strides = [1, 1]} : vector<2x64xf32> to vector<2x16xf32>
    %149 = arith.negf %148 : vector<2x16xf32>
    %150 = math.exp %149 : vector<2x16xf32>
    %cst_65 = arith.constant 1.000000e+00 : f32
    %151 = vector.broadcast %cst_65 : f32 to vector<2x16xf32>
    %152 = arith.addf %151, %150 : vector<2x16xf32>
    %153 = arith.divf %151, %152 : vector<2x16xf32>
    %154 = arith.mulf %145, %119 : vector<2x16xf32>
    %155 = arith.mulf %139, %147 : vector<2x16xf32>
    %156 = arith.addf %154, %155 : vector<2x16xf32>
    %157 = math.tanh %156 : vector<2x16xf32>
    %158 = arith.mulf %153, %157 : vector<2x16xf32>
    %159 = vector.broadcast %21 : vector<2x1xf32> to vector<2x16xf32>
    %160 = arith.mulf %159, %156 : vector<2x16xf32>
    %cst_66 = arith.constant 1.000000e+00 : f32
    %161 = vector.broadcast %cst_66 : f32 to vector<2x1xf32>
    %162 = arith.subf %161, %21 : vector<2x1xf32>
    %163 = vector.broadcast %162 : vector<2x1xf32> to vector<2x16xf32>
    %164 = arith.mulf %163, %119 : vector<2x16xf32>
    %165 = arith.addf %160, %164 : vector<2x16xf32>
    %166 = vector.broadcast %21 : vector<2x1xf32> to vector<2x16xf32>
    %167 = arith.mulf %166, %158 : vector<2x16xf32>
    %cst_67 = arith.constant 1.000000e+00 : f32
    %168 = vector.broadcast %cst_67 : f32 to vector<2x1xf32>
    %169 = arith.subf %168, %21 : vector<2x1xf32>
    %170 = vector.broadcast %169 : vector<2x1xf32> to vector<2x16xf32>
    %171 = arith.mulf %170, %126 : vector<2x16xf32>
    %172 = arith.addf %167, %171 : vector<2x16xf32>
    %173 = vector.broadcast %21 : vector<2x1xf32> to vector<2x16xf32>
    %174 = arith.mulf %173, %158 : vector<2x16xf32>
    %cst_68 = arith.constant dense<0.000000e+00> : vector<2x64xf32>
    %175 = tpu.matmul %7, %32, %cst_68 {dimension_numbers = #tpu.dot_dimension_numbers<[1], [0], [0], [1], [0, 0, 1, 1], [], []>} : vector<2x16xf32>, vector<16x64xf32>, vector<2x64xf32> -> vector<2x64xf32>
    %176 = vector.broadcast %34 : vector<1x64xf32> to vector<2x64xf32>
    %177 = arith.addf %176, %175 : vector<2x64xf32>
    %cst_69 = arith.constant dense<0.000000e+00> : vector<2x64xf32>
    %178 = tpu.matmul %172, %33, %cst_69 {dimension_numbers = #tpu.dot_dimension_numbers<[1], [0], [0], [1], [0, 0, 1, 1], [], []>} : vector<2x16xf32>, vector<16x64xf32>, vector<2x64xf32> -> vector<2x64xf32>
    %179 = arith.addf %177, %178 : vector<2x64xf32>
    %180 = vector.extract_strided_slice %179 {offsets = [0, 0], sizes = [2, 16], strides = [1, 1]} : vector<2x64xf32> to vector<2x16xf32>
    %181 = arith.negf %180 : vector<2x16xf32>
    %182 = math.exp %181 : vector<2x16xf32>
    %cst_70 = arith.constant 1.000000e+00 : f32
    %183 = vector.broadcast %cst_70 : f32 to vector<2x16xf32>
    %184 = arith.addf %183, %182 : vector<2x16xf32>
    %185 = arith.divf %183, %184 : vector<2x16xf32>
    %186 = vector.extract_strided_slice %179 {offsets = [0, 16], sizes = [2, 16], strides = [1, 1]} : vector<2x64xf32> to vector<2x16xf32>
    %187 = arith.negf %186 : vector<2x16xf32>
    %188 = math.exp %187 : vector<2x16xf32>
    %cst_71 = arith.constant 1.000000e+00 : f32
    %189 = vector.broadcast %cst_71 : f32 to vector<2x16xf32>
    %190 = arith.addf %189, %188 : vector<2x16xf32>
    %191 = arith.divf %189, %190 : vector<2x16xf32>
    %192 = vector.extract_strided_slice %179 {offsets = [0, 32], sizes = [2, 16], strides = [1, 1]} : vector<2x64xf32> to vector<2x16xf32>
    %193 = math.tanh %192 : vector<2x16xf32>
    %194 = vector.extract_strided_slice %179 {offsets = [0, 48], sizes = [2, 16], strides = [1, 1]} : vector<2x64xf32> to vector<2x16xf32>
    %195 = arith.negf %194 : vector<2x16xf32>
    %196 = math.exp %195 : vector<2x16xf32>
    %cst_72 = arith.constant 1.000000e+00 : f32
    %197 = vector.broadcast %cst_72 : f32 to vector<2x16xf32>
    %198 = arith.addf %197, %196 : vector<2x16xf32>
    %199 = arith.divf %197, %198 : vector<2x16xf32>
    %200 = arith.mulf %191, %165 : vector<2x16xf32>
    %201 = arith.mulf %185, %193 : vector<2x16xf32>
    %202 = arith.addf %200, %201 : vector<2x16xf32>
    %203 = math.tanh %202 : vector<2x16xf32>
    %204 = arith.mulf %199, %203 : vector<2x16xf32>
    %205 = vector.broadcast %23 : vector<2x1xf32> to vector<2x16xf32>
    %206 = arith.mulf %205, %202 : vector<2x16xf32>
    %cst_73 = arith.constant 1.000000e+00 : f32
    %207 = vector.broadcast %cst_73 : f32 to vector<2x1xf32>
    %208 = arith.subf %207, %23 : vector<2x1xf32>
    %209 = vector.broadcast %208 : vector<2x1xf32> to vector<2x16xf32>
    %210 = arith.mulf %209, %165 : vector<2x16xf32>
    %211 = arith.addf %206, %210 : vector<2x16xf32>
    %212 = vector.broadcast %23 : vector<2x1xf32> to vector<2x16xf32>
    %213 = arith.mulf %212, %204 : vector<2x16xf32>
    %cst_74 = arith.constant 1.000000e+00 : f32
    %214 = vector.broadcast %cst_74 : f32 to vector<2x1xf32>
    %215 = arith.subf %214, %23 : vector<2x1xf32>
    %216 = vector.broadcast %215 : vector<2x1xf32> to vector<2x16xf32>
    %217 = arith.mulf %216, %172 : vector<2x16xf32>
    %218 = arith.addf %213, %217 : vector<2x16xf32>
    %219 = vector.broadcast %23 : vector<2x1xf32> to vector<2x16xf32>
    %220 = arith.mulf %219, %204 : vector<2x16xf32>
    %cst_75 = arith.constant dense<0.000000e+00> : vector<2x64xf32>
    %221 = tpu.matmul %9, %32, %cst_75 {dimension_numbers = #tpu.dot_dimension_numbers<[1], [0], [0], [1], [0, 0, 1, 1], [], []>} : vector<2x16xf32>, vector<16x64xf32>, vector<2x64xf32> -> vector<2x64xf32>
    %222 = vector.broadcast %34 : vector<1x64xf32> to vector<2x64xf32>
    %223 = arith.addf %222, %221 : vector<2x64xf32>
    %cst_76 = arith.constant dense<0.000000e+00> : vector<2x64xf32>
    %224 = tpu.matmul %218, %33, %cst_76 {dimension_numbers = #tpu.dot_dimension_numbers<[1], [0], [0], [1], [0, 0, 1, 1], [], []>} : vector<2x16xf32>, vector<16x64xf32>, vector<2x64xf32> -> vector<2x64xf32>
    %225 = arith.addf %223, %224 : vector<2x64xf32>
    %226 = vector.extract_strided_slice %225 {offsets = [0, 0], sizes = [2, 16], strides = [1, 1]} : vector<2x64xf32> to vector<2x16xf32>
    %227 = arith.negf %226 : vector<2x16xf32>
    %228 = math.exp %227 : vector<2x16xf32>
    %cst_77 = arith.constant 1.000000e+00 : f32
    %229 = vector.broadcast %cst_77 : f32 to vector<2x16xf32>
    %230 = arith.addf %229, %228 : vector<2x16xf32>
    %231 = arith.divf %229, %230 : vector<2x16xf32>
    %232 = vector.extract_strided_slice %225 {offsets = [0, 16], sizes = [2, 16], strides = [1, 1]} : vector<2x64xf32> to vector<2x16xf32>
    %233 = arith.negf %232 : vector<2x16xf32>
    %234 = math.exp %233 : vector<2x16xf32>
    %cst_78 = arith.constant 1.000000e+00 : f32
    %235 = vector.broadcast %cst_78 : f32 to vector<2x16xf32>
    %236 = arith.addf %235, %234 : vector<2x16xf32>
    %237 = arith.divf %235, %236 : vector<2x16xf32>
    %238 = vector.extract_strided_slice %225 {offsets = [0, 32], sizes = [2, 16], strides = [1, 1]} : vector<2x64xf32> to vector<2x16xf32>
    %239 = math.tanh %238 : vector<2x16xf32>
    %240 = vector.extract_strided_slice %225 {offsets = [0, 48], sizes = [2, 16], strides = [1, 1]} : vector<2x64xf32> to vector<2x16xf32>
    %241 = arith.negf %240 : vector<2x16xf32>
    %242 = math.exp %241 : vector<2x16xf32>
    %cst_79 = arith.constant 1.000000e+00 : f32
    %243 = vector.broadcast %cst_79 : f32 to vector<2x16xf32>
    %244 = arith.addf %243, %242 : vector<2x16xf32>
    %245 = arith.divf %243, %244 : vector<2x16xf32>
    %246 = arith.mulf %237, %211 : vector<2x16xf32>
    %247 = arith.mulf %231, %239 : vector<2x16xf32>
    %248 = arith.addf %246, %247 : vector<2x16xf32>
    %249 = math.tanh %248 : vector<2x16xf32>
    %250 = arith.mulf %245, %249 : vector<2x16xf32>
    %251 = vector.broadcast %25 : vector<2x1xf32> to vector<2x16xf32>
    %252 = arith.mulf %251, %248 : vector<2x16xf32>
    %cst_80 = arith.constant 1.000000e+00 : f32
    %253 = vector.broadcast %cst_80 : f32 to vector<2x1xf32>
    %254 = arith.subf %253, %25 : vector<2x1xf32>
    %255 = vector.broadcast %254 : vector<2x1xf32> to vector<2x16xf32>
    %256 = arith.mulf %255, %211 : vector<2x16xf32>
    %257 = arith.addf %252, %256 : vector<2x16xf32>
    %258 = vector.broadcast %25 : vector<2x1xf32> to vector<2x16xf32>
    %259 = arith.mulf %258, %250 : vector<2x16xf32>
    %cst_81 = arith.constant 1.000000e+00 : f32
    %260 = vector.broadcast %cst_81 : f32 to vector<2x1xf32>
    %261 = arith.subf %260, %25 : vector<2x1xf32>
    %262 = vector.broadcast %261 : vector<2x1xf32> to vector<2x16xf32>
    %263 = arith.mulf %262, %218 : vector<2x16xf32>
    %264 = arith.addf %259, %263 : vector<2x16xf32>
    %265 = vector.broadcast %25 : vector<2x1xf32> to vector<2x16xf32>
    %266 = arith.mulf %265, %250 : vector<2x16xf32>
    %cst_82 = arith.constant dense<0.000000e+00> : vector<2x64xf32>
    %267 = tpu.matmul %11, %32, %cst_82 {dimension_numbers = #tpu.dot_dimension_numbers<[1], [0], [0], [1], [0, 0, 1, 1], [], []>} : vector<2x16xf32>, vector<16x64xf32>, vector<2x64xf32> -> vector<2x64xf32>
    %268 = vector.broadcast %34 : vector<1x64xf32> to vector<2x64xf32>
    %269 = arith.addf %268, %267 : vector<2x64xf32>
    %cst_83 = arith.constant dense<0.000000e+00> : vector<2x64xf32>
    %270 = tpu.matmul %264, %33, %cst_83 {dimension_numbers = #tpu.dot_dimension_numbers<[1], [0], [0], [1], [0, 0, 1, 1], [], []>} : vector<2x16xf32>, vector<16x64xf32>, vector<2x64xf32> -> vector<2x64xf32>
    %271 = arith.addf %269, %270 : vector<2x64xf32>
    %272 = vector.extract_strided_slice %271 {offsets = [0, 0], sizes = [2, 16], strides = [1, 1]} : vector<2x64xf32> to vector<2x16xf32>
    %273 = arith.negf %272 : vector<2x16xf32>
    %274 = math.exp %273 : vector<2x16xf32>
    %cst_84 = arith.constant 1.000000e+00 : f32
    %275 = vector.broadcast %cst_84 : f32 to vector<2x16xf32>
    %276 = arith.addf %275, %274 : vector<2x16xf32>
    %277 = arith.divf %275, %276 : vector<2x16xf32>
    %278 = vector.extract_strided_slice %271 {offsets = [0, 16], sizes = [2, 16], strides = [1, 1]} : vector<2x64xf32> to vector<2x16xf32>
    %279 = arith.negf %278 : vector<2x16xf32>
    %280 = math.exp %279 : vector<2x16xf32>
    %cst_85 = arith.constant 1.000000e+00 : f32
    %281 = vector.broadcast %cst_85 : f32 to vector<2x16xf32>
    %282 = arith.addf %281, %280 : vector<2x16xf32>
    %283 = arith.divf %281, %282 : vector<2x16xf32>
    %284 = vector.extract_strided_slice %271 {offsets = [0, 32], sizes = [2, 16], strides = [1, 1]} : vector<2x64xf32> to vector<2x16xf32>
    %285 = math.tanh %284 : vector<2x16xf32>
    %286 = vector.extract_strided_slice %271 {offsets = [0, 48], sizes = [2, 16], strides = [1, 1]} : vector<2x64xf32> to vector<2x16xf32>
    %287 = arith.negf %286 : vector<2x16xf32>
    %288 = math.exp %287 : vector<2x16xf32>
    %cst_86 = arith.constant 1.000000e+00 : f32
    %289 = vector.broadcast %cst_86 : f32 to vector<2x16xf32>
    %290 = arith.addf %289, %288 : vector<2x16xf32>
    %291 = arith.divf %289, %290 : vector<2x16xf32>
    %292 = arith.mulf %283, %257 : vector<2x16xf32>
    %293 = arith.mulf %277, %285 : vector<2x16xf32>
    %294 = arith.addf %292, %293 : vector<2x16xf32>
    %295 = math.tanh %294 : vector<2x16xf32>
    %296 = arith.mulf %291, %295 : vector<2x16xf32>
    %297 = vector.broadcast %27 : vector<2x1xf32> to vector<2x16xf32>
    %298 = arith.mulf %297, %294 : vector<2x16xf32>
    %cst_87 = arith.constant 1.000000e+00 : f32
    %299 = vector.broadcast %cst_87 : f32 to vector<2x1xf32>
    %300 = arith.subf %299, %27 : vector<2x1xf32>
    %301 = vector.broadcast %300 : vector<2x1xf32> to vector<2x16xf32>
    %302 = arith.mulf %301, %257 : vector<2x16xf32>
    %303 = arith.addf %298, %302 : vector<2x16xf32>
    %304 = vector.broadcast %27 : vector<2x1xf32> to vector<2x16xf32>
    %305 = arith.mulf %304, %296 : vector<2x16xf32>
    %cst_88 = arith.constant 1.000000e+00 : f32
    %306 = vector.broadcast %cst_88 : f32 to vector<2x1xf32>
    %307 = arith.subf %306, %27 : vector<2x1xf32>
    %308 = vector.broadcast %307 : vector<2x1xf32> to vector<2x16xf32>
    %309 = arith.mulf %308, %264 : vector<2x16xf32>
    %310 = arith.addf %305, %309 : vector<2x16xf32>
    %311 = vector.broadcast %27 : vector<2x1xf32> to vector<2x16xf32>
    %312 = arith.mulf %311, %296 : vector<2x16xf32>
    %cst_89 = arith.constant dense<0.000000e+00> : vector<2x64xf32>
    %313 = tpu.matmul %13, %32, %cst_89 {dimension_numbers = #tpu.dot_dimension_numbers<[1], [0], [0], [1], [0, 0, 1, 1], [], []>} : vector<2x16xf32>, vector<16x64xf32>, vector<2x64xf32> -> vector<2x64xf32>
    %314 = vector.broadcast %34 : vector<1x64xf32> to vector<2x64xf32>
    %315 = arith.addf %314, %313 : vector<2x64xf32>
    %cst_90 = arith.constant dense<0.000000e+00> : vector<2x64xf32>
    %316 = tpu.matmul %310, %33, %cst_90 {dimension_numbers = #tpu.dot_dimension_numbers<[1], [0], [0], [1], [0, 0, 1, 1], [], []>} : vector<2x16xf32>, vector<16x64xf32>, vector<2x64xf32> -> vector<2x64xf32>
    %317 = arith.addf %315, %316 : vector<2x64xf32>
    %318 = vector.extract_strided_slice %317 {offsets = [0, 0], sizes = [2, 16], strides = [1, 1]} : vector<2x64xf32> to vector<2x16xf32>
    %319 = arith.negf %318 : vector<2x16xf32>
    %320 = math.exp %319 : vector<2x16xf32>
    %cst_91 = arith.constant 1.000000e+00 : f32
    %321 = vector.broadcast %cst_91 : f32 to vector<2x16xf32>
    %322 = arith.addf %321, %320 : vector<2x16xf32>
    %323 = arith.divf %321, %322 : vector<2x16xf32>
    %324 = vector.extract_strided_slice %317 {offsets = [0, 16], sizes = [2, 16], strides = [1, 1]} : vector<2x64xf32> to vector<2x16xf32>
    %325 = arith.negf %324 : vector<2x16xf32>
    %326 = math.exp %325 : vector<2x16xf32>
    %cst_92 = arith.constant 1.000000e+00 : f32
    %327 = vector.broadcast %cst_92 : f32 to vector<2x16xf32>
    %328 = arith.addf %327, %326 : vector<2x16xf32>
    %329 = arith.divf %327, %328 : vector<2x16xf32>
    %330 = vector.extract_strided_slice %317 {offsets = [0, 32], sizes = [2, 16], strides = [1, 1]} : vector<2x64xf32> to vector<2x16xf32>
    %331 = math.tanh %330 : vector<2x16xf32>
    %332 = vector.extract_strided_slice %317 {offsets = [0, 48], sizes = [2, 16], strides = [1, 1]} : vector<2x64xf32> to vector<2x16xf32>
    %333 = arith.negf %332 : vector<2x16xf32>
    %334 = math.exp %333 : vector<2x16xf32>
    %cst_93 = arith.constant 1.000000e+00 : f32
    %335 = vector.broadcast %cst_93 : f32 to vector<2x16xf32>
    %336 = arith.addf %335, %334 : vector<2x16xf32>
    %337 = arith.divf %335, %336 : vector<2x16xf32>
    %338 = arith.mulf %329, %303 : vector<2x16xf32>
    %339 = arith.mulf %323, %331 : vector<2x16xf32>
    %340 = arith.addf %338, %339 : vector<2x16xf32>
    %341 = math.tanh %340 : vector<2x16xf32>
    %342 = arith.mulf %337, %341 : vector<2x16xf32>
    %343 = vector.broadcast %29 : vector<2x1xf32> to vector<2x16xf32>
    %344 = arith.mulf %343, %340 : vector<2x16xf32>
    %cst_94 = arith.constant 1.000000e+00 : f32
    %345 = vector.broadcast %cst_94 : f32 to vector<2x1xf32>
    %346 = arith.subf %345, %29 : vector<2x1xf32>
    %347 = vector.broadcast %346 : vector<2x1xf32> to vector<2x16xf32>
    %348 = arith.mulf %347, %303 : vector<2x16xf32>
    %349 = arith.addf %344, %348 : vector<2x16xf32>
    %350 = vector.broadcast %29 : vector<2x1xf32> to vector<2x16xf32>
    %351 = arith.mulf %350, %342 : vector<2x16xf32>
    %cst_95 = arith.constant 1.000000e+00 : f32
    %352 = vector.broadcast %cst_95 : f32 to vector<2x1xf32>
    %353 = arith.subf %352, %29 : vector<2x1xf32>
    %354 = vector.broadcast %353 : vector<2x1xf32> to vector<2x16xf32>
    %355 = arith.mulf %354, %310 : vector<2x16xf32>
    %356 = arith.addf %351, %355 : vector<2x16xf32>
    %357 = vector.broadcast %29 : vector<2x1xf32> to vector<2x16xf32>
    %358 = arith.mulf %357, %342 : vector<2x16xf32>
    %cst_96 = arith.constant dense<0.000000e+00> : vector<2x64xf32>
    %359 = tpu.matmul %15, %32, %cst_96 {dimension_numbers = #tpu.dot_dimension_numbers<[1], [0], [0], [1], [0, 0, 1, 1], [], []>} : vector<2x16xf32>, vector<16x64xf32>, vector<2x64xf32> -> vector<2x64xf32>
    %360 = vector.broadcast %34 : vector<1x64xf32> to vector<2x64xf32>
    %361 = arith.addf %360, %359 : vector<2x64xf32>
    %cst_97 = arith.constant dense<0.000000e+00> : vector<2x64xf32>
    %362 = tpu.matmul %356, %33, %cst_97 {dimension_numbers = #tpu.dot_dimension_numbers<[1], [0], [0], [1], [0, 0, 1, 1], [], []>} : vector<2x16xf32>, vector<16x64xf32>, vector<2x64xf32> -> vector<2x64xf32>
    %363 = arith.addf %361, %362 : vector<2x64xf32>
    %364 = vector.extract_strided_slice %363 {offsets = [0, 0], sizes = [2, 16], strides = [1, 1]} : vector<2x64xf32> to vector<2x16xf32>
    %365 = arith.negf %364 : vector<2x16xf32>
    %366 = math.exp %365 : vector<2x16xf32>
    %cst_98 = arith.constant 1.000000e+00 : f32
    %367 = vector.broadcast %cst_98 : f32 to vector<2x16xf32>
    %368 = arith.addf %367, %366 : vector<2x16xf32>
    %369 = arith.divf %367, %368 : vector<2x16xf32>
    %370 = vector.extract_strided_slice %363 {offsets = [0, 16], sizes = [2, 16], strides = [1, 1]} : vector<2x64xf32> to vector<2x16xf32>
    %371 = arith.negf %370 : vector<2x16xf32>
    %372 = math.exp %371 : vector<2x16xf32>
    %cst_99 = arith.constant 1.000000e+00 : f32
    %373 = vector.broadcast %cst_99 : f32 to vector<2x16xf32>
    %374 = arith.addf %373, %372 : vector<2x16xf32>
    %375 = arith.divf %373, %374 : vector<2x16xf32>
    %376 = vector.extract_strided_slice %363 {offsets = [0, 32], sizes = [2, 16], strides = [1, 1]} : vector<2x64xf32> to vector<2x16xf32>
    %377 = math.tanh %376 : vector<2x16xf32>
    %378 = vector.extract_strided_slice %363 {offsets = [0, 48], sizes = [2, 16], strides = [1, 1]} : vector<2x64xf32> to vector<2x16xf32>
    %379 = arith.negf %378 : vector<2x16xf32>
    %380 = math.exp %379 : vector<2x16xf32>
    %cst_100 = arith.constant 1.000000e+00 : f32
    %381 = vector.broadcast %cst_100 : f32 to vector<2x16xf32>
    %382 = arith.addf %381, %380 : vector<2x16xf32>
    %383 = arith.divf %381, %382 : vector<2x16xf32>
    %384 = arith.mulf %375, %349 : vector<2x16xf32>
    %385 = arith.mulf %369, %377 : vector<2x16xf32>
    %386 = arith.addf %384, %385 : vector<2x16xf32>
    %387 = math.tanh %386 : vector<2x16xf32>
    %388 = arith.mulf %383, %387 : vector<2x16xf32>
    %389 = vector.broadcast %31 : vector<2x1xf32> to vector<2x16xf32>
    %390 = arith.mulf %389, %388 : vector<2x16xf32>
    %c0_101 = arith.constant 0 : index
    %c0_102 = arith.constant 0 : index
    %391 = vector.load %arg5[%c0_101, %c0_102] : memref<16x64xf32, #tpu.memory_space<vmem>>, vector<16x64xf32>
    %c0_103 = arith.constant 0 : index
    %c0_104 = arith.constant 0 : index
    %392 = vector.load %arg6[%c0_103, %c0_104] : memref<16x64xf32, #tpu.memory_space<vmem>>, vector<16x64xf32>
    %c0_105 = arith.constant 0 : index
    %c0_106 = arith.constant 0 : index
    %393 = vector.load %arg7[%c0_105, %c0_106] : memref<1x64xf32, #tpu.memory_space<vmem>>, vector<1x64xf32>
    %cst_107 = arith.constant 0.000000e+00 : f32
    %394 = vector.broadcast %cst_107 : f32 to vector<2x16xf32>
    %cst_108 = arith.constant 0.000000e+00 : f32
    %395 = vector.broadcast %cst_108 : f32 to vector<2x16xf32>
    %cst_109 = arith.constant dense<0.000000e+00> : vector<2x64xf32>
    %396 = tpu.matmul %15, %391, %cst_109 {dimension_numbers = #tpu.dot_dimension_numbers<[1], [0], [0], [1], [0, 0, 1, 1], [], []>} : vector<2x16xf32>, vector<16x64xf32>, vector<2x64xf32> -> vector<2x64xf32>
    %397 = vector.broadcast %393 : vector<1x64xf32> to vector<2x64xf32>
    %398 = arith.addf %397, %396 : vector<2x64xf32>
    %cst_110 = arith.constant dense<0.000000e+00> : vector<2x64xf32>
    %399 = tpu.matmul %394, %392, %cst_110 {dimension_numbers = #tpu.dot_dimension_numbers<[1], [0], [0], [1], [0, 0, 1, 1], [], []>} : vector<2x16xf32>, vector<16x64xf32>, vector<2x64xf32> -> vector<2x64xf32>
    %400 = arith.addf %398, %399 : vector<2x64xf32>
    %401 = vector.extract_strided_slice %400 {offsets = [0, 0], sizes = [2, 16], strides = [1, 1]} : vector<2x64xf32> to vector<2x16xf32>
    %402 = arith.negf %401 : vector<2x16xf32>
    %403 = math.exp %402 : vector<2x16xf32>
    %cst_111 = arith.constant 1.000000e+00 : f32
    %404 = vector.broadcast %cst_111 : f32 to vector<2x16xf32>
    %405 = arith.addf %404, %403 : vector<2x16xf32>
    %406 = arith.divf %404, %405 : vector<2x16xf32>
    %407 = vector.extract_strided_slice %400 {offsets = [0, 16], sizes = [2, 16], strides = [1, 1]} : vector<2x64xf32> to vector<2x16xf32>
    %408 = arith.negf %407 : vector<2x16xf32>
    %409 = math.exp %408 : vector<2x16xf32>
    %cst_112 = arith.constant 1.000000e+00 : f32
    %410 = vector.broadcast %cst_112 : f32 to vector<2x16xf32>
    %411 = arith.addf %410, %409 : vector<2x16xf32>
    %412 = arith.divf %410, %411 : vector<2x16xf32>
    %413 = vector.extract_strided_slice %400 {offsets = [0, 32], sizes = [2, 16], strides = [1, 1]} : vector<2x64xf32> to vector<2x16xf32>
    %414 = math.tanh %413 : vector<2x16xf32>
    %415 = vector.extract_strided_slice %400 {offsets = [0, 48], sizes = [2, 16], strides = [1, 1]} : vector<2x64xf32> to vector<2x16xf32>
    %416 = arith.negf %415 : vector<2x16xf32>
    %417 = math.exp %416 : vector<2x16xf32>
    %cst_113 = arith.constant 1.000000e+00 : f32
    %418 = vector.broadcast %cst_113 : f32 to vector<2x16xf32>
    %419 = arith.addf %418, %417 : vector<2x16xf32>
    %420 = arith.divf %418, %419 : vector<2x16xf32>
    %421 = arith.mulf %412, %395 : vector<2x16xf32>
    %422 = arith.mulf %406, %414 : vector<2x16xf32>
    %423 = arith.addf %421, %422 : vector<2x16xf32>
    %424 = math.tanh %423 : vector<2x16xf32>
    %425 = arith.mulf %420, %424 : vector<2x16xf32>
    %426 = vector.broadcast %31 : vector<2x1xf32> to vector<2x16xf32>
    %427 = arith.mulf %426, %423 : vector<2x16xf32>
    %cst_114 = arith.constant 1.000000e+00 : f32
    %428 = vector.broadcast %cst_114 : f32 to vector<2x1xf32>
    %429 = arith.subf %428, %31 : vector<2x1xf32>
    %430 = vector.broadcast %429 : vector<2x1xf32> to vector<2x16xf32>
    %431 = arith.mulf %430, %395 : vector<2x16xf32>
    %432 = arith.addf %427, %431 : vector<2x16xf32>
    %433 = vector.broadcast %31 : vector<2x1xf32> to vector<2x16xf32>
    %434 = arith.mulf %433, %425 : vector<2x16xf32>
    %cst_115 = arith.constant 1.000000e+00 : f32
    %435 = vector.broadcast %cst_115 : f32 to vector<2x1xf32>
    %436 = arith.subf %435, %31 : vector<2x1xf32>
    %437 = vector.broadcast %436 : vector<2x1xf32> to vector<2x16xf32>
    %438 = arith.mulf %437, %394 : vector<2x16xf32>
    %439 = arith.addf %434, %438 : vector<2x16xf32>
    %440 = vector.broadcast %31 : vector<2x1xf32> to vector<2x16xf32>
    %441 = arith.mulf %440, %425 : vector<2x16xf32>
    %cst_116 = arith.constant dense<0.000000e+00> : vector<2x64xf32>
    %442 = tpu.matmul %13, %391, %cst_116 {dimension_numbers = #tpu.dot_dimension_numbers<[1], [0], [0], [1], [0, 0, 1, 1], [], []>} : vector<2x16xf32>, vector<16x64xf32>, vector<2x64xf32> -> vector<2x64xf32>
    %443 = vector.broadcast %393 : vector<1x64xf32> to vector<2x64xf32>
    %444 = arith.addf %443, %442 : vector<2x64xf32>
    %cst_117 = arith.constant dense<0.000000e+00> : vector<2x64xf32>
    %445 = tpu.matmul %439, %392, %cst_117 {dimension_numbers = #tpu.dot_dimension_numbers<[1], [0], [0], [1], [0, 0, 1, 1], [], []>} : vector<2x16xf32>, vector<16x64xf32>, vector<2x64xf32> -> vector<2x64xf32>
    %446 = arith.addf %444, %445 : vector<2x64xf32>
    %447 = vector.extract_strided_slice %446 {offsets = [0, 0], sizes = [2, 16], strides = [1, 1]} : vector<2x64xf32> to vector<2x16xf32>
    %448 = arith.negf %447 : vector<2x16xf32>
    %449 = math.exp %448 : vector<2x16xf32>
    %cst_118 = arith.constant 1.000000e+00 : f32
    %450 = vector.broadcast %cst_118 : f32 to vector<2x16xf32>
    %451 = arith.addf %450, %449 : vector<2x16xf32>
    %452 = arith.divf %450, %451 : vector<2x16xf32>
    %453 = vector.extract_strided_slice %446 {offsets = [0, 16], sizes = [2, 16], strides = [1, 1]} : vector<2x64xf32> to vector<2x16xf32>
    %454 = arith.negf %453 : vector<2x16xf32>
    %455 = math.exp %454 : vector<2x16xf32>
    %cst_119 = arith.constant 1.000000e+00 : f32
    %456 = vector.broadcast %cst_119 : f32 to vector<2x16xf32>
    %457 = arith.addf %456, %455 : vector<2x16xf32>
    %458 = arith.divf %456, %457 : vector<2x16xf32>
    %459 = vector.extract_strided_slice %446 {offsets = [0, 32], sizes = [2, 16], strides = [1, 1]} : vector<2x64xf32> to vector<2x16xf32>
    %460 = math.tanh %459 : vector<2x16xf32>
    %461 = vector.extract_strided_slice %446 {offsets = [0, 48], sizes = [2, 16], strides = [1, 1]} : vector<2x64xf32> to vector<2x16xf32>
    %462 = arith.negf %461 : vector<2x16xf32>
    %463 = math.exp %462 : vector<2x16xf32>
    %cst_120 = arith.constant 1.000000e+00 : f32
    %464 = vector.broadcast %cst_120 : f32 to vector<2x16xf32>
    %465 = arith.addf %464, %463 : vector<2x16xf32>
    %466 = arith.divf %464, %465 : vector<2x16xf32>
    %467 = arith.mulf %458, %432 : vector<2x16xf32>
    %468 = arith.mulf %452, %460 : vector<2x16xf32>
    %469 = arith.addf %467, %468 : vector<2x16xf32>
    %470 = math.tanh %469 : vector<2x16xf32>
    %471 = arith.mulf %466, %470 : vector<2x16xf32>
    %472 = vector.broadcast %29 : vector<2x1xf32> to vector<2x16xf32>
    %473 = arith.mulf %472, %469 : vector<2x16xf32>
    %cst_121 = arith.constant 1.000000e+00 : f32
    %474 = vector.broadcast %cst_121 : f32 to vector<2x1xf32>
    %475 = arith.subf %474, %29 : vector<2x1xf32>
    %476 = vector.broadcast %475 : vector<2x1xf32> to vector<2x16xf32>
    %477 = arith.mulf %476, %432 : vector<2x16xf32>
    %478 = arith.addf %473, %477 : vector<2x16xf32>
    %479 = vector.broadcast %29 : vector<2x1xf32> to vector<2x16xf32>
    %480 = arith.mulf %479, %471 : vector<2x16xf32>
    %cst_122 = arith.constant 1.000000e+00 : f32
    %481 = vector.broadcast %cst_122 : f32 to vector<2x1xf32>
    %482 = arith.subf %481, %29 : vector<2x1xf32>
    %483 = vector.broadcast %482 : vector<2x1xf32> to vector<2x16xf32>
    %484 = arith.mulf %483, %439 : vector<2x16xf32>
    %485 = arith.addf %480, %484 : vector<2x16xf32>
    %486 = vector.broadcast %29 : vector<2x1xf32> to vector<2x16xf32>
    %487 = arith.mulf %486, %471 : vector<2x16xf32>
    %cst_123 = arith.constant dense<0.000000e+00> : vector<2x64xf32>
    %488 = tpu.matmul %11, %391, %cst_123 {dimension_numbers = #tpu.dot_dimension_numbers<[1], [0], [0], [1], [0, 0, 1, 1], [], []>} : vector<2x16xf32>, vector<16x64xf32>, vector<2x64xf32> -> vector<2x64xf32>
    %489 = vector.broadcast %393 : vector<1x64xf32> to vector<2x64xf32>
    %490 = arith.addf %489, %488 : vector<2x64xf32>
    %cst_124 = arith.constant dense<0.000000e+00> : vector<2x64xf32>
    %491 = tpu.matmul %485, %392, %cst_124 {dimension_numbers = #tpu.dot_dimension_numbers<[1], [0], [0], [1], [0, 0, 1, 1], [], []>} : vector<2x16xf32>, vector<16x64xf32>, vector<2x64xf32> -> vector<2x64xf32>
    %492 = arith.addf %490, %491 : vector<2x64xf32>
    %493 = vector.extract_strided_slice %492 {offsets = [0, 0], sizes = [2, 16], strides = [1, 1]} : vector<2x64xf32> to vector<2x16xf32>
    %494 = arith.negf %493 : vector<2x16xf32>
    %495 = math.exp %494 : vector<2x16xf32>
    %cst_125 = arith.constant 1.000000e+00 : f32
    %496 = vector.broadcast %cst_125 : f32 to vector<2x16xf32>
    %497 = arith.addf %496, %495 : vector<2x16xf32>
    %498 = arith.divf %496, %497 : vector<2x16xf32>
    %499 = vector.extract_strided_slice %492 {offsets = [0, 16], sizes = [2, 16], strides = [1, 1]} : vector<2x64xf32> to vector<2x16xf32>
    %500 = arith.negf %499 : vector<2x16xf32>
    %501 = math.exp %500 : vector<2x16xf32>
    %cst_126 = arith.constant 1.000000e+00 : f32
    %502 = vector.broadcast %cst_126 : f32 to vector<2x16xf32>
    %503 = arith.addf %502, %501 : vector<2x16xf32>
    %504 = arith.divf %502, %503 : vector<2x16xf32>
    %505 = vector.extract_strided_slice %492 {offsets = [0, 32], sizes = [2, 16], strides = [1, 1]} : vector<2x64xf32> to vector<2x16xf32>
    %506 = math.tanh %505 : vector<2x16xf32>
    %507 = vector.extract_strided_slice %492 {offsets = [0, 48], sizes = [2, 16], strides = [1, 1]} : vector<2x64xf32> to vector<2x16xf32>
    %508 = arith.negf %507 : vector<2x16xf32>
    %509 = math.exp %508 : vector<2x16xf32>
    %cst_127 = arith.constant 1.000000e+00 : f32
    %510 = vector.broadcast %cst_127 : f32 to vector<2x16xf32>
    %511 = arith.addf %510, %509 : vector<2x16xf32>
    %512 = arith.divf %510, %511 : vector<2x16xf32>
    %513 = arith.mulf %504, %478 : vector<2x16xf32>
    %514 = arith.mulf %498, %506 : vector<2x16xf32>
    %515 = arith.addf %513, %514 : vector<2x16xf32>
    %516 = math.tanh %515 : vector<2x16xf32>
    %517 = arith.mulf %512, %516 : vector<2x16xf32>
    %518 = vector.broadcast %27 : vector<2x1xf32> to vector<2x16xf32>
    %519 = arith.mulf %518, %515 : vector<2x16xf32>
    %cst_128 = arith.constant 1.000000e+00 : f32
    %520 = vector.broadcast %cst_128 : f32 to vector<2x1xf32>
    %521 = arith.subf %520, %27 : vector<2x1xf32>
    %522 = vector.broadcast %521 : vector<2x1xf32> to vector<2x16xf32>
    %523 = arith.mulf %522, %478 : vector<2x16xf32>
    %524 = arith.addf %519, %523 : vector<2x16xf32>
    %525 = vector.broadcast %27 : vector<2x1xf32> to vector<2x16xf32>
    %526 = arith.mulf %525, %517 : vector<2x16xf32>
    %cst_129 = arith.constant 1.000000e+00 : f32
    %527 = vector.broadcast %cst_129 : f32 to vector<2x1xf32>
    %528 = arith.subf %527, %27 : vector<2x1xf32>
    %529 = vector.broadcast %528 : vector<2x1xf32> to vector<2x16xf32>
    %530 = arith.mulf %529, %485 : vector<2x16xf32>
    %531 = arith.addf %526, %530 : vector<2x16xf32>
    %532 = vector.broadcast %27 : vector<2x1xf32> to vector<2x16xf32>
    %533 = arith.mulf %532, %517 : vector<2x16xf32>
    %cst_130 = arith.constant dense<0.000000e+00> : vector<2x64xf32>
    %534 = tpu.matmul %9, %391, %cst_130 {dimension_numbers = #tpu.dot_dimension_numbers<[1], [0], [0], [1], [0, 0, 1, 1], [], []>} : vector<2x16xf32>, vector<16x64xf32>, vector<2x64xf32> -> vector<2x64xf32>
    %535 = vector.broadcast %393 : vector<1x64xf32> to vector<2x64xf32>
    %536 = arith.addf %535, %534 : vector<2x64xf32>
    %cst_131 = arith.constant dense<0.000000e+00> : vector<2x64xf32>
    %537 = tpu.matmul %531, %392, %cst_131 {dimension_numbers = #tpu.dot_dimension_numbers<[1], [0], [0], [1], [0, 0, 1, 1], [], []>} : vector<2x16xf32>, vector<16x64xf32>, vector<2x64xf32> -> vector<2x64xf32>
    %538 = arith.addf %536, %537 : vector<2x64xf32>
    %539 = vector.extract_strided_slice %538 {offsets = [0, 0], sizes = [2, 16], strides = [1, 1]} : vector<2x64xf32> to vector<2x16xf32>
    %540 = arith.negf %539 : vector<2x16xf32>
    %541 = math.exp %540 : vector<2x16xf32>
    %cst_132 = arith.constant 1.000000e+00 : f32
    %542 = vector.broadcast %cst_132 : f32 to vector<2x16xf32>
    %543 = arith.addf %542, %541 : vector<2x16xf32>
    %544 = arith.divf %542, %543 : vector<2x16xf32>
    %545 = vector.extract_strided_slice %538 {offsets = [0, 16], sizes = [2, 16], strides = [1, 1]} : vector<2x64xf32> to vector<2x16xf32>
    %546 = arith.negf %545 : vector<2x16xf32>
    %547 = math.exp %546 : vector<2x16xf32>
    %cst_133 = arith.constant 1.000000e+00 : f32
    %548 = vector.broadcast %cst_133 : f32 to vector<2x16xf32>
    %549 = arith.addf %548, %547 : vector<2x16xf32>
    %550 = arith.divf %548, %549 : vector<2x16xf32>
    %551 = vector.extract_strided_slice %538 {offsets = [0, 32], sizes = [2, 16], strides = [1, 1]} : vector<2x64xf32> to vector<2x16xf32>
    %552 = math.tanh %551 : vector<2x16xf32>
    %553 = vector.extract_strided_slice %538 {offsets = [0, 48], sizes = [2, 16], strides = [1, 1]} : vector<2x64xf32> to vector<2x16xf32>
    %554 = arith.negf %553 : vector<2x16xf32>
    %555 = math.exp %554 : vector<2x16xf32>
    %cst_134 = arith.constant 1.000000e+00 : f32
    %556 = vector.broadcast %cst_134 : f32 to vector<2x16xf32>
    %557 = arith.addf %556, %555 : vector<2x16xf32>
    %558 = arith.divf %556, %557 : vector<2x16xf32>
    %559 = arith.mulf %550, %524 : vector<2x16xf32>
    %560 = arith.mulf %544, %552 : vector<2x16xf32>
    %561 = arith.addf %559, %560 : vector<2x16xf32>
    %562 = math.tanh %561 : vector<2x16xf32>
    %563 = arith.mulf %558, %562 : vector<2x16xf32>
    %564 = vector.broadcast %25 : vector<2x1xf32> to vector<2x16xf32>
    %565 = arith.mulf %564, %561 : vector<2x16xf32>
    %cst_135 = arith.constant 1.000000e+00 : f32
    %566 = vector.broadcast %cst_135 : f32 to vector<2x1xf32>
    %567 = arith.subf %566, %25 : vector<2x1xf32>
    %568 = vector.broadcast %567 : vector<2x1xf32> to vector<2x16xf32>
    %569 = arith.mulf %568, %524 : vector<2x16xf32>
    %570 = arith.addf %565, %569 : vector<2x16xf32>
    %571 = vector.broadcast %25 : vector<2x1xf32> to vector<2x16xf32>
    %572 = arith.mulf %571, %563 : vector<2x16xf32>
    %cst_136 = arith.constant 1.000000e+00 : f32
    %573 = vector.broadcast %cst_136 : f32 to vector<2x1xf32>
    %574 = arith.subf %573, %25 : vector<2x1xf32>
    %575 = vector.broadcast %574 : vector<2x1xf32> to vector<2x16xf32>
    %576 = arith.mulf %575, %531 : vector<2x16xf32>
    %577 = arith.addf %572, %576 : vector<2x16xf32>
    %578 = vector.broadcast %25 : vector<2x1xf32> to vector<2x16xf32>
    %579 = arith.mulf %578, %563 : vector<2x16xf32>
    %cst_137 = arith.constant dense<0.000000e+00> : vector<2x64xf32>
    %580 = tpu.matmul %7, %391, %cst_137 {dimension_numbers = #tpu.dot_dimension_numbers<[1], [0], [0], [1], [0, 0, 1, 1], [], []>} : vector<2x16xf32>, vector<16x64xf32>, vector<2x64xf32> -> vector<2x64xf32>
    %581 = vector.broadcast %393 : vector<1x64xf32> to vector<2x64xf32>
    %582 = arith.addf %581, %580 : vector<2x64xf32>
    %cst_138 = arith.constant dense<0.000000e+00> : vector<2x64xf32>
    %583 = tpu.matmul %577, %392, %cst_138 {dimension_numbers = #tpu.dot_dimension_numbers<[1], [0], [0], [1], [0, 0, 1, 1], [], []>} : vector<2x16xf32>, vector<16x64xf32>, vector<2x64xf32> -> vector<2x64xf32>
    %584 = arith.addf %582, %583 : vector<2x64xf32>
    %585 = vector.extract_strided_slice %584 {offsets = [0, 0], sizes = [2, 16], strides = [1, 1]} : vector<2x64xf32> to vector<2x16xf32>
    %586 = arith.negf %585 : vector<2x16xf32>
    %587 = math.exp %586 : vector<2x16xf32>
    %cst_139 = arith.constant 1.000000e+00 : f32
    %588 = vector.broadcast %cst_139 : f32 to vector<2x16xf32>
    %589 = arith.addf %588, %587 : vector<2x16xf32>
    %590 = arith.divf %588, %589 : vector<2x16xf32>
    %591 = vector.extract_strided_slice %584 {offsets = [0, 16], sizes = [2, 16], strides = [1, 1]} : vector<2x64xf32> to vector<2x16xf32>
    %592 = arith.negf %591 : vector<2x16xf32>
    %593 = math.exp %592 : vector<2x16xf32>
    %cst_140 = arith.constant 1.000000e+00 : f32
    %594 = vector.broadcast %cst_140 : f32 to vector<2x16xf32>
    %595 = arith.addf %594, %593 : vector<2x16xf32>
    %596 = arith.divf %594, %595 : vector<2x16xf32>
    %597 = vector.extract_strided_slice %584 {offsets = [0, 32], sizes = [2, 16], strides = [1, 1]} : vector<2x64xf32> to vector<2x16xf32>
    %598 = math.tanh %597 : vector<2x16xf32>
    %599 = vector.extract_strided_slice %584 {offsets = [0, 48], sizes = [2, 16], strides = [1, 1]} : vector<2x64xf32> to vector<2x16xf32>
    %600 = arith.negf %599 : vector<2x16xf32>
    %601 = math.exp %600 : vector<2x16xf32>
    %cst_141 = arith.constant 1.000000e+00 : f32
    %602 = vector.broadcast %cst_141 : f32 to vector<2x16xf32>
    %603 = arith.addf %602, %601 : vector<2x16xf32>
    %604 = arith.divf %602, %603 : vector<2x16xf32>
    %605 = arith.mulf %596, %570 : vector<2x16xf32>
    %606 = arith.mulf %590, %598 : vector<2x16xf32>
    %607 = arith.addf %605, %606 : vector<2x16xf32>
    %608 = math.tanh %607 : vector<2x16xf32>
    %609 = arith.mulf %604, %608 : vector<2x16xf32>
    %610 = vector.broadcast %23 : vector<2x1xf32> to vector<2x16xf32>
    %611 = arith.mulf %610, %607 : vector<2x16xf32>
    %cst_142 = arith.constant 1.000000e+00 : f32
    %612 = vector.broadcast %cst_142 : f32 to vector<2x1xf32>
    %613 = arith.subf %612, %23 : vector<2x1xf32>
    %614 = vector.broadcast %613 : vector<2x1xf32> to vector<2x16xf32>
    %615 = arith.mulf %614, %570 : vector<2x16xf32>
    %616 = arith.addf %611, %615 : vector<2x16xf32>
    %617 = vector.broadcast %23 : vector<2x1xf32> to vector<2x16xf32>
    %618 = arith.mulf %617, %609 : vector<2x16xf32>
    %cst_143 = arith.constant 1.000000e+00 : f32
    %619 = vector.broadcast %cst_143 : f32 to vector<2x1xf32>
    %620 = arith.subf %619, %23 : vector<2x1xf32>
    %621 = vector.broadcast %620 : vector<2x1xf32> to vector<2x16xf32>
    %622 = arith.mulf %621, %577 : vector<2x16xf32>
    %623 = arith.addf %618, %622 : vector<2x16xf32>
    %624 = vector.broadcast %23 : vector<2x1xf32> to vector<2x16xf32>
    %625 = arith.mulf %624, %609 : vector<2x16xf32>
    %cst_144 = arith.constant dense<0.000000e+00> : vector<2x64xf32>
    %626 = tpu.matmul %5, %391, %cst_144 {dimension_numbers = #tpu.dot_dimension_numbers<[1], [0], [0], [1], [0, 0, 1, 1], [], []>} : vector<2x16xf32>, vector<16x64xf32>, vector<2x64xf32> -> vector<2x64xf32>
    %627 = vector.broadcast %393 : vector<1x64xf32> to vector<2x64xf32>
    %628 = arith.addf %627, %626 : vector<2x64xf32>
    %cst_145 = arith.constant dense<0.000000e+00> : vector<2x64xf32>
    %629 = tpu.matmul %623, %392, %cst_145 {dimension_numbers = #tpu.dot_dimension_numbers<[1], [0], [0], [1], [0, 0, 1, 1], [], []>} : vector<2x16xf32>, vector<16x64xf32>, vector<2x64xf32> -> vector<2x64xf32>
    %630 = arith.addf %628, %629 : vector<2x64xf32>
    %631 = vector.extract_strided_slice %630 {offsets = [0, 0], sizes = [2, 16], strides = [1, 1]} : vector<2x64xf32> to vector<2x16xf32>
    %632 = arith.negf %631 : vector<2x16xf32>
    %633 = math.exp %632 : vector<2x16xf32>
    %cst_146 = arith.constant 1.000000e+00 : f32
    %634 = vector.broadcast %cst_146 : f32 to vector<2x16xf32>
    %635 = arith.addf %634, %633 : vector<2x16xf32>
    %636 = arith.divf %634, %635 : vector<2x16xf32>
    %637 = vector.extract_strided_slice %630 {offsets = [0, 16], sizes = [2, 16], strides = [1, 1]} : vector<2x64xf32> to vector<2x16xf32>
    %638 = arith.negf %637 : vector<2x16xf32>
    %639 = math.exp %638 : vector<2x16xf32>
    %cst_147 = arith.constant 1.000000e+00 : f32
    %640 = vector.broadcast %cst_147 : f32 to vector<2x16xf32>
    %641 = arith.addf %640, %639 : vector<2x16xf32>
    %642 = arith.divf %640, %641 : vector<2x16xf32>
    %643 = vector.extract_strided_slice %630 {offsets = [0, 32], sizes = [2, 16], strides = [1, 1]} : vector<2x64xf32> to vector<2x16xf32>
    %644 = math.tanh %643 : vector<2x16xf32>
    %645 = vector.extract_strided_slice %630 {offsets = [0, 48], sizes = [2, 16], strides = [1, 1]} : vector<2x64xf32> to vector<2x16xf32>
    %646 = arith.negf %645 : vector<2x16xf32>
    %647 = math.exp %646 : vector<2x16xf32>
    %cst_148 = arith.constant 1.000000e+00 : f32
    %648 = vector.broadcast %cst_148 : f32 to vector<2x16xf32>
    %649 = arith.addf %648, %647 : vector<2x16xf32>
    %650 = arith.divf %648, %649 : vector<2x16xf32>
    %651 = arith.mulf %642, %616 : vector<2x16xf32>
    %652 = arith.mulf %636, %644 : vector<2x16xf32>
    %653 = arith.addf %651, %652 : vector<2x16xf32>
    %654 = math.tanh %653 : vector<2x16xf32>
    %655 = arith.mulf %650, %654 : vector<2x16xf32>
    %656 = vector.broadcast %21 : vector<2x1xf32> to vector<2x16xf32>
    %657 = arith.mulf %656, %653 : vector<2x16xf32>
    %cst_149 = arith.constant 1.000000e+00 : f32
    %658 = vector.broadcast %cst_149 : f32 to vector<2x1xf32>
    %659 = arith.subf %658, %21 : vector<2x1xf32>
    %660 = vector.broadcast %659 : vector<2x1xf32> to vector<2x16xf32>
    %661 = arith.mulf %660, %616 : vector<2x16xf32>
    %662 = arith.addf %657, %661 : vector<2x16xf32>
    %663 = vector.broadcast %21 : vector<2x1xf32> to vector<2x16xf32>
    %664 = arith.mulf %663, %655 : vector<2x16xf32>
    %cst_150 = arith.constant 1.000000e+00 : f32
    %665 = vector.broadcast %cst_150 : f32 to vector<2x1xf32>
    %666 = arith.subf %665, %21 : vector<2x1xf32>
    %667 = vector.broadcast %666 : vector<2x1xf32> to vector<2x16xf32>
    %668 = arith.mulf %667, %623 : vector<2x16xf32>
    %669 = arith.addf %664, %668 : vector<2x16xf32>
    %670 = vector.broadcast %21 : vector<2x1xf32> to vector<2x16xf32>
    %671 = arith.mulf %670, %655 : vector<2x16xf32>
    %cst_151 = arith.constant dense<0.000000e+00> : vector<2x64xf32>
    %672 = tpu.matmul %3, %391, %cst_151 {dimension_numbers = #tpu.dot_dimension_numbers<[1], [0], [0], [1], [0, 0, 1, 1], [], []>} : vector<2x16xf32>, vector<16x64xf32>, vector<2x64xf32> -> vector<2x64xf32>
    %673 = vector.broadcast %393 : vector<1x64xf32> to vector<2x64xf32>
    %674 = arith.addf %673, %672 : vector<2x64xf32>
    %cst_152 = arith.constant dense<0.000000e+00> : vector<2x64xf32>
    %675 = tpu.matmul %669, %392, %cst_152 {dimension_numbers = #tpu.dot_dimension_numbers<[1], [0], [0], [1], [0, 0, 1, 1], [], []>} : vector<2x16xf32>, vector<16x64xf32>, vector<2x64xf32> -> vector<2x64xf32>
    %676 = arith.addf %674, %675 : vector<2x64xf32>
    %677 = vector.extract_strided_slice %676 {offsets = [0, 0], sizes = [2, 16], strides = [1, 1]} : vector<2x64xf32> to vector<2x16xf32>
    %678 = arith.negf %677 : vector<2x16xf32>
    %679 = math.exp %678 : vector<2x16xf32>
    %cst_153 = arith.constant 1.000000e+00 : f32
    %680 = vector.broadcast %cst_153 : f32 to vector<2x16xf32>
    %681 = arith.addf %680, %679 : vector<2x16xf32>
    %682 = arith.divf %680, %681 : vector<2x16xf32>
    %683 = vector.extract_strided_slice %676 {offsets = [0, 16], sizes = [2, 16], strides = [1, 1]} : vector<2x64xf32> to vector<2x16xf32>
    %684 = arith.negf %683 : vector<2x16xf32>
    %685 = math.exp %684 : vector<2x16xf32>
    %cst_154 = arith.constant 1.000000e+00 : f32
    %686 = vector.broadcast %cst_154 : f32 to vector<2x16xf32>
    %687 = arith.addf %686, %685 : vector<2x16xf32>
    %688 = arith.divf %686, %687 : vector<2x16xf32>
    %689 = vector.extract_strided_slice %676 {offsets = [0, 32], sizes = [2, 16], strides = [1, 1]} : vector<2x64xf32> to vector<2x16xf32>
    %690 = math.tanh %689 : vector<2x16xf32>
    %691 = vector.extract_strided_slice %676 {offsets = [0, 48], sizes = [2, 16], strides = [1, 1]} : vector<2x64xf32> to vector<2x16xf32>
    %692 = arith.negf %691 : vector<2x16xf32>
    %693 = math.exp %692 : vector<2x16xf32>
    %cst_155 = arith.constant 1.000000e+00 : f32
    %694 = vector.broadcast %cst_155 : f32 to vector<2x16xf32>
    %695 = arith.addf %694, %693 : vector<2x16xf32>
    %696 = arith.divf %694, %695 : vector<2x16xf32>
    %697 = arith.mulf %688, %662 : vector<2x16xf32>
    %698 = arith.mulf %682, %690 : vector<2x16xf32>
    %699 = arith.addf %697, %698 : vector<2x16xf32>
    %700 = math.tanh %699 : vector<2x16xf32>
    %701 = arith.mulf %696, %700 : vector<2x16xf32>
    %702 = vector.broadcast %19 : vector<2x1xf32> to vector<2x16xf32>
    %703 = arith.mulf %702, %699 : vector<2x16xf32>
    %cst_156 = arith.constant 1.000000e+00 : f32
    %704 = vector.broadcast %cst_156 : f32 to vector<2x1xf32>
    %705 = arith.subf %704, %19 : vector<2x1xf32>
    %706 = vector.broadcast %705 : vector<2x1xf32> to vector<2x16xf32>
    %707 = arith.mulf %706, %662 : vector<2x16xf32>
    %708 = arith.addf %703, %707 : vector<2x16xf32>
    %709 = vector.broadcast %19 : vector<2x1xf32> to vector<2x16xf32>
    %710 = arith.mulf %709, %701 : vector<2x16xf32>
    %cst_157 = arith.constant 1.000000e+00 : f32
    %711 = vector.broadcast %cst_157 : f32 to vector<2x1xf32>
    %712 = arith.subf %711, %19 : vector<2x1xf32>
    %713 = vector.broadcast %712 : vector<2x1xf32> to vector<2x16xf32>
    %714 = arith.mulf %713, %669 : vector<2x16xf32>
    %715 = arith.addf %710, %714 : vector<2x16xf32>
    %716 = vector.broadcast %19 : vector<2x1xf32> to vector<2x16xf32>
    %717 = arith.mulf %716, %701 : vector<2x16xf32>
    %cst_158 = arith.constant dense<0.000000e+00> : vector<2x64xf32>
    %718 = tpu.matmul %1, %391, %cst_158 {dimension_numbers = #tpu.dot_dimension_numbers<[1], [0], [0], [1], [0, 0, 1, 1], [], []>} : vector<2x16xf32>, vector<16x64xf32>, vector<2x64xf32> -> vector<2x64xf32>
    %719 = vector.broadcast %393 : vector<1x64xf32> to vector<2x64xf32>
    %720 = arith.addf %719, %718 : vector<2x64xf32>
    %cst_159 = arith.constant dense<0.000000e+00> : vector<2x64xf32>
    %721 = tpu.matmul %715, %392, %cst_159 {dimension_numbers = #tpu.dot_dimension_numbers<[1], [0], [0], [1], [0, 0, 1, 1], [], []>} : vector<2x16xf32>, vector<16x64xf32>, vector<2x64xf32> -> vector<2x64xf32>
    %722 = arith.addf %720, %721 : vector<2x64xf32>
    %723 = vector.extract_strided_slice %722 {offsets = [0, 0], sizes = [2, 16], strides = [1, 1]} : vector<2x64xf32> to vector<2x16xf32>
    %724 = arith.negf %723 : vector<2x16xf32>
    %725 = math.exp %724 : vector<2x16xf32>
    %cst_160 = arith.constant 1.000000e+00 : f32
    %726 = vector.broadcast %cst_160 : f32 to vector<2x16xf32>
    %727 = arith.addf %726, %725 : vector<2x16xf32>
    %728 = arith.divf %726, %727 : vector<2x16xf32>
    %729 = vector.extract_strided_slice %722 {offsets = [0, 16], sizes = [2, 16], strides = [1, 1]} : vector<2x64xf32> to vector<2x16xf32>
    %730 = arith.negf %729 : vector<2x16xf32>
    %731 = math.exp %730 : vector<2x16xf32>
    %cst_161 = arith.constant 1.000000e+00 : f32
    %732 = vector.broadcast %cst_161 : f32 to vector<2x16xf32>
    %733 = arith.addf %732, %731 : vector<2x16xf32>
    %734 = arith.divf %732, %733 : vector<2x16xf32>
    %735 = vector.extract_strided_slice %722 {offsets = [0, 32], sizes = [2, 16], strides = [1, 1]} : vector<2x64xf32> to vector<2x16xf32>
    %736 = math.tanh %735 : vector<2x16xf32>
    %737 = vector.extract_strided_slice %722 {offsets = [0, 48], sizes = [2, 16], strides = [1, 1]} : vector<2x64xf32> to vector<2x16xf32>
    %738 = arith.negf %737 : vector<2x16xf32>
    %739 = math.exp %738 : vector<2x16xf32>
    %cst_162 = arith.constant 1.000000e+00 : f32
    %740 = vector.broadcast %cst_162 : f32 to vector<2x16xf32>
    %741 = arith.addf %740, %739 : vector<2x16xf32>
    %742 = arith.divf %740, %741 : vector<2x16xf32>
    %743 = arith.mulf %734, %708 : vector<2x16xf32>
    %744 = arith.mulf %728, %736 : vector<2x16xf32>
    %745 = arith.addf %743, %744 : vector<2x16xf32>
    %746 = math.tanh %745 : vector<2x16xf32>
    %747 = arith.mulf %742, %746 : vector<2x16xf32>
    %748 = vector.broadcast %17 : vector<2x1xf32> to vector<2x16xf32>
    %749 = arith.mulf %748, %747 : vector<2x16xf32>
    %c0_163 = arith.constant 0 : index
    %c0_164 = arith.constant 0 : index
    %750 = vector.load %arg8[%c0_163, %c0_164] : memref<32x64xf32, #tpu.memory_space<vmem>>, vector<16x64xf32>
    %c16 = arith.constant 16 : index
    %c0_165 = arith.constant 0 : index
    %751 = vector.load %arg8[%c16, %c0_165] : memref<32x64xf32, #tpu.memory_space<vmem>>, vector<16x64xf32>
    %c0_166 = arith.constant 0 : index
    %c0_167 = arith.constant 0 : index
    %752 = vector.load %arg9[%c0_166, %c0_167] : memref<16x64xf32, #tpu.memory_space<vmem>>, vector<16x64xf32>
    %c0_168 = arith.constant 0 : index
    %c0_169 = arith.constant 0 : index
    %753 = vector.load %arg10[%c0_168, %c0_169] : memref<1x64xf32, #tpu.memory_space<vmem>>, vector<1x64xf32>
    %cst_170 = arith.constant 0.000000e+00 : f32
    %754 = vector.broadcast %cst_170 : f32 to vector<2x16xf32>
    %cst_171 = arith.constant 0.000000e+00 : f32
    %755 = vector.broadcast %cst_171 : f32 to vector<2x16xf32>
    %cst_172 = arith.constant dense<0.000000e+00> : vector<2x64xf32>
    %756 = tpu.matmul %82, %750, %cst_172 {dimension_numbers = #tpu.dot_dimension_numbers<[1], [0], [0], [1], [0, 0, 1, 1], [], []>} : vector<2x16xf32>, vector<16x64xf32>, vector<2x64xf32> -> vector<2x64xf32>
    %757 = vector.broadcast %753 : vector<1x64xf32> to vector<2x64xf32>
    %758 = arith.addf %757, %756 : vector<2x64xf32>
    %cst_173 = arith.constant dense<0.000000e+00> : vector<2x64xf32>
    %759 = tpu.matmul %749, %751, %cst_173 {dimension_numbers = #tpu.dot_dimension_numbers<[1], [0], [0], [1], [0, 0, 1, 1], [], []>} : vector<2x16xf32>, vector<16x64xf32>, vector<2x64xf32> -> vector<2x64xf32>
    %760 = arith.addf %758, %759 : vector<2x64xf32>
    %cst_174 = arith.constant dense<0.000000e+00> : vector<2x64xf32>
    %761 = tpu.matmul %754, %752, %cst_174 {dimension_numbers = #tpu.dot_dimension_numbers<[1], [0], [0], [1], [0, 0, 1, 1], [], []>} : vector<2x16xf32>, vector<16x64xf32>, vector<2x64xf32> -> vector<2x64xf32>
    %762 = arith.addf %760, %761 : vector<2x64xf32>
    %763 = vector.extract_strided_slice %762 {offsets = [0, 0], sizes = [2, 16], strides = [1, 1]} : vector<2x64xf32> to vector<2x16xf32>
    %764 = arith.negf %763 : vector<2x16xf32>
    %765 = math.exp %764 : vector<2x16xf32>
    %cst_175 = arith.constant 1.000000e+00 : f32
    %766 = vector.broadcast %cst_175 : f32 to vector<2x16xf32>
    %767 = arith.addf %766, %765 : vector<2x16xf32>
    %768 = arith.divf %766, %767 : vector<2x16xf32>
    %769 = vector.extract_strided_slice %762 {offsets = [0, 16], sizes = [2, 16], strides = [1, 1]} : vector<2x64xf32> to vector<2x16xf32>
    %770 = arith.negf %769 : vector<2x16xf32>
    %771 = math.exp %770 : vector<2x16xf32>
    %cst_176 = arith.constant 1.000000e+00 : f32
    %772 = vector.broadcast %cst_176 : f32 to vector<2x16xf32>
    %773 = arith.addf %772, %771 : vector<2x16xf32>
    %774 = arith.divf %772, %773 : vector<2x16xf32>
    %775 = vector.extract_strided_slice %762 {offsets = [0, 32], sizes = [2, 16], strides = [1, 1]} : vector<2x64xf32> to vector<2x16xf32>
    %776 = math.tanh %775 : vector<2x16xf32>
    %777 = vector.extract_strided_slice %762 {offsets = [0, 48], sizes = [2, 16], strides = [1, 1]} : vector<2x64xf32> to vector<2x16xf32>
    %778 = arith.negf %777 : vector<2x16xf32>
    %779 = math.exp %778 : vector<2x16xf32>
    %cst_177 = arith.constant 1.000000e+00 : f32
    %780 = vector.broadcast %cst_177 : f32 to vector<2x16xf32>
    %781 = arith.addf %780, %779 : vector<2x16xf32>
    %782 = arith.divf %780, %781 : vector<2x16xf32>
    %783 = arith.mulf %774, %755 : vector<2x16xf32>
    %784 = arith.mulf %768, %776 : vector<2x16xf32>
    %785 = arith.addf %783, %784 : vector<2x16xf32>
    %786 = math.tanh %785 : vector<2x16xf32>
    %787 = arith.mulf %782, %786 : vector<2x16xf32>
    %788 = vector.broadcast %17 : vector<2x1xf32> to vector<2x16xf32>
    %789 = arith.mulf %788, %785 : vector<2x16xf32>
    %cst_178 = arith.constant 1.000000e+00 : f32
    %790 = vector.broadcast %cst_178 : f32 to vector<2x1xf32>
    %791 = arith.subf %790, %17 : vector<2x1xf32>
    %792 = vector.broadcast %791 : vector<2x1xf32> to vector<2x16xf32>
    %793 = arith.mulf %792, %755 : vector<2x16xf32>
    %794 = arith.addf %789, %793 : vector<2x16xf32>
    %795 = vector.broadcast %17 : vector<2x1xf32> to vector<2x16xf32>
    %796 = arith.mulf %795, %787 : vector<2x16xf32>
    %cst_179 = arith.constant 1.000000e+00 : f32
    %797 = vector.broadcast %cst_179 : f32 to vector<2x1xf32>
    %798 = arith.subf %797, %17 : vector<2x1xf32>
    %799 = vector.broadcast %798 : vector<2x1xf32> to vector<2x16xf32>
    %800 = arith.mulf %799, %754 : vector<2x16xf32>
    %801 = arith.addf %796, %800 : vector<2x16xf32>
    %802 = vector.broadcast %17 : vector<2x1xf32> to vector<2x16xf32>
    %803 = arith.mulf %802, %787 : vector<2x16xf32>
    %cst_180 = arith.constant dense<0.000000e+00> : vector<2x64xf32>
    %804 = tpu.matmul %128, %750, %cst_180 {dimension_numbers = #tpu.dot_dimension_numbers<[1], [0], [0], [1], [0, 0, 1, 1], [], []>} : vector<2x16xf32>, vector<16x64xf32>, vector<2x64xf32> -> vector<2x64xf32>
    %805 = vector.broadcast %753 : vector<1x64xf32> to vector<2x64xf32>
    %806 = arith.addf %805, %804 : vector<2x64xf32>
    %cst_181 = arith.constant dense<0.000000e+00> : vector<2x64xf32>
    %807 = tpu.matmul %717, %751, %cst_181 {dimension_numbers = #tpu.dot_dimension_numbers<[1], [0], [0], [1], [0, 0, 1, 1], [], []>} : vector<2x16xf32>, vector<16x64xf32>, vector<2x64xf32> -> vector<2x64xf32>
    %808 = arith.addf %806, %807 : vector<2x64xf32>
    %cst_182 = arith.constant dense<0.000000e+00> : vector<2x64xf32>
    %809 = tpu.matmul %801, %752, %cst_182 {dimension_numbers = #tpu.dot_dimension_numbers<[1], [0], [0], [1], [0, 0, 1, 1], [], []>} : vector<2x16xf32>, vector<16x64xf32>, vector<2x64xf32> -> vector<2x64xf32>
    %810 = arith.addf %808, %809 : vector<2x64xf32>
    %811 = vector.extract_strided_slice %810 {offsets = [0, 0], sizes = [2, 16], strides = [1, 1]} : vector<2x64xf32> to vector<2x16xf32>
    %812 = arith.negf %811 : vector<2x16xf32>
    %813 = math.exp %812 : vector<2x16xf32>
    %cst_183 = arith.constant 1.000000e+00 : f32
    %814 = vector.broadcast %cst_183 : f32 to vector<2x16xf32>
    %815 = arith.addf %814, %813 : vector<2x16xf32>
    %816 = arith.divf %814, %815 : vector<2x16xf32>
    %817 = vector.extract_strided_slice %810 {offsets = [0, 16], sizes = [2, 16], strides = [1, 1]} : vector<2x64xf32> to vector<2x16xf32>
    %818 = arith.negf %817 : vector<2x16xf32>
    %819 = math.exp %818 : vector<2x16xf32>
    %cst_184 = arith.constant 1.000000e+00 : f32
    %820 = vector.broadcast %cst_184 : f32 to vector<2x16xf32>
    %821 = arith.addf %820, %819 : vector<2x16xf32>
    %822 = arith.divf %820, %821 : vector<2x16xf32>
    %823 = vector.extract_strided_slice %810 {offsets = [0, 32], sizes = [2, 16], strides = [1, 1]} : vector<2x64xf32> to vector<2x16xf32>
    %824 = math.tanh %823 : vector<2x16xf32>
    %825 = vector.extract_strided_slice %810 {offsets = [0, 48], sizes = [2, 16], strides = [1, 1]} : vector<2x64xf32> to vector<2x16xf32>
    %826 = arith.negf %825 : vector<2x16xf32>
    %827 = math.exp %826 : vector<2x16xf32>
    %cst_185 = arith.constant 1.000000e+00 : f32
    %828 = vector.broadcast %cst_185 : f32 to vector<2x16xf32>
    %829 = arith.addf %828, %827 : vector<2x16xf32>
    %830 = arith.divf %828, %829 : vector<2x16xf32>
    %831 = arith.mulf %822, %794 : vector<2x16xf32>
    %832 = arith.mulf %816, %824 : vector<2x16xf32>
    %833 = arith.addf %831, %832 : vector<2x16xf32>
    %834 = math.tanh %833 : vector<2x16xf32>
    %835 = arith.mulf %830, %834 : vector<2x16xf32>
    %836 = vector.broadcast %19 : vector<2x1xf32> to vector<2x16xf32>
    %837 = arith.mulf %836, %833 : vector<2x16xf32>
    %cst_186 = arith.constant 1.000000e+00 : f32
    %838 = vector.broadcast %cst_186 : f32 to vector<2x1xf32>
    %839 = arith.subf %838, %19 : vector<2x1xf32>
    %840 = vector.broadcast %839 : vector<2x1xf32> to vector<2x16xf32>
    %841 = arith.mulf %840, %794 : vector<2x16xf32>
    %842 = arith.addf %837, %841 : vector<2x16xf32>
    %843 = vector.broadcast %19 : vector<2x1xf32> to vector<2x16xf32>
    %844 = arith.mulf %843, %835 : vector<2x16xf32>
    %cst_187 = arith.constant 1.000000e+00 : f32
    %845 = vector.broadcast %cst_187 : f32 to vector<2x1xf32>
    %846 = arith.subf %845, %19 : vector<2x1xf32>
    %847 = vector.broadcast %846 : vector<2x1xf32> to vector<2x16xf32>
    %848 = arith.mulf %847, %801 : vector<2x16xf32>
    %849 = arith.addf %844, %848 : vector<2x16xf32>
    %850 = vector.broadcast %19 : vector<2x1xf32> to vector<2x16xf32>
    %851 = arith.mulf %850, %835 : vector<2x16xf32>
    %cst_188 = arith.constant dense<0.000000e+00> : vector<2x64xf32>
    %852 = tpu.matmul %174, %750, %cst_188 {dimension_numbers = #tpu.dot_dimension_numbers<[1], [0], [0], [1], [0, 0, 1, 1], [], []>} : vector<2x16xf32>, vector<16x64xf32>, vector<2x64xf32> -> vector<2x64xf32>
    %853 = vector.broadcast %753 : vector<1x64xf32> to vector<2x64xf32>
    %854 = arith.addf %853, %852 : vector<2x64xf32>
    %cst_189 = arith.constant dense<0.000000e+00> : vector<2x64xf32>
    %855 = tpu.matmul %671, %751, %cst_189 {dimension_numbers = #tpu.dot_dimension_numbers<[1], [0], [0], [1], [0, 0, 1, 1], [], []>} : vector<2x16xf32>, vector<16x64xf32>, vector<2x64xf32> -> vector<2x64xf32>
    %856 = arith.addf %854, %855 : vector<2x64xf32>
    %cst_190 = arith.constant dense<0.000000e+00> : vector<2x64xf32>
    %857 = tpu.matmul %849, %752, %cst_190 {dimension_numbers = #tpu.dot_dimension_numbers<[1], [0], [0], [1], [0, 0, 1, 1], [], []>} : vector<2x16xf32>, vector<16x64xf32>, vector<2x64xf32> -> vector<2x64xf32>
    %858 = arith.addf %856, %857 : vector<2x64xf32>
    %859 = vector.extract_strided_slice %858 {offsets = [0, 0], sizes = [2, 16], strides = [1, 1]} : vector<2x64xf32> to vector<2x16xf32>
    %860 = arith.negf %859 : vector<2x16xf32>
    %861 = math.exp %860 : vector<2x16xf32>
    %cst_191 = arith.constant 1.000000e+00 : f32
    %862 = vector.broadcast %cst_191 : f32 to vector<2x16xf32>
    %863 = arith.addf %862, %861 : vector<2x16xf32>
    %864 = arith.divf %862, %863 : vector<2x16xf32>
    %865 = vector.extract_strided_slice %858 {offsets = [0, 16], sizes = [2, 16], strides = [1, 1]} : vector<2x64xf32> to vector<2x16xf32>
    %866 = arith.negf %865 : vector<2x16xf32>
    %867 = math.exp %866 : vector<2x16xf32>
    %cst_192 = arith.constant 1.000000e+00 : f32
    %868 = vector.broadcast %cst_192 : f32 to vector<2x16xf32>
    %869 = arith.addf %868, %867 : vector<2x16xf32>
    %870 = arith.divf %868, %869 : vector<2x16xf32>
    %871 = vector.extract_strided_slice %858 {offsets = [0, 32], sizes = [2, 16], strides = [1, 1]} : vector<2x64xf32> to vector<2x16xf32>
    %872 = math.tanh %871 : vector<2x16xf32>
    %873 = vector.extract_strided_slice %858 {offsets = [0, 48], sizes = [2, 16], strides = [1, 1]} : vector<2x64xf32> to vector<2x16xf32>
    %874 = arith.negf %873 : vector<2x16xf32>
    %875 = math.exp %874 : vector<2x16xf32>
    %cst_193 = arith.constant 1.000000e+00 : f32
    %876 = vector.broadcast %cst_193 : f32 to vector<2x16xf32>
    %877 = arith.addf %876, %875 : vector<2x16xf32>
    %878 = arith.divf %876, %877 : vector<2x16xf32>
    %879 = arith.mulf %870, %842 : vector<2x16xf32>
    %880 = arith.mulf %864, %872 : vector<2x16xf32>
    %881 = arith.addf %879, %880 : vector<2x16xf32>
    %882 = math.tanh %881 : vector<2x16xf32>
    %883 = arith.mulf %878, %882 : vector<2x16xf32>
    %884 = vector.broadcast %21 : vector<2x1xf32> to vector<2x16xf32>
    %885 = arith.mulf %884, %881 : vector<2x16xf32>
    %cst_194 = arith.constant 1.000000e+00 : f32
    %886 = vector.broadcast %cst_194 : f32 to vector<2x1xf32>
    %887 = arith.subf %886, %21 : vector<2x1xf32>
    %888 = vector.broadcast %887 : vector<2x1xf32> to vector<2x16xf32>
    %889 = arith.mulf %888, %842 : vector<2x16xf32>
    %890 = arith.addf %885, %889 : vector<2x16xf32>
    %891 = vector.broadcast %21 : vector<2x1xf32> to vector<2x16xf32>
    %892 = arith.mulf %891, %883 : vector<2x16xf32>
    %cst_195 = arith.constant 1.000000e+00 : f32
    %893 = vector.broadcast %cst_195 : f32 to vector<2x1xf32>
    %894 = arith.subf %893, %21 : vector<2x1xf32>
    %895 = vector.broadcast %894 : vector<2x1xf32> to vector<2x16xf32>
    %896 = arith.mulf %895, %849 : vector<2x16xf32>
    %897 = arith.addf %892, %896 : vector<2x16xf32>
    %898 = vector.broadcast %21 : vector<2x1xf32> to vector<2x16xf32>
    %899 = arith.mulf %898, %883 : vector<2x16xf32>
    %cst_196 = arith.constant dense<0.000000e+00> : vector<2x64xf32>
    %900 = tpu.matmul %220, %750, %cst_196 {dimension_numbers = #tpu.dot_dimension_numbers<[1], [0], [0], [1], [0, 0, 1, 1], [], []>} : vector<2x16xf32>, vector<16x64xf32>, vector<2x64xf32> -> vector<2x64xf32>
    %901 = vector.broadcast %753 : vector<1x64xf32> to vector<2x64xf32>
    %902 = arith.addf %901, %900 : vector<2x64xf32>
    %cst_197 = arith.constant dense<0.000000e+00> : vector<2x64xf32>
    %903 = tpu.matmul %625, %751, %cst_197 {dimension_numbers = #tpu.dot_dimension_numbers<[1], [0], [0], [1], [0, 0, 1, 1], [], []>} : vector<2x16xf32>, vector<16x64xf32>, vector<2x64xf32> -> vector<2x64xf32>
    %904 = arith.addf %902, %903 : vector<2x64xf32>
    %cst_198 = arith.constant dense<0.000000e+00> : vector<2x64xf32>
    %905 = tpu.matmul %897, %752, %cst_198 {dimension_numbers = #tpu.dot_dimension_numbers<[1], [0], [0], [1], [0, 0, 1, 1], [], []>} : vector<2x16xf32>, vector<16x64xf32>, vector<2x64xf32> -> vector<2x64xf32>
    %906 = arith.addf %904, %905 : vector<2x64xf32>
    %907 = vector.extract_strided_slice %906 {offsets = [0, 0], sizes = [2, 16], strides = [1, 1]} : vector<2x64xf32> to vector<2x16xf32>
    %908 = arith.negf %907 : vector<2x16xf32>
    %909 = math.exp %908 : vector<2x16xf32>
    %cst_199 = arith.constant 1.000000e+00 : f32
    %910 = vector.broadcast %cst_199 : f32 to vector<2x16xf32>
    %911 = arith.addf %910, %909 : vector<2x16xf32>
    %912 = arith.divf %910, %911 : vector<2x16xf32>
    %913 = vector.extract_strided_slice %906 {offsets = [0, 16], sizes = [2, 16], strides = [1, 1]} : vector<2x64xf32> to vector<2x16xf32>
    %914 = arith.negf %913 : vector<2x16xf32>
    %915 = math.exp %914 : vector<2x16xf32>
    %cst_200 = arith.constant 1.000000e+00 : f32
    %916 = vector.broadcast %cst_200 : f32 to vector<2x16xf32>
    %917 = arith.addf %916, %915 : vector<2x16xf32>
    %918 = arith.divf %916, %917 : vector<2x16xf32>
    %919 = vector.extract_strided_slice %906 {offsets = [0, 32], sizes = [2, 16], strides = [1, 1]} : vector<2x64xf32> to vector<2x16xf32>
    %920 = math.tanh %919 : vector<2x16xf32>
    %921 = vector.extract_strided_slice %906 {offsets = [0, 48], sizes = [2, 16], strides = [1, 1]} : vector<2x64xf32> to vector<2x16xf32>
    %922 = arith.negf %921 : vector<2x16xf32>
    %923 = math.exp %922 : vector<2x16xf32>
    %cst_201 = arith.constant 1.000000e+00 : f32
    %924 = vector.broadcast %cst_201 : f32 to vector<2x16xf32>
    %925 = arith.addf %924, %923 : vector<2x16xf32>
    %926 = arith.divf %924, %925 : vector<2x16xf32>
    %927 = arith.mulf %918, %890 : vector<2x16xf32>
    %928 = arith.mulf %912, %920 : vector<2x16xf32>
    %929 = arith.addf %927, %928 : vector<2x16xf32>
    %930 = math.tanh %929 : vector<2x16xf32>
    %931 = arith.mulf %926, %930 : vector<2x16xf32>
    %932 = vector.broadcast %23 : vector<2x1xf32> to vector<2x16xf32>
    %933 = arith.mulf %932, %929 : vector<2x16xf32>
    %cst_202 = arith.constant 1.000000e+00 : f32
    %934 = vector.broadcast %cst_202 : f32 to vector<2x1xf32>
    %935 = arith.subf %934, %23 : vector<2x1xf32>
    %936 = vector.broadcast %935 : vector<2x1xf32> to vector<2x16xf32>
    %937 = arith.mulf %936, %890 : vector<2x16xf32>
    %938 = arith.addf %933, %937 : vector<2x16xf32>
    %939 = vector.broadcast %23 : vector<2x1xf32> to vector<2x16xf32>
    %940 = arith.mulf %939, %931 : vector<2x16xf32>
    %cst_203 = arith.constant 1.000000e+00 : f32
    %941 = vector.broadcast %cst_203 : f32 to vector<2x1xf32>
    %942 = arith.subf %941, %23 : vector<2x1xf32>
    %943 = vector.broadcast %942 : vector<2x1xf32> to vector<2x16xf32>
    %944 = arith.mulf %943, %897 : vector<2x16xf32>
    %945 = arith.addf %940, %944 : vector<2x16xf32>
    %946 = vector.broadcast %23 : vector<2x1xf32> to vector<2x16xf32>
    %947 = arith.mulf %946, %931 : vector<2x16xf32>
    %cst_204 = arith.constant dense<0.000000e+00> : vector<2x64xf32>
    %948 = tpu.matmul %266, %750, %cst_204 {dimension_numbers = #tpu.dot_dimension_numbers<[1], [0], [0], [1], [0, 0, 1, 1], [], []>} : vector<2x16xf32>, vector<16x64xf32>, vector<2x64xf32> -> vector<2x64xf32>
    %949 = vector.broadcast %753 : vector<1x64xf32> to vector<2x64xf32>
    %950 = arith.addf %949, %948 : vector<2x64xf32>
    %cst_205 = arith.constant dense<0.000000e+00> : vector<2x64xf32>
    %951 = tpu.matmul %579, %751, %cst_205 {dimension_numbers = #tpu.dot_dimension_numbers<[1], [0], [0], [1], [0, 0, 1, 1], [], []>} : vector<2x16xf32>, vector<16x64xf32>, vector<2x64xf32> -> vector<2x64xf32>
    %952 = arith.addf %950, %951 : vector<2x64xf32>
    %cst_206 = arith.constant dense<0.000000e+00> : vector<2x64xf32>
    %953 = tpu.matmul %945, %752, %cst_206 {dimension_numbers = #tpu.dot_dimension_numbers<[1], [0], [0], [1], [0, 0, 1, 1], [], []>} : vector<2x16xf32>, vector<16x64xf32>, vector<2x64xf32> -> vector<2x64xf32>
    %954 = arith.addf %952, %953 : vector<2x64xf32>
    %955 = vector.extract_strided_slice %954 {offsets = [0, 0], sizes = [2, 16], strides = [1, 1]} : vector<2x64xf32> to vector<2x16xf32>
    %956 = arith.negf %955 : vector<2x16xf32>
    %957 = math.exp %956 : vector<2x16xf32>
    %cst_207 = arith.constant 1.000000e+00 : f32
    %958 = vector.broadcast %cst_207 : f32 to vector<2x16xf32>
    %959 = arith.addf %958, %957 : vector<2x16xf32>
    %960 = arith.divf %958, %959 : vector<2x16xf32>
    %961 = vector.extract_strided_slice %954 {offsets = [0, 16], sizes = [2, 16], strides = [1, 1]} : vector<2x64xf32> to vector<2x16xf32>
    %962 = arith.negf %961 : vector<2x16xf32>
    %963 = math.exp %962 : vector<2x16xf32>
    %cst_208 = arith.constant 1.000000e+00 : f32
    %964 = vector.broadcast %cst_208 : f32 to vector<2x16xf32>
    %965 = arith.addf %964, %963 : vector<2x16xf32>
    %966 = arith.divf %964, %965 : vector<2x16xf32>
    %967 = vector.extract_strided_slice %954 {offsets = [0, 32], sizes = [2, 16], strides = [1, 1]} : vector<2x64xf32> to vector<2x16xf32>
    %968 = math.tanh %967 : vector<2x16xf32>
    %969 = vector.extract_strided_slice %954 {offsets = [0, 48], sizes = [2, 16], strides = [1, 1]} : vector<2x64xf32> to vector<2x16xf32>
    %970 = arith.negf %969 : vector<2x16xf32>
    %971 = math.exp %970 : vector<2x16xf32>
    %cst_209 = arith.constant 1.000000e+00 : f32
    %972 = vector.broadcast %cst_209 : f32 to vector<2x16xf32>
    %973 = arith.addf %972, %971 : vector<2x16xf32>
    %974 = arith.divf %972, %973 : vector<2x16xf32>
    %975 = arith.mulf %966, %938 : vector<2x16xf32>
    %976 = arith.mulf %960, %968 : vector<2x16xf32>
    %977 = arith.addf %975, %976 : vector<2x16xf32>
    %978 = math.tanh %977 : vector<2x16xf32>
    %979 = arith.mulf %974, %978 : vector<2x16xf32>
    %980 = vector.broadcast %25 : vector<2x1xf32> to vector<2x16xf32>
    %981 = arith.mulf %980, %977 : vector<2x16xf32>
    %cst_210 = arith.constant 1.000000e+00 : f32
    %982 = vector.broadcast %cst_210 : f32 to vector<2x1xf32>
    %983 = arith.subf %982, %25 : vector<2x1xf32>
    %984 = vector.broadcast %983 : vector<2x1xf32> to vector<2x16xf32>
    %985 = arith.mulf %984, %938 : vector<2x16xf32>
    %986 = arith.addf %981, %985 : vector<2x16xf32>
    %987 = vector.broadcast %25 : vector<2x1xf32> to vector<2x16xf32>
    %988 = arith.mulf %987, %979 : vector<2x16xf32>
    %cst_211 = arith.constant 1.000000e+00 : f32
    %989 = vector.broadcast %cst_211 : f32 to vector<2x1xf32>
    %990 = arith.subf %989, %25 : vector<2x1xf32>
    %991 = vector.broadcast %990 : vector<2x1xf32> to vector<2x16xf32>
    %992 = arith.mulf %991, %945 : vector<2x16xf32>
    %993 = arith.addf %988, %992 : vector<2x16xf32>
    %994 = vector.broadcast %25 : vector<2x1xf32> to vector<2x16xf32>
    %995 = arith.mulf %994, %979 : vector<2x16xf32>
    %cst_212 = arith.constant dense<0.000000e+00> : vector<2x64xf32>
    %996 = tpu.matmul %312, %750, %cst_212 {dimension_numbers = #tpu.dot_dimension_numbers<[1], [0], [0], [1], [0, 0, 1, 1], [], []>} : vector<2x16xf32>, vector<16x64xf32>, vector<2x64xf32> -> vector<2x64xf32>
    %997 = vector.broadcast %753 : vector<1x64xf32> to vector<2x64xf32>
    %998 = arith.addf %997, %996 : vector<2x64xf32>
    %cst_213 = arith.constant dense<0.000000e+00> : vector<2x64xf32>
    %999 = tpu.matmul %533, %751, %cst_213 {dimension_numbers = #tpu.dot_dimension_numbers<[1], [0], [0], [1], [0, 0, 1, 1], [], []>} : vector<2x16xf32>, vector<16x64xf32>, vector<2x64xf32> -> vector<2x64xf32>
    %1000 = arith.addf %998, %999 : vector<2x64xf32>
    %cst_214 = arith.constant dense<0.000000e+00> : vector<2x64xf32>
    %1001 = tpu.matmul %993, %752, %cst_214 {dimension_numbers = #tpu.dot_dimension_numbers<[1], [0], [0], [1], [0, 0, 1, 1], [], []>} : vector<2x16xf32>, vector<16x64xf32>, vector<2x64xf32> -> vector<2x64xf32>
    %1002 = arith.addf %1000, %1001 : vector<2x64xf32>
    %1003 = vector.extract_strided_slice %1002 {offsets = [0, 0], sizes = [2, 16], strides = [1, 1]} : vector<2x64xf32> to vector<2x16xf32>
    %1004 = arith.negf %1003 : vector<2x16xf32>
    %1005 = math.exp %1004 : vector<2x16xf32>
    %cst_215 = arith.constant 1.000000e+00 : f32
    %1006 = vector.broadcast %cst_215 : f32 to vector<2x16xf32>
    %1007 = arith.addf %1006, %1005 : vector<2x16xf32>
    %1008 = arith.divf %1006, %1007 : vector<2x16xf32>
    %1009 = vector.extract_strided_slice %1002 {offsets = [0, 16], sizes = [2, 16], strides = [1, 1]} : vector<2x64xf32> to vector<2x16xf32>
    %1010 = arith.negf %1009 : vector<2x16xf32>
    %1011 = math.exp %1010 : vector<2x16xf32>
    %cst_216 = arith.constant 1.000000e+00 : f32
    %1012 = vector.broadcast %cst_216 : f32 to vector<2x16xf32>
    %1013 = arith.addf %1012, %1011 : vector<2x16xf32>
    %1014 = arith.divf %1012, %1013 : vector<2x16xf32>
    %1015 = vector.extract_strided_slice %1002 {offsets = [0, 32], sizes = [2, 16], strides = [1, 1]} : vector<2x64xf32> to vector<2x16xf32>
    %1016 = math.tanh %1015 : vector<2x16xf32>
    %1017 = vector.extract_strided_slice %1002 {offsets = [0, 48], sizes = [2, 16], strides = [1, 1]} : vector<2x64xf32> to vector<2x16xf32>
    %1018 = arith.negf %1017 : vector<2x16xf32>
    %1019 = math.exp %1018 : vector<2x16xf32>
    %cst_217 = arith.constant 1.000000e+00 : f32
    %1020 = vector.broadcast %cst_217 : f32 to vector<2x16xf32>
    %1021 = arith.addf %1020, %1019 : vector<2x16xf32>
    %1022 = arith.divf %1020, %1021 : vector<2x16xf32>
    %1023 = arith.mulf %1014, %986 : vector<2x16xf32>
    %1024 = arith.mulf %1008, %1016 : vector<2x16xf32>
    %1025 = arith.addf %1023, %1024 : vector<2x16xf32>
    %1026 = math.tanh %1025 : vector<2x16xf32>
    %1027 = arith.mulf %1022, %1026 : vector<2x16xf32>
    %1028 = vector.broadcast %27 : vector<2x1xf32> to vector<2x16xf32>
    %1029 = arith.mulf %1028, %1025 : vector<2x16xf32>
    %cst_218 = arith.constant 1.000000e+00 : f32
    %1030 = vector.broadcast %cst_218 : f32 to vector<2x1xf32>
    %1031 = arith.subf %1030, %27 : vector<2x1xf32>
    %1032 = vector.broadcast %1031 : vector<2x1xf32> to vector<2x16xf32>
    %1033 = arith.mulf %1032, %986 : vector<2x16xf32>
    %1034 = arith.addf %1029, %1033 : vector<2x16xf32>
    %1035 = vector.broadcast %27 : vector<2x1xf32> to vector<2x16xf32>
    %1036 = arith.mulf %1035, %1027 : vector<2x16xf32>
    %cst_219 = arith.constant 1.000000e+00 : f32
    %1037 = vector.broadcast %cst_219 : f32 to vector<2x1xf32>
    %1038 = arith.subf %1037, %27 : vector<2x1xf32>
    %1039 = vector.broadcast %1038 : vector<2x1xf32> to vector<2x16xf32>
    %1040 = arith.mulf %1039, %993 : vector<2x16xf32>
    %1041 = arith.addf %1036, %1040 : vector<2x16xf32>
    %1042 = vector.broadcast %27 : vector<2x1xf32> to vector<2x16xf32>
    %1043 = arith.mulf %1042, %1027 : vector<2x16xf32>
    %cst_220 = arith.constant dense<0.000000e+00> : vector<2x64xf32>
    %1044 = tpu.matmul %358, %750, %cst_220 {dimension_numbers = #tpu.dot_dimension_numbers<[1], [0], [0], [1], [0, 0, 1, 1], [], []>} : vector<2x16xf32>, vector<16x64xf32>, vector<2x64xf32> -> vector<2x64xf32>
    %1045 = vector.broadcast %753 : vector<1x64xf32> to vector<2x64xf32>
    %1046 = arith.addf %1045, %1044 : vector<2x64xf32>
    %cst_221 = arith.constant dense<0.000000e+00> : vector<2x64xf32>
    %1047 = tpu.matmul %487, %751, %cst_221 {dimension_numbers = #tpu.dot_dimension_numbers<[1], [0], [0], [1], [0, 0, 1, 1], [], []>} : vector<2x16xf32>, vector<16x64xf32>, vector<2x64xf32> -> vector<2x64xf32>
    %1048 = arith.addf %1046, %1047 : vector<2x64xf32>
    %cst_222 = arith.constant dense<0.000000e+00> : vector<2x64xf32>
    %1049 = tpu.matmul %1041, %752, %cst_222 {dimension_numbers = #tpu.dot_dimension_numbers<[1], [0], [0], [1], [0, 0, 1, 1], [], []>} : vector<2x16xf32>, vector<16x64xf32>, vector<2x64xf32> -> vector<2x64xf32>
    %1050 = arith.addf %1048, %1049 : vector<2x64xf32>
    %1051 = vector.extract_strided_slice %1050 {offsets = [0, 0], sizes = [2, 16], strides = [1, 1]} : vector<2x64xf32> to vector<2x16xf32>
    %1052 = arith.negf %1051 : vector<2x16xf32>
    %1053 = math.exp %1052 : vector<2x16xf32>
    %cst_223 = arith.constant 1.000000e+00 : f32
    %1054 = vector.broadcast %cst_223 : f32 to vector<2x16xf32>
    %1055 = arith.addf %1054, %1053 : vector<2x16xf32>
    %1056 = arith.divf %1054, %1055 : vector<2x16xf32>
    %1057 = vector.extract_strided_slice %1050 {offsets = [0, 16], sizes = [2, 16], strides = [1, 1]} : vector<2x64xf32> to vector<2x16xf32>
    %1058 = arith.negf %1057 : vector<2x16xf32>
    %1059 = math.exp %1058 : vector<2x16xf32>
    %cst_224 = arith.constant 1.000000e+00 : f32
    %1060 = vector.broadcast %cst_224 : f32 to vector<2x16xf32>
    %1061 = arith.addf %1060, %1059 : vector<2x16xf32>
    %1062 = arith.divf %1060, %1061 : vector<2x16xf32>
    %1063 = vector.extract_strided_slice %1050 {offsets = [0, 32], sizes = [2, 16], strides = [1, 1]} : vector<2x64xf32> to vector<2x16xf32>
    %1064 = math.tanh %1063 : vector<2x16xf32>
    %1065 = vector.extract_strided_slice %1050 {offsets = [0, 48], sizes = [2, 16], strides = [1, 1]} : vector<2x64xf32> to vector<2x16xf32>
    %1066 = arith.negf %1065 : vector<2x16xf32>
    %1067 = math.exp %1066 : vector<2x16xf32>
    %cst_225 = arith.constant 1.000000e+00 : f32
    %1068 = vector.broadcast %cst_225 : f32 to vector<2x16xf32>
    %1069 = arith.addf %1068, %1067 : vector<2x16xf32>
    %1070 = arith.divf %1068, %1069 : vector<2x16xf32>
    %1071 = arith.mulf %1062, %1034 : vector<2x16xf32>
    %1072 = arith.mulf %1056, %1064 : vector<2x16xf32>
    %1073 = arith.addf %1071, %1072 : vector<2x16xf32>
    %1074 = math.tanh %1073 : vector<2x16xf32>
    %1075 = arith.mulf %1070, %1074 : vector<2x16xf32>
    %1076 = vector.broadcast %29 : vector<2x1xf32> to vector<2x16xf32>
    %1077 = arith.mulf %1076, %1073 : vector<2x16xf32>
    %cst_226 = arith.constant 1.000000e+00 : f32
    %1078 = vector.broadcast %cst_226 : f32 to vector<2x1xf32>
    %1079 = arith.subf %1078, %29 : vector<2x1xf32>
    %1080 = vector.broadcast %1079 : vector<2x1xf32> to vector<2x16xf32>
    %1081 = arith.mulf %1080, %1034 : vector<2x16xf32>
    %1082 = arith.addf %1077, %1081 : vector<2x16xf32>
    %1083 = vector.broadcast %29 : vector<2x1xf32> to vector<2x16xf32>
    %1084 = arith.mulf %1083, %1075 : vector<2x16xf32>
    %cst_227 = arith.constant 1.000000e+00 : f32
    %1085 = vector.broadcast %cst_227 : f32 to vector<2x1xf32>
    %1086 = arith.subf %1085, %29 : vector<2x1xf32>
    %1087 = vector.broadcast %1086 : vector<2x1xf32> to vector<2x16xf32>
    %1088 = arith.mulf %1087, %1041 : vector<2x16xf32>
    %1089 = arith.addf %1084, %1088 : vector<2x16xf32>
    %1090 = vector.broadcast %29 : vector<2x1xf32> to vector<2x16xf32>
    %1091 = arith.mulf %1090, %1075 : vector<2x16xf32>
    %cst_228 = arith.constant dense<0.000000e+00> : vector<2x64xf32>
    %1092 = tpu.matmul %390, %750, %cst_228 {dimension_numbers = #tpu.dot_dimension_numbers<[1], [0], [0], [1], [0, 0, 1, 1], [], []>} : vector<2x16xf32>, vector<16x64xf32>, vector<2x64xf32> -> vector<2x64xf32>
    %1093 = vector.broadcast %753 : vector<1x64xf32> to vector<2x64xf32>
    %1094 = arith.addf %1093, %1092 : vector<2x64xf32>
    %cst_229 = arith.constant dense<0.000000e+00> : vector<2x64xf32>
    %1095 = tpu.matmul %441, %751, %cst_229 {dimension_numbers = #tpu.dot_dimension_numbers<[1], [0], [0], [1], [0, 0, 1, 1], [], []>} : vector<2x16xf32>, vector<16x64xf32>, vector<2x64xf32> -> vector<2x64xf32>
    %1096 = arith.addf %1094, %1095 : vector<2x64xf32>
    %cst_230 = arith.constant dense<0.000000e+00> : vector<2x64xf32>
    %1097 = tpu.matmul %1089, %752, %cst_230 {dimension_numbers = #tpu.dot_dimension_numbers<[1], [0], [0], [1], [0, 0, 1, 1], [], []>} : vector<2x16xf32>, vector<16x64xf32>, vector<2x64xf32> -> vector<2x64xf32>
    %1098 = arith.addf %1096, %1097 : vector<2x64xf32>
    %1099 = vector.extract_strided_slice %1098 {offsets = [0, 0], sizes = [2, 16], strides = [1, 1]} : vector<2x64xf32> to vector<2x16xf32>
    %1100 = arith.negf %1099 : vector<2x16xf32>
    %1101 = math.exp %1100 : vector<2x16xf32>
    %cst_231 = arith.constant 1.000000e+00 : f32
    %1102 = vector.broadcast %cst_231 : f32 to vector<2x16xf32>
    %1103 = arith.addf %1102, %1101 : vector<2x16xf32>
    %1104 = arith.divf %1102, %1103 : vector<2x16xf32>
    %1105 = vector.extract_strided_slice %1098 {offsets = [0, 16], sizes = [2, 16], strides = [1, 1]} : vector<2x64xf32> to vector<2x16xf32>
    %1106 = arith.negf %1105 : vector<2x16xf32>
    %1107 = math.exp %1106 : vector<2x16xf32>
    %cst_232 = arith.constant 1.000000e+00 : f32
    %1108 = vector.broadcast %cst_232 : f32 to vector<2x16xf32>
    %1109 = arith.addf %1108, %1107 : vector<2x16xf32>
    %1110 = arith.divf %1108, %1109 : vector<2x16xf32>
    %1111 = vector.extract_strided_slice %1098 {offsets = [0, 32], sizes = [2, 16], strides = [1, 1]} : vector<2x64xf32> to vector<2x16xf32>
    %1112 = math.tanh %1111 : vector<2x16xf32>
    %1113 = vector.extract_strided_slice %1098 {offsets = [0, 48], sizes = [2, 16], strides = [1, 1]} : vector<2x64xf32> to vector<2x16xf32>
    %1114 = arith.negf %1113 : vector<2x16xf32>
    %1115 = math.exp %1114 : vector<2x16xf32>
    %cst_233 = arith.constant 1.000000e+00 : f32
    %1116 = vector.broadcast %cst_233 : f32 to vector<2x16xf32>
    %1117 = arith.addf %1116, %1115 : vector<2x16xf32>
    %1118 = arith.divf %1116, %1117 : vector<2x16xf32>
    %1119 = arith.mulf %1110, %1082 : vector<2x16xf32>
    %1120 = arith.mulf %1104, %1112 : vector<2x16xf32>
    %1121 = arith.addf %1119, %1120 : vector<2x16xf32>
    %1122 = math.tanh %1121 : vector<2x16xf32>
    %1123 = arith.mulf %1118, %1122 : vector<2x16xf32>
    %1124 = vector.broadcast %31 : vector<2x1xf32> to vector<2x16xf32>
    %1125 = arith.mulf %1124, %1123 : vector<2x16xf32>
    %c0_234 = arith.constant 0 : index
    %c0_235 = arith.constant 0 : index
    %1126 = vector.load %arg11[%c0_234, %c0_235] : memref<32x64xf32, #tpu.memory_space<vmem>>, vector<16x64xf32>
    %c16_236 = arith.constant 16 : index
    %c0_237 = arith.constant 0 : index
    %1127 = vector.load %arg11[%c16_236, %c0_237] : memref<32x64xf32, #tpu.memory_space<vmem>>, vector<16x64xf32>
    %c0_238 = arith.constant 0 : index
    %c0_239 = arith.constant 0 : index
    %1128 = vector.load %arg12[%c0_238, %c0_239] : memref<16x64xf32, #tpu.memory_space<vmem>>, vector<16x64xf32>
    %c0_240 = arith.constant 0 : index
    %c0_241 = arith.constant 0 : index
    %1129 = vector.load %arg13[%c0_240, %c0_241] : memref<1x64xf32, #tpu.memory_space<vmem>>, vector<1x64xf32>
    %cst_242 = arith.constant 0.000000e+00 : f32
    %1130 = vector.broadcast %cst_242 : f32 to vector<2x16xf32>
    %cst_243 = arith.constant 0.000000e+00 : f32
    %1131 = vector.broadcast %cst_243 : f32 to vector<2x16xf32>
    %cst_244 = arith.constant dense<0.000000e+00> : vector<2x64xf32>
    %1132 = tpu.matmul %390, %1126, %cst_244 {dimension_numbers = #tpu.dot_dimension_numbers<[1], [0], [0], [1], [0, 0, 1, 1], [], []>} : vector<2x16xf32>, vector<16x64xf32>, vector<2x64xf32> -> vector<2x64xf32>
    %1133 = vector.broadcast %1129 : vector<1x64xf32> to vector<2x64xf32>
    %1134 = arith.addf %1133, %1132 : vector<2x64xf32>
    %cst_245 = arith.constant dense<0.000000e+00> : vector<2x64xf32>
    %1135 = tpu.matmul %441, %1127, %cst_245 {dimension_numbers = #tpu.dot_dimension_numbers<[1], [0], [0], [1], [0, 0, 1, 1], [], []>} : vector<2x16xf32>, vector<16x64xf32>, vector<2x64xf32> -> vector<2x64xf32>
    %1136 = arith.addf %1134, %1135 : vector<2x64xf32>
    %cst_246 = arith.constant dense<0.000000e+00> : vector<2x64xf32>
    %1137 = tpu.matmul %1130, %1128, %cst_246 {dimension_numbers = #tpu.dot_dimension_numbers<[1], [0], [0], [1], [0, 0, 1, 1], [], []>} : vector<2x16xf32>, vector<16x64xf32>, vector<2x64xf32> -> vector<2x64xf32>
    %1138 = arith.addf %1136, %1137 : vector<2x64xf32>
    %1139 = vector.extract_strided_slice %1138 {offsets = [0, 0], sizes = [2, 16], strides = [1, 1]} : vector<2x64xf32> to vector<2x16xf32>
    %1140 = arith.negf %1139 : vector<2x16xf32>
    %1141 = math.exp %1140 : vector<2x16xf32>
    %cst_247 = arith.constant 1.000000e+00 : f32
    %1142 = vector.broadcast %cst_247 : f32 to vector<2x16xf32>
    %1143 = arith.addf %1142, %1141 : vector<2x16xf32>
    %1144 = arith.divf %1142, %1143 : vector<2x16xf32>
    %1145 = vector.extract_strided_slice %1138 {offsets = [0, 16], sizes = [2, 16], strides = [1, 1]} : vector<2x64xf32> to vector<2x16xf32>
    %1146 = arith.negf %1145 : vector<2x16xf32>
    %1147 = math.exp %1146 : vector<2x16xf32>
    %cst_248 = arith.constant 1.000000e+00 : f32
    %1148 = vector.broadcast %cst_248 : f32 to vector<2x16xf32>
    %1149 = arith.addf %1148, %1147 : vector<2x16xf32>
    %1150 = arith.divf %1148, %1149 : vector<2x16xf32>
    %1151 = vector.extract_strided_slice %1138 {offsets = [0, 32], sizes = [2, 16], strides = [1, 1]} : vector<2x64xf32> to vector<2x16xf32>
    %1152 = math.tanh %1151 : vector<2x16xf32>
    %1153 = vector.extract_strided_slice %1138 {offsets = [0, 48], sizes = [2, 16], strides = [1, 1]} : vector<2x64xf32> to vector<2x16xf32>
    %1154 = arith.negf %1153 : vector<2x16xf32>
    %1155 = math.exp %1154 : vector<2x16xf32>
    %cst_249 = arith.constant 1.000000e+00 : f32
    %1156 = vector.broadcast %cst_249 : f32 to vector<2x16xf32>
    %1157 = arith.addf %1156, %1155 : vector<2x16xf32>
    %1158 = arith.divf %1156, %1157 : vector<2x16xf32>
    %1159 = arith.mulf %1150, %1131 : vector<2x16xf32>
    %1160 = arith.mulf %1144, %1152 : vector<2x16xf32>
    %1161 = arith.addf %1159, %1160 : vector<2x16xf32>
    %1162 = math.tanh %1161 : vector<2x16xf32>
    %1163 = arith.mulf %1158, %1162 : vector<2x16xf32>
    %1164 = vector.broadcast %31 : vector<2x1xf32> to vector<2x16xf32>
    %1165 = arith.mulf %1164, %1161 : vector<2x16xf32>
    %cst_250 = arith.constant 1.000000e+00 : f32
    %1166 = vector.broadcast %cst_250 : f32 to vector<2x1xf32>
    %1167 = arith.subf %1166, %31 : vector<2x1xf32>
    %1168 = vector.broadcast %1167 : vector<2x1xf32> to vector<2x16xf32>
    %1169 = arith.mulf %1168, %1131 : vector<2x16xf32>
    %1170 = arith.addf %1165, %1169 : vector<2x16xf32>
    %1171 = vector.broadcast %31 : vector<2x1xf32> to vector<2x16xf32>
    %1172 = arith.mulf %1171, %1163 : vector<2x16xf32>
    %cst_251 = arith.constant 1.000000e+00 : f32
    %1173 = vector.broadcast %cst_251 : f32 to vector<2x1xf32>
    %1174 = arith.subf %1173, %31 : vector<2x1xf32>
    %1175 = vector.broadcast %1174 : vector<2x1xf32> to vector<2x16xf32>
    %1176 = arith.mulf %1175, %1130 : vector<2x16xf32>
    %1177 = arith.addf %1172, %1176 : vector<2x16xf32>
    %1178 = vector.broadcast %31 : vector<2x1xf32> to vector<2x16xf32>
    %1179 = arith.mulf %1178, %1163 : vector<2x16xf32>
    %cst_252 = arith.constant dense<0.000000e+00> : vector<2x64xf32>
    %1180 = tpu.matmul %358, %1126, %cst_252 {dimension_numbers = #tpu.dot_dimension_numbers<[1], [0], [0], [1], [0, 0, 1, 1], [], []>} : vector<2x16xf32>, vector<16x64xf32>, vector<2x64xf32> -> vector<2x64xf32>
    %1181 = vector.broadcast %1129 : vector<1x64xf32> to vector<2x64xf32>
    %1182 = arith.addf %1181, %1180 : vector<2x64xf32>
    %cst_253 = arith.constant dense<0.000000e+00> : vector<2x64xf32>
    %1183 = tpu.matmul %487, %1127, %cst_253 {dimension_numbers = #tpu.dot_dimension_numbers<[1], [0], [0], [1], [0, 0, 1, 1], [], []>} : vector<2x16xf32>, vector<16x64xf32>, vector<2x64xf32> -> vector<2x64xf32>
    %1184 = arith.addf %1182, %1183 : vector<2x64xf32>
    %cst_254 = arith.constant dense<0.000000e+00> : vector<2x64xf32>
    %1185 = tpu.matmul %1177, %1128, %cst_254 {dimension_numbers = #tpu.dot_dimension_numbers<[1], [0], [0], [1], [0, 0, 1, 1], [], []>} : vector<2x16xf32>, vector<16x64xf32>, vector<2x64xf32> -> vector<2x64xf32>
    %1186 = arith.addf %1184, %1185 : vector<2x64xf32>
    %1187 = vector.extract_strided_slice %1186 {offsets = [0, 0], sizes = [2, 16], strides = [1, 1]} : vector<2x64xf32> to vector<2x16xf32>
    %1188 = arith.negf %1187 : vector<2x16xf32>
    %1189 = math.exp %1188 : vector<2x16xf32>
    %cst_255 = arith.constant 1.000000e+00 : f32
    %1190 = vector.broadcast %cst_255 : f32 to vector<2x16xf32>
    %1191 = arith.addf %1190, %1189 : vector<2x16xf32>
    %1192 = arith.divf %1190, %1191 : vector<2x16xf32>
    %1193 = vector.extract_strided_slice %1186 {offsets = [0, 16], sizes = [2, 16], strides = [1, 1]} : vector<2x64xf32> to vector<2x16xf32>
    %1194 = arith.negf %1193 : vector<2x16xf32>
    %1195 = math.exp %1194 : vector<2x16xf32>
    %cst_256 = arith.constant 1.000000e+00 : f32
    %1196 = vector.broadcast %cst_256 : f32 to vector<2x16xf32>
    %1197 = arith.addf %1196, %1195 : vector<2x16xf32>
    %1198 = arith.divf %1196, %1197 : vector<2x16xf32>
    %1199 = vector.extract_strided_slice %1186 {offsets = [0, 32], sizes = [2, 16], strides = [1, 1]} : vector<2x64xf32> to vector<2x16xf32>
    %1200 = math.tanh %1199 : vector<2x16xf32>
    %1201 = vector.extract_strided_slice %1186 {offsets = [0, 48], sizes = [2, 16], strides = [1, 1]} : vector<2x64xf32> to vector<2x16xf32>
    %1202 = arith.negf %1201 : vector<2x16xf32>
    %1203 = math.exp %1202 : vector<2x16xf32>
    %cst_257 = arith.constant 1.000000e+00 : f32
    %1204 = vector.broadcast %cst_257 : f32 to vector<2x16xf32>
    %1205 = arith.addf %1204, %1203 : vector<2x16xf32>
    %1206 = arith.divf %1204, %1205 : vector<2x16xf32>
    %1207 = arith.mulf %1198, %1170 : vector<2x16xf32>
    %1208 = arith.mulf %1192, %1200 : vector<2x16xf32>
    %1209 = arith.addf %1207, %1208 : vector<2x16xf32>
    %1210 = math.tanh %1209 : vector<2x16xf32>
    %1211 = arith.mulf %1206, %1210 : vector<2x16xf32>
    %1212 = vector.broadcast %29 : vector<2x1xf32> to vector<2x16xf32>
    %1213 = arith.mulf %1212, %1209 : vector<2x16xf32>
    %cst_258 = arith.constant 1.000000e+00 : f32
    %1214 = vector.broadcast %cst_258 : f32 to vector<2x1xf32>
    %1215 = arith.subf %1214, %29 : vector<2x1xf32>
    %1216 = vector.broadcast %1215 : vector<2x1xf32> to vector<2x16xf32>
    %1217 = arith.mulf %1216, %1170 : vector<2x16xf32>
    %1218 = arith.addf %1213, %1217 : vector<2x16xf32>
    %1219 = vector.broadcast %29 : vector<2x1xf32> to vector<2x16xf32>
    %1220 = arith.mulf %1219, %1211 : vector<2x16xf32>
    %cst_259 = arith.constant 1.000000e+00 : f32
    %1221 = vector.broadcast %cst_259 : f32 to vector<2x1xf32>
    %1222 = arith.subf %1221, %29 : vector<2x1xf32>
    %1223 = vector.broadcast %1222 : vector<2x1xf32> to vector<2x16xf32>
    %1224 = arith.mulf %1223, %1177 : vector<2x16xf32>
    %1225 = arith.addf %1220, %1224 : vector<2x16xf32>
    %1226 = vector.broadcast %29 : vector<2x1xf32> to vector<2x16xf32>
    %1227 = arith.mulf %1226, %1211 : vector<2x16xf32>
    %cst_260 = arith.constant dense<0.000000e+00> : vector<2x64xf32>
    %1228 = tpu.matmul %312, %1126, %cst_260 {dimension_numbers = #tpu.dot_dimension_numbers<[1], [0], [0], [1], [0, 0, 1, 1], [], []>} : vector<2x16xf32>, vector<16x64xf32>, vector<2x64xf32> -> vector<2x64xf32>
    %1229 = vector.broadcast %1129 : vector<1x64xf32> to vector<2x64xf32>
    %1230 = arith.addf %1229, %1228 : vector<2x64xf32>
    %cst_261 = arith.constant dense<0.000000e+00> : vector<2x64xf32>
    %1231 = tpu.matmul %533, %1127, %cst_261 {dimension_numbers = #tpu.dot_dimension_numbers<[1], [0], [0], [1], [0, 0, 1, 1], [], []>} : vector<2x16xf32>, vector<16x64xf32>, vector<2x64xf32> -> vector<2x64xf32>
    %1232 = arith.addf %1230, %1231 : vector<2x64xf32>
    %cst_262 = arith.constant dense<0.000000e+00> : vector<2x64xf32>
    %1233 = tpu.matmul %1225, %1128, %cst_262 {dimension_numbers = #tpu.dot_dimension_numbers<[1], [0], [0], [1], [0, 0, 1, 1], [], []>} : vector<2x16xf32>, vector<16x64xf32>, vector<2x64xf32> -> vector<2x64xf32>
    %1234 = arith.addf %1232, %1233 : vector<2x64xf32>
    %1235 = vector.extract_strided_slice %1234 {offsets = [0, 0], sizes = [2, 16], strides = [1, 1]} : vector<2x64xf32> to vector<2x16xf32>
    %1236 = arith.negf %1235 : vector<2x16xf32>
    %1237 = math.exp %1236 : vector<2x16xf32>
    %cst_263 = arith.constant 1.000000e+00 : f32
    %1238 = vector.broadcast %cst_263 : f32 to vector<2x16xf32>
    %1239 = arith.addf %1238, %1237 : vector<2x16xf32>
    %1240 = arith.divf %1238, %1239 : vector<2x16xf32>
    %1241 = vector.extract_strided_slice %1234 {offsets = [0, 16], sizes = [2, 16], strides = [1, 1]} : vector<2x64xf32> to vector<2x16xf32>
    %1242 = arith.negf %1241 : vector<2x16xf32>
    %1243 = math.exp %1242 : vector<2x16xf32>
    %cst_264 = arith.constant 1.000000e+00 : f32
    %1244 = vector.broadcast %cst_264 : f32 to vector<2x16xf32>
    %1245 = arith.addf %1244, %1243 : vector<2x16xf32>
    %1246 = arith.divf %1244, %1245 : vector<2x16xf32>
    %1247 = vector.extract_strided_slice %1234 {offsets = [0, 32], sizes = [2, 16], strides = [1, 1]} : vector<2x64xf32> to vector<2x16xf32>
    %1248 = math.tanh %1247 : vector<2x16xf32>
    %1249 = vector.extract_strided_slice %1234 {offsets = [0, 48], sizes = [2, 16], strides = [1, 1]} : vector<2x64xf32> to vector<2x16xf32>
    %1250 = arith.negf %1249 : vector<2x16xf32>
    %1251 = math.exp %1250 : vector<2x16xf32>
    %cst_265 = arith.constant 1.000000e+00 : f32
    %1252 = vector.broadcast %cst_265 : f32 to vector<2x16xf32>
    %1253 = arith.addf %1252, %1251 : vector<2x16xf32>
    %1254 = arith.divf %1252, %1253 : vector<2x16xf32>
    %1255 = arith.mulf %1246, %1218 : vector<2x16xf32>
    %1256 = arith.mulf %1240, %1248 : vector<2x16xf32>
    %1257 = arith.addf %1255, %1256 : vector<2x16xf32>
    %1258 = math.tanh %1257 : vector<2x16xf32>
    %1259 = arith.mulf %1254, %1258 : vector<2x16xf32>
    %1260 = vector.broadcast %27 : vector<2x1xf32> to vector<2x16xf32>
    %1261 = arith.mulf %1260, %1257 : vector<2x16xf32>
    %cst_266 = arith.constant 1.000000e+00 : f32
    %1262 = vector.broadcast %cst_266 : f32 to vector<2x1xf32>
    %1263 = arith.subf %1262, %27 : vector<2x1xf32>
    %1264 = vector.broadcast %1263 : vector<2x1xf32> to vector<2x16xf32>
    %1265 = arith.mulf %1264, %1218 : vector<2x16xf32>
    %1266 = arith.addf %1261, %1265 : vector<2x16xf32>
    %1267 = vector.broadcast %27 : vector<2x1xf32> to vector<2x16xf32>
    %1268 = arith.mulf %1267, %1259 : vector<2x16xf32>
    %cst_267 = arith.constant 1.000000e+00 : f32
    %1269 = vector.broadcast %cst_267 : f32 to vector<2x1xf32>
    %1270 = arith.subf %1269, %27 : vector<2x1xf32>
    %1271 = vector.broadcast %1270 : vector<2x1xf32> to vector<2x16xf32>
    %1272 = arith.mulf %1271, %1225 : vector<2x16xf32>
    %1273 = arith.addf %1268, %1272 : vector<2x16xf32>
    %1274 = vector.broadcast %27 : vector<2x1xf32> to vector<2x16xf32>
    %1275 = arith.mulf %1274, %1259 : vector<2x16xf32>
    %cst_268 = arith.constant dense<0.000000e+00> : vector<2x64xf32>
    %1276 = tpu.matmul %266, %1126, %cst_268 {dimension_numbers = #tpu.dot_dimension_numbers<[1], [0], [0], [1], [0, 0, 1, 1], [], []>} : vector<2x16xf32>, vector<16x64xf32>, vector<2x64xf32> -> vector<2x64xf32>
    %1277 = vector.broadcast %1129 : vector<1x64xf32> to vector<2x64xf32>
    %1278 = arith.addf %1277, %1276 : vector<2x64xf32>
    %cst_269 = arith.constant dense<0.000000e+00> : vector<2x64xf32>
    %1279 = tpu.matmul %579, %1127, %cst_269 {dimension_numbers = #tpu.dot_dimension_numbers<[1], [0], [0], [1], [0, 0, 1, 1], [], []>} : vector<2x16xf32>, vector<16x64xf32>, vector<2x64xf32> -> vector<2x64xf32>
    %1280 = arith.addf %1278, %1279 : vector<2x64xf32>
    %cst_270 = arith.constant dense<0.000000e+00> : vector<2x64xf32>
    %1281 = tpu.matmul %1273, %1128, %cst_270 {dimension_numbers = #tpu.dot_dimension_numbers<[1], [0], [0], [1], [0, 0, 1, 1], [], []>} : vector<2x16xf32>, vector<16x64xf32>, vector<2x64xf32> -> vector<2x64xf32>
    %1282 = arith.addf %1280, %1281 : vector<2x64xf32>
    %1283 = vector.extract_strided_slice %1282 {offsets = [0, 0], sizes = [2, 16], strides = [1, 1]} : vector<2x64xf32> to vector<2x16xf32>
    %1284 = arith.negf %1283 : vector<2x16xf32>
    %1285 = math.exp %1284 : vector<2x16xf32>
    %cst_271 = arith.constant 1.000000e+00 : f32
    %1286 = vector.broadcast %cst_271 : f32 to vector<2x16xf32>
    %1287 = arith.addf %1286, %1285 : vector<2x16xf32>
    %1288 = arith.divf %1286, %1287 : vector<2x16xf32>
    %1289 = vector.extract_strided_slice %1282 {offsets = [0, 16], sizes = [2, 16], strides = [1, 1]} : vector<2x64xf32> to vector<2x16xf32>
    %1290 = arith.negf %1289 : vector<2x16xf32>
    %1291 = math.exp %1290 : vector<2x16xf32>
    %cst_272 = arith.constant 1.000000e+00 : f32
    %1292 = vector.broadcast %cst_272 : f32 to vector<2x16xf32>
    %1293 = arith.addf %1292, %1291 : vector<2x16xf32>
    %1294 = arith.divf %1292, %1293 : vector<2x16xf32>
    %1295 = vector.extract_strided_slice %1282 {offsets = [0, 32], sizes = [2, 16], strides = [1, 1]} : vector<2x64xf32> to vector<2x16xf32>
    %1296 = math.tanh %1295 : vector<2x16xf32>
    %1297 = vector.extract_strided_slice %1282 {offsets = [0, 48], sizes = [2, 16], strides = [1, 1]} : vector<2x64xf32> to vector<2x16xf32>
    %1298 = arith.negf %1297 : vector<2x16xf32>
    %1299 = math.exp %1298 : vector<2x16xf32>
    %cst_273 = arith.constant 1.000000e+00 : f32
    %1300 = vector.broadcast %cst_273 : f32 to vector<2x16xf32>
    %1301 = arith.addf %1300, %1299 : vector<2x16xf32>
    %1302 = arith.divf %1300, %1301 : vector<2x16xf32>
    %1303 = arith.mulf %1294, %1266 : vector<2x16xf32>
    %1304 = arith.mulf %1288, %1296 : vector<2x16xf32>
    %1305 = arith.addf %1303, %1304 : vector<2x16xf32>
    %1306 = math.tanh %1305 : vector<2x16xf32>
    %1307 = arith.mulf %1302, %1306 : vector<2x16xf32>
    %1308 = vector.broadcast %25 : vector<2x1xf32> to vector<2x16xf32>
    %1309 = arith.mulf %1308, %1305 : vector<2x16xf32>
    %cst_274 = arith.constant 1.000000e+00 : f32
    %1310 = vector.broadcast %cst_274 : f32 to vector<2x1xf32>
    %1311 = arith.subf %1310, %25 : vector<2x1xf32>
    %1312 = vector.broadcast %1311 : vector<2x1xf32> to vector<2x16xf32>
    %1313 = arith.mulf %1312, %1266 : vector<2x16xf32>
    %1314 = arith.addf %1309, %1313 : vector<2x16xf32>
    %1315 = vector.broadcast %25 : vector<2x1xf32> to vector<2x16xf32>
    %1316 = arith.mulf %1315, %1307 : vector<2x16xf32>
    %cst_275 = arith.constant 1.000000e+00 : f32
    %1317 = vector.broadcast %cst_275 : f32 to vector<2x1xf32>
    %1318 = arith.subf %1317, %25 : vector<2x1xf32>
    %1319 = vector.broadcast %1318 : vector<2x1xf32> to vector<2x16xf32>
    %1320 = arith.mulf %1319, %1273 : vector<2x16xf32>
    %1321 = arith.addf %1316, %1320 : vector<2x16xf32>
    %1322 = vector.broadcast %25 : vector<2x1xf32> to vector<2x16xf32>
    %1323 = arith.mulf %1322, %1307 : vector<2x16xf32>
    %cst_276 = arith.constant dense<0.000000e+00> : vector<2x64xf32>
    %1324 = tpu.matmul %220, %1126, %cst_276 {dimension_numbers = #tpu.dot_dimension_numbers<[1], [0], [0], [1], [0, 0, 1, 1], [], []>} : vector<2x16xf32>, vector<16x64xf32>, vector<2x64xf32> -> vector<2x64xf32>
    %1325 = vector.broadcast %1129 : vector<1x64xf32> to vector<2x64xf32>
    %1326 = arith.addf %1325, %1324 : vector<2x64xf32>
    %cst_277 = arith.constant dense<0.000000e+00> : vector<2x64xf32>
    %1327 = tpu.matmul %625, %1127, %cst_277 {dimension_numbers = #tpu.dot_dimension_numbers<[1], [0], [0], [1], [0, 0, 1, 1], [], []>} : vector<2x16xf32>, vector<16x64xf32>, vector<2x64xf32> -> vector<2x64xf32>
    %1328 = arith.addf %1326, %1327 : vector<2x64xf32>
    %cst_278 = arith.constant dense<0.000000e+00> : vector<2x64xf32>
    %1329 = tpu.matmul %1321, %1128, %cst_278 {dimension_numbers = #tpu.dot_dimension_numbers<[1], [0], [0], [1], [0, 0, 1, 1], [], []>} : vector<2x16xf32>, vector<16x64xf32>, vector<2x64xf32> -> vector<2x64xf32>
    %1330 = arith.addf %1328, %1329 : vector<2x64xf32>
    %1331 = vector.extract_strided_slice %1330 {offsets = [0, 0], sizes = [2, 16], strides = [1, 1]} : vector<2x64xf32> to vector<2x16xf32>
    %1332 = arith.negf %1331 : vector<2x16xf32>
    %1333 = math.exp %1332 : vector<2x16xf32>
    %cst_279 = arith.constant 1.000000e+00 : f32
    %1334 = vector.broadcast %cst_279 : f32 to vector<2x16xf32>
    %1335 = arith.addf %1334, %1333 : vector<2x16xf32>
    %1336 = arith.divf %1334, %1335 : vector<2x16xf32>
    %1337 = vector.extract_strided_slice %1330 {offsets = [0, 16], sizes = [2, 16], strides = [1, 1]} : vector<2x64xf32> to vector<2x16xf32>
    %1338 = arith.negf %1337 : vector<2x16xf32>
    %1339 = math.exp %1338 : vector<2x16xf32>
    %cst_280 = arith.constant 1.000000e+00 : f32
    %1340 = vector.broadcast %cst_280 : f32 to vector<2x16xf32>
    %1341 = arith.addf %1340, %1339 : vector<2x16xf32>
    %1342 = arith.divf %1340, %1341 : vector<2x16xf32>
    %1343 = vector.extract_strided_slice %1330 {offsets = [0, 32], sizes = [2, 16], strides = [1, 1]} : vector<2x64xf32> to vector<2x16xf32>
    %1344 = math.tanh %1343 : vector<2x16xf32>
    %1345 = vector.extract_strided_slice %1330 {offsets = [0, 48], sizes = [2, 16], strides = [1, 1]} : vector<2x64xf32> to vector<2x16xf32>
    %1346 = arith.negf %1345 : vector<2x16xf32>
    %1347 = math.exp %1346 : vector<2x16xf32>
    %cst_281 = arith.constant 1.000000e+00 : f32
    %1348 = vector.broadcast %cst_281 : f32 to vector<2x16xf32>
    %1349 = arith.addf %1348, %1347 : vector<2x16xf32>
    %1350 = arith.divf %1348, %1349 : vector<2x16xf32>
    %1351 = arith.mulf %1342, %1314 : vector<2x16xf32>
    %1352 = arith.mulf %1336, %1344 : vector<2x16xf32>
    %1353 = arith.addf %1351, %1352 : vector<2x16xf32>
    %1354 = math.tanh %1353 : vector<2x16xf32>
    %1355 = arith.mulf %1350, %1354 : vector<2x16xf32>
    %1356 = vector.broadcast %23 : vector<2x1xf32> to vector<2x16xf32>
    %1357 = arith.mulf %1356, %1353 : vector<2x16xf32>
    %cst_282 = arith.constant 1.000000e+00 : f32
    %1358 = vector.broadcast %cst_282 : f32 to vector<2x1xf32>
    %1359 = arith.subf %1358, %23 : vector<2x1xf32>
    %1360 = vector.broadcast %1359 : vector<2x1xf32> to vector<2x16xf32>
    %1361 = arith.mulf %1360, %1314 : vector<2x16xf32>
    %1362 = arith.addf %1357, %1361 : vector<2x16xf32>
    %1363 = vector.broadcast %23 : vector<2x1xf32> to vector<2x16xf32>
    %1364 = arith.mulf %1363, %1355 : vector<2x16xf32>
    %cst_283 = arith.constant 1.000000e+00 : f32
    %1365 = vector.broadcast %cst_283 : f32 to vector<2x1xf32>
    %1366 = arith.subf %1365, %23 : vector<2x1xf32>
    %1367 = vector.broadcast %1366 : vector<2x1xf32> to vector<2x16xf32>
    %1368 = arith.mulf %1367, %1321 : vector<2x16xf32>
    %1369 = arith.addf %1364, %1368 : vector<2x16xf32>
    %1370 = vector.broadcast %23 : vector<2x1xf32> to vector<2x16xf32>
    %1371 = arith.mulf %1370, %1355 : vector<2x16xf32>
    %cst_284 = arith.constant dense<0.000000e+00> : vector<2x64xf32>
    %1372 = tpu.matmul %174, %1126, %cst_284 {dimension_numbers = #tpu.dot_dimension_numbers<[1], [0], [0], [1], [0, 0, 1, 1], [], []>} : vector<2x16xf32>, vector<16x64xf32>, vector<2x64xf32> -> vector<2x64xf32>
    %1373 = vector.broadcast %1129 : vector<1x64xf32> to vector<2x64xf32>
    %1374 = arith.addf %1373, %1372 : vector<2x64xf32>
    %cst_285 = arith.constant dense<0.000000e+00> : vector<2x64xf32>
    %1375 = tpu.matmul %671, %1127, %cst_285 {dimension_numbers = #tpu.dot_dimension_numbers<[1], [0], [0], [1], [0, 0, 1, 1], [], []>} : vector<2x16xf32>, vector<16x64xf32>, vector<2x64xf32> -> vector<2x64xf32>
    %1376 = arith.addf %1374, %1375 : vector<2x64xf32>
    %cst_286 = arith.constant dense<0.000000e+00> : vector<2x64xf32>
    %1377 = tpu.matmul %1369, %1128, %cst_286 {dimension_numbers = #tpu.dot_dimension_numbers<[1], [0], [0], [1], [0, 0, 1, 1], [], []>} : vector<2x16xf32>, vector<16x64xf32>, vector<2x64xf32> -> vector<2x64xf32>
    %1378 = arith.addf %1376, %1377 : vector<2x64xf32>
    %1379 = vector.extract_strided_slice %1378 {offsets = [0, 0], sizes = [2, 16], strides = [1, 1]} : vector<2x64xf32> to vector<2x16xf32>
    %1380 = arith.negf %1379 : vector<2x16xf32>
    %1381 = math.exp %1380 : vector<2x16xf32>
    %cst_287 = arith.constant 1.000000e+00 : f32
    %1382 = vector.broadcast %cst_287 : f32 to vector<2x16xf32>
    %1383 = arith.addf %1382, %1381 : vector<2x16xf32>
    %1384 = arith.divf %1382, %1383 : vector<2x16xf32>
    %1385 = vector.extract_strided_slice %1378 {offsets = [0, 16], sizes = [2, 16], strides = [1, 1]} : vector<2x64xf32> to vector<2x16xf32>
    %1386 = arith.negf %1385 : vector<2x16xf32>
    %1387 = math.exp %1386 : vector<2x16xf32>
    %cst_288 = arith.constant 1.000000e+00 : f32
    %1388 = vector.broadcast %cst_288 : f32 to vector<2x16xf32>
    %1389 = arith.addf %1388, %1387 : vector<2x16xf32>
    %1390 = arith.divf %1388, %1389 : vector<2x16xf32>
    %1391 = vector.extract_strided_slice %1378 {offsets = [0, 32], sizes = [2, 16], strides = [1, 1]} : vector<2x64xf32> to vector<2x16xf32>
    %1392 = math.tanh %1391 : vector<2x16xf32>
    %1393 = vector.extract_strided_slice %1378 {offsets = [0, 48], sizes = [2, 16], strides = [1, 1]} : vector<2x64xf32> to vector<2x16xf32>
    %1394 = arith.negf %1393 : vector<2x16xf32>
    %1395 = math.exp %1394 : vector<2x16xf32>
    %cst_289 = arith.constant 1.000000e+00 : f32
    %1396 = vector.broadcast %cst_289 : f32 to vector<2x16xf32>
    %1397 = arith.addf %1396, %1395 : vector<2x16xf32>
    %1398 = arith.divf %1396, %1397 : vector<2x16xf32>
    %1399 = arith.mulf %1390, %1362 : vector<2x16xf32>
    %1400 = arith.mulf %1384, %1392 : vector<2x16xf32>
    %1401 = arith.addf %1399, %1400 : vector<2x16xf32>
    %1402 = math.tanh %1401 : vector<2x16xf32>
    %1403 = arith.mulf %1398, %1402 : vector<2x16xf32>
    %1404 = vector.broadcast %21 : vector<2x1xf32> to vector<2x16xf32>
    %1405 = arith.mulf %1404, %1401 : vector<2x16xf32>
    %cst_290 = arith.constant 1.000000e+00 : f32
    %1406 = vector.broadcast %cst_290 : f32 to vector<2x1xf32>
    %1407 = arith.subf %1406, %21 : vector<2x1xf32>
    %1408 = vector.broadcast %1407 : vector<2x1xf32> to vector<2x16xf32>
    %1409 = arith.mulf %1408, %1362 : vector<2x16xf32>
    %1410 = arith.addf %1405, %1409 : vector<2x16xf32>
    %1411 = vector.broadcast %21 : vector<2x1xf32> to vector<2x16xf32>
    %1412 = arith.mulf %1411, %1403 : vector<2x16xf32>
    %cst_291 = arith.constant 1.000000e+00 : f32
    %1413 = vector.broadcast %cst_291 : f32 to vector<2x1xf32>
    %1414 = arith.subf %1413, %21 : vector<2x1xf32>
    %1415 = vector.broadcast %1414 : vector<2x1xf32> to vector<2x16xf32>
    %1416 = arith.mulf %1415, %1369 : vector<2x16xf32>
    %1417 = arith.addf %1412, %1416 : vector<2x16xf32>
    %1418 = vector.broadcast %21 : vector<2x1xf32> to vector<2x16xf32>
    %1419 = arith.mulf %1418, %1403 : vector<2x16xf32>
    %cst_292 = arith.constant dense<0.000000e+00> : vector<2x64xf32>
    %1420 = tpu.matmul %128, %1126, %cst_292 {dimension_numbers = #tpu.dot_dimension_numbers<[1], [0], [0], [1], [0, 0, 1, 1], [], []>} : vector<2x16xf32>, vector<16x64xf32>, vector<2x64xf32> -> vector<2x64xf32>
    %1421 = vector.broadcast %1129 : vector<1x64xf32> to vector<2x64xf32>
    %1422 = arith.addf %1421, %1420 : vector<2x64xf32>
    %cst_293 = arith.constant dense<0.000000e+00> : vector<2x64xf32>
    %1423 = tpu.matmul %717, %1127, %cst_293 {dimension_numbers = #tpu.dot_dimension_numbers<[1], [0], [0], [1], [0, 0, 1, 1], [], []>} : vector<2x16xf32>, vector<16x64xf32>, vector<2x64xf32> -> vector<2x64xf32>
    %1424 = arith.addf %1422, %1423 : vector<2x64xf32>
    %cst_294 = arith.constant dense<0.000000e+00> : vector<2x64xf32>
    %1425 = tpu.matmul %1417, %1128, %cst_294 {dimension_numbers = #tpu.dot_dimension_numbers<[1], [0], [0], [1], [0, 0, 1, 1], [], []>} : vector<2x16xf32>, vector<16x64xf32>, vector<2x64xf32> -> vector<2x64xf32>
    %1426 = arith.addf %1424, %1425 : vector<2x64xf32>
    %1427 = vector.extract_strided_slice %1426 {offsets = [0, 0], sizes = [2, 16], strides = [1, 1]} : vector<2x64xf32> to vector<2x16xf32>
    %1428 = arith.negf %1427 : vector<2x16xf32>
    %1429 = math.exp %1428 : vector<2x16xf32>
    %cst_295 = arith.constant 1.000000e+00 : f32
    %1430 = vector.broadcast %cst_295 : f32 to vector<2x16xf32>
    %1431 = arith.addf %1430, %1429 : vector<2x16xf32>
    %1432 = arith.divf %1430, %1431 : vector<2x16xf32>
    %1433 = vector.extract_strided_slice %1426 {offsets = [0, 16], sizes = [2, 16], strides = [1, 1]} : vector<2x64xf32> to vector<2x16xf32>
    %1434 = arith.negf %1433 : vector<2x16xf32>
    %1435 = math.exp %1434 : vector<2x16xf32>
    %cst_296 = arith.constant 1.000000e+00 : f32
    %1436 = vector.broadcast %cst_296 : f32 to vector<2x16xf32>
    %1437 = arith.addf %1436, %1435 : vector<2x16xf32>
    %1438 = arith.divf %1436, %1437 : vector<2x16xf32>
    %1439 = vector.extract_strided_slice %1426 {offsets = [0, 32], sizes = [2, 16], strides = [1, 1]} : vector<2x64xf32> to vector<2x16xf32>
    %1440 = math.tanh %1439 : vector<2x16xf32>
    %1441 = vector.extract_strided_slice %1426 {offsets = [0, 48], sizes = [2, 16], strides = [1, 1]} : vector<2x64xf32> to vector<2x16xf32>
    %1442 = arith.negf %1441 : vector<2x16xf32>
    %1443 = math.exp %1442 : vector<2x16xf32>
    %cst_297 = arith.constant 1.000000e+00 : f32
    %1444 = vector.broadcast %cst_297 : f32 to vector<2x16xf32>
    %1445 = arith.addf %1444, %1443 : vector<2x16xf32>
    %1446 = arith.divf %1444, %1445 : vector<2x16xf32>
    %1447 = arith.mulf %1438, %1410 : vector<2x16xf32>
    %1448 = arith.mulf %1432, %1440 : vector<2x16xf32>
    %1449 = arith.addf %1447, %1448 : vector<2x16xf32>
    %1450 = math.tanh %1449 : vector<2x16xf32>
    %1451 = arith.mulf %1446, %1450 : vector<2x16xf32>
    %1452 = vector.broadcast %19 : vector<2x1xf32> to vector<2x16xf32>
    %1453 = arith.mulf %1452, %1449 : vector<2x16xf32>
    %cst_298 = arith.constant 1.000000e+00 : f32
    %1454 = vector.broadcast %cst_298 : f32 to vector<2x1xf32>
    %1455 = arith.subf %1454, %19 : vector<2x1xf32>
    %1456 = vector.broadcast %1455 : vector<2x1xf32> to vector<2x16xf32>
    %1457 = arith.mulf %1456, %1410 : vector<2x16xf32>
    %1458 = arith.addf %1453, %1457 : vector<2x16xf32>
    %1459 = vector.broadcast %19 : vector<2x1xf32> to vector<2x16xf32>
    %1460 = arith.mulf %1459, %1451 : vector<2x16xf32>
    %cst_299 = arith.constant 1.000000e+00 : f32
    %1461 = vector.broadcast %cst_299 : f32 to vector<2x1xf32>
    %1462 = arith.subf %1461, %19 : vector<2x1xf32>
    %1463 = vector.broadcast %1462 : vector<2x1xf32> to vector<2x16xf32>
    %1464 = arith.mulf %1463, %1417 : vector<2x16xf32>
    %1465 = arith.addf %1460, %1464 : vector<2x16xf32>
    %1466 = vector.broadcast %19 : vector<2x1xf32> to vector<2x16xf32>
    %1467 = arith.mulf %1466, %1451 : vector<2x16xf32>
    %cst_300 = arith.constant dense<0.000000e+00> : vector<2x64xf32>
    %1468 = tpu.matmul %82, %1126, %cst_300 {dimension_numbers = #tpu.dot_dimension_numbers<[1], [0], [0], [1], [0, 0, 1, 1], [], []>} : vector<2x16xf32>, vector<16x64xf32>, vector<2x64xf32> -> vector<2x64xf32>
    %1469 = vector.broadcast %1129 : vector<1x64xf32> to vector<2x64xf32>
    %1470 = arith.addf %1469, %1468 : vector<2x64xf32>
    %cst_301 = arith.constant dense<0.000000e+00> : vector<2x64xf32>
    %1471 = tpu.matmul %749, %1127, %cst_301 {dimension_numbers = #tpu.dot_dimension_numbers<[1], [0], [0], [1], [0, 0, 1, 1], [], []>} : vector<2x16xf32>, vector<16x64xf32>, vector<2x64xf32> -> vector<2x64xf32>
    %1472 = arith.addf %1470, %1471 : vector<2x64xf32>
    %cst_302 = arith.constant dense<0.000000e+00> : vector<2x64xf32>
    %1473 = tpu.matmul %1465, %1128, %cst_302 {dimension_numbers = #tpu.dot_dimension_numbers<[1], [0], [0], [1], [0, 0, 1, 1], [], []>} : vector<2x16xf32>, vector<16x64xf32>, vector<2x64xf32> -> vector<2x64xf32>
    %1474 = arith.addf %1472, %1473 : vector<2x64xf32>
    %1475 = vector.extract_strided_slice %1474 {offsets = [0, 0], sizes = [2, 16], strides = [1, 1]} : vector<2x64xf32> to vector<2x16xf32>
    %1476 = arith.negf %1475 : vector<2x16xf32>
    %1477 = math.exp %1476 : vector<2x16xf32>
    %cst_303 = arith.constant 1.000000e+00 : f32
    %1478 = vector.broadcast %cst_303 : f32 to vector<2x16xf32>
    %1479 = arith.addf %1478, %1477 : vector<2x16xf32>
    %1480 = arith.divf %1478, %1479 : vector<2x16xf32>
    %1481 = vector.extract_strided_slice %1474 {offsets = [0, 16], sizes = [2, 16], strides = [1, 1]} : vector<2x64xf32> to vector<2x16xf32>
    %1482 = arith.negf %1481 : vector<2x16xf32>
    %1483 = math.exp %1482 : vector<2x16xf32>
    %cst_304 = arith.constant 1.000000e+00 : f32
    %1484 = vector.broadcast %cst_304 : f32 to vector<2x16xf32>
    %1485 = arith.addf %1484, %1483 : vector<2x16xf32>
    %1486 = arith.divf %1484, %1485 : vector<2x16xf32>
    %1487 = vector.extract_strided_slice %1474 {offsets = [0, 32], sizes = [2, 16], strides = [1, 1]} : vector<2x64xf32> to vector<2x16xf32>
    %1488 = math.tanh %1487 : vector<2x16xf32>
    %1489 = vector.extract_strided_slice %1474 {offsets = [0, 48], sizes = [2, 16], strides = [1, 1]} : vector<2x64xf32> to vector<2x16xf32>
    %1490 = arith.negf %1489 : vector<2x16xf32>
    %1491 = math.exp %1490 : vector<2x16xf32>
    %cst_305 = arith.constant 1.000000e+00 : f32
    %1492 = vector.broadcast %cst_305 : f32 to vector<2x16xf32>
    %1493 = arith.addf %1492, %1491 : vector<2x16xf32>
    %1494 = arith.divf %1492, %1493 : vector<2x16xf32>
    %1495 = arith.mulf %1486, %1458 : vector<2x16xf32>
    %1496 = arith.mulf %1480, %1488 : vector<2x16xf32>
    %1497 = arith.addf %1495, %1496 : vector<2x16xf32>
    %1498 = math.tanh %1497 : vector<2x16xf32>
    %1499 = arith.mulf %1494, %1498 : vector<2x16xf32>
    %1500 = vector.broadcast %17 : vector<2x1xf32> to vector<2x16xf32>
    %1501 = arith.mulf %1500, %1499 : vector<2x16xf32>
    %c0_306 = arith.constant 0 : index
    %c0_307 = arith.constant 0 : index
    %1502 = vector.load %arg14[%c0_306, %c0_307] : memref<32x5xf32, #tpu.memory_space<vmem>>, vector<16x5xf32>
    %c16_308 = arith.constant 16 : index
    %c0_309 = arith.constant 0 : index
    %1503 = vector.load %arg14[%c16_308, %c0_309] : memref<32x5xf32, #tpu.memory_space<vmem>>, vector<16x5xf32>
    %c0_310 = arith.constant 0 : index
    %c0_311 = arith.constant 0 : index
    %1504 = vector.load %arg15[%c0_310, %c0_311] : memref<1x5xf32, #tpu.memory_space<vmem>>, vector<1x5xf32>
    %cst_312 = arith.constant dense<0.000000e+00> : vector<2x5xf32>
    %1505 = tpu.matmul %803, %1502, %cst_312 {dimension_numbers = #tpu.dot_dimension_numbers<[1], [0], [0], [1], [0, 0, 1, 1], [], []>} : vector<2x16xf32>, vector<16x5xf32>, vector<2x5xf32> -> vector<2x5xf32>
    %cst_313 = arith.constant dense<0.000000e+00> : vector<2x5xf32>
    %1506 = tpu.matmul %1501, %1503, %cst_313 {dimension_numbers = #tpu.dot_dimension_numbers<[1], [0], [0], [1], [0, 0, 1, 1], [], []>} : vector<2x16xf32>, vector<16x5xf32>, vector<2x5xf32> -> vector<2x5xf32>
    %1507 = arith.addf %1505, %1506 : vector<2x5xf32>
    %1508 = vector.broadcast %1504 : vector<1x5xf32> to vector<2x5xf32>
    %1509 = arith.addf %1507, %1508 : vector<2x5xf32>
    %c0_314 = arith.constant 0 : index
    %c0_315 = arith.constant 0 : index
    %c0_316 = arith.constant 0 : index
    %1510 = vector.load %arg19[%c0_314, %c0_315, %c0_316] : memref<8x2x5xf32, #tpu.memory_space<vmem>>, vector<1x2x5xf32>
    %1511 = vector.shape_cast %1510 : vector<1x2x5xf32> to vector<2x5xf32>
    %1512 = vector.shape_cast %1509 : vector<2x5xf32> to vector<1x2x5xf32>
    tpu.vector_store %arg19[%c0_314, %c0_315, %c0_316], %1512 {strides = array<i32>} : memref<8x2x5xf32, #tpu.memory_space<vmem>>, vector<1x2x5xf32>,
    %cst_317 = arith.constant dense<0.000000e+00> : vector<2x5xf32>
    %1513 = tpu.matmul %851, %1502, %cst_317 {dimension_numbers = #tpu.dot_dimension_numbers<[1], [0], [0], [1], [0, 0, 1, 1], [], []>} : vector<2x16xf32>, vector<16x5xf32>, vector<2x5xf32> -> vector<2x5xf32>
    %cst_318 = arith.constant dense<0.000000e+00> : vector<2x5xf32>
    %1514 = tpu.matmul %1467, %1503, %cst_318 {dimension_numbers = #tpu.dot_dimension_numbers<[1], [0], [0], [1], [0, 0, 1, 1], [], []>} : vector<2x16xf32>, vector<16x5xf32>, vector<2x5xf32> -> vector<2x5xf32>
    %1515 = arith.addf %1513, %1514 : vector<2x5xf32>
    %1516 = vector.broadcast %1504 : vector<1x5xf32> to vector<2x5xf32>
    %1517 = arith.addf %1515, %1516 : vector<2x5xf32>
    %c1_319 = arith.constant 1 : index
    %c0_320 = arith.constant 0 : index
    %c0_321 = arith.constant 0 : index
    %1518 = vector.load %arg19[%c1_319, %c0_320, %c0_321] : memref<8x2x5xf32, #tpu.memory_space<vmem>>, vector<1x2x5xf32>
    %1519 = vector.shape_cast %1518 : vector<1x2x5xf32> to vector<2x5xf32>
    %1520 = vector.shape_cast %1517 : vector<2x5xf32> to vector<1x2x5xf32>
    tpu.vector_store %arg19[%c1_319, %c0_320, %c0_321], %1520 {strides = array<i32>} : memref<8x2x5xf32, #tpu.memory_space<vmem>>, vector<1x2x5xf32>,
    %cst_322 = arith.constant dense<0.000000e+00> : vector<2x5xf32>
    %1521 = tpu.matmul %899, %1502, %cst_322 {dimension_numbers = #tpu.dot_dimension_numbers<[1], [0], [0], [1], [0, 0, 1, 1], [], []>} : vector<2x16xf32>, vector<16x5xf32>, vector<2x5xf32> -> vector<2x5xf32>
    %cst_323 = arith.constant dense<0.000000e+00> : vector<2x5xf32>
    %1522 = tpu.matmul %1419, %1503, %cst_323 {dimension_numbers = #tpu.dot_dimension_numbers<[1], [0], [0], [1], [0, 0, 1, 1], [], []>} : vector<2x16xf32>, vector<16x5xf32>, vector<2x5xf32> -> vector<2x5xf32>
    %1523 = arith.addf %1521, %1522 : vector<2x5xf32>
    %1524 = vector.broadcast %1504 : vector<1x5xf32> to vector<2x5xf32>
    %1525 = arith.addf %1523, %1524 : vector<2x5xf32>
    %c2_324 = arith.constant 2 : index
    %c0_325 = arith.constant 0 : index
    %c0_326 = arith.constant 0 : index
    %1526 = vector.load %arg19[%c2_324, %c0_325, %c0_326] : memref<8x2x5xf32, #tpu.memory_space<vmem>>, vector<1x2x5xf32>
    %1527 = vector.shape_cast %1526 : vector<1x2x5xf32> to vector<2x5xf32>
    %1528 = vector.shape_cast %1525 : vector<2x5xf32> to vector<1x2x5xf32>
    tpu.vector_store %arg19[%c2_324, %c0_325, %c0_326], %1528 {strides = array<i32>} : memref<8x2x5xf32, #tpu.memory_space<vmem>>, vector<1x2x5xf32>,
    %cst_327 = arith.constant dense<0.000000e+00> : vector<2x5xf32>
    %1529 = tpu.matmul %947, %1502, %cst_327 {dimension_numbers = #tpu.dot_dimension_numbers<[1], [0], [0], [1], [0, 0, 1, 1], [], []>} : vector<2x16xf32>, vector<16x5xf32>, vector<2x5xf32> -> vector<2x5xf32>
    %cst_328 = arith.constant dense<0.000000e+00> : vector<2x5xf32>
    %1530 = tpu.matmul %1371, %1503, %cst_328 {dimension_numbers = #tpu.dot_dimension_numbers<[1], [0], [0], [1], [0, 0, 1, 1], [], []>} : vector<2x16xf32>, vector<16x5xf32>, vector<2x5xf32> -> vector<2x5xf32>
    %1531 = arith.addf %1529, %1530 : vector<2x5xf32>
    %1532 = vector.broadcast %1504 : vector<1x5xf32> to vector<2x5xf32>
    %1533 = arith.addf %1531, %1532 : vector<2x5xf32>
    %c3_329 = arith.constant 3 : index
    %c0_330 = arith.constant 0 : index
    %c0_331 = arith.constant 0 : index
    %1534 = vector.load %arg19[%c3_329, %c0_330, %c0_331] : memref<8x2x5xf32, #tpu.memory_space<vmem>>, vector<1x2x5xf32>
    %1535 = vector.shape_cast %1534 : vector<1x2x5xf32> to vector<2x5xf32>
    %1536 = vector.shape_cast %1533 : vector<2x5xf32> to vector<1x2x5xf32>
    tpu.vector_store %arg19[%c3_329, %c0_330, %c0_331], %1536 {strides = array<i32>} : memref<8x2x5xf32, #tpu.memory_space<vmem>>, vector<1x2x5xf32>,
    %cst_332 = arith.constant dense<0.000000e+00> : vector<2x5xf32>
    %1537 = tpu.matmul %995, %1502, %cst_332 {dimension_numbers = #tpu.dot_dimension_numbers<[1], [0], [0], [1], [0, 0, 1, 1], [], []>} : vector<2x16xf32>, vector<16x5xf32>, vector<2x5xf32> -> vector<2x5xf32>
    %cst_333 = arith.constant dense<0.000000e+00> : vector<2x5xf32>
    %1538 = tpu.matmul %1323, %1503, %cst_333 {dimension_numbers = #tpu.dot_dimension_numbers<[1], [0], [0], [1], [0, 0, 1, 1], [], []>} : vector<2x16xf32>, vector<16x5xf32>, vector<2x5xf32> -> vector<2x5xf32>
    %1539 = arith.addf %1537, %1538 : vector<2x5xf32>
    %1540 = vector.broadcast %1504 : vector<1x5xf32> to vector<2x5xf32>
    %1541 = arith.addf %1539, %1540 : vector<2x5xf32>
    %c4_334 = arith.constant 4 : index
    %c0_335 = arith.constant 0 : index
    %c0_336 = arith.constant 0 : index
    %1542 = vector.load %arg19[%c4_334, %c0_335, %c0_336] : memref<8x2x5xf32, #tpu.memory_space<vmem>>, vector<1x2x5xf32>
    %1543 = vector.shape_cast %1542 : vector<1x2x5xf32> to vector<2x5xf32>
    %1544 = vector.shape_cast %1541 : vector<2x5xf32> to vector<1x2x5xf32>
    tpu.vector_store %arg19[%c4_334, %c0_335, %c0_336], %1544 {strides = array<i32>} : memref<8x2x5xf32, #tpu.memory_space<vmem>>, vector<1x2x5xf32>,
    %cst_337 = arith.constant dense<0.000000e+00> : vector<2x5xf32>
    %1545 = tpu.matmul %1043, %1502, %cst_337 {dimension_numbers = #tpu.dot_dimension_numbers<[1], [0], [0], [1], [0, 0, 1, 1], [], []>} : vector<2x16xf32>, vector<16x5xf32>, vector<2x5xf32> -> vector<2x5xf32>
    %cst_338 = arith.constant dense<0.000000e+00> : vector<2x5xf32>
    %1546 = tpu.matmul %1275, %1503, %cst_338 {dimension_numbers = #tpu.dot_dimension_numbers<[1], [0], [0], [1], [0, 0, 1, 1], [], []>} : vector<2x16xf32>, vector<16x5xf32>, vector<2x5xf32> -> vector<2x5xf32>
    %1547 = arith.addf %1545, %1546 : vector<2x5xf32>
    %1548 = vector.broadcast %1504 : vector<1x5xf32> to vector<2x5xf32>
    %1549 = arith.addf %1547, %1548 : vector<2x5xf32>
    %c5_339 = arith.constant 5 : index
    %c0_340 = arith.constant 0 : index
    %c0_341 = arith.constant 0 : index
    %1550 = vector.load %arg19[%c5_339, %c0_340, %c0_341] : memref<8x2x5xf32, #tpu.memory_space<vmem>>, vector<1x2x5xf32>
    %1551 = vector.shape_cast %1550 : vector<1x2x5xf32> to vector<2x5xf32>
    %1552 = vector.shape_cast %1549 : vector<2x5xf32> to vector<1x2x5xf32>
    tpu.vector_store %arg19[%c5_339, %c0_340, %c0_341], %1552 {strides = array<i32>} : memref<8x2x5xf32, #tpu.memory_space<vmem>>, vector<1x2x5xf32>,
    %cst_342 = arith.constant dense<0.000000e+00> : vector<2x5xf32>
    %1553 = tpu.matmul %1091, %1502, %cst_342 {dimension_numbers = #tpu.dot_dimension_numbers<[1], [0], [0], [1], [0, 0, 1, 1], [], []>} : vector<2x16xf32>, vector<16x5xf32>, vector<2x5xf32> -> vector<2x5xf32>
    %cst_343 = arith.constant dense<0.000000e+00> : vector<2x5xf32>
    %1554 = tpu.matmul %1227, %1503, %cst_343 {dimension_numbers = #tpu.dot_dimension_numbers<[1], [0], [0], [1], [0, 0, 1, 1], [], []>} : vector<2x16xf32>, vector<16x5xf32>, vector<2x5xf32> -> vector<2x5xf32>
    %1555 = arith.addf %1553, %1554 : vector<2x5xf32>
    %1556 = vector.broadcast %1504 : vector<1x5xf32> to vector<2x5xf32>
    %1557 = arith.addf %1555, %1556 : vector<2x5xf32>
    %c6_344 = arith.constant 6 : index
    %c0_345 = arith.constant 0 : index
    %c0_346 = arith.constant 0 : index
    %1558 = vector.load %arg19[%c6_344, %c0_345, %c0_346] : memref<8x2x5xf32, #tpu.memory_space<vmem>>, vector<1x2x5xf32>
    %1559 = vector.shape_cast %1558 : vector<1x2x5xf32> to vector<2x5xf32>
    %1560 = vector.shape_cast %1557 : vector<2x5xf32> to vector<1x2x5xf32>
    tpu.vector_store %arg19[%c6_344, %c0_345, %c0_346], %1560 {strides = array<i32>} : memref<8x2x5xf32, #tpu.memory_space<vmem>>, vector<1x2x5xf32>,
    %cst_347 = arith.constant dense<0.000000e+00> : vector<2x5xf32>
    %1561 = tpu.matmul %1125, %1502, %cst_347 {dimension_numbers = #tpu.dot_dimension_numbers<[1], [0], [0], [1], [0, 0, 1, 1], [], []>} : vector<2x16xf32>, vector<16x5xf32>, vector<2x5xf32> -> vector<2x5xf32>
    %cst_348 = arith.constant dense<0.000000e+00> : vector<2x5xf32>
    %1562 = tpu.matmul %1179, %1503, %cst_348 {dimension_numbers = #tpu.dot_dimension_numbers<[1], [0], [0], [1], [0, 0, 1, 1], [], []>} : vector<2x16xf32>, vector<16x5xf32>, vector<2x5xf32> -> vector<2x5xf32>
    %1563 = arith.addf %1561, %1562 : vector<2x5xf32>
    %1564 = vector.broadcast %1504 : vector<1x5xf32> to vector<2x5xf32>
    %1565 = arith.addf %1563, %1564 : vector<2x5xf32>
    %c7_349 = arith.constant 7 : index
    %c0_350 = arith.constant 0 : index
    %c0_351 = arith.constant 0 : index
    %1566 = vector.load %arg19[%c7_349, %c0_350, %c0_351] : memref<8x2x5xf32, #tpu.memory_space<vmem>>, vector<1x2x5xf32>
    %1567 = vector.shape_cast %1566 : vector<1x2x5xf32> to vector<2x5xf32>
    %1568 = vector.shape_cast %1565 : vector<2x5xf32> to vector<1x2x5xf32>
    tpu.vector_store %arg19[%c7_349, %c0_350, %c0_351], %1568 {strides = array<i32>} : memref<8x2x5xf32, #tpu.memory_space<vmem>>, vector<1x2x5xf32>,
    %c0_352 = arith.constant 0 : index
    %c0_353 = arith.constant 0 : index
    %1569 = vector.load %arg16[%c0_352, %c0_353] : memref<5x5xf32, #tpu.memory_space<vmem>>, vector<5x5xf32>
    %c0_354 = arith.constant 0 : index
    %c0_355 = arith.constant 0 : index
    %1570 = vector.load %arg17[%c0_354, %c0_355] : memref<1x5xf32, #tpu.memory_space<vmem>>, vector<1x5xf32>
    %1571 = vector.broadcast %1570 : vector<1x5xf32> to vector<2x5xf32>
    %1572 = arith.addf %1571, %1509 : vector<2x5xf32>
    %c0_i32 = arith.constant 0 : i32
    %1573 = vector.broadcast %c0_i32 : i32 to vector<2x5xi32>
    %c0_356 = arith.constant 0 : index
    %c0_357 = arith.constant 0 : index
    %c0_358 = arith.constant 0 : index
    %1574 = vector.load %arg20[%c0_356, %c0_357, %c0_358] : memref<8x2x5xi32, #tpu.memory_space<vmem>>, vector<1x2x5xi32>
    %1575 = vector.shape_cast %1574 : vector<1x2x5xi32> to vector<2x5xi32>
    %1576 = vector.shape_cast %1573 : vector<2x5xi32> to vector<1x2x5xi32>
    tpu.vector_store %arg20[%c0_356, %c0_357, %c0_358], %1576 {strides = array<i32>} : memref<8x2x5xi32, #tpu.memory_space<vmem>>, vector<1x2x5xi32>,
    %1577 = vector.shape_cast %1572 : vector<2x5xf32> to vector<2x1x5xf32>
    %1578 = vector.shape_cast %1569 : vector<5x5xf32> to vector<1x5x5xf32>
    %1579 = vector.broadcast %1577 : vector<2x1x5xf32> to vector<2x5x5xf32>
    %1580 = vector.broadcast %1578 : vector<1x5x5xf32> to vector<2x5x5xf32>
    %1581 = arith.addf %1579, %1580 : vector<2x5x5xf32>
    %1582 = vector.shape_cast %1517 : vector<2x5xf32> to vector<2x5x1xf32>
    %1583 = vector.broadcast %1582 : vector<2x5x1xf32> to vector<2x5x5xf32>
    %1584 = arith.addf %1581, %1583 : vector<2x5x5xf32>
    %cst_359 = arith.constant dense<0xFF800000> : vector<2x5xf32>
    %1585 = vector.multi_reduction <maximumf>, %1584, %cst_359 [2] : vector<2x5x5xf32> to vector<2x5xf32>
    %1586 = vector.shape_cast %1585 : vector<2x5xf32> to vector<2x5x1xf32>
    %1587 = tpu.iota {dimensions = array<i32: 2>} : vector<2x5x5xi32>
    %1588 = vector.broadcast %1586 : vector<2x5x1xf32> to vector<2x5x5xf32>
    %1589 = arith.cmpf oge, %1584, %1588 : vector<2x5x5xf32>
    %c5_i32 = arith.constant 5 : i32
    %1590 = vector.broadcast %c5_i32 : i32 to vector<2x5x5xi32>
    %1591 = arith.select %1589, %1587, %1590 : vector<2x5x5xi1>, vector<2x5x5xi32>
    %cst_360 = arith.constant dense<2147483647> : vector<2x5xi32>
    %1592 = vector.multi_reduction <minsi>, %1591, %cst_360 [2] : vector<2x5x5xi32> to vector<2x5xi32>
    %cst_361 = arith.constant 0.000000e+00 : f32
    %1593 = vector.broadcast %cst_361 : f32 to vector<2x1xf32>
    %1594 = arith.cmpf ogt, %19, %1593 : vector<2x1xf32>
    %1595 = vector.shape_cast %1586 : vector<2x5x1xf32> to vector<2x5xf32>
    %1596 = vector.shape_cast %1594 : vector<2x1xi1> to vector<2x1xi1>
    %1597 = vector.broadcast %1596 : vector<2x1xi1> to vector<2x5xi1>
    %1598 = arith.select %1597, %1595, %1572 : vector<2x5xi1>, vector<2x5xf32>
    %c1_362 = arith.constant 1 : index
    %c0_363 = arith.constant 0 : index
    %c0_364 = arith.constant 0 : index
    %1599 = vector.load %arg20[%c1_362, %c0_363, %c0_364] : memref<8x2x5xi32, #tpu.memory_space<vmem>>, vector<1x2x5xi32>
    %1600 = vector.shape_cast %1599 : vector<1x2x5xi32> to vector<2x5xi32>
    %1601 = vector.shape_cast %1592 : vector<2x5xi32> to vector<1x2x5xi32>
    tpu.vector_store %arg20[%c1_362, %c0_363, %c0_364], %1601 {strides = array<i32>} : memref<8x2x5xi32, #tpu.memory_space<vmem>>, vector<1x2x5xi32>,
    %1602 = vector.shape_cast %1598 : vector<2x5xf32> to vector<2x1x5xf32>
    %1603 = vector.shape_cast %1569 : vector<5x5xf32> to vector<1x5x5xf32>
    %1604 = vector.broadcast %1602 : vector<2x1x5xf32> to vector<2x5x5xf32>
    %1605 = vector.broadcast %1603 : vector<1x5x5xf32> to vector<2x5x5xf32>
    %1606 = arith.addf %1604, %1605 : vector<2x5x5xf32>
    %1607 = vector.shape_cast %1525 : vector<2x5xf32> to vector<2x5x1xf32>
    %1608 = vector.broadcast %1607 : vector<2x5x1xf32> to vector<2x5x5xf32>
    %1609 = arith.addf %1606, %1608 : vector<2x5x5xf32>
    %cst_365 = arith.constant dense<0xFF800000> : vector<2x5xf32>
    %1610 = vector.multi_reduction <maximumf>, %1609, %cst_365 [2] : vector<2x5x5xf32> to vector<2x5xf32>
    %1611 = vector.shape_cast %1610 : vector<2x5xf32> to vector<2x5x1xf32>
    %1612 = tpu.iota {dimensions = array<i32: 2>} : vector<2x5x5xi32>
    %1613 = vector.broadcast %1611 : vector<2x5x1xf32> to vector<2x5x5xf32>
    %1614 = arith.cmpf oge, %1609, %1613 : vector<2x5x5xf32>
    %c5_i32_366 = arith.constant 5 : i32
    %1615 = vector.broadcast %c5_i32_366 : i32 to vector<2x5x5xi32>
    %1616 = arith.select %1614, %1612, %1615 : vector<2x5x5xi1>, vector<2x5x5xi32>
    %cst_367 = arith.constant dense<2147483647> : vector<2x5xi32>
    %1617 = vector.multi_reduction <minsi>, %1616, %cst_367 [2] : vector<2x5x5xi32> to vector<2x5xi32>
    %cst_368 = arith.constant 0.000000e+00 : f32
    %1618 = vector.broadcast %cst_368 : f32 to vector<2x1xf32>
    %1619 = arith.cmpf ogt, %21, %1618 : vector<2x1xf32>
    %1620 = vector.shape_cast %1611 : vector<2x5x1xf32> to vector<2x5xf32>
    %1621 = vector.shape_cast %1619 : vector<2x1xi1> to vector<2x1xi1>
    %1622 = vector.broadcast %1621 : vector<2x1xi1> to vector<2x5xi1>
    %1623 = arith.select %1622, %1620, %1598 : vector<2x5xi1>, vector<2x5xf32>
    %c2_369 = arith.constant 2 : index
    %c0_370 = arith.constant 0 : index
    %c0_371 = arith.constant 0 : index
    %1624 = vector.load %arg20[%c2_369, %c0_370, %c0_371] : memref<8x2x5xi32, #tpu.memory_space<vmem>>, vector<1x2x5xi32>
    %1625 = vector.shape_cast %1624 : vector<1x2x5xi32> to vector<2x5xi32>
    %1626 = vector.shape_cast %1617 : vector<2x5xi32> to vector<1x2x5xi32>
    tpu.vector_store %arg20[%c2_369, %c0_370, %c0_371], %1626 {strides = array<i32>} : memref<8x2x5xi32, #tpu.memory_space<vmem>>, vector<1x2x5xi32>,
    %1627 = vector.shape_cast %1623 : vector<2x5xf32> to vector<2x1x5xf32>
    %1628 = vector.shape_cast %1569 : vector<5x5xf32> to vector<1x5x5xf32>
    %1629 = vector.broadcast %1627 : vector<2x1x5xf32> to vector<2x5x5xf32>
    %1630 = vector.broadcast %1628 : vector<1x5x5xf32> to vector<2x5x5xf32>
    %1631 = arith.addf %1629, %1630 : vector<2x5x5xf32>
    %1632 = vector.shape_cast %1533 : vector<2x5xf32> to vector<2x5x1xf32>
    %1633 = vector.broadcast %1632 : vector<2x5x1xf32> to vector<2x5x5xf32>
    %1634 = arith.addf %1631, %1633 : vector<2x5x5xf32>
    %cst_372 = arith.constant dense<0xFF800000> : vector<2x5xf32>
    %1635 = vector.multi_reduction <maximumf>, %1634, %cst_372 [2] : vector<2x5x5xf32> to vector<2x5xf32>
    %1636 = vector.shape_cast %1635 : vector<2x5xf32> to vector<2x5x1xf32>
    %1637 = tpu.iota {dimensions = array<i32: 2>} : vector<2x5x5xi32>
    %1638 = vector.broadcast %1636 : vector<2x5x1xf32> to vector<2x5x5xf32>
    %1639 = arith.cmpf oge, %1634, %1638 : vector<2x5x5xf32>
    %c5_i32_373 = arith.constant 5 : i32
    %1640 = vector.broadcast %c5_i32_373 : i32 to vector<2x5x5xi32>
    %1641 = arith.select %1639, %1637, %1640 : vector<2x5x5xi1>, vector<2x5x5xi32>
    %cst_374 = arith.constant dense<2147483647> : vector<2x5xi32>
    %1642 = vector.multi_reduction <minsi>, %1641, %cst_374 [2] : vector<2x5x5xi32> to vector<2x5xi32>
    %cst_375 = arith.constant 0.000000e+00 : f32
    %1643 = vector.broadcast %cst_375 : f32 to vector<2x1xf32>
    %1644 = arith.cmpf ogt, %23, %1643 : vector<2x1xf32>
    %1645 = vector.shape_cast %1636 : vector<2x5x1xf32> to vector<2x5xf32>
    %1646 = vector.shape_cast %1644 : vector<2x1xi1> to vector<2x1xi1>
    %1647 = vector.broadcast %1646 : vector<2x1xi1> to vector<2x5xi1>
    %1648 = arith.select %1647, %1645, %1623 : vector<2x5xi1>, vector<2x5xf32>
    %c3_376 = arith.constant 3 : index
    %c0_377 = arith.constant 0 : index
    %c0_378 = arith.constant 0 : index
    %1649 = vector.load %arg20[%c3_376, %c0_377, %c0_378] : memref<8x2x5xi32, #tpu.memory_space<vmem>>, vector<1x2x5xi32>
    %1650 = vector.shape_cast %1649 : vector<1x2x5xi32> to vector<2x5xi32>
    %1651 = vector.shape_cast %1642 : vector<2x5xi32> to vector<1x2x5xi32>
    tpu.vector_store %arg20[%c3_376, %c0_377, %c0_378], %1651 {strides = array<i32>} : memref<8x2x5xi32, #tpu.memory_space<vmem>>, vector<1x2x5xi32>,
    %1652 = vector.shape_cast %1648 : vector<2x5xf32> to vector<2x1x5xf32>
    %1653 = vector.shape_cast %1569 : vector<5x5xf32> to vector<1x5x5xf32>
    %1654 = vector.broadcast %1652 : vector<2x1x5xf32> to vector<2x5x5xf32>
    %1655 = vector.broadcast %1653 : vector<1x5x5xf32> to vector<2x5x5xf32>
    %1656 = arith.addf %1654, %1655 : vector<2x5x5xf32>
    %1657 = vector.shape_cast %1541 : vector<2x5xf32> to vector<2x5x1xf32>
    %1658 = vector.broadcast %1657 : vector<2x5x1xf32> to vector<2x5x5xf32>
    %1659 = arith.addf %1656, %1658 : vector<2x5x5xf32>
    %cst_379 = arith.constant dense<0xFF800000> : vector<2x5xf32>
    %1660 = vector.multi_reduction <maximumf>, %1659, %cst_379 [2] : vector<2x5x5xf32> to vector<2x5xf32>
    %1661 = vector.shape_cast %1660 : vector<2x5xf32> to vector<2x5x1xf32>
    %1662 = tpu.iota {dimensions = array<i32: 2>} : vector<2x5x5xi32>
    %1663 = vector.broadcast %1661 : vector<2x5x1xf32> to vector<2x5x5xf32>
    %1664 = arith.cmpf oge, %1659, %1663 : vector<2x5x5xf32>
    %c5_i32_380 = arith.constant 5 : i32
    %1665 = vector.broadcast %c5_i32_380 : i32 to vector<2x5x5xi32>
    %1666 = arith.select %1664, %1662, %1665 : vector<2x5x5xi1>, vector<2x5x5xi32>
    %cst_381 = arith.constant dense<2147483647> : vector<2x5xi32>
    %1667 = vector.multi_reduction <minsi>, %1666, %cst_381 [2] : vector<2x5x5xi32> to vector<2x5xi32>
    %cst_382 = arith.constant 0.000000e+00 : f32
    %1668 = vector.broadcast %cst_382 : f32 to vector<2x1xf32>
    %1669 = arith.cmpf ogt, %25, %1668 : vector<2x1xf32>
    %1670 = vector.shape_cast %1661 : vector<2x5x1xf32> to vector<2x5xf32>
    %1671 = vector.shape_cast %1669 : vector<2x1xi1> to vector<2x1xi1>
    %1672 = vector.broadcast %1671 : vector<2x1xi1> to vector<2x5xi1>
    %1673 = arith.select %1672, %1670, %1648 : vector<2x5xi1>, vector<2x5xf32>
    %c4_383 = arith.constant 4 : index
    %c0_384 = arith.constant 0 : index
    %c0_385 = arith.constant 0 : index
    %1674 = vector.load %arg20[%c4_383, %c0_384, %c0_385] : memref<8x2x5xi32, #tpu.memory_space<vmem>>, vector<1x2x5xi32>
    %1675 = vector.shape_cast %1674 : vector<1x2x5xi32> to vector<2x5xi32>
    %1676 = vector.shape_cast %1667 : vector<2x5xi32> to vector<1x2x5xi32>
    tpu.vector_store %arg20[%c4_383, %c0_384, %c0_385], %1676 {strides = array<i32>} : memref<8x2x5xi32, #tpu.memory_space<vmem>>, vector<1x2x5xi32>,
    %1677 = vector.shape_cast %1673 : vector<2x5xf32> to vector<2x1x5xf32>
    %1678 = vector.shape_cast %1569 : vector<5x5xf32> to vector<1x5x5xf32>
    %1679 = vector.broadcast %1677 : vector<2x1x5xf32> to vector<2x5x5xf32>
    %1680 = vector.broadcast %1678 : vector<1x5x5xf32> to vector<2x5x5xf32>
    %1681 = arith.addf %1679, %1680 : vector<2x5x5xf32>
    %1682 = vector.shape_cast %1549 : vector<2x5xf32> to vector<2x5x1xf32>
    %1683 = vector.broadcast %1682 : vector<2x5x1xf32> to vector<2x5x5xf32>
    %1684 = arith.addf %1681, %1683 : vector<2x5x5xf32>
    %cst_386 = arith.constant dense<0xFF800000> : vector<2x5xf32>
    %1685 = vector.multi_reduction <maximumf>, %1684, %cst_386 [2] : vector<2x5x5xf32> to vector<2x5xf32>
    %1686 = vector.shape_cast %1685 : vector<2x5xf32> to vector<2x5x1xf32>
    %1687 = tpu.iota {dimensions = array<i32: 2>} : vector<2x5x5xi32>
    %1688 = vector.broadcast %1686 : vector<2x5x1xf32> to vector<2x5x5xf32>
    %1689 = arith.cmpf oge, %1684, %1688 : vector<2x5x5xf32>
    %c5_i32_387 = arith.constant 5 : i32
    %1690 = vector.broadcast %c5_i32_387 : i32 to vector<2x5x5xi32>
    %1691 = arith.select %1689, %1687, %1690 : vector<2x5x5xi1>, vector<2x5x5xi32>
    %cst_388 = arith.constant dense<2147483647> : vector<2x5xi32>
    %1692 = vector.multi_reduction <minsi>, %1691, %cst_388 [2] : vector<2x5x5xi32> to vector<2x5xi32>
    %cst_389 = arith.constant 0.000000e+00 : f32
    %1693 = vector.broadcast %cst_389 : f32 to vector<2x1xf32>
    %1694 = arith.cmpf ogt, %27, %1693 : vector<2x1xf32>
    %1695 = vector.shape_cast %1686 : vector<2x5x1xf32> to vector<2x5xf32>
    %1696 = vector.shape_cast %1694 : vector<2x1xi1> to vector<2x1xi1>
    %1697 = vector.broadcast %1696 : vector<2x1xi1> to vector<2x5xi1>
    %1698 = arith.select %1697, %1695, %1673 : vector<2x5xi1>, vector<2x5xf32>
    %c5_390 = arith.constant 5 : index
    %c0_391 = arith.constant 0 : index
    %c0_392 = arith.constant 0 : index
    %1699 = vector.load %arg20[%c5_390, %c0_391, %c0_392] : memref<8x2x5xi32, #tpu.memory_space<vmem>>, vector<1x2x5xi32>
    %1700 = vector.shape_cast %1699 : vector<1x2x5xi32> to vector<2x5xi32>
    %1701 = vector.shape_cast %1692 : vector<2x5xi32> to vector<1x2x5xi32>
    tpu.vector_store %arg20[%c5_390, %c0_391, %c0_392], %1701 {strides = array<i32>} : memref<8x2x5xi32, #tpu.memory_space<vmem>>, vector<1x2x5xi32>,
    %1702 = vector.shape_cast %1698 : vector<2x5xf32> to vector<2x1x5xf32>
    %1703 = vector.shape_cast %1569 : vector<5x5xf32> to vector<1x5x5xf32>
    %1704 = vector.broadcast %1702 : vector<2x1x5xf32> to vector<2x5x5xf32>
    %1705 = vector.broadcast %1703 : vector<1x5x5xf32> to vector<2x5x5xf32>
    %1706 = arith.addf %1704, %1705 : vector<2x5x5xf32>
    %1707 = vector.shape_cast %1557 : vector<2x5xf32> to vector<2x5x1xf32>
    %1708 = vector.broadcast %1707 : vector<2x5x1xf32> to vector<2x5x5xf32>
    %1709 = arith.addf %1706, %1708 : vector<2x5x5xf32>
    %cst_393 = arith.constant dense<0xFF800000> : vector<2x5xf32>
    %1710 = vector.multi_reduction <maximumf>, %1709, %cst_393 [2] : vector<2x5x5xf32> to vector<2x5xf32>
    %1711 = vector.shape_cast %1710 : vector<2x5xf32> to vector<2x5x1xf32>
    %1712 = tpu.iota {dimensions = array<i32: 2>} : vector<2x5x5xi32>
    %1713 = vector.broadcast %1711 : vector<2x5x1xf32> to vector<2x5x5xf32>
    %1714 = arith.cmpf oge, %1709, %1713 : vector<2x5x5xf32>
    %c5_i32_394 = arith.constant 5 : i32
    %1715 = vector.broadcast %c5_i32_394 : i32 to vector<2x5x5xi32>
    %1716 = arith.select %1714, %1712, %1715 : vector<2x5x5xi1>, vector<2x5x5xi32>
    %cst_395 = arith.constant dense<2147483647> : vector<2x5xi32>
    %1717 = vector.multi_reduction <minsi>, %1716, %cst_395 [2] : vector<2x5x5xi32> to vector<2x5xi32>
    %cst_396 = arith.constant 0.000000e+00 : f32
    %1718 = vector.broadcast %cst_396 : f32 to vector<2x1xf32>
    %1719 = arith.cmpf ogt, %29, %1718 : vector<2x1xf32>
    %1720 = vector.shape_cast %1711 : vector<2x5x1xf32> to vector<2x5xf32>
    %1721 = vector.shape_cast %1719 : vector<2x1xi1> to vector<2x1xi1>
    %1722 = vector.broadcast %1721 : vector<2x1xi1> to vector<2x5xi1>
    %1723 = arith.select %1722, %1720, %1698 : vector<2x5xi1>, vector<2x5xf32>
    %c6_397 = arith.constant 6 : index
    %c0_398 = arith.constant 0 : index
    %c0_399 = arith.constant 0 : index
    %1724 = vector.load %arg20[%c6_397, %c0_398, %c0_399] : memref<8x2x5xi32, #tpu.memory_space<vmem>>, vector<1x2x5xi32>
    %1725 = vector.shape_cast %1724 : vector<1x2x5xi32> to vector<2x5xi32>
    %1726 = vector.shape_cast %1717 : vector<2x5xi32> to vector<1x2x5xi32>
    tpu.vector_store %arg20[%c6_397, %c0_398, %c0_399], %1726 {strides = array<i32>} : memref<8x2x5xi32, #tpu.memory_space<vmem>>, vector<1x2x5xi32>,
    %1727 = vector.shape_cast %1723 : vector<2x5xf32> to vector<2x1x5xf32>
    %1728 = vector.shape_cast %1569 : vector<5x5xf32> to vector<1x5x5xf32>
    %1729 = vector.broadcast %1727 : vector<2x1x5xf32> to vector<2x5x5xf32>
    %1730 = vector.broadcast %1728 : vector<1x5x5xf32> to vector<2x5x5xf32>
    %1731 = arith.addf %1729, %1730 : vector<2x5x5xf32>
    %1732 = vector.shape_cast %1565 : vector<2x5xf32> to vector<2x5x1xf32>
    %1733 = vector.broadcast %1732 : vector<2x5x1xf32> to vector<2x5x5xf32>
    %1734 = arith.addf %1731, %1733 : vector<2x5x5xf32>
    %cst_400 = arith.constant dense<0xFF800000> : vector<2x5xf32>
    %1735 = vector.multi_reduction <maximumf>, %1734, %cst_400 [2] : vector<2x5x5xf32> to vector<2x5xf32>
    %1736 = vector.shape_cast %1735 : vector<2x5xf32> to vector<2x5x1xf32>
    %1737 = tpu.iota {dimensions = array<i32: 2>} : vector<2x5x5xi32>
    %1738 = vector.broadcast %1736 : vector<2x5x1xf32> to vector<2x5x5xf32>
    %1739 = arith.cmpf oge, %1734, %1738 : vector<2x5x5xf32>
    %c5_i32_401 = arith.constant 5 : i32
    %1740 = vector.broadcast %c5_i32_401 : i32 to vector<2x5x5xi32>
    %1741 = arith.select %1739, %1737, %1740 : vector<2x5x5xi1>, vector<2x5x5xi32>
    %cst_402 = arith.constant dense<2147483647> : vector<2x5xi32>
    %1742 = vector.multi_reduction <minsi>, %1741, %cst_402 [2] : vector<2x5x5xi32> to vector<2x5xi32>
    %cst_403 = arith.constant 0.000000e+00 : f32
    %1743 = vector.broadcast %cst_403 : f32 to vector<2x1xf32>
    %1744 = arith.cmpf ogt, %31, %1743 : vector<2x1xf32>
    %1745 = vector.shape_cast %1736 : vector<2x5x1xf32> to vector<2x5xf32>
    %1746 = vector.shape_cast %1744 : vector<2x1xi1> to vector<2x1xi1>
    %1747 = vector.broadcast %1746 : vector<2x1xi1> to vector<2x5xi1>
    %1748 = arith.select %1747, %1745, %1723 : vector<2x5xi1>, vector<2x5xf32>
    %c7_404 = arith.constant 7 : index
    %c0_405 = arith.constant 0 : index
    %c0_406 = arith.constant 0 : index
    %1749 = vector.load %arg20[%c7_404, %c0_405, %c0_406] : memref<8x2x5xi32, #tpu.memory_space<vmem>>, vector<1x2x5xi32>
    %1750 = vector.shape_cast %1749 : vector<1x2x5xi32> to vector<2x5xi32>
    %1751 = vector.shape_cast %1742 : vector<2x5xi32> to vector<1x2x5xi32>
    tpu.vector_store %arg20[%c7_404, %c0_405, %c0_406], %1751 {strides = array<i32>} : memref<8x2x5xi32, #tpu.memory_space<vmem>>, vector<1x2x5xi32>,
    %c0_407 = arith.constant 0 : index
    %c0_408 = arith.constant 0 : index
    %1752 = vector.load %arg18[%c0_407, %c0_408] : memref<1x5xf32, #tpu.memory_space<vmem>>, vector<1x5xf32>
    %1753 = vector.broadcast %1752 : vector<1x5xf32> to vector<2x5xf32>
    %1754 = arith.addf %1748, %1753 : vector<2x5xf32>
    %c0_409 = arith.constant 0 : index
    %c0_410 = arith.constant 0 : index
    %1755 = vector.load %arg21[%c0_409, %c0_410] : memref<2x5xf32, #tpu.memory_space<vmem>>, vector<2x5xf32>
    tpu.vector_store %arg21[%c0_409, %c0_410], %1754 {strides = array<i32>} : memref<2x5xf32, #tpu.memory_space<vmem>>, vector<2x5xf32>,
    return
  }
}

</mosaic_0001>

<bundles_post_ra>
// kernel: custom-call.5
= control target key start
LH: loop header
LB: loop body
LE: loop exit
PB: predicated region body
PF: predicated region fallthrough
CT: control target
= control target key end

     0   :  { %s6_s0 = inlined_call_operand.vmem [shape: s32[7,2], index: 0, kind: output, shape index: {}]  }

// kernel: bilstm_crf_forward.1
= control target key start
LH: loop header
LB: loop body
LE: loop exit
PB: predicated region body
PF: predicated region fallthrough
CT: control target
= control target key end

     0   :  { %vm100_vm0 = vcmask 130048   ;;  %v4978_v5 = vmov 0.0   ;;  %s4979_s25 = smov 96   ;;  %v4981_v27 = vmov 0   ;;  %s6704_s30 = smov 80   ;;  %s6674_s2 = inlined_call_operand.vmem [shape: f32[16,64], index: 2, kind: input, shape index: {}]   ;;  %s6675_s3 = inlined_call_operand.vmem [shape: f32[16,64], index: 3, kind: input, shape index: {}]   ;;  %s6676_s0 = inlined_call_operand.vmem [shape: f32[8,2,16], index: 0, kind: input, shape index: {}]   ;;  %s6677_s4 = inlined_call_operand.vmem [shape: f32[1,64], index: 4, kind: input, shape index: {}]   ;;  %s6678_s1 = inlined_call_operand.vmem [shape: f32[8,2,1], index: 1, kind: input, shape index: {}]   ;;  %s6679_s5 = inlined_call_operand.vmem [shape: f32[16,64], index: 5, kind: input, shape index: {}]   ;;  %s6680_s6 = inlined_call_operand.vmem [shape: f32[16,64], index: 6, kind: input, shape index: {}]   ;;  %s6681_s7 = inlined_call_operand.vmem [shape: f32[1,64], index: 7, kind: input, shape index: {}]   ;;  %s6682_s8 = inlined_call_operand.vmem [shape: f32[32,64], index: 8, kind: input, shape index: {}]   ;;  %s6683_s10 = inlined_call_operand.vmem [shape: f32[1,64], index: 10, kind: input, shape index: {}]   ;;  %s6684_s9 = inlined_call_operand.vmem [shape: f32[16,64], index: 9, kind: input, shape index: {}]   ;;  %s6685_s11 = inlined_call_operand.vmem [shape: f32[32,64], index: 11, kind: input, shape index: {}]   ;;  %s6686_s12 = inlined_call_operand.vmem [shape: f32[16,64], index: 12, kind: input, shape index: {}]   ;;  %s6687_s13 = inlined_call_operand.vmem [shape: f32[1,64], index: 13, kind: input, shape index: {}]   ;;  %s6688_s14 = inlined_call_operand.vmem [shape: f32[32,5], index: 14, kind: input, shape index: {}]   ;;  %s6689_s15 = inlined_call_operand.vmem [shape: f32[1,5], index: 15, kind: input, shape index: {}]   ;;  %s6690_s17 = inlined_call_operand.vmem [shape: f32[1,5], index: 17, kind: input, shape index: {}]   ;;  %s6691_s19 = inlined_call_operand.vmem [shape: f32[8,2,5], index: 19, kind: output, shape index: {0}]   ;;  %s6692_s16 = inlined_call_operand.vmem [shape: f32[5,5], index: 16, kind: input, shape index: {}]   ;;  %s6693_s20 = inlined_call_operand.vmem [shape: s32[8,2,5], index: 20, kind: output, shape index: {1}]   ;;  %s6694_s18 = inlined_call_operand.vmem [shape: f32[1,5], index: 18, kind: input, shape index: {}]   ;;  %s6695_s21 = inlined_call_operand.vmem [shape: f32[2,5], index: 21, kind: output, shape index: {2}]  }
   0x1   :  { %6708 = sst [smem:[#allocation2_spill]] %s6674_s2  ;;  %4690 = vset.pattern.permute.xlu1 %v4981_v27  ;;  %4691 = vset.pattern.permute.xlu2 %v4981_v27 }
   0x2   :  { %6709 = sst [smem:[#allocation3_spill]] %s6675_s3  ;;  %4692 = vset.pattern.permute.xlu0 %v4981_v27 }
   0x3   :  { %6710 = sst [smem:[#allocation4_spill]] %s6676_s0 }
   0x4   :  { %6711 = sst [smem:[#allocation5_spill]] %s6677_s4  ;;  %s6721_s4 = smov 32  }
   0x5   :  { %6712 = sst [smem:[#allocation6_spill]] %s6678_s1  ;;  %s6702_s1 = smov 32  }
   0x6   :  { %6713 = sst [smem:[#allocation7_spill]] %s6679_s5 }
   0x7   :  { %s6714_s26 = sld [smem:[#allocation2_spill]] }
   0x8   :  { %s6715_s29 = sld [smem:[#allocation3_spill]] }
   0x9   :  { %s6716_s5 = sld [smem:[#allocation4_spill]] }
   0xa   :  { %s6717_s0 = sld [smem:[#allocation5_spill]] }
   0xb   :  { %s6718_s28 = sld [smem:[#allocation6_spill]] }
   0xd   :  { %v5097_v0 = vld [vmem:[%s6714_s26 + $0x8] sm:$0xff]  ;;  %v5102_v1 = vld [vmem:[%s6714_s26] sm:$0xff]  ;;  %s6706_s26 = smov 16  }
   0xe   :  { %v5107_v2 = vld [vmem:[%s6715_s29 + $0x8] sm:$0xff]  ;;  %118 = vmatpush.msra.mxu0 %v5097_v0  ;;  %v5119_v4 = vld [vmem:[%s6715_s29] sm:$0xff]  ;;  %222 = vmatpush.msra.mxu2 %v5097_v0  ;;  %s6719_s29 = sld [smem:[#allocation7_spill]] }
   0xf   :  { %145 = vmatpush.msra.mxu1 %v5107_v2  ;;  %v5114_v3 = vld [vmem:[%s6716_s5] sm:$0x3]  ;;  %248 = vmatpush.msra.mxu3 %v5107_v2  ;;  %v5160_v34 = vld [vmem:[%s6716_s5 + $0x2] sm:$0x3] }
  0x10   :  { %119 = vmatpush.msra.mxu0 %v5102_v1  ;;  %223 = vmatpush.msra.mxu2 %v5102_v1  ;;  %v5145_v6 = vld [vmem:[%s6717_s0] ss:$0 sm:$0xff] }
  0x11   :  { %146 = vmatpush.msra.mxu1 %v5119_v4  ;;  %4546 = vmatmul.msk.f32.vlgmr.msra.gmra.mxu0 %vm100_vm0, %v5114_v3  ;;  %v80_v28 = vld [vmem:[%s6718_s28] sm:$0x3]  ;;  %v4539_v51 = vld [vmem:[%s6718_s28 + $0x2] sm:$0x3] }
  0x12   :  { %147 = vmatmul.f32.vlgmr.msra.gmra.mxu1 %v4978_v5  ;;  %249 = vmatpush.msra.mxu3 %v5119_v4  ;;  %v195_v29 = vsub.f32 1.0, %v80_v28 }
  0x13   :  { %326 = vmatpush.msrb.mxu0 %v5097_v0  ;;  %352 = vmatpush.msrb.mxu1 %v5107_v2 }
  0x14   :  { %430 = vmatpush.msrb.mxu2 %v5097_v0  ;;  %456 = vmatpush.msrb.mxu3 %v5107_v2 }
  0x15   :  { %327 = vmatpush.msrb.mxu0 %v5102_v1  ;;  %353 = vmatpush.msrb.mxu1 %v5119_v4 }
  0x16   :  { %431 = vmatpush.msrb.mxu2 %v5102_v1  ;;  %457 = vmatpush.msrb.mxu3 %v5119_v4 }
  0x17   :  { %534 = vmatpush.msra.mxu0 %v5097_v0  ;;  %560 = vmatpush.msra.mxu1 %v5107_v2 }
  0x18   :  { %198 = vperm.xlu2 %4691, %v195_v29   ;;  %4548 = vmatmul.msk.f32.vlgmr.msra.gmra.mxu2 %vm100_vm0, %v5160_v34  ;;  %v4540_v29 = vld [vmem:[%s6718_s28 + $0x4] sm:$0x3] }
  0x19   :  { %535 = vmatpush.msra.mxu0 %v5102_v1  ;;  %561 = vmatpush.msra.mxu1 %v5119_v4 }
  0x1a   :  { %638 = vmatpush.msra.mxu2 %v5097_v0 }
  0x1c   :  { %639 = vmatpush.msra.mxu2 %v5102_v1 }
  0x72   :  { %v199_v36 = vpop.permute.xlu2 %198 }
  0x73   :  { %v5166_v38 = vmul.f32 0.0, %v199_v36 }
  0x8e   :  { %v121_v7 = vpop.f32.mrf.mxu0 }
  0x8f   :  { %v148_v8 = vpop.f32.mrf.mxu1  ;;  %v127_v9 = vadd.f32 %v5145_v6, %v121_v7  ;;  %v298_v7 = vsub.f32 1.0, %v4539_v51 }
  0x91   :  { %v151_v10 = vadd.f32 %v148_v8, %v127_v9 }
  0x93   :  { %4713 = vtanh.f32 %v151_v10  ;;  %v4547_v12 = vmul.f32 -1.442695, %v151_v10 }
  0x95   :  { %4715 = vpow2.f32 %v4547_v12 }
  0x99   :  { %v4714_v11 = vpop.eup %4713 }
  0x9a   :  { %174 = vrot.lane.b32.xlu0 %v4714_v11, %s4979_s25 }
  0x9b   :  { %v4716_v13 = vpop.eup %4715  ;;  %v225_v43 = vpop.f32.mrf.mxu2 }
  0x9c   :  { %v155_v14 = vadd.f32 1.0, %v4716_v13  ;;  %v228_v44 = vadd.f32 %v5145_v6, %v225_v43 }
  0x9e   :  { %4717 = vrcp.f32 %v155_v14  ;;  %v167_v20 = vand.u32 2147483648, %v155_v14  ;;  %vm161_vm2 = vweird.f32 %v155_v14  ;;  %v165_v21 = vand.u32 2147483647, %v155_v14 }
  0xa0   :  { %v168_v23 = vor.u32 1.1754944e-38, %v167_v20  ;;  %vm166_vm4 = vcmp.eq.f32.partialorder %v165_v21, 8.507059e+37 }
  0xa4   :  { %v4718_v15 = vpop.eup %4717 }
  0xa5   :  { %v157_v16 = vmul.f32 %v4718_v15, %v155_v14  ;;  %vm162_vm1 = vweird.f32 %v4718_v15  ;;  %v5191_v14 = vld [vmem:[%s6716_s5 + $0x4] sm:$0x3] }
  0xa6   :  { %vm163_vm3 = vmor %vm161_vm2, %vm162_vm1  ;;  %4551 = vmatmul.msk.f32.vlgmr.msrb.gmra.mxu0 %vm100_vm0, %v5191_v14 }
  0xa7   :  { %v158_v17 = vsub.f32 1.0, %v157_v16  ;;  %742 = vmatpush.msrb.mxu0 %v5097_v0 }
  0xa9   :  { %v159_v18 = vmul.f32 %v4718_v15, %v158_v17  ;;  %743 = vmatpush.msrb.mxu0 %v5102_v1 }
  0xab   :  { %v160_v19 = vadd.f32 %v4718_v15, %v159_v18 }
  0xad   :  { %v164_v22 = vsel %vm163_vm3, %v4718_v15, %v160_v19 }
  0xae   :  { %v169_v25 = vsel %vm166_vm4, %v168_v23, %v164_v22 }
  0xaf   :  { %v172_v30 = vmul.f32 0.0, %v169_v25 }
 0x10c   :  { %v175_v24 = vpop.permute.xlu0 %174 }
 0x10d   :  { %v177_v26 = vmul.f32 %v175_v24, %v169_v25 }
 0x10f   :  { %179 = vrot.lane.b32.xlu0 %v177_v26, %s6706_s26 }
 0x123   :  { %v329_v23 = vpop.f32.mrf.mxu0 }
 0x124   :  { %v332_v24 = vadd.f32 %v5145_v6, %v329_v23 }
 0x181   :  { %v180_v31 = vpop.permute.xlu0 %179 }
 0x182   :  { %v182_v32 = vadd.f32 %v180_v31, %v172_v30 }
 0x184   :  { %4719 = vtanh.f32 %v182_v32 }
 0x18a   :  { %v4720_v33 = vpop.eup %4719 }
 0x18b   :  { %185 = vrot.lane.b32.xlu1 %v4720_v33, %s6702_s1 }
 0x193   :  { %191 = vperm.xlu1 %4690, %v80_v28  }
 0x1fd   :  { %v186_v35 = vpop.permute.xlu1 %185 }
 0x1fe   :  { %v188_v37 = vmul.f32 %v186_v35, %v169_v25 }
 0x205   :  { %v5168_v39 = vpop.permute.xlu1 %191 }
 0x206   :  { %v5171_v40 = vmul.f32 %v5168_v39, %v188_v37  ;;  %v194_v8 = vmul.f32 %v5168_v39, %v182_v32 }
 0x208   :  { %v204_v41 = vadd.f32 %v5171_v40, %v5166_v38  ;;  %v202_v9 = vadd.f32 %v5166_v38, %v194_v8 }
 0x20a   :  { %230 = vrot.lane.b32.xlu2 %v204_v41, %s6704_s30 }
 0x264   :  { %v231_v42 = vpop.permute.xlu2 %230 }
 0x265   :  { %4549 = vmatmul.msk.f32.vlgmr.msra.gmra.mxu3 %vm100_vm0, %v231_v42 }
 0x266   :  { %664 = vmatpush.msra.mxu3 %v5107_v2 }
 0x268   :  { %665 = vmatpush.msra.mxu3 %v5119_v4 }
 0x2e8   :  { %v251_v45 = vpop.f32.mrf.mxu3 }
 0x2e9   :  { %v254_v46 = vadd.f32 %v251_v45, %v228_v44 }
 0x2eb   :  { %4721 = vtanh.f32 %v254_v46  ;;  %v4550_v48 = vmul.f32 -1.442695, %v254_v46 }
 0x2ed   :  { %4723 = vpow2.f32 %v4550_v48 }
 0x2f1   :  { %v4722_v47 = vpop.eup %4721 }
 0x2f2   :  { %277 = vrot.lane.b32.xlu0 %v4722_v47, %s4979_s25 }
 0x2f3   :  { %v4724_v49 = vpop.eup %4723 }
 0x2f4   :  { %v258_v50 = vadd.f32 1.0, %v4724_v49  ;;  %v402_v49 = vsub.f32 1.0, %v4540_v29 }
 0x2f6   :  { %4725 = vrcp.f32 %v258_v50  ;;  %v270_v57 = vand.u32 2147483648, %v258_v50  ;;  %vm264_vm6 = vweird.f32 %v258_v50  ;;  %v268_v58 = vand.u32 2147483647, %v258_v50 }
 0x2f8   :  { %v271_v60 = vor.u32 1.1754944e-38, %v270_v57  ;;  %vm269_vm8 = vcmp.eq.f32.partialorder %v268_v58, 8.507059e+37  ;;  %v5222_v57 = vld [vmem:[%s6716_s5 + $0x6] sm:$0x3] }
 0x2f9   :  { %4554 = vmatmul.msk.f32.vlgmr.msrb.gmra.mxu2 %vm100_vm0, %v5222_v57 }
 0x2fa   :  { %294 = vperm.xlu0 %4692, %v4539_v51   ;;  %846 = vmatpush.msrb.mxu2 %v5097_v0 }
 0x2fc   :  { %v4726_v52 = vpop.eup %4725  ;;  %847 = vmatpush.msrb.mxu2 %v5102_v1 }
 0x2fd   :  { %v260_v53 = vmul.f32 %v4726_v52, %v258_v50  ;;  %vm265_vm5 = vweird.f32 %v4726_v52 }
 0x2fe   :  { %vm266_vm7 = vmor %vm264_vm6, %vm265_vm5 }
 0x2ff   :  { %v261_v54 = vsub.f32 1.0, %v260_v53 }
 0x301   :  { %v262_v55 = vmul.f32 %v4726_v52, %v261_v54 }
 0x303   :  { %v263_v56 = vadd.f32 %v4726_v52, %v262_v55 }
 0x305   :  { %v267_v59 = vsel %vm266_vm7, %v4726_v52, %v263_v56 }
 0x306   :  { %v272_v62 = vsel %vm269_vm8, %v271_v60, %v267_v59 }
 0x307   :  { %v275_v10 = vmul.f32 %v272_v62, %v202_v9 }
 0x364   :  { %v278_v61 = vpop.permute.xlu0 %277 }
 0x365   :  { %v280_v63 = vmul.f32 %v278_v61, %v272_v62 }
 0x367   :  { %282 = vrot.lane.b32.xlu1 %v280_v63, %s6706_s26 }
 0x36c   :  { %v5199_v18 = vpop.permute.xlu0 %294 }
 0x36f   :  { %301 = vperm.xlu1 %4690, %v298_v7  }
 0x37c   :  { %v433_v0 = vpop.f32.mrf.mxu2 }
 0x37d   :  { %v436_v1 = vadd.f32 %v5145_v6, %v433_v0 }
 0x3d9   :  { %v283_v11 = vpop.permute.xlu1 %282 }
 0x3da   :  { %v285_v12 = vadd.f32 %v283_v11, %v275_v10 }
 0x3dc   :  { %4727 = vtanh.f32 %v285_v12  ;;  %v297_v51 = vmul.f32 %v5199_v18, %v285_v12  ;;  %v4541_v12 = vld [vmem:[%s6718_s28 + $0x6] sm:$0x3] }
 0x3e1   :  { %v5197_v15 = vpop.permute.xlu1 %301 }
 0x3e2   :  { %v4728_v13 = vpop.eup %4727  ;;  %v307_v20 = vmul.f32 %v5197_v15, %v204_v41  ;;  %v304_v50 = vmul.f32 %v5197_v15, %v202_v9 }
 0x3e3   :  { %288 = vrot.lane.b32.xlu2 %v4728_v13, %s6702_s1 }
 0x3e4   :  { %v305_v52 = vadd.f32 %v304_v50, %v297_v51 }
 0x43d   :  { %v289_v16 = vpop.permute.xlu2 %288 }
 0x43e   :  { %v291_v17 = vmul.f32 %v289_v16, %v272_v62 }
 0x440   :  { %v5202_v19 = vmul.f32 %v5199_v18, %v291_v17 }
 0x442   :  { %v308_v21 = vadd.f32 %v307_v20, %v5202_v19 }
 0x444   :  { %334 = vrot.lane.b32.xlu2 %v308_v21, %s6704_s30 }
 0x49e   :  { %v335_v22 = vpop.permute.xlu2 %334 }
 0x49f   :  { %4552 = vmatmul.msk.f32.vlgmr.msrb.gmra.mxu1 %vm100_vm0, %v335_v22 }
 0x4a0   :  { %768 = vmatpush.msrb.mxu1 %v5107_v2 }
 0x4a2   :  { %769 = vmatpush.msrb.mxu1 %v5119_v4 }
 0x51c   :  { %v355_v25 = vpop.f32.mrf.mxu1 }
 0x51d   :  { %v358_v26 = vadd.f32 %v355_v25, %v332_v24 }
 0x51f   :  { %4729 = vtanh.f32 %v358_v26  ;;  %v4553_v30 = vmul.f32 -1.442695, %v358_v26 }
 0x521   :  { %4731 = vpow2.f32 %v4553_v30 }
 0x525   :  { %v4730_v28 = vpop.eup %4729 }
 0x526   :  { %381 = vrot.lane.b32.xlu1 %v4730_v28, %s4979_s25 }
 0x527   :  { %v4732_v31 = vpop.eup %4731 }
 0x528   :  { %v362_v32 = vadd.f32 1.0, %v4732_v31  ;;  %v506_v31 = vsub.f32 1.0, %v4541_v12 }
 0x52a   :  { %4733 = vrcp.f32 %v362_v32  ;;  %v374_v42 = vand.u32 2147483648, %v362_v32  ;;  %vm368_vm10 = vweird.f32 %v362_v32  ;;  %v372_v43 = vand.u32 2147483647, %v362_v32 }
 0x52c   :  { %v375_v45 = vor.u32 1.1754944e-38, %v374_v42  ;;  %vm373_vm12 = vcmp.eq.f32.partialorder %v372_v43, 8.507059e+37  ;;  %v5253_v43 = vld [vmem:[%s6716_s5 + $0x8] sm:$0x3] }
 0x52d   :  { %4557 = vmatmul.msk.f32.vlgmr.msra.gmra.mxu0 %vm100_vm0, %v5253_v43 }
 0x52e   :  { %398 = vperm.xlu1 %4690, %v4540_v29  }
 0x530   :  { %v4734_v33 = vpop.eup %4733 }
 0x531   :  { %v364_v35 = vmul.f32 %v4734_v33, %v362_v32  ;;  %vm369_vm9 = vweird.f32 %v4734_v33 }
 0x532   :  { %vm370_vm11 = vmor %vm368_vm10, %vm369_vm9 }
 0x533   :  { %v365_v36 = vsub.f32 1.0, %v364_v35 }
 0x535   :  { %v366_v37 = vmul.f32 %v4734_v33, %v365_v36 }
 0x537   :  { %v367_v41 = vadd.f32 %v4734_v33, %v366_v37 }
 0x539   :  { %v371_v44 = vsel %vm370_vm11, %v4734_v33, %v367_v41 }
 0x53a   :  { %v376_v47 = vsel %vm373_vm12, %v375_v45, %v371_v44 }
 0x53b   :  { %v379_v53 = vmul.f32 %v376_v47, %v305_v52 }
 0x598   :  { %v382_v46 = vpop.permute.xlu1 %381 }
 0x599   :  { %v384_v48 = vmul.f32 %v382_v46, %v376_v47 }
 0x59b   :  { %386 = vrot.lane.b32.xlu2 %v384_v48, %s6706_s26 }
 0x5a0   :  { %v5230_v61 = vpop.permute.xlu1 %398 }
 0x5a3   :  { %405 = vperm.xlu2 %4691, %v402_v49  }
 0x5f5   :  { %v387_v54 = vpop.permute.xlu2 %386 }
 0x5f6   :  { %v389_v55 = vadd.f32 %v387_v54, %v379_v53 }
 0x5f8   :  { %4735 = vtanh.f32 %v389_v55  ;;  %v401_v33 = vmul.f32 %v5230_v61, %v389_v55 }
 0x5fd   :  { %v5228_v58 = vpop.permute.xlu2 %405 }
 0x5fe   :  { %v4736_v56 = vpop.eup %4735  ;;  %v411_v63 = vmul.f32 %v5228_v58, %v308_v21  ;;  %v408_v32 = vmul.f32 %v5228_v58, %v305_v52  ;;  %v537_v52 = vpop.f32.mrf.mxu0 }
 0x5ff   :  { %392 = vrot.lane.b32.xlu0 %v4736_v56, %s6702_s1  ;;  %v540_v53 = vadd.f32 %v5145_v6, %v537_v52 }
 0x600   :  { %v409_v35 = vadd.f32 %v408_v32, %v401_v33 }
 0x671   :  { %v393_v59 = vpop.permute.xlu0 %392 }
 0x672   :  { %v395_v60 = vmul.f32 %v393_v59, %v376_v47  ;;  %v4542_v59 = vld [vmem:[%s6718_s28 + $0x8] sm:$0x3] }
 0x674   :  { %v5233_v62 = vmul.f32 %v5230_v61, %v395_v60 }
 0x676   :  { %v412_v7 = vadd.f32 %v411_v63, %v5233_v62 }
 0x678   :  { %438 = vrot.lane.b32.xlu0 %v412_v7, %s6704_s30 }
 0x6ea   :  { %v439_v8 = vpop.permute.xlu0 %438 }
 0x6eb   :  { %4555 = vmatmul.msk.f32.vlgmr.msrb.gmra.mxu3 %vm100_vm0, %v439_v8 }
 0x6ec   :  { %872 = vmatpush.msrb.mxu3 %v5107_v2 }
 0x6ee   :  { %873 = vmatpush.msrb.mxu3 %v5119_v4 }
 0x76e   :  { %v459_v9 = vpop.f32.mrf.mxu3 }
 0x76f   :  { %v462_v10 = vadd.f32 %v459_v9, %v436_v1 }
 0x771   :  { %4737 = vtanh.f32 %v462_v10  ;;  %v4556_v13 = vmul.f32 -1.442695, %v462_v10 }
 0x773   :  { %4739 = vpow2.f32 %v4556_v13 }
 0x777   :  { %v4738_v11 = vpop.eup %4737 }
 0x778   :  { %485 = vrot.lane.b32.xlu1 %v4738_v11, %s4979_s25 }
 0x779   :  { %v4740_v16 = vpop.eup %4739 }
 0x77a   :  { %v466_v2 = vadd.f32 1.0, %v4740_v16 }
 0x77c   :  { %4741 = vrcp.f32 %v466_v2  ;;  %v478_v23 = vand.u32 2147483648, %v466_v2  ;;  %vm472_vm14 = vweird.f32 %v466_v2  ;;  %v476_v24 = vand.u32 2147483647, %v466_v2 }
 0x77e   :  { %v479_v26 = vor.u32 1.1754944e-38, %v478_v23  ;;  %vm477_vm1 = vcmp.eq.f32.partialorder %v476_v24, 8.507059e+37 }
 0x780   :  { %502 = vperm.xlu1 %4690, %v4541_v12  }
 0x782   :  { %v4742_v4 = vpop.eup %4741 }
 0x783   :  { %v468_v17 = vmul.f32 %v4742_v4, %v466_v2  ;;  %vm473_vm13 = vweird.f32 %v4742_v4 }
 0x784   :  { %vm474_vm15 = vmor %vm472_vm14, %vm473_vm13 }
 0x785   :  { %v469_v20 = vsub.f32 1.0, %v468_v17 }
 0x787   :  { %v470_v21 = vmul.f32 %v4742_v4, %v469_v20  ;;  %v610_v20 = vsub.f32 1.0, %v4542_v59 }
 0x789   :  { %v471_v22 = vadd.f32 %v4742_v4, %v470_v21 }
 0x78b   :  { %v475_v25 = vsel %vm474_vm15, %v4742_v4, %v471_v22 }
 0x78c   :  { %v480_v29 = vsel %vm477_vm1, %v479_v26, %v475_v25 }
 0x78d   :  { %v483_v36 = vmul.f32 %v480_v29, %v409_v35 }
 0x7ea   :  { %v486_v28 = vpop.permute.xlu1 %485 }
 0x7eb   :  { %v488_v30 = vmul.f32 %v486_v28, %v480_v29 }
 0x7ed   :  { %490 = vrot.lane.b32.xlu2 %v488_v30, %s6706_s26 }
 0x7f2   :  { %v5259_v47 = vpop.permute.xlu1 %502 }
 0x7f5   :  { %509 = vperm.xlu2 %4691, %v506_v31  }
 0x847   :  { %v491_v37 = vpop.permute.xlu2 %490 }
 0x848   :  { %v493_v41 = vadd.f32 %v491_v37, %v483_v36 }
 0x84a   :  { %4743 = vtanh.f32 %v493_v41  ;;  %v505_v22 = vmul.f32 %v5259_v47, %v493_v41 }
 0x84f   :  { %v5257_v44 = vpop.permute.xlu2 %509 }
 0x850   :  { %v4744_v42 = vpop.eup %4743  ;;  %v515_v49 = vmul.f32 %v5257_v44, %v412_v7  ;;  %v512_v21 = vmul.f32 %v5257_v44, %v409_v35 }
 0x851   :  { %496 = vrot.lane.b32.xlu0 %v4744_v42, %s6702_s1 }
 0x852   :  { %v513_v23 = vadd.f32 %v512_v21, %v505_v22  ;;  %v4537_v22 = vld [vmem:[%s6716_s5 + $0xc] sm:$0x3] }
 0x853   :  { %4563 = vmatmul.msk.f32.vlgmr.msrb.gmra.mxu0 %vm100_vm0, %v4537_v22 }
 0x8c3   :  { %v497_v45 = vpop.permute.xlu0 %496 }
 0x8c4   :  { %v499_v46 = vmul.f32 %v497_v45, %v480_v29  ;;  %v5280_v29 = vld [vmem:[%s6716_s5 + $0xa] sm:$0x3] }
 0x8c5   :  { %4560 = vmatmul.msk.f32.vlgmr.msra.gmra.mxu2 %vm100_vm0, %v5280_v29 }
 0x8c6   :  { %v5262_v48 = vmul.f32 %v5259_v47, %v499_v46 }
 0x8c8   :  { %v516_v50 = vadd.f32 %v515_v49, %v5262_v48 }
 0x8ca   :  { %542 = vrot.lane.b32.xlu0 %v516_v50, %s6704_s30 }
 0x93c   :  { %v543_v51 = vpop.permute.xlu0 %542 }
 0x93d   :  { %4558 = vmatmul.msk.f32.vlgmr.msra.gmra.mxu1 %vm100_vm0, %v543_v51 }
 0x948   :  { %v641_v42 = vpop.f32.mrf.mxu2 }
 0x949   :  { %v644_v45 = vadd.f32 %v5145_v6, %v641_v42  ;;  %v5336_v42 = vld [vmem:[%s6680_s6 + $0x8] sm:$0xff] }
 0x94a   :  { %965 = vmatpush.msra.mxu1 %v5336_v42 }
 0x9ba   :  { %v563_v54 = vpop.f32.mrf.mxu1 }
 0x9bb   :  { %v566_v55 = vadd.f32 %v563_v54, %v540_v53 }
 0x9bd   :  { %4745 = vtanh.f32 %v566_v55  ;;  %v4559_v60 = vmul.f32 -1.442695, %v566_v55 }
 0x9bf   :  { %4747 = vpow2.f32 %v4559_v60 }
 0x9c3   :  { %v4746_v56 = vpop.eup %4745 }
 0x9c4   :  { %589 = vrot.lane.b32.xlu1 %v4746_v56, %s4979_s25 }
 0x9c5   :  { %v4748_v63 = vpop.eup %4747 }
 0x9c6   :  { %v570_v7 = vadd.f32 1.0, %v4748_v63 }
 0x9c8   :  { %4749 = vrcp.f32 %v570_v7  ;;  %v582_v11 = vand.u32 2147483648, %v570_v7  ;;  %vm576_vm3 = vweird.f32 %v570_v7  ;;  %v580_v12 = vand.u32 2147483647, %v570_v7 }
 0x9ca   :  { %v583_v16 = vor.u32 1.1754944e-38, %v582_v11  ;;  %vm581_vm5 = vcmp.eq.f32.partialorder %v580_v12, 8.507059e+37 }
 0x9cc   :  { %606 = vperm.xlu1 %4690, %v4542_v59  }
 0x9ce   :  { %v4750_v8 = vpop.eup %4749 }
 0x9cf   :  { %v572_v0 = vmul.f32 %v4750_v8, %v570_v7  ;;  %vm577_vm2 = vweird.f32 %v4750_v8 }
 0x9d0   :  { %vm578_vm4 = vmor %vm576_vm3, %vm577_vm2 }
 0x9d1   :  { %v573_v1 = vsub.f32 1.0, %v572_v0 }
 0x9d3   :  { %v574_v9 = vmul.f32 %v4750_v8, %v573_v1 }
 0x9d5   :  { %v575_v10 = vadd.f32 %v4750_v8, %v574_v9 }
 0x9d7   :  { %v579_v13 = vsel %vm578_vm4, %v4750_v8, %v575_v10 }
 0x9d8   :  { %v584_v4 = vsel %vm581_vm5, %v583_v16, %v579_v13 }
 0x9d9   :  { %v587_v24 = vmul.f32 %v584_v4, %v513_v23 }
 0xa36   :  { %v590_v2 = vpop.permute.xlu1 %589 }
 0xa37   :  { %v592_v17 = vmul.f32 %v590_v2, %v584_v4 }
 0xa39   :  { %594 = vrot.lane.b32.xlu2 %v592_v17, %s6706_s26 }
 0xa3e   :  { %v5286_v33 = vpop.permute.xlu1 %606 }
 0xa41   :  { %613 = vperm.xlu2 %4691, %v610_v20  }
 0xa93   :  { %v595_v25 = vpop.permute.xlu2 %594 }
 0xa94   :  { %v597_v26 = vadd.f32 %v595_v25, %v587_v24 }
 0xa96   :  { %4751 = vtanh.f32 %v597_v26  ;;  %v609_v16 = vmul.f32 %v5286_v33, %v597_v26 }
 0xa9b   :  { %v5284_v30 = vpop.permute.xlu2 %613 }
 0xa9c   :  { %v4752_v28 = vpop.eup %4751  ;;  %v619_v36 = vmul.f32 %v5284_v30, %v516_v50  ;;  %v4543_v50 = vld [vmem:[%s6718_s28 + $0xa] sm:$0x3]  ;;  %v616_v13 = vmul.f32 %v5284_v30, %v513_v23 }
 0xa9d   :  { %600 = vrot.lane.b32.xlu0 %v4752_v28, %s6702_s1  ;;  %v714_v12 = vsub.f32 1.0, %v4543_v50 }
 0xa9e   :  { %v5303_v2 = vadd.f32 %v616_v13, %v609_v16 }
 0xb0f   :  { %v601_v31 = vpop.permute.xlu0 %600 }
 0xb10   :  { %v603_v32 = vmul.f32 %v601_v31, %v584_v4 }
 0xb12   :  { %v5289_v35 = vmul.f32 %v5286_v33, %v603_v32 }
 0xb14   :  { %v620_v37 = vadd.f32 %v619_v36, %v5289_v35  ;;  %v923_v36 = vld [vmem:[%s6719_s29 + $0x8] sm:$0xff] }
 0xb15   :  { %941 = vmatpush.msra.mxu0 %v923_v36  ;;  %1034 = vmatpush.msra.mxu2 %v923_v36 }
 0xb16   :  { %646 = vrot.lane.b32.xlu0 %v620_v37, %s6704_s30 }
 0xb88   :  { %v647_v41 = vpop.permute.xlu0 %646 }
 0xb89   :  { %4561 = vmatmul.msk.f32.vlgmr.msra.gmra.mxu3 %vm100_vm0, %v647_v41  ;;  %v922_v41 = vld [vmem:[%s6719_s29] sm:$0xff]  ;;  %s6722_s29 = smov 80  }
 0xb8a   :  { %1060 = vmatpush.msra.mxu3 %v5336_v42  ;;  %942 = vmatpush.msra.mxu0 %v922_v41 }
 0xb8b   :  { %1035 = vmatpush.msra.mxu2 %v922_v41 }
 0xb8c   :  { %1124 = vmatpush.msrb.mxu0 %v923_v36 }
 0xb8e   :  { %1125 = vmatpush.msrb.mxu0 %v922_v41 }
 0xc0c   :  { %v667_v46 = vpop.f32.mrf.mxu3 }
 0xc0d   :  { %v670_v49 = vadd.f32 %v667_v46, %v644_v45  ;;  %v5345_v45 = vld [vmem:[%s6680_s6] sm:$0xff] }
 0xc0e   :  { %966 = vmatpush.msra.mxu1 %v5345_v45  ;;  %1061 = vmatpush.msra.mxu3 %v5345_v45 }
 0xc0f   :  { %4753 = vtanh.f32 %v670_v49  ;;  %v4562_v52 = vmul.f32 -1.442695, %v670_v49 }
 0xc11   :  { %4755 = vpow2.f32 %v4562_v52 }
 0xc15   :  { %v4754_v51 = vpop.eup %4753 }
 0xc16   :  { %693 = vrot.lane.b32.xlu1 %v4754_v51, %s4979_s25 }
 0xc17   :  { %v4756_v53 = vpop.eup %4755 }
 0xc18   :  { %v674_v54 = vadd.f32 1.0, %v4756_v53 }
 0xc1a   :  { %4757 = vrcp.f32 %v674_v54  ;;  %v686_v7 = vand.u32 2147483648, %v674_v54  ;;  %vm680_vm7 = vweird.f32 %v674_v54  ;;  %v684_v8 = vand.u32 2147483647, %v674_v54 }
 0xc1c   :  { %v687_v1 = vor.u32 1.1754944e-38, %v686_v7  ;;  %vm685_vm9 = vcmp.eq.f32.partialorder %v684_v8, 8.507059e+37 }
 0xc1e   :  { %710 = vperm.xlu1 %4690, %v4543_v50  }
 0xc20   :  { %v4758_v55 = vpop.eup %4757 }
 0xc21   :  { %v676_v56 = vmul.f32 %v4758_v55, %v674_v54  ;;  %vm681_vm6 = vweird.f32 %v4758_v55 }
 0xc22   :  { %vm682_vm8 = vmor %vm680_vm7, %vm681_vm6 }
 0xc23   :  { %v677_v59 = vsub.f32 1.0, %v676_v56 }
 0xc25   :  { %v678_v60 = vmul.f32 %v4758_v55, %v677_v59 }
 0xc27   :  { %v679_v63 = vadd.f32 %v4758_v55, %v678_v60 }
 0xc29   :  { %v683_v0 = vsel %vm682_vm8, %v4758_v55, %v679_v63 }
 0xc2a   :  { %v688_v10 = vsel %vm685_vm9, %v687_v1, %v683_v0 }
 0xc2b   :  { %v691_v4 = vmul.f32 %v688_v10, %v5303_v2 }
 0xc88   :  { %v694_v9 = vpop.permute.xlu1 %693 }
 0xc89   :  { %v696_v11 = vmul.f32 %v694_v9, %v688_v10 }
 0xc8b   :  { %698 = vrot.lane.b32.xlu2 %v696_v11, %s6706_s26 }
 0xc90   :  { %v5316_v26 = vpop.permute.xlu1 %710 }
 0xc93   :  { %717 = vperm.xlu2 %4691, %v714_v12  }
 0xce5   :  { %v699_v17 = vpop.permute.xlu2 %698 }
 0xce6   :  { %v5306_v20 = vadd.f32 %v699_v17, %v691_v4 }
 0xce8   :  { %4759 = vtanh.f32 %v5306_v20 }
 0xced   :  { %v5314_v23 = vpop.permute.xlu2 %717 }
 0xcee   :  { %v4760_v21 = vpop.eup %4759  ;;  %v723_v31 = vmul.f32 %v5314_v23, %v620_v37  ;;  %v4538_v37 = vld [vmem:[%s6716_s5 + $0xe] sm:$0x3] }
 0xcef   :  { %704 = vrot.lane.b32.xlu0 %v4760_v21, %s6702_s1  ;;  %4566 = vmatmul.msk.f32.vlgmr.msrb.gmra.mxu2 %vm100_vm0, %v4538_v37 }
 0xcf0   :  { %4569 = vmatmul.msk.f32.vlgmr.msra.gmra.mxu0 %vm100_vm0, %v4538_v37  ;;  %1214 = vmatpush.msrb.mxu2 %v923_v36 }
 0xcf1   :  { %1304 = vmatpush.msra.mxu0 %v923_v36 }
 0xcf2   :  { %1215 = vmatpush.msrb.mxu2 %v922_v41 }
 0xcf3   :  { %1305 = vmatpush.msra.mxu0 %v922_v41 }
 0xcf7   :  { %4571 = vmatmul.msk.f32.vlgmr.msra.gmra.mxu2 %vm100_vm0, %v4537_v22 }
 0xcf8   :  { %1394 = vmatpush.msra.mxu2 %v923_v36  ;;  %4574 = vmatmul.msk.f32.vlgmr.msrb.gmra.mxu0 %vm100_vm0, %v5280_v29  ;;  %v5375_v29 = vld [vmem:[%s6681_s7] ss:$0 sm:$0xff]  ;;  %s6720_s7 = smov 16  }
 0xcf9   :  { %1484 = vmatpush.msrb.mxu0 %v923_v36 }
 0xcfa   :  { %1395 = vmatpush.msra.mxu2 %v922_v41 }
 0xcfb   :  { %1485 = vmatpush.msrb.mxu0 %v922_v41 }
 0xcff   :  { %4577 = vmatmul.msk.f32.vlgmr.msrb.gmra.mxu2 %vm100_vm0, %v5253_v43 }
 0xd00   :  { %1574 = vmatpush.msrb.mxu2 %v923_v36  ;;  %4580 = vmatmul.msk.f32.vlgmr.msra.gmra.mxu0 %vm100_vm0, %v5222_v57 }
 0xd02   :  { %1575 = vmatpush.msrb.mxu2 %v922_v41 }
 0xd07   :  { %4583 = vmatmul.msk.f32.vlgmr.msra.gmra.mxu2 %vm100_vm0, %v5191_v14  ;;  %v745_v14 = vpop.f32.mrf.mxu0 }
 0xd08   :  { %4586 = vmatmul.msk.f32.vlgmr.msrb.gmra.mxu0 %vm100_vm0, %v5160_v34  ;;  %v748_v57 = vadd.f32 %v5145_v6, %v745_v14 }
 0xd0f   :  { %4589 = vmatmul.msk.f32.vlgmr.msrb.gmra.mxu2 %vm100_vm0, %v5114_v3 }
 0xd61   :  { %v705_v24 = vpop.permute.xlu0 %704 }
 0xd62   :  { %v707_v25 = vmul.f32 %v705_v24, %v688_v10  ;;  %v4544_v24 = vld [vmem:[%s6718_s28 + $0xc] sm:$0x3] }
 0xd64   :  { %v5319_v28 = vmul.f32 %v5316_v26, %v707_v25 }
 0xd66   :  { %v5323_v32 = vadd.f32 %v723_v31, %v5319_v28  ;;  %v818_v31 = vsub.f32 1.0, %v4544_v24 }
 0xd68   :  { %750 = vrot.lane.b32.xlu0 %v5323_v32, %s6704_s30 }
 0xd6d   :  { %v944_v49 = vpop.f32.mrf.mxu0 }
 0xd6e   :  { %v950_v3 = vadd.f32 %v5375_v29, %v944_v49 }
 0xdda   :  { %v751_v46 = vpop.permute.xlu0 %750 }
 0xddb   :  { %4564 = vmatmul.msk.f32.vlgmr.msrb.gmra.mxu1 %vm100_vm0, %v751_v46  ;;  %v4545_v46 = vld [vmem:[%s6718_s28 + $0xe] sm:$0x3] }
 0xddc   :  { %1150 = vmatpush.msrb.mxu1 %v5336_v42 }
 0xdde   :  { %1151 = vmatpush.msrb.mxu1 %v5345_v45 }
 0xde3   :  { %967 = vmatmul.f32.vlgmr.msra.gmra.mxu1 %v4978_v5 }
 0xde4   :  { %1330 = vmatpush.msra.mxu1 %v5336_v42 }
 0xde6   :  { %1331 = vmatpush.msra.mxu1 %v5345_v45 }
 0xe58   :  { %v771_v34 = vpop.f32.mrf.mxu1 }
 0xe59   :  { %v774_v43 = vadd.f32 %v771_v34, %v748_v57  ;;  %v1010_v34 = vsub.f32 1.0, %v4545_v46 }
 0xe5b   :  { %4761 = vtanh.f32 %v774_v43  ;;  %v4565_v56 = vmul.f32 -1.442695, %v774_v43 }
 0xe60   :  { %v968_v51 = vpop.f32.mrf.mxu1 }
 0xe61   :  { %v4762_v50 = vpop.eup %4761  ;;  %v971_v52 = vadd.f32 %v968_v51, %v950_v3  ;;  %v720_v51 = vmul.f32 %v5314_v23, %v5303_v2 }
 0xe62   :  { %797 = vrot.lane.b32.xlu1 %v4762_v50, %s4979_s25  ;;  %v713_v50 = vmul.f32 %v5316_v26, %v5306_v20 }
 0xe63   :  { %4763 = vtanh.f32 %v971_v52  ;;  %v4570_v6 = vmul.f32 -1.442695, %v971_v52 }
 0xe64   :  { %v5392_v52 = vadd.f32 %v720_v51, %v713_v50 }
 0xe65   :  { %4765 = vpow2.f32 %v4570_v6 }
 0xe69   :  { %v4764_v53 = vpop.eup %4763 }
 0xe6a   :  { %994 = vrot.lane.b32.xlu2 %v4764_v53, %s4979_s25 }
 0xe6b   :  { %v4766_v54 = vpop.eup %4765 }
 0xe6c   :  { %v975_v55 = vadd.f32 1.0, %v4766_v54 }
 0xe6e   :  { %4767 = vrcp.f32 %v975_v55  ;;  %vm981_vm10 = vweird.f32 %v975_v55  ;;  %v987_v1 = vand.u32 2147483648, %v975_v55  ;;  %v985_v10 = vand.u32 2147483647, %v975_v55 }
 0xe6f   :  { %4769 = vpow2.f32 %v4565_v56 }
 0xe70   :  { %v988_v12 = vor.u32 1.1754944e-38, %v987_v1  ;;  %vm986_vm13 = vcmp.eq.f32.partialorder %v985_v10, 8.507059e+37 }
 0xe74   :  { %v4768_v59 = vpop.eup %4767 }
 0xe75   :  { %v4770_v60 = vpop.eup %4769  ;;  %v977_v63 = vmul.f32 %v4768_v59, %v975_v55  ;;  %vm982_vm11 = vweird.f32 %v4768_v59 }
 0xe76   :  { %v778_v7 = vadd.f32 1.0, %v4770_v60  ;;  %vm983_vm12 = vmor %vm981_vm10, %vm982_vm11 }
 0xe77   :  { %v978_v8 = vsub.f32 1.0, %v977_v63 }
 0xe78   :  { %4771 = vrcp.f32 %v778_v7  ;;  %v790_v41 = vand.u32 2147483648, %v778_v7  ;;  %vm784_vm15 = vweird.f32 %v778_v7  ;;  %v788_v37 = vand.u32 2147483647, %v778_v7 }
 0xe79   :  { %v979_v0 = vmul.f32 %v4768_v59, %v978_v8 }
 0xe7a   :  { %v791_v57 = vor.u32 1.1754944e-38, %v790_v41  ;;  %vm789_vm2 = vcmp.eq.f32.partialorder %v788_v37, 8.507059e+37 }
 0xe7b   :  { %v980_v9 = vadd.f32 %v4768_v59, %v979_v0 }
 0xe7d   :  { %v984_v13 = vsel %vm983_vm12, %v4768_v59, %v980_v9 }
 0xe7e   :  { %v4772_v11 = vpop.eup %4771  ;;  %v989_v17 = vsel %vm986_vm13, %v988_v12, %v984_v13 }
 0xe7f   :  { %v780_v16 = vmul.f32 %v4772_v11, %v778_v7  ;;  %vm785_vm14 = vweird.f32 %v4772_v11  ;;  %v992_v56 = vmul.f32 0.0, %v989_v17 }
 0xe80   :  { %vm786_vm1 = vmor %vm784_vm15, %vm785_vm14 }
 0xe81   :  { %v781_v22 = vsub.f32 1.0, %v780_v16 }
 0xe83   :  { %v782_v25 = vmul.f32 %v4772_v11, %v781_v22  ;;  %v5427_v22 = vpop.f32.mrf.mxu2 }
 0xe85   :  { %v783_v36 = vadd.f32 %v4772_v11, %v782_v25 }
 0xe87   :  { %v787_v14 = vsel %vm786_vm1, %v4772_v11, %v783_v36 }
 0xe88   :  { %v792_v49 = vsel %vm789_vm2, %v791_v57, %v787_v14 }
 0xe89   :  { %v795_v53 = vmul.f32 %v792_v49, %v5392_v52 }
 0xe8b   :  { %v1037_v25 = vpop.f32.mrf.mxu2 }
 0xec4   :  { %v995_v4 = vpop.permute.xlu2 %994 }
 0xec5   :  { %v997_v21 = vmul.f32 %v995_v4, %v989_v17 }
 0xec7   :  { %999 = vrot.lane.b32.xlu1 %v997_v21, %s6720_s7 }
 0xecf   :  { %821 = vperm.xlu1 %4690, %v818_v31   ;;  %v1040_v31 = vadd.f32 %v5375_v29, %v1037_v25 }
 0xed4   :  { %v798_v43 = vpop.permute.xlu1 %797 }
 0xed5   :  { %v800_v3 = vmul.f32 %v798_v43, %v792_v49 }
 0xed7   :  { %1013 = vperm.xlu1 %4690, %v1010_v34   ;;  %802 = vrot.lane.b32.xlu0 %v800_v3, %s6720_s7 }
 0xedf   :  { %814 = vperm.xlu0 %4692, %v4544_v24  }
 0xee7   :  { %918 = vperm.xlu0 %4692, %v4545_v46  }
 0xf39   :  { %v1000_v55 = vpop.permute.xlu1 %999 }
 0xf3a   :  { %v1002_v59 = vadd.f32 %v1000_v55, %v992_v56 }
 0xf41   :  { %v5400_v20 = vpop.permute.xlu1 %821 }
 0xf42   :  { %v827_v1 = vmul.f32 %v5400_v20, %v5323_v32 }
 0xf49   :  { %v803_v6 = vpop.permute.xlu0 %802  ;;  %v1014_v10 = vpop.permute.xlu1 %1013 }
 0xf4a   :  { %v5395_v54 = vadd.f32 %v803_v6, %v795_v53  ;;  %v5413_v16 = vmul.f32 0.0, %v1014_v10 }
 0xf4c   :  { %4773 = vtanh.f32 %v5395_v54 }
 0xf4d   :  { %4775 = vtanh.f32 %v1002_v59 }
 0xf51   :  { %v5402_v63 = vpop.permute.xlu0 %814 }
 0xf52   :  { %v4774_v60 = vpop.eup %4773 }
 0xf53   :  { %808 = vrot.lane.b32.xlu2 %v4774_v60, %s6721_s4  ;;  %v4776_v2 = vpop.eup %4775 }
 0xf59   :  { %v5411_v13 = vpop.permute.xlu0 %918 }
 0xf5b   :  { %1005 = vrot.lane.b32.xlu2 %v4776_v2, %s6721_s4 }
 0xfad   :  { %v809_v7 = vpop.permute.xlu2 %808 }
 0xfae   :  { %v811_v8 = vmul.f32 %v809_v7, %v792_v49  ;;  %v1009_v7 = vmul.f32 %v1002_v59, %v5411_v13 }
 0xfb0   :  { %v5405_v0 = vmul.f32 %v5402_v63, %v811_v8  ;;  %v1017_v8 = vadd.f32 %v5413_v16, %v1009_v7 }
 0xfb2   :  { %v828_v9 = vadd.f32 %v827_v1, %v5405_v0 }
 0xfb4   :  { %854 = vrot.lane.b32.xlu2 %v828_v9, %s6722_s29 }
 0xfb5   :  { %v1006_v11 = vpop.permute.xlu2 %1005 }
 0xfb6   :  { %v1008_v12 = vmul.f32 %v1006_v11, %v989_v17 }
 0xfb8   :  { %v5416_v4 = vmul.f32 %v1008_v12, %v5411_v13 }
 0xfba   :  { %v1019_v21 = vadd.f32 %v5416_v4, %v5413_v16 }
 0xfbc   :  { %1042 = vrot.lane.b32.xlu0 %v1019_v21, %s6722_s29  ;;  %v1108_v25 = vmul.f32 %v1019_v21, %v5400_v20 }
0x100e   :  { %v855_v32 = vpop.permute.xlu2 %854 }
0x100f   :  { %4567 = vmatmul.msk.f32.vlgmr.msrb.gmra.mxu3 %vm100_vm0, %v855_v32 }
0x1010   :  { %1240 = vmatpush.msrb.mxu3 %v5336_v42 }
0x1012   :  { %1241 = vmatpush.msrb.mxu3 %v5345_v45 }
0x102e   :  { %v1043_v17 = vpop.permute.xlu0 %1042 }
0x102f   :  { %4572 = vmatmul.msk.f32.vlgmr.msra.gmra.mxu3 %vm100_vm0, %v1043_v17 }
0x1030   :  { %1420 = vmatpush.msra.mxu3 %v5336_v42 }
0x1032   :  { %1421 = vmatpush.msra.mxu3 %v5345_v45 }
0x1092   :  { %v5429_v24 = vpop.f32.mrf.mxu3 }
0x10b2   :  { %v1063_v36 = vpop.f32.mrf.mxu3 }
0x10b3   :  { %v1066_v41 = vadd.f32 %v1063_v36, %v1040_v31  ;;  %v1127_v36 = vpop.f32.mrf.mxu0 }
0x10b5   :  { %4777 = vtanh.f32 %v1066_v41  ;;  %v4573_v46 = vmul.f32 -1.442695, %v1066_v41  ;;  %v1130_v41 = vadd.f32 %v5375_v29, %v1127_v36 }
0x10b7   :  { %4779 = vpow2.f32 %v4573_v46 }
0x10bb   :  { %v4778_v37 = vpop.eup %4777 }
0x10bc   :  { %1089 = vrot.lane.b32.xlu1 %v4778_v37, %s4979_s25 }
0x10bd   :  { %v4780_v14 = vpop.eup %4779 }
0x10be   :  { %v1070_v57 = vadd.f32 1.0, %v4780_v14 }
0x10c0   :  { %4781 = vrcp.f32 %v1070_v57  ;;  %v1082_v50 = vand.u32 2147483648, %v1070_v57  ;;  %vm1076_vm4 = vweird.f32 %v1070_v57  ;;  %v1080_v53 = vand.u32 2147483647, %v1070_v57 }
0x10c2   :  { %v1083_v55 = vor.u32 1.1754944e-38, %v1082_v50  ;;  %vm1081_vm6 = vcmp.eq.f32.partialorder %v1080_v53, 8.507059e+37 }
0x10c6   :  { %v4782_v34 = vpop.eup %4781 }
0x10c7   :  { %v1072_v43 = vmul.f32 %v4782_v34, %v1070_v57  ;;  %vm1077_vm3 = vweird.f32 %v4782_v34 }
0x10c8   :  { %vm1078_vm5 = vmor %vm1076_vm4, %vm1077_vm3 }
0x10c9   :  { %v1073_v49 = vsub.f32 1.0, %v1072_v43 }
0x10cb   :  { %v1074_v3 = vmul.f32 %v4782_v34, %v1073_v49 }
0x10cd   :  { %v1075_v51 = vadd.f32 %v4782_v34, %v1074_v3 }
0x10cf   :  { %v1079_v6 = vsel %vm1078_vm5, %v4782_v34, %v1075_v51 }
0x10d0   :  { %v1084_v60 = vsel %vm1081_vm6, %v1083_v55, %v1079_v6 }
0x10d1   :  { %v1087_v1 = vmul.f32 %v1084_v60, %v1017_v8 }
0x112e   :  { %v1090_v56 = vpop.permute.xlu1 %1089 }
0x112f   :  { %v1092_v2 = vmul.f32 %v1090_v56, %v1084_v60 }
0x1131   :  { %1094 = vrot.lane.b32.xlu2 %v1092_v2, %s6720_s7 }
0x118b   :  { %v1095_v9 = vpop.permute.xlu2 %1094 }
0x118c   :  { %v1097_v10 = vadd.f32 %v1095_v9, %v1087_v1  ;;  %v1105_v9 = vmul.f32 %v1017_v8, %v5400_v20 }
0x118e   :  { %4783 = vtanh.f32 %v1097_v10  ;;  %v1104_v1 = vmul.f32 %v1097_v10, %v5402_v63  ;;  %v1217_v10 = vpop.f32.mrf.mxu2 }
0x1194   :  { %v4784_v11 = vpop.eup %4783 }
0x1195   :  { %1100 = vrot.lane.b32.xlu0 %v4784_v11, %s6721_s4  ;;  %v1106_v11 = vadd.f32 %v1105_v9, %v1104_v1 }
0x1207   :  { %v1101_v12 = vpop.permute.xlu0 %1100 }
0x1208   :  { %v1103_v32 = vmul.f32 %v1101_v12, %v1084_v60 }
0x120a   :  { %v5438_v17 = vmul.f32 %v1103_v32, %v5402_v63 }
0x120c   :  { %v1109_v31 = vadd.f32 %v1108_v25, %v5438_v17 }
0x120e   :  { %1132 = vrot.lane.b32.xlu1 %v1109_v31, %s6722_s29 }
0x1280   :  { %v1133_v59 = vpop.permute.xlu1 %1132 }
0x1281   :  { %4575 = vmatmul.msk.f32.vlgmr.msrb.gmra.mxu1 %vm100_vm0, %v1133_v59 }
0x1282   :  { %1510 = vmatpush.msrb.mxu1 %v5336_v42 }
0x1284   :  { %1511 = vmatpush.msrb.mxu1 %v5345_v45 }
0x12fe   :  { %v1153_v37 = vpop.f32.mrf.mxu1 }
0x12ff   :  { %v1156_v46 = vadd.f32 %v1153_v37, %v1130_v41 }
0x1301   :  { %4785 = vtanh.f32 %v1156_v46  ;;  %v4576_v21 = vmul.f32 -1.442695, %v1156_v46  ;;  %v1198_v46 = vmul.f32 %v1109_v31, %v5314_v23 }
0x1303   :  { %4787 = vpow2.f32 %v4576_v21  ;;  %v1220_v21 = vadd.f32 %v5375_v29, %v1217_v10 }
0x1307   :  { %v4786_v14 = vpop.eup %4785 }
0x1308   :  { %1179 = vrot.lane.b32.xlu2 %v4786_v14, %s4979_s25 }
0x1309   :  { %v4788_v57 = vpop.eup %4787 }
0x130a   :  { %v1160_v34 = vadd.f32 1.0, %v4788_v57 }
0x130c   :  { %4789 = vrcp.f32 %v1160_v34  ;;  %v1172_v53 = vand.u32 2147483648, %v1160_v34  ;;  %vm1166_vm8 = vweird.f32 %v1160_v34  ;;  %v1170_v6 = vand.u32 2147483647, %v1160_v34 }
0x130e   :  { %v1173_v56 = vor.u32 1.1754944e-38, %v1172_v53  ;;  %vm1171_vm10 = vcmp.eq.f32.partialorder %v1170_v6, 8.507059e+37 }
0x1312   :  { %v4790_v43 = vpop.eup %4789 }
0x1313   :  { %v1162_v49 = vmul.f32 %v4790_v43, %v1160_v34  ;;  %vm1167_vm7 = vweird.f32 %v4790_v43 }
0x1314   :  { %vm1168_vm9 = vmor %vm1166_vm8, %vm1167_vm7 }
0x1315   :  { %v1163_v3 = vsub.f32 1.0, %v1162_v49 }
0x1317   :  { %v1164_v51 = vmul.f32 %v4790_v43, %v1163_v3 }
0x1319   :  { %v1165_v50 = vadd.f32 %v4790_v43, %v1164_v51 }
0x131b   :  { %v1169_v55 = vsel %vm1168_vm9, %v4790_v43, %v1165_v50 }
0x131c   :  { %v1174_v2 = vsel %vm1171_vm10, %v1173_v56, %v1169_v55 }
0x131d   :  { %v1177_v12 = vmul.f32 %v1174_v2, %v1106_v11 }
0x1362   :  { %v1180_v60 = vpop.permute.xlu2 %1179 }
0x1363   :  { %v1182_v7 = vmul.f32 %v1180_v60, %v1174_v2 }
0x1365   :  { %1184 = vrot.lane.b32.xlu0 %v1182_v7, %s6720_s7 }
0x13d7   :  { %v1185_v32 = vpop.permute.xlu0 %1184 }
0x13d8   :  { %v1187_v25 = vadd.f32 %v1185_v32, %v1177_v12  ;;  %v1195_v12 = vmul.f32 %v1106_v11, %v5314_v23 }
0x13da   :  { %4791 = vtanh.f32 %v1187_v25  ;;  %v1194_v9 = vmul.f32 %v1187_v25, %v5316_v26  ;;  %v1307_v25 = vpop.f32.mrf.mxu0 }
0x13dc   :  { %v1196_v32 = vadd.f32 %v1195_v12, %v1194_v9 }
0x13e0   :  { %v4792_v59 = vpop.eup %4791 }
0x13e1   :  { %1190 = vrot.lane.b32.xlu1 %v4792_v59, %s6721_s4 }
0x1453   :  { %v1191_v36 = vpop.permute.xlu1 %1190 }
0x1454   :  { %v1193_v41 = vmul.f32 %v1191_v36, %v1174_v2 }
0x1456   :  { %v5453_v37 = vmul.f32 %v1193_v41, %v5316_v26 }
0x1458   :  { %v1199_v14 = vadd.f32 %v1198_v46, %v5453_v37 }
0x145a   :  { %1222 = vrot.lane.b32.xlu2 %v1199_v14, %s6722_s29 }
0x14b4   :  { %v1223_v8 = vpop.permute.xlu2 %1222 }
0x14b5   :  { %4578 = vmatmul.msk.f32.vlgmr.msrb.gmra.mxu3 %vm100_vm0, %v1223_v8 }
0x14b6   :  { %1600 = vmatpush.msrb.mxu3 %v5336_v42 }
0x14b8   :  { %1601 = vmatpush.msrb.mxu3 %v5345_v45 }
0x1538   :  { %v1243_v57 = vpop.f32.mrf.mxu3 }
0x1539   :  { %v1246_v34 = vadd.f32 %v1243_v57, %v1220_v21  ;;  %v1288_v57 = vmul.f32 %v1199_v14, %v5284_v30 }
0x153b   :  { %4793 = vtanh.f32 %v1246_v34  ;;  %v4579_v31 = vmul.f32 -1.442695, %v1246_v34 }
0x153d   :  { %4795 = vpow2.f32 %v4579_v31 }
0x1541   :  { %v4794_v43 = vpop.eup %4793 }
0x1542   :  { %1269 = vrot.lane.b32.xlu0 %v4794_v43, %s4979_s25  ;;  %v1310_v43 = vadd.f32 %v5375_v29, %v1307_v25 }
0x1543   :  { %v4796_v49 = vpop.eup %4795 }
0x1544   :  { %v1250_v3 = vadd.f32 1.0, %v4796_v49 }
0x1546   :  { %4797 = vrcp.f32 %v1250_v3  ;;  %v1262_v45 = vand.u32 2147483648, %v1250_v3  ;;  %vm1256_vm12 = vweird.f32 %v1250_v3  ;;  %v1260_v55 = vand.u32 2147483647, %v1250_v3 }
0x1548   :  { %v1263_v60 = vor.u32 1.1754944e-38, %v1262_v45  ;;  %vm1261_vm14 = vcmp.eq.f32.partialorder %v1260_v55, 8.507059e+37 }
0x154c   :  { %v4798_v51 = vpop.eup %4797 }
0x154d   :  { %v1252_v50 = vmul.f32 %v4798_v51, %v1250_v3  ;;  %vm1257_vm11 = vweird.f32 %v4798_v51 }
0x154e   :  { %vm1258_vm13 = vmor %vm1256_vm12, %vm1257_vm11 }
0x154f   :  { %v1253_v53 = vsub.f32 1.0, %v1252_v50 }
0x1551   :  { %v1254_v42 = vmul.f32 %v4798_v51, %v1253_v53 }
0x1553   :  { %v1255_v6 = vadd.f32 %v4798_v51, %v1254_v42 }
0x1555   :  { %v1259_v56 = vsel %vm1258_vm13, %v4798_v51, %v1255_v6 }
0x1556   :  { %v1264_v7 = vsel %vm1261_vm14, %v1263_v60, %v1259_v56 }
0x1557   :  { %v1267_v59 = vmul.f32 %v1264_v7, %v1196_v32 }
0x15b4   :  { %v1270_v2 = vpop.permute.xlu0 %1269 }
0x15b5   :  { %v1272_v1 = vmul.f32 %v1270_v2, %v1264_v7 }
0x15b7   :  { %1274 = vrot.lane.b32.xlu1 %v1272_v1, %s6720_s7 }
0x1629   :  { %v1275_v36 = vpop.permute.xlu1 %1274 }
0x162a   :  { %v1277_v41 = vadd.f32 %v1275_v36, %v1267_v59  ;;  %v1285_v36 = vmul.f32 %v1196_v32, %v5284_v30 }
0x162c   :  { %4799 = vtanh.f32 %v1277_v41  ;;  %v1284_v59 = vmul.f32 %v1277_v41, %v5286_v33  ;;  %v1397_v41 = vpop.f32.mrf.mxu2 }
0x1632   :  { %v4800_v46 = vpop.eup %4799 }
0x1633   :  { %1280 = vrot.lane.b32.xlu2 %v4800_v46, %s6721_s4  ;;  %v1286_v46 = vadd.f32 %v1285_v36, %v1284_v59 }
0x168d   :  { %v1281_v8 = vpop.permute.xlu2 %1280 }
0x168e   :  { %v1283_v10 = vmul.f32 %v1281_v8, %v1264_v7 }
0x1690   :  { %v5468_v21 = vmul.f32 %v1283_v10, %v5286_v33 }
0x1692   :  { %v1289_v34 = vadd.f32 %v1288_v57, %v5468_v21 }
0x1694   :  { %1312 = vrot.lane.b32.xlu0 %v1289_v34, %s6722_s29 }
0x1706   :  { %v1313_v11 = vpop.permute.xlu0 %1312 }
0x1707   :  { %4581 = vmatmul.msk.f32.vlgmr.msra.gmra.mxu1 %vm100_vm0, %v1313_v11 }
0x1784   :  { %v1333_v31 = vpop.f32.mrf.mxu1 }
0x1785   :  { %v1336_v49 = vadd.f32 %v1333_v31, %v1310_v43 }
0x1787   :  { %4801 = vtanh.f32 %v1336_v49  ;;  %v4582_v51 = vmul.f32 -1.442695, %v1336_v49  ;;  %v1378_v49 = vmul.f32 %v1289_v34, %v5257_v44 }
0x1789   :  { %4803 = vpow2.f32 %v4582_v51  ;;  %v1400_v51 = vadd.f32 %v5375_v29, %v1397_v41 }
0x178d   :  { %v4802_v3 = vpop.eup %4801 }
0x178e   :  { %1359 = vrot.lane.b32.xlu1 %v4802_v3, %s4979_s25 }
0x178f   :  { %v4804_v50 = vpop.eup %4803 }
0x1790   :  { %v1340_v14 = vadd.f32 1.0, %v4804_v50 }
0x1792   :  { %4805 = vrcp.f32 %v1340_v14  ;;  %v1352_v56 = vand.u32 2147483648, %v1340_v14  ;;  %vm1346_vm1 = vweird.f32 %v1340_v14  ;;  %v1350_v60 = vand.u32 2147483647, %v1340_v14 }
0x1794   :  { %v1353_v7 = vor.u32 1.1754944e-38, %v1352_v56  ;;  %vm1351_vm3 = vcmp.eq.f32.partialorder %v1350_v60, 8.507059e+37 }
0x1798   :  { %v4806_v53 = vpop.eup %4805 }
0x1799   :  { %v1342_v42 = vmul.f32 %v4806_v53, %v1340_v14  ;;  %vm1347_vm15 = vweird.f32 %v4806_v53 }
0x179a   :  { %vm1348_vm2 = vmor %vm1346_vm1, %vm1347_vm15 }
0x179b   :  { %v1343_v6 = vsub.f32 1.0, %v1342_v42 }
0x179d   :  { %v1344_v45 = vmul.f32 %v4806_v53, %v1343_v6 }
0x179f   :  { %v1345_v55 = vadd.f32 %v4806_v53, %v1344_v45 }
0x17a1   :  { %v1349_v2 = vsel %vm1348_vm2, %v4806_v53, %v1345_v55 }
0x17a2   :  { %v1354_v9 = vsel %vm1351_vm3, %v1353_v7, %v1349_v2 }
0x17a3   :  { %v1357_v8 = vmul.f32 %v1354_v9, %v1286_v46 }
0x1800   :  { %v1360_v1 = vpop.permute.xlu1 %1359 }
0x1801   :  { %v1362_v12 = vmul.f32 %v1360_v1, %v1354_v9 }
0x1803   :  { %1364 = vrot.lane.b32.xlu2 %v1362_v12, %s6720_s7 }
0x185d   :  { %v1365_v10 = vpop.permute.xlu2 %1364 }
0x185e   :  { %v1367_v57 = vadd.f32 %v1365_v10, %v1357_v8 }
0x1860   :  { %4807 = vtanh.f32 %v1367_v57  ;;  %v1374_v10 = vmul.f32 %v1367_v57, %v5259_v47  ;;  %v1487_v57 = vpop.f32.mrf.mxu0 }
0x1866   :  { %v4808_v11 = vpop.eup %4807 }
0x1867   :  { %1370 = vrot.lane.b32.xlu0 %v4808_v11, %s6721_s4  ;;  %v1375_v11 = vmul.f32 %v1286_v46, %v5257_v44 }
0x18d9   :  { %v1371_v25 = vpop.permute.xlu0 %1370 }
0x18da   :  { %v1373_v43 = vmul.f32 %v1371_v25, %v1354_v9  ;;  %v1376_v25 = vadd.f32 %v1375_v11, %v1374_v10 }
0x18dc   :  { %v5481_v31 = vmul.f32 %v1373_v43, %v5259_v47 }
0x18de   :  { %v1379_v3 = vadd.f32 %v1378_v49, %v5481_v31 }
0x18e0   :  { %1402 = vrot.lane.b32.xlu1 %v1379_v3, %s6722_s29 }
0x1952   :  { %v1403_v32 = vpop.permute.xlu1 %1402 }
0x1953   :  { %4584 = vmatmul.msk.f32.vlgmr.msra.gmra.mxu3 %vm100_vm0, %v1403_v32 }
0x19d6   :  { %v1423_v50 = vpop.f32.mrf.mxu3 }
0x19d7   :  { %v1426_v14 = vadd.f32 %v1423_v50, %v1400_v51 }
0x19d9   :  { %4809 = vtanh.f32 %v1426_v14  ;;  %v4585_v42 = vmul.f32 -1.442695, %v1426_v14 }
0x19db   :  { %4811 = vpow2.f32 %v4585_v42 }
0x19df   :  { %v4810_v53 = vpop.eup %4809 }
0x19e0   :  { %1449 = vrot.lane.b32.xlu2 %v4810_v53, %s4979_s25  ;;  %v1468_v53 = vmul.f32 %v1379_v3, %v5228_v58 }
0x19e1   :  { %v4812_v6 = vpop.eup %4811 }
0x19e2   :  { %v1430_v34 = vadd.f32 1.0, %v4812_v6  ;;  %v1490_v6 = vadd.f32 %v5375_v29, %v1487_v57 }
0x19e4   :  { %4813 = vrcp.f32 %v1430_v34  ;;  %v1442_v7 = vand.u32 2147483648, %v1430_v34  ;;  %vm1436_vm5 = vweird.f32 %v1430_v34  ;;  %v1440_v1 = vand.u32 2147483647, %v1430_v34 }
0x19e6   :  { %v1443_v12 = vor.u32 1.1754944e-38, %v1442_v7  ;;  %vm1441_vm7 = vcmp.eq.f32.partialorder %v1440_v1, 8.507059e+37 }
0x19ea   :  { %v4814_v45 = vpop.eup %4813 }
0x19eb   :  { %v1432_v55 = vmul.f32 %v4814_v45, %v1430_v34  ;;  %vm1437_vm4 = vweird.f32 %v4814_v45 }
0x19ec   :  { %vm1438_vm6 = vmor %vm1436_vm5, %vm1437_vm4 }
0x19ed   :  { %v1433_v56 = vsub.f32 1.0, %v1432_v55 }
0x19ef   :  { %v1434_v60 = vmul.f32 %v4814_v45, %v1433_v56 }
0x19f1   :  { %v1435_v2 = vadd.f32 %v4814_v45, %v1434_v60 }
0x19f3   :  { %v1439_v9 = vsel %vm1438_vm6, %v4814_v45, %v1435_v2 }
0x19f4   :  { %v1444_v36 = vsel %vm1441_vm7, %v1443_v12, %v1439_v9 }
0x19f5   :  { %v1447_v43 = vmul.f32 %v1444_v36, %v1376_v25 }
0x1a3a   :  { %v1450_v59 = vpop.permute.xlu2 %1449 }
0x1a3b   :  { %v1452_v8 = vmul.f32 %v1450_v59, %v1444_v36 }
0x1a3d   :  { %1454 = vrot.lane.b32.xlu0 %v1452_v8, %s6720_s7 }
0x1aaf   :  { %v1455_v49 = vpop.permute.xlu0 %1454 }
0x1ab0   :  { %v1457_v32 = vadd.f32 %v1455_v49, %v1447_v43 }
0x1ab2   :  { %4815 = vtanh.f32 %v1457_v32 }
0x1ab8   :  { %v4816_v41 = vpop.eup %4815 }
0x1ab9   :  { %1460 = vrot.lane.b32.xlu1 %v4816_v41, %s6721_s4  ;;  %v1464_v41 = vmul.f32 %v1457_v32, %v5230_v61  ;;  %v1577_v32 = vpop.f32.mrf.mxu2 }
0x1b2b   :  { %v1461_v51 = vpop.permute.xlu1 %1460 }
0x1b2c   :  { %v1463_v50 = vmul.f32 %v1461_v51, %v1444_v36  ;;  %v1465_v51 = vmul.f32 %v1376_v25, %v5228_v58 }
0x1b2e   :  { %v5494_v14 = vmul.f32 %v1463_v50, %v5230_v61  ;;  %v1466_v50 = vadd.f32 %v1465_v51, %v1464_v41 }
0x1b30   :  { %v1469_v42 = vadd.f32 %v1468_v53, %v5494_v14 }
0x1b32   :  { %1492 = vrot.lane.b32.xlu2 %v1469_v42, %s6722_s29 }
0x1b8c   :  { %v1493_v46 = vpop.permute.xlu2 %1492 }
0x1b8d   :  { %4587 = vmatmul.msk.f32.vlgmr.msrb.gmra.mxu1 %vm100_vm0, %v1493_v46 }
0x1c0a   :  { %v1513_v34 = vpop.f32.mrf.mxu1 }
0x1c0b   :  { %v1516_v45 = vadd.f32 %v1513_v34, %v1490_v6 }
0x1c0d   :  { %4817 = vtanh.f32 %v1516_v45  ;;  %v4588_v56 = vmul.f32 -1.442695, %v1516_v45 }
0x1c0f   :  { %4819 = vpow2.f32 %v4588_v56  ;;  %v1558_v56 = vmul.f32 %v1469_v42, %v5197_v15 }
0x1c13   :  { %v4818_v55 = vpop.eup %4817 }
0x1c14   :  { %1539 = vrot.lane.b32.xlu0 %v4818_v55, %s4979_s25 }
0x1c15   :  { %v4820_v60 = vpop.eup %4819 }
0x1c16   :  { %v1520_v3 = vadd.f32 1.0, %v4820_v60 }
0x1c18   :  { %4821 = vrcp.f32 %v1520_v3  ;;  %v1532_v59 = vand.u32 2147483648, %v1520_v3  ;;  %vm1526_vm9 = vweird.f32 %v1520_v3  ;;  %v1530_v36 = vand.u32 2147483647, %v1520_v3 }
0x1c1a   :  { %v1533_v10 = vor.u32 1.1754944e-38, %v1532_v59  ;;  %vm1531_vm11 = vcmp.eq.f32.partialorder %v1530_v36, 8.507059e+37  ;;  %v5520_v59 = vld [vmem:[%s6682_s8 + $0x8] sm:$0xff] }
0x1c1b   :  { %1671 = vmatpush.msra.mxu0 %v5520_v59  ;;  %1788 = vmatpush.msra.mxu3 %v5520_v59 }
0x1c1e   :  { %v4822_v2 = vpop.eup %4821 }
0x1c1f   :  { %v1522_v7 = vmul.f32 %v4822_v2, %v1520_v3  ;;  %vm1527_vm8 = vweird.f32 %v4822_v2  ;;  %v1580_v3 = vadd.f32 %v5375_v29, %v1577_v32  ;;  %v5525_v29 = vld [vmem:[%s6682_s8] sm:$0xff] }
0x1c20   :  { %vm1528_vm10 = vmor %vm1526_vm9, %vm1527_vm8  ;;  %1672 = vmatpush.msra.mxu0 %v5525_v29  ;;  %1789 = vmatpush.msra.mxu3 %v5525_v29 }
0x1c21   :  { %v1523_v1 = vsub.f32 1.0, %v1522_v7 }
0x1c23   :  { %v1524_v9 = vmul.f32 %v4822_v2, %v1523_v1 }
0x1c25   :  { %v1525_v12 = vadd.f32 %v4822_v2, %v1524_v9 }
0x1c27   :  { %v1529_v8 = vsel %vm1528_vm10, %v4822_v2, %v1525_v12 }
0x1c28   :  { %v1534_v43 = vsel %vm1531_vm11, %v1533_v10, %v1529_v8 }
0x1c29   :  { %v1537_v53 = vmul.f32 %v1534_v43, %v1466_v50 }
0x1c86   :  { %v1540_v11 = vpop.permute.xlu0 %1539 }
0x1c87   :  { %v1542_v49 = vmul.f32 %v1540_v11, %v1534_v43 }
0x1c89   :  { %1544 = vrot.lane.b32.xlu1 %v1542_v49, %s6720_s7 }
0x1cfb   :  { %v1545_v46 = vpop.permute.xlu1 %1544 }
0x1cfc   :  { %v1547_v57 = vadd.f32 %v1545_v46, %v1537_v53 }
0x1cfe   :  { %4823 = vtanh.f32 %v1547_v57 }
0x1d04   :  { %v4824_v6 = vpop.eup %4823 }
0x1d05   :  { %1550 = vrot.lane.b32.xlu2 %v4824_v6, %s6721_s4 }
0x1d5f   :  { %v1551_v34 = vpop.permute.xlu2 %1550 }
0x1d60   :  { %v1553_v45 = vmul.f32 %v1551_v34, %v1534_v43 }
0x1d62   :  { %v5507_v55 = vmul.f32 %v1553_v45, %v5199_v18  ;;  %v1554_v45 = vmul.f32 %v1547_v57, %v5199_v18  ;;  %v5559_v57 = vld [vmem:[%s6682_s8 + $0x10] sm:$0xff] }
0x1d64   :  { %v1559_v60 = vadd.f32 %v1558_v56, %v5507_v55  ;;  %v1555_v56 = vmul.f32 %v1466_v50, %v5197_v15  ;;  %v5552_v50 = vld [vmem:[%s6684_s9] sm:$0xff] }
0x1d66   :  { %1582 = vrot.lane.b32.xlu0 %v1559_v60, %s6722_s29  ;;  %v1556_v60 = vadd.f32 %v1555_v56, %v1554_v45 }
0x1dd8   :  { %v1583_v25 = vpop.permute.xlu0 %1582 }
0x1dd9   :  { %4590 = vmatmul.msk.f32.vlgmr.msrb.gmra.mxu3 %vm100_vm0, %v1583_v25 }
0x1e5c   :  { %v1603_v2 = vpop.f32.mrf.mxu3 }
0x1e5d   :  { %v1606_v7 = vadd.f32 %v1603_v2, %v1580_v3 }
0x1e5f   :  { %4825 = vtanh.f32 %v1606_v7  ;;  %v4591_v42 = vmul.f32 -1.442695, %v1606_v7  ;;  %v5542_v7 = vld [vmem:[%s6684_s9 + $0x8] sm:$0xff] }
0x1e60   :  { %1721 = vmatpush.msra.mxu2 %v5542_v7 }
0x1e61   :  { %4827 = vpow2.f32 %v4591_v42 }
0x1e62   :  { %1722 = vmatpush.msra.mxu2 %v5552_v50 }
0x1e63   :  { %1723 = vmatmul.f32.vlgmr.msra.gmra.mxu2 %v4978_v5 }
0x1e64   :  { %1909 = vmatpush.msrb.mxu2 %v5520_v59 }
0x1e65   :  { %v4826_v1 = vpop.eup %4825 }
0x1e66   :  { %1629 = vrot.lane.b32.xlu1 %v4826_v1, %s4979_s25  ;;  %v5547_v1 = vld [vmem:[%s6682_s8 + $0x18] sm:$0xff]  ;;  %1910 = vmatpush.msrb.mxu2 %v5525_v29 }
0x1e67   :  { %v4828_v9 = vpop.eup %4827  ;;  %1700 = vmatpush.msra.mxu1 %v5547_v1  ;;  %1814 = vmatpush.msrb.mxu0 %v5547_v1 }
0x1e68   :  { %v1610_v12 = vadd.f32 1.0, %v4828_v9  ;;  %1935 = vmatpush.msrb.mxu3 %v5547_v1  ;;  %2056 = vmatpush.msra.mxu2 %v5547_v1 }
0x1e69   :  { %1701 = vmatpush.msra.mxu1 %v5559_v57  ;;  %1815 = vmatpush.msrb.mxu0 %v5559_v57 }
0x1e6a   :  { %4829 = vrcp.f32 %v1610_v12  ;;  %v1622_v43 = vand.u32 2147483648, %v1610_v12  ;;  %vm1616_vm13 = vweird.f32 %v1610_v12  ;;  %v1620_v49 = vand.u32 2147483647, %v1610_v12  ;;  %1936 = vmatpush.msrb.mxu3 %v5559_v57  ;;  %2057 = vmatpush.msra.mxu2 %v5559_v57 }
0x1e6b   :  { %1840 = vmatpush.msrb.mxu1 %v5542_v7 }
0x1e6c   :  { %v1623_v51 = vor.u32 1.1754944e-38, %v1622_v43  ;;  %vm1621_vm15 = vcmp.eq.f32.partialorder %v1620_v49, 8.507059e+37 }
0x1e6d   :  { %1841 = vmatpush.msrb.mxu1 %v5552_v50 }
0x1e6e   :  { %1653 = vrot.lane.b32.xlu1 %v5171_v40, %s6722_s29 }
0x1e70   :  { %v4830_v40 = vpop.eup %4829 }
0x1e71   :  { %v1612_v36 = vmul.f32 %v4830_v40, %v1610_v12  ;;  %vm1617_vm12 = vweird.f32 %v4830_v40 }
0x1e72   :  { %vm1618_vm14 = vmor %vm1616_vm13, %vm1617_vm12 }
0x1e73   :  { %v1613_v8 = vsub.f32 1.0, %v1612_v36  ;;  %v5587_v36 = vld [vmem:[%s6683_s10] ss:$0 sm:$0xff] }
0x1e75   :  { %v1614_v10 = vmul.f32 %v4830_v40, %v1613_v8 }
0x1e77   :  { %v1615_v11 = vadd.f32 %v4830_v40, %v1614_v10 }
0x1e79   :  { %v1619_v41 = vsel %vm1618_vm14, %v4830_v40, %v1615_v11 }
0x1e7a   :  { %v1624_v46 = vsel %vm1621_vm15, %v1623_v51, %v1619_v41 }
0x1e7b   :  { %v1627_v25 = vmul.f32 %v1624_v46, %v1556_v60 }
0x1ed8   :  { %v1630_v53 = vpop.permute.xlu1 %1629 }
0x1ed9   :  { %v1632_v6 = vmul.f32 %v1630_v53, %v1624_v46 }
0x1edb   :  { %1634 = vrot.lane.b32.xlu2 %v1632_v6, %s6720_s7 }
0x1ee0   :  { %v5532_v34 = vpop.permute.xlu1 %1653 }
0x1ee1   :  { %4592 = vmatmul.msk.f32.vlgmr.msra.gmra.mxu0 %vm100_vm0, %v5532_v34 }
0x1ee2   :  { %1961 = vmatpush.msra.mxu0 %v5542_v7 }
0x1ee4   :  { %1962 = vmatpush.msra.mxu0 %v5552_v50 }
0x1ee6   :  { %v1724_v43 = vpop.f32.mrf.mxu2 }
0x1f35   :  { %v1635_v32 = vpop.permute.xlu2 %1634 }
0x1f36   :  { %v1637_v3 = vadd.f32 %v1635_v32, %v1627_v25 }
0x1f38   :  { %4831 = vtanh.f32 %v1637_v3 }
0x1f3e   :  { %v4832_v2 = vpop.eup %4831 }
0x1f3f   :  { %1640 = vrot.lane.b32.xlu0 %v4832_v2, %s6721_s4 }
0x1f5e   :  { %v1674_v8 = vpop.f32.mrf.mxu0 }
0x1f5f   :  { %v1680_v10 = vadd.f32 %v5587_v36, %v1674_v8 }
0x1fb1   :  { %v1641_v42 = vpop.permute.xlu0 %1640 }
0x1fb2   :  { %v1643_v9 = vmul.f32 %v1641_v42, %v1624_v46 }
0x1fb4   :  { %v1644_v12 = vmul.f32 %v1643_v9, %v5168_v39 }
0x1fb6   :  { %1682 = vrot.lane.b32.xlu2 %v1644_v12, %s6722_s29 }
0x2010   :  { %v5578_v40 = vpop.permute.xlu2 %1682 }
0x2011   :  { %4593 = vmatmul.msk.f32.vlgmr.msra.gmra.mxu1 %vm100_vm0, %v5578_v40 }
0x2012   :  { %2030 = vmatpush.msra.mxu1 %v5520_v59 }
0x2014   :  { %2031 = vmatpush.msra.mxu1 %v5525_v29 }
0x208e   :  { %v1703_v11 = vpop.f32.mrf.mxu1 }
0x208f   :  { %v1706_v49 = vadd.f32 %v1703_v11, %v1680_v10 }
0x2091   :  { %v1727_v41 = vadd.f32 %v1724_v43, %v1706_v49 }
0x2093   :  { %4833 = vtanh.f32 %v1727_v41  ;;  %v4594_v53 = vmul.f32 -1.442695, %v1727_v41 }
0x2095   :  { %4835 = vpow2.f32 %v4594_v53 }
0x2099   :  { %v4834_v51 = vpop.eup %4833 }
0x209a   :  { %1750 = vrot.lane.b32.xlu0 %v4834_v51, %s4979_s25 }
0x209b   :  { %v4836_v46 = vpop.eup %4835 }
0x209c   :  { %v1731_v6 = vadd.f32 1.0, %v4836_v46 }
0x209e   :  { %4837 = vrcp.f32 %v1731_v6  ;;  %v1743_v3 = vand.u32 2147483648, %v1731_v6  ;;  %vm1737_vm2 = vweird.f32 %v1731_v6  ;;  %v1741_v2 = vand.u32 2147483647, %v1731_v6 }
0x20a0   :  { %v1744_v9 = vor.u32 1.1754944e-38, %v1743_v3  ;;  %vm1742_vm4 = vcmp.eq.f32.partialorder %v1741_v2, 8.507059e+37 }
0x20a2   :  { %1770 = vrot.lane.b32.xlu0 %v5202_v19, %s6722_s29 }
0x20a4   :  { %v4838_v45 = vpop.eup %4837 }
0x20a5   :  { %v1733_v56 = vmul.f32 %v4838_v45, %v1731_v6  ;;  %vm1738_vm1 = vweird.f32 %v4838_v45 }
0x20a6   :  { %vm1739_vm3 = vmor %vm1737_vm2, %vm1738_vm1 }
0x20a7   :  { %v1734_v60 = vsub.f32 1.0, %v1733_v56 }
0x20a9   :  { %v1735_v25 = vmul.f32 %v4838_v45, %v1734_v60 }
0x20ab   :  { %v1736_v32 = vadd.f32 %v4838_v45, %v1735_v25 }
0x20ad   :  { %v1740_v42 = vsel %vm1739_vm3, %v4838_v45, %v1736_v32 }
0x20ae   :  { %v1745_v19 = vsel %vm1742_vm4, %v1744_v9, %v1740_v42 }
0x20af   :  { %v1748_v11 = vmul.f32 0.0, %v1745_v19 }
0x210c   :  { %v1751_v12 = vpop.permute.xlu0 %1750 }
0x210d   :  { %v1753_v8 = vmul.f32 %v1751_v12, %v1745_v19 }
0x210f   :  { %1755 = vrot.lane.b32.xlu1 %v1753_v8, %s6720_s7 }
0x2114   :  { %v5594_v10 = vpop.permute.xlu0 %1770 }
0x2115   :  { %4595 = vmatmul.msk.f32.vlgmr.msra.gmra.mxu3 %vm100_vm0, %v5594_v10 }
0x2116   :  { %2082 = vmatpush.msra.mxu3 %v5542_v7 }
0x2117   :  { %1796 = vrot.lane.b32.xlu1 %v5507_v55, %s6722_s29 }
0x2118   :  { %2083 = vmatpush.msra.mxu3 %v5552_v50 }
0x2181   :  { %v1756_v43 = vpop.permute.xlu1 %1755 }
0x2182   :  { %v1758_v49 = vadd.f32 %v1756_v43, %v1748_v11 }
0x2184   :  { %4839 = vtanh.f32 %v1758_v49 }
0x2189   :  { %v5602_v41 = vpop.permute.xlu1 %1796 }
0x218a   :  { %v4840_v51 = vpop.eup %4839  ;;  %4596 = vmatmul.msk.f32.vlgmr.msrb.gmra.mxu0 %vm100_vm0, %v5602_v41 }
0x218b   :  { %1761 = vrot.lane.b32.xlu2 %v4840_v51, %s6721_s4  ;;  %2151 = vmatpush.msrb.mxu0 %v5520_v59 }
0x218d   :  { %2152 = vmatpush.msrb.mxu0 %v5525_v29 }
0x2198   :  { %v1791_v56 = vpop.f32.mrf.mxu3 }
0x2199   :  { %v1794_v25 = vadd.f32 %v5587_v36, %v1791_v56 }
0x21e5   :  { %v1762_v53 = vpop.permute.xlu2 %1761 }
0x21e6   :  { %v1764_v55 = vmul.f32 %v1762_v53, %v1745_v19 }
0x21e8   :  { %v5610_v46 = vmul.f32 %v1764_v55, %v5168_v39 }
0x21ea   :  { %v1768_v6 = vadd.f32 %v5610_v46, %v5166_v38 }
0x21ec   :  { %1822 = vrot.lane.b32.xlu2 %v1768_v6, %s6722_s29 }
0x2207   :  { %v1817_v60 = vpop.f32.mrf.mxu0 }
0x2208   :  { %v1820_v32 = vadd.f32 %v1817_v60, %v1794_v25 }
0x2246   :  { %v1823_v45 = vpop.permute.xlu2 %1822 }
0x2247   :  { %4597 = vmatmul.msk.f32.vlgmr.msrb.gmra.mxu1 %vm100_vm0, %v1823_v45 }
0x2248   :  { %2177 = vmatpush.msrb.mxu1 %v5547_v1 }
0x224a   :  { %2178 = vmatpush.msrb.mxu1 %v5559_v57 }
0x22c4   :  { %v1843_v3 = vpop.f32.mrf.mxu1 }
0x22c5   :  { %v1846_v2 = vadd.f32 %v1843_v3, %v1820_v32 }
0x22c7   :  { %4841 = vtanh.f32 %v1846_v2  ;;  %v4598_v9 = vmul.f32 -1.442695, %v1846_v2  ;;  %v1765_v2 = vmul.f32 %v1758_v49, %v5168_v39 }
0x22c9   :  { %4843 = vpow2.f32 %v4598_v9 }
0x22cd   :  { %v4842_v42 = vpop.eup %4841 }
0x22ce   :  { %1869 = vrot.lane.b32.xlu0 %v4842_v42, %s4979_s25  ;;  %v1766_v42 = vadd.f32 %v1765_v2, %v5166_v38 }
0x22cf   :  { %v4844_v12 = vpop.eup %4843 }
0x22d0   :  { %v1850_v19 = vadd.f32 1.0, %v4844_v12 }
0x22d2   :  { %4845 = vrcp.f32 %v1850_v19  ;;  %v1862_v55 = vand.u32 2147483648, %v1850_v19  ;;  %vm1856_vm6 = vweird.f32 %v1850_v19  ;;  %v1860_v45 = vand.u32 2147483647, %v1850_v19 }
0x22d4   :  { %v1863_v60 = vor.u32 1.1754944e-38, %v1862_v55  ;;  %vm1861_vm8 = vcmp.eq.f32.partialorder %v1860_v45, 8.507059e+37 }
0x22d6   :  { %1891 = vrot.lane.b32.xlu0 %v5233_v62, %s6722_s29 }
0x22d8   :  { %v4846_v8 = vpop.eup %4845 }
0x22d9   :  { %v1852_v11 = vmul.f32 %v4846_v8, %v1850_v19  ;;  %vm1857_vm5 = vweird.f32 %v4846_v8 }
0x22da   :  { %vm1858_vm7 = vmor %vm1856_vm6, %vm1857_vm5 }
0x22db   :  { %v1853_v43 = vsub.f32 1.0, %v1852_v11 }
0x22dd   :  { %v1854_v51 = vmul.f32 %v4846_v8, %v1853_v43  ;;  %v1888_v43 = vmul.f32 %v1768_v6, %v5197_v15 }
0x22df   :  { %v1855_v53 = vadd.f32 %v4846_v8, %v1854_v51 }
0x22e1   :  { %v1859_v56 = vsel %vm1858_vm7, %v4846_v8, %v1855_v53 }
0x22e2   :  { %v1864_v62 = vsel %vm1861_vm8, %v1863_v60, %v1859_v56 }
0x22e3   :  { %v1867_v9 = vmul.f32 %v1864_v62, %v1766_v42 }
0x2340   :  { %v1870_v25 = vpop.permute.xlu0 %1869 }
0x2341   :  { %v1872_v32 = vmul.f32 %v1870_v25, %v1864_v62 }
0x2343   :  { %1874 = vrot.lane.b32.xlu1 %v1872_v32, %s6720_s7 }
0x2348   :  { %v5623_v3 = vpop.permute.xlu0 %1891 }
0x2349   :  { %4599 = vmatmul.msk.f32.vlgmr.msrb.gmra.mxu2 %vm100_vm0, %v5623_v3 }
0x234a   :  { %2203 = vmatpush.msrb.mxu2 %v5542_v7 }
0x234b   :  { %1917 = vrot.lane.b32.xlu1 %v5494_v14, %s6722_s29 }
0x234c   :  { %2204 = vmatpush.msrb.mxu2 %v5552_v50 }
0x23b5   :  { %v1875_v12 = vpop.permute.xlu1 %1874 }
0x23b6   :  { %v1877_v19 = vadd.f32 %v1875_v12, %v1867_v9 }
0x23b8   :  { %4847 = vtanh.f32 %v1877_v19 }
0x23bd   :  { %v5633_v8 = vpop.permute.xlu1 %1917 }
0x23be   :  { %v4848_v11 = vpop.eup %4847  ;;  %4600 = vmatmul.msk.f32.vlgmr.msrb.gmra.mxu3 %vm100_vm0, %v5633_v8 }
0x23bf   :  { %1880 = vrot.lane.b32.xlu2 %v4848_v11, %s6721_s4  ;;  %2272 = vmatpush.msrb.mxu3 %v5520_v59 }
0x23c1   :  { %2273 = vmatpush.msrb.mxu3 %v5525_v29 }
0x23cc   :  { %v1912_v55 = vpop.f32.mrf.mxu2 }
0x23cd   :  { %v1915_v56 = vadd.f32 %v5587_v36, %v1912_v55 }
0x2419   :  { %v1881_v14 = vpop.permute.xlu2 %1880 }
0x241a   :  { %v1883_v49 = vmul.f32 %v1881_v14, %v1864_v62 }
0x241c   :  { %v5641_v38 = vmul.f32 %v1883_v49, %v5199_v18 }
0x241e   :  { %v1889_v51 = vadd.f32 %v1888_v43, %v5641_v38 }
0x2420   :  { %1943 = vrot.lane.b32.xlu2 %v1889_v51, %s6722_s29 }
0x2441   :  { %v1938_v45 = vpop.f32.mrf.mxu3 }
0x2442   :  { %v1941_v60 = vadd.f32 %v1938_v45, %v1915_v56 }
0x247a   :  { %v1944_v53 = vpop.permute.xlu2 %1943 }
0x247b   :  { %4601 = vmatmul.msk.f32.vlgmr.msra.gmra.mxu0 %vm100_vm0, %v1944_v53 }
0x247c   :  { %2298 = vmatpush.msra.mxu0 %v5547_v1 }
0x247e   :  { %2299 = vmatpush.msra.mxu0 %v5559_v57 }
0x24f8   :  { %v1964_v25 = vpop.f32.mrf.mxu0 }
0x24f9   :  { %v1967_v62 = vadd.f32 %v1964_v25, %v1941_v60 }
0x24fb   :  { %4849 = vtanh.f32 %v1967_v62  ;;  %v4602_v32 = vmul.f32 -1.442695, %v1967_v62 }
0x24fd   :  { %4851 = vpow2.f32 %v4602_v32  ;;  %v1885_v32 = vmul.f32 %v1766_v42, %v5197_v15 }
0x2501   :  { %v4850_v6 = vpop.eup %4849 }
0x2502   :  { %1990 = vrot.lane.b32.xlu0 %v4850_v6, %s4979_s25  ;;  %v1884_v6 = vmul.f32 %v1877_v19, %v5199_v18  ;;  %v2009_v19 = vmul.f32 %v1889_v51, %v5228_v58 }
0x2503   :  { %v4852_v2 = vpop.eup %4851 }
0x2504   :  { %v1971_v9 = vadd.f32 1.0, %v4852_v2  ;;  %v1886_v2 = vadd.f32 %v1885_v32, %v1884_v6 }
0x2506   :  { %4853 = vrcp.f32 %v1971_v9  ;;  %v1983_v53 = vand.u32 2147483648, %v1971_v9  ;;  %vm1977_vm10 = vweird.f32 %v1971_v9  ;;  %v1981_v55 = vand.u32 2147483647, %v1971_v9 }
0x2508   :  { %v1984_v56 = vor.u32 1.1754944e-38, %v1983_v53  ;;  %vm1982_vm12 = vcmp.eq.f32.partialorder %v1981_v55, 8.507059e+37 }
0x250a   :  { %2038 = vrot.lane.b32.xlu0 %v5481_v31, %s6722_s29 }
0x250c   :  { %v4854_v12 = vpop.eup %4853 }
0x250d   :  { %v1973_v11 = vmul.f32 %v4854_v12, %v1971_v9  ;;  %vm1978_vm9 = vweird.f32 %v4854_v12 }
0x250e   :  { %vm1979_vm11 = vmor %vm1977_vm10, %vm1978_vm9 }
0x250f   :  { %v1974_v14 = vsub.f32 1.0, %v1973_v11 }
0x2511   :  { %v1975_v49 = vmul.f32 %v4854_v12, %v1974_v14 }
0x2513   :  { %v1976_v43 = vadd.f32 %v4854_v12, %v1975_v49 }
0x2515   :  { %v1980_v45 = vsel %vm1979_vm11, %v4854_v12, %v1976_v43 }
0x2516   :  { %v1985_v31 = vsel %vm1982_vm12, %v1984_v56, %v1980_v45 }
0x2517   :  { %v1988_v9 = vmul.f32 %v1985_v31, %v1886_v2 }
0x2574   :  { %v1991_v60 = vpop.permute.xlu0 %1990 }
0x2575   :  { %v1993_v25 = vmul.f32 %v1991_v60, %v1985_v31 }
0x2577   :  { %1995 = vrot.lane.b32.xlu1 %v1993_v25, %s6720_s7 }
0x257c   :  { %v5654_v62 = vpop.permute.xlu0 %2038 }
0x257d   :  { %4604 = vmatmul.msk.f32.vlgmr.msra.gmra.mxu2 %vm100_vm0, %v5654_v62 }
0x257e   :  { %2393 = vmatpush.msra.mxu2 %v5520_v59 }
0x2580   :  { %2394 = vmatpush.msra.mxu2 %v5525_v29 }
0x25e9   :  { %v1996_v12 = vpop.permute.xlu1 %1995 }
0x25ea   :  { %v1998_v11 = vadd.f32 %v1996_v12, %v1988_v9 }
0x25ec   :  { %4855 = vtanh.f32 %v1998_v11 }
0x25f2   :  { %v4856_v14 = vpop.eup %4855 }
0x25f3   :  { %2001 = vrot.lane.b32.xlu2 %v4856_v14, %s6721_s4 }
0x25fb   :  { %2012 = vrot.lane.b32.xlu2 %v5262_v48, %s6722_s29 }
0x2600   :  { %v2059_v56 = vpop.f32.mrf.mxu2 }
0x264d   :  { %v2002_v49 = vpop.permute.xlu2 %2001 }
0x264e   :  { %v2004_v43 = vmul.f32 %v2002_v49, %v1985_v31 }
0x2650   :  { %v5666_v53 = vmul.f32 %v2004_v43, %v5230_v61 }
0x2652   :  { %v2010_v42 = vadd.f32 %v2009_v19, %v5666_v53 }
0x2654   :  { %2064 = vrot.lane.b32.xlu1 %v2010_v42, %s6722_s29 }
0x2655   :  { %v5671_v55 = vpop.permute.xlu2 %2012 }
0x2656   :  { %4603 = vmatmul.msk.f32.vlgmr.msra.gmra.mxu1 %vm100_vm0, %v5671_v55 }
0x2657   :  { %2324 = vmatpush.msra.mxu1 %v5542_v7 }
0x2659   :  { %2325 = vmatpush.msra.mxu1 %v5552_v50 }
0x26c6   :  { %v2065_v48 = vpop.permute.xlu1 %2064 }
0x26c7   :  { %4605 = vmatmul.msk.f32.vlgmr.msra.gmra.mxu3 %vm100_vm0, %v2065_v48 }
0x26c8   :  { %2419 = vmatpush.msra.mxu3 %v5547_v1 }
0x26ca   :  { %2420 = vmatpush.msra.mxu3 %v5559_v57 }
0x26d3   :  { %v2033_v51 = vpop.f32.mrf.mxu1 }
0x26d4   :  { %v2036_v45 = vadd.f32 %v5587_v36, %v2033_v51 }
0x26d6   :  { %v2062_v60 = vadd.f32 %v2059_v56, %v2036_v45 }
0x274a   :  { %v2085_v31 = vpop.f32.mrf.mxu3 }
0x274b   :  { %v2088_v25 = vadd.f32 %v2085_v31, %v2062_v60 }
0x274d   :  { %4857 = vtanh.f32 %v2088_v25  ;;  %v4606_v32 = vmul.f32 -1.442695, %v2088_v25 }
0x274f   :  { %4859 = vpow2.f32 %v4606_v32  ;;  %v2005_v32 = vmul.f32 %v1998_v11, %v5230_v61 }
0x2753   :  { %v4858_v6 = vpop.eup %4857 }
0x2754   :  { %2111 = vrot.lane.b32.xlu0 %v4858_v6, %s4979_s25 }
0x2755   :  { %v4860_v9 = vpop.eup %4859 }
0x2756   :  { %v2092_v12 = vadd.f32 1.0, %v4860_v9  ;;  %v2006_v9 = vmul.f32 %v1886_v2, %v5228_v58 }
0x2758   :  { %4861 = vrcp.f32 %v2092_v12  ;;  %v2104_v51 = vand.u32 2147483648, %v2092_v12  ;;  %vm2098_vm14 = vweird.f32 %v2092_v12  ;;  %v2102_v45 = vand.u32 2147483647, %v2092_v12 }
0x275a   :  { %v2105_v60 = vor.u32 1.1754944e-38, %v2104_v51  ;;  %vm2103_vm1 = vcmp.eq.f32.partialorder %v2102_v45, 8.507059e+37  ;;  %v2130_v51 = vmul.f32 %v2010_v42, %v5257_v44 }
0x275e   :  { %v4862_v14 = vpop.eup %4861 }
0x275f   :  { %v2094_v49 = vmul.f32 %v4862_v14, %v2092_v12  ;;  %vm2099_vm13 = vweird.f32 %v4862_v14 }
0x2760   :  { %vm2100_vm15 = vmor %vm2098_vm14, %vm2099_vm13 }
0x2761   :  { %v2095_v43 = vsub.f32 1.0, %v2094_v49  ;;  %v5687_v49 = vadd.f32 %v2006_v9, %v2005_v32 }
0x2763   :  { %v2096_v19 = vmul.f32 %v4862_v14, %v2095_v43 }
0x2765   :  { %v2097_v48 = vadd.f32 %v4862_v14, %v2096_v19 }
0x2767   :  { %v2101_v56 = vsel %vm2100_vm15, %v4862_v14, %v2097_v48 }
0x2768   :  { %v2106_v6 = vsel %vm2103_vm1, %v2105_v60, %v2101_v56 }
0x2769   :  { %v2109_v12 = vmul.f32 %v2106_v6, %v5687_v49 }
0x27c6   :  { %v2112_v31 = vpop.permute.xlu0 %2111 }
0x27c7   :  { %v2114_v25 = vmul.f32 %v2112_v31, %v2106_v6 }
0x27c9   :  { %2116 = vrot.lane.b32.xlu1 %v2114_v25, %s6720_s7 }
0x27d1   :  { %2133 = vrot.lane.b32.xlu1 %v5289_v35, %s6722_s29 }
0x283b   :  { %v2117_v43 = vpop.permute.xlu1 %2116 }
0x283c   :  { %v5690_v14 = vadd.f32 %v2117_v43, %v2109_v12 }
0x283e   :  { %4863 = vtanh.f32 %v5690_v14 }
0x2843   :  { %v5693_v19 = vpop.permute.xlu1 %2133 }
0x2844   :  { %v4864_v48 = vpop.eup %4863  ;;  %4607 = vmatmul.msk.f32.vlgmr.msrb.gmra.mxu0 %vm100_vm0, %v5693_v19 }
0x2845   :  { %2122 = vrot.lane.b32.xlu2 %v4864_v48, %s6721_s4  ;;  %2445 = vmatpush.msrb.mxu0 %v5542_v7 }
0x2847   :  { %2446 = vmatpush.msrb.mxu0 %v5552_v50 }
0x284d   :  { %2159 = vrot.lane.b32.xlu2 %v5468_v21, %s6722_s29 }
0x289f   :  { %v2123_v35 = vpop.permute.xlu2 %2122 }
0x28a0   :  { %v2125_v2 = vmul.f32 %v2123_v35, %v2106_v6 }
0x28a2   :  { %v5703_v11 = vmul.f32 %v2125_v2, %v5259_v47 }
0x28a4   :  { %v5707_v45 = vadd.f32 %v2130_v51, %v5703_v11 }
0x28a6   :  { %2185 = vrot.lane.b32.xlu0 %v5707_v45, %s6722_s29 }
0x28a7   :  { %v5711_v56 = vpop.permute.xlu2 %2159 }
0x28a8   :  { %4608 = vmatmul.msk.f32.vlgmr.msrb.gmra.mxu1 %vm100_vm0, %v5711_v56 }
0x28a9   :  { %2514 = vmatpush.msrb.mxu1 %v5520_v59 }
0x28ab   :  { %2515 = vmatpush.msrb.mxu1 %v5525_v29 }
0x28c1   :  { %v2154_v42 = vpop.f32.mrf.mxu0 }
0x28c2   :  { %v2157_v31 = vadd.f32 %v5587_v36, %v2154_v42 }
0x2918   :  { %v2186_v21 = vpop.permute.xlu0 %2185 }
0x2919   :  { %4609 = vmatmul.msk.f32.vlgmr.msrb.gmra.mxu2 %vm100_vm0, %v2186_v21 }
0x291a   :  { %2540 = vmatpush.msrb.mxu2 %v5547_v1 }
0x291c   :  { %2541 = vmatpush.msrb.mxu2 %v5559_v57 }
0x2925   :  { %v2180_v60 = vpop.f32.mrf.mxu1 }
0x2926   :  { %v2183_v6 = vadd.f32 %v2180_v60, %v2157_v31 }
0x299c   :  { %v2206_v25 = vpop.f32.mrf.mxu2 }
0x299d   :  { %v2209_v32 = vadd.f32 %v2206_v25, %v2183_v6  ;;  %v4969_v6 = vld [vmem:[%s6717_s0] ss:$0 sm:$0xff] }
0x299e   :  { %v852_v25 = vadd.f32 %v4969_v6, %v5427_v22  ;;  %v2126_v22 = vmul.f32 %v5690_v14, %v5259_v47 }
0x299f   :  { %4865 = vtanh.f32 %v2209_v32  ;;  %v4610_v59 = vmul.f32 -1.442695, %v2209_v32 }
0x29a0   :  { %v878_v32 = vadd.f32 %v5429_v24, %v852_v25  ;;  %v2127_v24 = vmul.f32 %v5687_v49, %v5257_v44 }
0x29a1   :  { %4867 = vpow2.f32 %v4610_v59 }
0x29a5   :  { %v4866_v9 = vpop.eup %4865 }
0x29a6   :  { %2232 = vrot.lane.b32.xlu0 %v4866_v9, %s4979_s25 }
0x29a7   :  { %v4868_v29 = vpop.eup %4867 }
0x29a8   :  { %v2213_v1 = vadd.f32 1.0, %v4868_v29  ;;  %v5743_v29 = vadd.f32 %v2127_v24, %v2126_v22 }
0x29aa   :  { %4869 = vrcp.f32 %v2213_v1  ;;  %v2225_v2 = vand.u32 2147483648, %v2213_v1  ;;  %vm2219_vm3 = vweird.f32 %v2213_v1  ;;  %v2223_v51 = vand.u32 2147483647, %v2213_v1 }
0x29ab   :  { %4871 = vtanh.f32 %v878_v32 }
0x29ac   :  { %v2226_v42 = vor.u32 1.1754944e-38, %v2225_v2  ;;  %vm2224_vm5 = vcmp.eq.f32.partialorder %v2223_v51, 8.507059e+37  ;;  %v4568_v2 = vmul.f32 -1.442695, %v878_v32 }
0x29ae   :  { %2254 = vrot.lane.b32.xlu0 %v5319_v28, %s6722_s29 }
0x29b0   :  { %v4870_v57 = vpop.eup %4869 }
0x29b1   :  { %v2215_v12 = vmul.f32 %v4870_v57, %v2213_v1  ;;  %vm2220_vm2 = vweird.f32 %v4870_v57  ;;  %v4872_v59 = vpop.eup %4871 }
0x29b2   :  { %vm2221_vm4 = vmor %vm2219_vm3, %vm2220_vm2 }
0x29b3   :  { %v2216_v43 = vsub.f32 1.0, %v2215_v12 }
0x29b5   :  { %v2217_v48 = vmul.f32 %v4870_v57, %v2216_v43  ;;  %v2251_v43 = vmul.f32 %v5707_v45, %v5284_v30 }
0x29b7   :  { %v2218_v35 = vadd.f32 %v4870_v57, %v2217_v48 }
0x29b9   :  { %v2222_v21 = vsel %vm2221_vm4, %v4870_v57, %v2218_v35 }
0x29ba   :  { %v2227_v28 = vsel %vm2224_vm5, %v2226_v42, %v2222_v21 }
0x29bb   :  { %v2230_v1 = vmul.f32 %v2227_v28, %v5743_v29 }
0x2a18   :  { %v2233_v60 = vpop.permute.xlu0 %2232 }
0x2a19   :  { %v2235_v31 = vmul.f32 %v2233_v60, %v2227_v28 }
0x2a1b   :  { %2237 = vrot.lane.b32.xlu1 %v2235_v31, %s6720_s7 }
0x2a20   :  { %v5730_v9 = vpop.permute.xlu0 %2254 }
0x2a21   :  { %4611 = vmatmul.msk.f32.vlgmr.msrb.gmra.mxu3 %vm100_vm0, %v5730_v9 }
0x2a22   :  { %2566 = vmatpush.msrb.mxu3 %v5542_v7 }
0x2a23   :  { %2280 = vrot.lane.b32.xlu1 %v5453_v37, %s6722_s29 }
0x2a24   :  { %2567 = vmatpush.msrb.mxu3 %v5552_v50 }
0x2a2b   :  { %901 = vrot.lane.b32.xlu1 %v4872_v59, %s4979_s25 }
0x2a8d   :  { %v2238_v7 = vpop.permute.xlu1 %2237 }
0x2a8e   :  { %v5746_v57 = vadd.f32 %v2238_v7, %v2230_v1 }
0x2a90   :  { %4873 = vtanh.f32 %v5746_v57 }
0x2a91   :  { %4875 = vpow2.f32 %v4568_v2 }
0x2a95   :  { %v5749_v37 = vpop.permute.xlu1 %2280 }
0x2a96   :  { %v4874_v50 = vpop.eup %4873  ;;  %4612 = vmatmul.msk.f32.vlgmr.msra.gmra.mxu0 %vm100_vm0, %v5749_v37 }
0x2a97   :  { %2243 = vrot.lane.b32.xlu2 %v4874_v50, %s6721_s4  ;;  %v4876_v51 = vpop.eup %4875 }
0x2a98   :  { %v882_v21 = vadd.f32 1.0, %v4876_v51 }
0x2a9a   :  { %4877 = vrcp.f32 %v882_v21  ;;  %v894_v32 = vand.u32 2147483648, %v882_v21  ;;  %vm888_vm7 = vweird.f32 %v882_v21  ;;  %v892_v50 = vand.u32 2147483647, %v882_v21 }
0x2a9c   :  { %vm893_vm9 = vcmp.eq.f32.partialorder %v892_v50, 8.507059e+37  ;;  %v824_v50 = vmul.f32 %v5400_v20, %v5392_v52  ;;  %v5802_v52 = vld [vmem:[%s6685_s11 + $0x10] sm:$0xff] }
0x2aa0   :  { %v4878_v42 = vpop.eup %4877 }
0x2aa1   :  { %vm889_vm6 = vweird.f32 %v4878_v42 }
0x2aa2   :  { %vm890_vm8 = vmor %vm888_vm7, %vm889_vm6 }
0x2aa4   :  { %v2275_v60 = vpop.f32.mrf.mxu3 }
0x2aa5   :  { %v2278_v45 = vadd.f32 %v5587_v36, %v2275_v60 }
0x2af1   :  { %v2244_v14 = vpop.permute.xlu2 %2243 }
0x2af2   :  { %v2246_v12 = vmul.f32 %v2244_v14, %v2227_v28  ;;  %v884_v28 = vmul.f32 %v4878_v42, %v882_v21 }
0x2af4   :  { %v5755_v49 = vmul.f32 %v2246_v12, %v5286_v33  ;;  %v885_v25 = vsub.f32 1.0, %v884_v28  ;;  %v902_v12 = vpop.permute.xlu1 %901 }
0x2af6   :  { %v5760_v48 = vadd.f32 %v2251_v43, %v5755_v49  ;;  %v886_v24 = vmul.f32 %v4878_v42, %v885_v25  ;;  %v895_v43 = vor.u32 1.1754944e-38, %v894_v32  ;;  %v5780_v32 = vld [vmem:[%s6685_s11 + $0x8] sm:$0xff] }
0x2af7   :  { %2632 = vmatpush.msra.mxu0 %v5780_v32 }
0x2af8   :  { %2306 = vrot.lane.b32.xlu2 %v5760_v48, %s6722_s29  ;;  %v887_v1 = vadd.f32 %v4878_v42, %v886_v24 }
0x2afa   :  { %v891_v14 = vsel %vm890_vm8, %v4878_v42, %v887_v1 }
0x2b13   :  { %v2301_v31 = vpop.f32.mrf.mxu0 }
0x2b14   :  { %v2304_v6 = vadd.f32 %v2301_v31, %v2278_v45 }
0x2b52   :  { %v2307_v35 = vpop.permute.xlu2 %2306 }
0x2b53   :  { %4613 = vmatmul.msk.f32.vlgmr.msra.gmra.mxu1 %vm100_vm0, %v2307_v35  ;;  %v5767_v35 = vsel %vm893_vm9, %v895_v43, %v891_v14  ;;  %v5789_v14 = vld [vmem:[%s6685_s11] sm:$0xff] }
0x2b54   :  { %v904_v2 = vmul.f32 %v902_v12, %v5767_v35  ;;  %2633 = vmatpush.msra.mxu0 %v5789_v14 }
0x2bd0   :  { %v2327_v59 = vpop.f32.mrf.mxu1 }
0x2bd1   :  { %v2330_v22 = vadd.f32 %v2327_v59, %v2304_v6 }
0x2bd3   :  { %4879 = vtanh.f32 %v2330_v22  ;;  %v4614_v51 = vmul.f32 -1.442695, %v2330_v22 }
0x2bd5   :  { %4881 = vpow2.f32 %v4614_v51  ;;  %v5796_v51 = vld [vmem:[%s6685_s11 + $0x18] sm:$0xff] }
0x2bd6   :  { %2656 = vmatpush.msra.mxu1 %v5796_v51 }
0x2bd8   :  { %2657 = vmatpush.msra.mxu1 %v5802_v52 }
0x2bd9   :  { %v4880_v7 = vpop.eup %4879 }
0x2bda   :  { %2353 = vrot.lane.b32.xlu0 %v4880_v7, %s4979_s25  ;;  %v817_v7 = vmul.f32 %v5402_v63, %v5395_v54 }
0x2bdb   :  { %v4882_v21 = vpop.eup %4881 }
0x2bdc   :  { %v2334_v60 = vadd.f32 1.0, %v4882_v21  ;;  %v825_v54 = vadd.f32 %v824_v50, %v817_v7  ;;  %v5808_v21 = vld [vmem:[%s6686_s12 + $0x8] sm:$0xff]  ;;  %v2372_v7 = vmul.f32 %v5760_v48, %v5314_v23 }
0x2bde   :  { %4883 = vrcp.f32 %v2334_v60  ;;  %v2346_v25 = vand.u32 2147483648, %v2334_v60  ;;  %vm2340_vm11 = vweird.f32 %v2334_v60  ;;  %v2344_v59 = vand.u32 2147483647, %v2334_v60 }
0x2bdf   :  { %v899_v12 = vmul.f32 %v5767_v35, %v825_v54 }
0x2be0   :  { %vm2345_vm13 = vcmp.eq.f32.partialorder %v2344_v59, 8.507059e+37 }
0x2be2   :  { %906 = vrot.lane.b32.xlu0 %v904_v2, %s6720_s7 }
0x2be4   :  { %v4884_v42 = vpop.eup %4883 }
0x2be5   :  { %v2336_v28 = vmul.f32 %v4884_v42, %v2334_v60  ;;  %vm2341_vm10 = vweird.f32 %v4884_v42 }
0x2be6   :  { %vm2342_vm12 = vmor %vm2340_vm11, %vm2341_vm10 }
0x2be7   :  { %v2337_v31 = vsub.f32 1.0, %v2336_v28  ;;  %v5817_v28 = vld [vmem:[%s6686_s12] sm:$0xff] }
0x2be9   :  { %v2338_v45 = vmul.f32 %v4884_v42, %v2337_v31 }
0x2bea   :  { %2375 = vrot.lane.b32.xlu0 %v5405_v0, %s6722_s29  ;;  %v2347_v0 = vor.u32 1.1754944e-38, %v2346_v25 }
0x2beb   :  { %v2339_v6 = vadd.f32 %v4884_v42, %v2338_v45  ;;  %v2248_v45 = vmul.f32 %v5743_v29, %v5284_v30 }
0x2bed   :  { %v2343_v24 = vsel %vm2342_vm12, %v4884_v42, %v2339_v6 }
0x2bf2   :  { %2522 = vrot.lane.b32.xlu0 %v5416_v4, %s6722_s29  ;;  %v2348_v4 = vsel %vm2345_vm13, %v2347_v0, %v2343_v24 }
0x2c4c   :  { %v2354_v1 = vpop.permute.xlu0 %2353 }
0x2c4d   :  { %v2356_v22 = vmul.f32 %v2354_v1, %v2348_v4 }
0x2c4f   :  { %2358 = vrot.lane.b32.xlu2 %v2356_v22, %s6720_s7 }
0x2c54   :  { %v907_v43 = vpop.permute.xlu0 %906 }
0x2c55   :  { %v909_v2 = vadd.f32 %v907_v43, %v899_v12 }
0x2c57   :  { %4885 = vtanh.f32 %v909_v2 }
0x2c5c   :  { %v5810_v60 = vpop.permute.xlu0 %2375 }
0x2c5d   :  { %v4886_v42 = vpop.eup %4885  ;;  %4615 = vmatmul.msk.f32.vlgmr.msra.gmra.mxu2 %vm100_vm0, %v5810_v60 }
0x2c5e   :  { %912 = vrot.lane.b32.xlu2 %v4886_v42, %s6721_s4  ;;  %2677 = vmatpush.msra.mxu2 %v5808_v21 }
0x2c60   :  { %2678 = vmatpush.msra.mxu2 %v5817_v28 }
0x2c64   :  { %v2523_v31 = vpop.permute.xlu0 %2522 }
0x2c65   :  { %4620 = vmatmul.msk.f32.vlgmr.msrb.gmra.mxu2 %vm100_vm0, %v2523_v31 }
0x2c66   :  { %2850 = vmatpush.msrb.mxu2 %v5780_v32 }
0x2c68   :  { %2851 = vmatpush.msrb.mxu2 %v5789_v14 }
0x2c6d   :  { %2679 = vmatmul.f32.vlgmr.msra.gmra.mxu2 %v4978_v5  ;;  %v2247_v5 = vmul.f32 %v5746_v57, %v5286_v33 }
0x2c6e   :  { %2982 = vmatpush.msra.mxu2 %v5796_v51 }
0x2c6f   :  { %v5840_v6 = vadd.f32 %v2248_v45, %v2247_v5  ;;  %v5888_v45 = vld [vmem:[%s6687_s13] ss:$0 sm:$0xff] }
0x2c70   :  { %2983 = vmatpush.msra.mxu2 %v5802_v52 }
0x2c75   :  { %4630 = vmatmul.msk.f32.vlgmr.msrb.gmra.mxu2 %vm100_vm0, %v5730_v9  ;;  %v2351_v9 = vmul.f32 %v2348_v4, %v5840_v6 }
0x2c76   :  { %3119 = vmatpush.msrb.mxu2 %v5808_v21 }
0x2c78   :  { %3120 = vmatpush.msrb.mxu2 %v5817_v28 }
0x2c7d   :  { %4635 = vmatmul.msk.f32.vlgmr.msra.gmra.mxu2 %vm100_vm0, %v5711_v56 }
0x2c7e   :  { %3294 = vmatpush.msra.mxu2 %v5780_v32 }
0x2c80   :  { %3295 = vmatpush.msra.mxu2 %v5789_v14 }
0x2ca9   :  { %v2359_v25 = vpop.permute.xlu2 %2358 }
0x2caa   :  { %v5843_v59 = vadd.f32 %v2359_v25, %v2351_v9 }
0x2cac   :  { %4887 = vtanh.f32 %v5843_v59 }
0x2cb2   :  { %v4888_v56 = vpop.eup %4887 }
0x2cb3   :  { %2364 = vrot.lane.b32.xlu1 %v4888_v56, %s6721_s4 }
0x2cb8   :  { %v913_v24 = vpop.permute.xlu2 %912 }
0x2cb9   :  { %v915_v57 = vmul.f32 %v913_v24, %v5767_v35 }
0x2cbb   :  { %2401 = vrot.lane.b32.xlu1 %v5438_v17, %s6722_s29  ;;  %v921_v29 = vmul.f32 %v5411_v13, %v915_v57 }
0x2cc3   :  { %2496 = vrot.lane.b32.xlu1 %v921_v29, %s6722_s29 }
0x2d25   :  { %v2365_v0 = vpop.permute.xlu1 %2364 }
0x2d26   :  { %v2367_v1 = vmul.f32 %v2365_v0, %v2348_v4  ;;  %v2396_v4 = vpop.f32.mrf.mxu2 }
0x2d27   :  { %v2399_v12 = vadd.f32 %v5587_v36, %v2396_v4 }
0x2d28   :  { %v5853_v22 = vmul.f32 %v2367_v1, %v5316_v26 }
0x2d2a   :  { %v5858_v50 = vadd.f32 %v2372_v7, %v5853_v22 }
0x2d2c   :  { %2427 = vrot.lane.b32.xlu2 %v5858_v50, %s6722_s29 }
0x2d2d   :  { %v2402_v17 = vpop.permute.xlu1 %2401 }
0x2d2e   :  { %4616 = vmatmul.msk.f32.vlgmr.msra.gmra.mxu3 %vm100_vm0, %v2402_v17  ;;  %v5883_v5 = vpop.f32.mrf.mxu2 }
0x2d2f   :  { %2739 = vmatpush.msra.mxu3 %v5780_v32 }
0x2d31   :  { %2740 = vmatpush.msra.mxu3 %v5789_v14 }
0x2d35   :  { %v2497_v35 = vpop.permute.xlu1 %2496 }
0x2d36   :  { %4619 = vmatmul.msk.f32.vlgmr.msrb.gmra.mxu1 %vm100_vm0, %v2497_v35  ;;  %v2680_v57 = vpop.f32.mrf.mxu2 }
0x2d37   :  { %2786 = vmatpush.msrb.mxu1 %v5808_v21 }
0x2d39   :  { %2787 = vmatpush.msrb.mxu1 %v5817_v28 }
0x2d3e   :  { %4624 = vmatmul.msk.f32.vlgmr.msra.gmra.mxu1 %vm100_vm0, %v2523_v31 }
0x2d3f   :  { %2961 = vmatpush.msra.mxu1 %v5780_v32 }
0x2d41   :  { %2962 = vmatpush.msra.mxu1 %v5789_v14 }
0x2d86   :  { %v2428_v48 = vpop.permute.xlu2 %2427 }
0x2d87   :  { %4617 = vmatmul.msk.f32.vlgmr.msrb.gmra.mxu0 %vm100_vm0, %v2428_v48 }
0x2d88   :  { %2760 = vmatpush.msrb.mxu0 %v5796_v51 }
0x2d8a   :  { %2761 = vmatpush.msrb.mxu0 %v5802_v52 }
0x2d8f   :  { %4623 = vmatmul.msk.f32.vlgmr.msra.gmra.mxu0 %vm100_vm0, %v2497_v35 }
0x2d90   :  { %2897 = vmatpush.msra.mxu0 %v5808_v21 }
0x2d92   :  { %2898 = vmatpush.msra.mxu0 %v5817_v28 }
0x2d97   :  { %4627 = vmatmul.msk.f32.vlgmr.msrb.gmra.mxu0 %vm100_vm0, %v2402_v17 }
0x2d98   :  { %3072 = vmatpush.msrb.mxu0 %v5780_v32 }
0x2d9a   :  { %3073 = vmatpush.msrb.mxu0 %v5789_v14 }
0x2db1   :  { %v2422_v54 = vpop.f32.mrf.mxu3 }
0x2db2   :  { %v2425_v43 = vadd.f32 %v2422_v54, %v2399_v12 }
0x2db3   :  { %v5881_v2 = vpop.f32.mrf.mxu1 }
0x2dbb   :  { %v2659_v24 = vpop.f32.mrf.mxu1 }
0x2e04   :  { %v2448_v42 = vpop.f32.mrf.mxu0 }
0x2e05   :  { %v2451_v31 = vadd.f32 %v2448_v42, %v2425_v43 }
0x2e07   :  { %4889 = vtanh.f32 %v2451_v31  ;;  %v4618_v1 = vmul.f32 -1.442695, %v2451_v31 }
0x2e0c   :  { %v2635_v9 = vpop.f32.mrf.mxu0 }
0x2e0d   :  { %v4890_v25 = vpop.eup %4889  ;;  %v2641_v56 = vadd.f32 %v5888_v45, %v2635_v9 }
0x2e0e   :  { %2474 = vrot.lane.b32.xlu2 %v4890_v25, %s4979_s25 }
0x2e0f   :  { %v2662_v36 = vadd.f32 %v2659_v24, %v2641_v56 }
0x2e11   :  { %v2683_v29 = vadd.f32 %v2680_v57, %v2662_v36 }
0x2e13   :  { %4891 = vtanh.f32 %v2683_v29  ;;  %v4625_v12 = vmul.f32 -1.442695, %v2683_v29 }
0x2e14   :  { %4893 = vpow2.f32 %v4618_v1 }
0x2e19   :  { %v4892_v0 = vpop.eup %4891 }
0x2e1a   :  { %2706 = vrot.lane.b32.xlu0 %v4892_v0, %s4979_s25  ;;  %v4894_v7 = vpop.eup %4893 }
0x2e1b   :  { %v2455_v17 = vadd.f32 1.0, %v4894_v7 }
0x2e1d   :  { %4895 = vrcp.f32 %v2455_v17  ;;  %v2467_v42 = vand.u32 2147483648, %v2455_v17  ;;  %vm2461_vm15 = vweird.f32 %v2455_v17  ;;  %v2465_v9 = vand.u32 2147483647, %v2455_v17 }
0x2e1e   :  { %4897 = vpow2.f32 %v4625_v12 }
0x2e1f   :  { %v2468_v56 = vor.u32 1.1754944e-38, %v2467_v42  ;;  %vm2466_vm2 = vcmp.eq.f32.partialorder %v2465_v9, 8.507059e+37 }
0x2e23   :  { %v4896_v35 = vpop.eup %4895 }
0x2e24   :  { %v2457_v48 = vmul.f32 %v4896_v35, %v2455_v17  ;;  %vm2462_vm14 = vweird.f32 %v4896_v35  ;;  %v4898_v36 = vpop.eup %4897 }
0x2e25   :  { %vm2463_vm1 = vmor %vm2461_vm15, %vm2462_vm14  ;;  %v2687_v0 = vadd.f32 1.0, %v4898_v36 }
0x2e26   :  { %v2458_v4 = vsub.f32 1.0, %v2457_v48 }
0x2e27   :  { %4899 = vrcp.f32 %v2687_v0  ;;  %vm2693_vm4 = vweird.f32 %v2687_v0  ;;  %v2697_v17 = vand.u32 2147483647, %v2687_v0 }
0x2e28   :  { %v2459_v54 = vmul.f32 %v4896_v35, %v2458_v4 }
0x2e29   :  { %vm2698_vm6 = vcmp.eq.f32.partialorder %v2697_v17, 8.507059e+37  ;;  %v2493_v17 = vmul.f32 %v5858_v50, %v5400_v20 }
0x2e2a   :  { %v2460_v43 = vadd.f32 %v4896_v35, %v2459_v54  ;;  %v2699_v54 = vand.u32 2147483648, %v2687_v0 }
0x2e2c   :  { %v2464_v25 = vsel %vm2463_vm1, %v4896_v35, %v2460_v43  ;;  %v2700_v12 = vor.u32 1.1754944e-38, %v2699_v54 }
0x2e2d   :  { %v2469_v24 = vsel %vm2466_vm2, %v2468_v56, %v2464_v25  ;;  %v4900_v1 = vpop.eup %4899  ;;  %v2368_v25 = vmul.f32 %v5843_v59, %v5316_v26  ;;  %v2369_v56 = vmul.f32 %v5840_v6, %v5314_v23 }
0x2e2e   :  { %v2689_v29 = vmul.f32 %v4900_v1, %v2687_v0  ;;  %vm2694_vm3 = vweird.f32 %v4900_v1 }
0x2e2f   :  { %vm2695_vm5 = vmor %vm2693_vm4, %vm2694_vm3 }
0x2e30   :  { %v2690_v7 = vsub.f32 1.0, %v2689_v29 }
0x2e32   :  { %v2691_v48 = vmul.f32 %v4900_v1, %v2690_v7 }
0x2e34   :  { %v2692_v4 = vadd.f32 %v4900_v1, %v2691_v48 }
0x2e36   :  { %v2696_v35 = vsel %vm2695_vm5, %v4900_v1, %v2692_v4 }
0x2e37   :  { %v2701_v42 = vsel %vm2698_vm6, %v2700_v12, %v2696_v35 }
0x2e38   :  { %v2704_v29 = vmul.f32 0.0, %v2701_v42 }
0x2e68   :  { %v2475_v31 = vpop.permute.xlu2 %2474 }
0x2e69   :  { %v2477_v57 = vmul.f32 %v2475_v31, %v2469_v24  ;;  %v5899_v31 = vadd.f32 %v2369_v56, %v2368_v25 }
0x2e6b   :  { %2479 = vrot.lane.b32.xlu1 %v2477_v57, %s6720_s7  ;;  %v2472_v36 = vmul.f32 %v2469_v24, %v5899_v31 }
0x2e8c   :  { %v2707_v43 = vpop.permute.xlu0 %2706 }
0x2e8d   :  { %v2709_v9 = vmul.f32 %v2707_v43, %v2701_v42 }
0x2e8f   :  { %2711 = vrot.lane.b32.xlu2 %v2709_v9, %s6720_s7 }
0x2edd   :  { %v2480_v57 = vpop.permute.xlu1 %2479 }
0x2ede   :  { %v5902_v0 = vadd.f32 %v2480_v57, %v2472_v36 }
0x2ee0   :  { %4901 = vtanh.f32 %v5902_v0 }
0x2ee6   :  { %v4902_v1 = vpop.eup %4901 }
0x2ee7   :  { %2485 = vrot.lane.b32.xlu0 %v4902_v1, %s6721_s4  ;;  %v2763_v1 = vpop.f32.mrf.mxu0 }
0x2ee9   :  { %v2712_v7 = vpop.permute.xlu2 %2711 }
0x2eea   :  { %v5906_v48 = vadd.f32 %v2712_v7, %v2704_v29 }
0x2eec   :  { %4903 = vtanh.f32 %v5906_v48 }
0x2ef2   :  { %v4904_v59 = vpop.eup %4903 }
0x2ef3   :  { %2717 = vrot.lane.b32.xlu1 %v4904_v59, %s6721_s4 }
0x2f59   :  { %v2486_v6 = vpop.permute.xlu0 %2485 }
0x2f5a   :  { %v2488_v4 = vmul.f32 %v2486_v6, %v2469_v24 }
0x2f5c   :  { %v5911_v54 = vmul.f32 %v2488_v4, %v5402_v63 }
0x2f5e   :  { %v2494_v35 = vadd.f32 %v2493_v17, %v5911_v54 }
0x2f60   :  { %2548 = vrot.lane.b32.xlu2 %v2494_v35, %s6722_s29 }
0x2f65   :  { %v2718_v12 = vpop.permute.xlu1 %2717 }
0x2f66   :  { %v2720_v43 = vmul.f32 %v2718_v12, %v2701_v42 }
0x2f68   :  { %v5918_v9 = vmul.f32 %v2720_v43, %v5411_v13 }
0x2f6a   :  { %v5922_v25 = vadd.f32 %v5918_v9, %v5413_v16 }
0x2f6c   :  { %2768 = vrot.lane.b32.xlu0 %v5922_v25, %s6722_s29 }
0x2fba   :  { %v2549_v24 = vpop.permute.xlu2 %2548 }
0x2fbb   :  { %4621 = vmatmul.msk.f32.vlgmr.msrb.gmra.mxu3 %vm100_vm0, %v2549_v24 }
0x2fbc   :  { %2871 = vmatpush.msrb.mxu3 %v5796_v51 }
0x2fbe   :  { %2872 = vmatpush.msrb.mxu3 %v5802_v52 }
0x2fc3   :  { %4626 = vmatmul.msk.f32.vlgmr.msra.gmra.mxu3 %vm100_vm0, %v5810_v60 }
0x2fc4   :  { %3008 = vmatpush.msra.mxu3 %v5808_v21 }
0x2fc6   :  { %3009 = vmatpush.msra.mxu3 %v5817_v28 }
0x2fcb   :  { %4631 = vmatmul.msk.f32.vlgmr.msrb.gmra.mxu3 %vm100_vm0, %v5749_v37  ;;  %v4970_v37 = vld [vmem:[%s6683_s10] ss:$0 sm:$0xff] }
0x2fcc   :  { %3183 = vmatpush.msrb.mxu3 %v5780_v32  ;;  %v2520_v60 = vadd.f32 %v4970_v37, %v5881_v2 }
0x2fce   :  { %3184 = vmatpush.msrb.mxu3 %v5789_v14  ;;  %v2546_v42 = vadd.f32 %v5883_v5, %v2520_v60 }
0x2fde   :  { %v2769_v50 = vpop.permute.xlu0 %2768 }
0x2fdf   :  { %4628 = vmatmul.msk.f32.vlgmr.msrb.gmra.mxu1 %vm100_vm0, %v2769_v50 }
0x2fe0   :  { %3093 = vmatpush.msrb.mxu1 %v5796_v51 }
0x2fe2   :  { %3094 = vmatpush.msrb.mxu1 %v5802_v52 }
0x2fe7   :  { %4634 = vmatmul.msk.f32.vlgmr.msra.gmra.mxu1 %vm100_vm0, %v5693_v19 }
0x2fe8   :  { %3230 = vmatpush.msra.mxu1 %v5808_v21 }
0x2fea   :  { %3231 = vmatpush.msra.mxu1 %v5817_v28 }
0x2fef   :  { %4639 = vmatmul.msk.f32.vlgmr.msrb.gmra.mxu1 %vm100_vm0, %v5654_v62 }
0x2ff0   :  { %3405 = vmatpush.msrb.mxu1 %v5780_v32 }
0x2ff2   :  { %3406 = vmatpush.msrb.mxu1 %v5789_v14 }
0x303e   :  { %v2569_v19 = vpop.f32.mrf.mxu3 }
0x303f   :  { %v5953_v56 = vadd.f32 %v2569_v19, %v2546_v42  ;;  %v2721_v19 = vmul.f32 %v5906_v48, %v5411_v13  ;;  %v2853_v48 = vpop.f32.mrf.mxu2 }
0x3046   :  { %v2742_v36 = vpop.f32.mrf.mxu3 }
0x3047   :  { %v2745_v57 = vadd.f32 %v5888_v45, %v2742_v36  ;;  %v2722_v36 = vadd.f32 %v2721_v19, %v5413_v16 }
0x3049   :  { %v2766_v62 = vadd.f32 %v2763_v1, %v2745_v57 }
0x305c   :  { %v2789_v29 = vpop.f32.mrf.mxu1 }
0x305d   :  { %v2792_v32 = vadd.f32 %v2789_v29, %v2766_v62 }
0x305f   :  { %4905 = vtanh.f32 %v2792_v32  ;;  %v4629_v7 = vmul.f32 -1.442695, %v2792_v32 }
0x3061   :  { %4907 = vpow2.f32 %v4629_v7 }
0x3065   :  { %v4906_v14 = vpop.eup %4905 }
0x3066   :  { %2815 = vrot.lane.b32.xlu1 %v4906_v14, %s4979_s25 }
0x3067   :  { %v4908_v59 = vpop.eup %4907 }
0x3068   :  { %v2796_v2 = vadd.f32 1.0, %v4908_v59  ;;  %v2834_v59 = vmul.f32 %v5922_v25, %v5400_v20  ;;  %v2874_v25 = vpop.f32.mrf.mxu3 }
0x306a   :  { %4909 = vrcp.f32 %v2796_v2  ;;  %v2808_v12 = vand.u32 2147483648, %v2796_v2  ;;  %vm2802_vm8 = vweird.f32 %v2796_v2  ;;  %v2806_v43 = vand.u32 2147483647, %v2796_v2 }
0x306c   :  { %v2809_v50 = vor.u32 1.1754944e-38, %v2808_v12  ;;  %vm2807_vm10 = vcmp.eq.f32.partialorder %v2806_v43, 8.507059e+37 }
0x3070   :  { %v4910_v5 = vpop.eup %4909 }
0x3071   :  { %v2798_v6 = vmul.f32 %v4910_v5, %v2796_v2  ;;  %vm2803_vm7 = vweird.f32 %v4910_v5 }
0x3072   :  { %vm2804_vm9 = vmor %vm2802_vm8, %vm2803_vm7 }
0x3073   :  { %v2799_v4 = vsub.f32 1.0, %v2798_v6 }
0x3075   :  { %v2800_v17 = vmul.f32 %v4910_v5, %v2799_v4 }
0x3077   :  { %v2801_v35 = vadd.f32 %v4910_v5, %v2800_v17 }
0x3079   :  { %v2805_v24 = vsel %vm2804_vm9, %v4910_v5, %v2801_v35  ;;  %v2856_v5 = vadd.f32 %v5888_v45, %v2853_v48 }
0x307a   :  { %v2810_v60 = vsel %vm2807_vm10, %v2809_v50, %v2805_v24 }
0x307b   :  { %v2813_v57 = vmul.f32 %v2810_v60, %v2722_v36  ;;  %v2877_v6 = vadd.f32 %v2874_v25, %v2856_v5 }
0x30d8   :  { %v2816_v37 = vpop.permute.xlu1 %2815 }
0x30d9   :  { %v2818_v42 = vmul.f32 %v2816_v37, %v2810_v60 }
0x30db   :  { %2820 = vrot.lane.b32.xlu2 %v2818_v42, %s6720_s7 }
0x3135   :  { %v2821_v1 = vpop.permute.xlu2 %2820 }
0x3136   :  { %v2823_v62 = vadd.f32 %v2821_v1, %v2813_v57 }
0x3138   :  { %4911 = vtanh.f32 %v2823_v62 }
0x313e   :  { %v4912_v29 = vpop.eup %4911 }
0x313f   :  { %2826 = vrot.lane.b32.xlu0 %v4912_v29, %s6721_s4 }
0x31b1   :  { %v2827_v32 = vpop.permute.xlu0 %2826 }
0x31b2   :  { %v2829_v14 = vmul.f32 %v2827_v32, %v2810_v60 }
0x31b4   :  { %v5963_v7 = vmul.f32 %v2829_v14, %v5402_v63 }
0x31b6   :  { %v2835_v2 = vadd.f32 %v2834_v59, %v5963_v7  ;;  %v2830_v59 = vmul.f32 %v2823_v62, %v5402_v63  ;;  %v2964_v62 = vpop.f32.mrf.mxu1 }
0x31b8   :  { %2879 = vrot.lane.b32.xlu1 %v2835_v2, %s6722_s29 }
0x322a   :  { %v2880_v16 = vpop.permute.xlu1 %2879 }
0x322b   :  { %4632 = vmatmul.msk.f32.vlgmr.msra.gmra.mxu0 %vm100_vm0, %v2880_v16  ;;  %v2831_v16 = vmul.f32 %v2722_v36, %v5400_v20 }
0x322c   :  { %3204 = vmatpush.msra.mxu0 %v5796_v51 }
0x322d   :  { %v2832_v48 = vadd.f32 %v2831_v16, %v2830_v59 }
0x322e   :  { %3205 = vmatpush.msra.mxu0 %v5802_v52 }
0x3233   :  { %4638 = vmatmul.msk.f32.vlgmr.msrb.gmra.mxu0 %vm100_vm0, %v5671_v55 }
0x3234   :  { %3341 = vmatpush.msrb.mxu0 %v5808_v21 }
0x3236   :  { %3342 = vmatpush.msrb.mxu0 %v5817_v28 }
0x323b   :  { %4643 = vmatmul.msk.f32.vlgmr.msra.gmra.mxu0 %vm100_vm0, %v5633_v8 }
0x32a8   :  { %v2900_v4 = vpop.f32.mrf.mxu0 }
0x32a9   :  { %v2903_v17 = vadd.f32 %v2900_v4, %v2877_v6 }
0x32ab   :  { %4913 = vtanh.f32 %v2903_v17  ;;  %v4633_v12 = vmul.f32 -1.442695, %v2903_v17 }
0x32ad   :  { %4915 = vpow2.f32 %v4633_v12 }
0x32b1   :  { %v4914_v35 = vpop.eup %4913 }
0x32b2   :  { %2926 = vrot.lane.b32.xlu2 %v4914_v35, %s4979_s25 }
0x32b3   :  { %v4916_v55 = vpop.eup %4915 }
0x32b4   :  { %v2907_v43 = vadd.f32 1.0, %v4916_v55  ;;  %v2945_v55 = vmul.f32 %v2835_v2, %v5314_v23  ;;  %v2967_v2 = vadd.f32 %v5888_v45, %v2964_v62 }
0x32b6   :  { %4917 = vrcp.f32 %v2907_v43  ;;  %v2919_v42 = vand.u32 2147483648, %v2907_v43  ;;  %vm2913_vm12 = vweird.f32 %v2907_v43  ;;  %v2917_v19 = vand.u32 2147483647, %v2907_v43 }
0x32b8   :  { %v2920_v1 = vor.u32 1.1754944e-38, %v2919_v42  ;;  %vm2918_vm14 = vcmp.eq.f32.partialorder %v2917_v19, 8.507059e+37 }
0x32bc   :  { %v4918_v24 = vpop.eup %4917 }
0x32bd   :  { %v2909_v50 = vmul.f32 %v4918_v24, %v2907_v43  ;;  %vm2914_vm11 = vweird.f32 %v4918_v24 }
0x32be   :  { %vm2915_vm13 = vmor %vm2913_vm12, %vm2914_vm11 }
0x32bf   :  { %v2910_v37 = vsub.f32 1.0, %v2909_v50 }
0x32c1   :  { %v2911_v8 = vmul.f32 %v4918_v24, %v2910_v37 }
0x32c3   :  { %v2912_v60 = vadd.f32 %v4918_v24, %v2911_v8 }
0x32c5   :  { %v2916_v57 = vsel %vm2915_vm13, %v4918_v24, %v2912_v60  ;;  %v2985_v24 = vpop.f32.mrf.mxu2 }
0x32c6   :  { %v2921_v32 = vsel %vm2918_vm14, %v2920_v1, %v2916_v57  ;;  %v2988_v50 = vadd.f32 %v2985_v24, %v2967_v2 }
0x32c7   :  { %v2924_v25 = vmul.f32 %v2921_v32, %v2832_v48 }
0x330c   :  { %v2927_v29 = vpop.permute.xlu2 %2926 }
0x330d   :  { %v2929_v14 = vmul.f32 %v2927_v29, %v2921_v32 }
0x330f   :  { %2931 = vrot.lane.b32.xlu0 %v2929_v14, %s6720_s7 }
0x3381   :  { %v2932_v5 = vpop.permute.xlu0 %2931 }
0x3382   :  { %v2934_v6 = vadd.f32 %v2932_v5, %v2924_v25 }
0x3384   :  { %4919 = vtanh.f32 %v2934_v6 }
0x338a   :  { %v4920_v4 = vpop.eup %4919 }
0x338b   :  { %2937 = vrot.lane.b32.xlu1 %v4920_v4, %s6721_s4  ;;  %v2941_v4 = vmul.f32 %v2934_v6, %v5316_v26  ;;  %v3096_v6 = vpop.f32.mrf.mxu1 }
0x33fd   :  { %v2938_v17 = vpop.permute.xlu1 %2937 }
0x33fe   :  { %v2940_v35 = vmul.f32 %v2938_v17, %v2921_v32  ;;  %v2942_v17 = vmul.f32 %v2832_v48, %v5314_v23 }
0x3400   :  { %v5985_v12 = vmul.f32 %v2940_v35, %v5316_v26  ;;  %v2943_v35 = vadd.f32 %v2942_v17, %v2941_v4  ;;  %v3075_v26 = vpop.f32.mrf.mxu0 }
0x3401   :  { %v3078_v48 = vadd.f32 %v5888_v45, %v3075_v26 }
0x3402   :  { %v2946_v43 = vadd.f32 %v2945_v55, %v5985_v12  ;;  %v3053_v4 = vmul.f32 %v2943_v35, %v5284_v30 }
0x3404   :  { %2990 = vrot.lane.b32.xlu2 %v2946_v43, %s6722_s29 }
0x345e   :  { %v2991_v36 = vpop.permute.xlu2 %2990 }
0x345f   :  { %4636 = vmatmul.msk.f32.vlgmr.msra.gmra.mxu3 %vm100_vm0, %v2991_v36 }
0x3460   :  { %3315 = vmatpush.msra.mxu3 %v5796_v51 }
0x3462   :  { %3316 = vmatpush.msra.mxu3 %v5802_v52 }
0x3467   :  { %4642 = vmatmul.msk.f32.vlgmr.msrb.gmra.mxu3 %vm100_vm0, %v5623_v3 }
0x3468   :  { %3452 = vmatpush.msrb.mxu3 %v5808_v21 }
0x346a   :  { %3453 = vmatpush.msrb.mxu3 %v5817_v28 }
0x346f   :  { %4647 = vmatmul.msk.f32.vlgmr.msra.gmra.mxu3 %vm100_vm0, %v5602_v41 }
0x34e2   :  { %v3011_v37 = vpop.f32.mrf.mxu3 }
0x34e3   :  { %v3014_v8 = vadd.f32 %v3011_v37, %v2988_v50 }
0x34e5   :  { %4921 = vtanh.f32 %v3014_v8  ;;  %v4637_v42 = vmul.f32 -1.442695, %v3014_v8  ;;  %v3056_v8 = vmul.f32 %v2946_v43, %v5284_v30  ;;  %v3099_v43 = vadd.f32 %v3096_v6, %v3078_v48 }
0x34e7   :  { %4923 = vpow2.f32 %v4637_v42 }
0x34eb   :  { %v4922_v60 = vpop.eup %4921 }
0x34ec   :  { %3037 = vrot.lane.b32.xlu0 %v4922_v60, %s4979_s25 }
0x34ed   :  { %v4924_v3 = vpop.eup %4923 }
0x34ee   :  { %v3018_v21 = vadd.f32 1.0, %v4924_v3 }
0x34f0   :  { %4925 = vrcp.f32 %v3018_v21  ;;  %v3030_v29 = vand.u32 2147483648, %v3018_v21  ;;  %vm3024_vm1 = vweird.f32 %v3018_v21  ;;  %v3028_v32 = vand.u32 2147483647, %v3018_v21 }
0x34f2   :  { %v3031_v59 = vor.u32 1.1754944e-38, %v3030_v29  ;;  %vm3029_vm3 = vcmp.eq.f32.partialorder %v3028_v32, 8.507059e+37 }
0x34f6   :  { %v4926_v28 = vpop.eup %4925 }
0x34f7   :  { %v3020_v19 = vmul.f32 %v4926_v28, %v3018_v21  ;;  %vm3025_vm15 = vweird.f32 %v4926_v28 }
0x34f8   :  { %vm3026_vm2 = vmor %vm3024_vm1, %vm3025_vm15 }
0x34f9   :  { %v3021_v57 = vsub.f32 1.0, %v3020_v19 }
0x34fb   :  { %v3022_v41 = vmul.f32 %v4926_v28, %v3021_v57 }
0x34fd   :  { %v3023_v1 = vadd.f32 %v4926_v28, %v3022_v41 }
0x34ff   :  { %v3027_v14 = vsel %vm3026_vm2, %v4926_v28, %v3023_v1 }
0x3500   :  { %v3032_v25 = vsel %vm3029_vm3, %v3031_v59, %v3027_v14 }
0x3501   :  { %v3035_v55 = vmul.f32 %v3032_v25, %v2943_v35 }
0x355e   :  { %v3038_v16 = vpop.permute.xlu0 %3037 }
0x355f   :  { %v3040_v5 = vmul.f32 %v3038_v16, %v3032_v25 }
0x3561   :  { %3042 = vrot.lane.b32.xlu1 %v3040_v5, %s6720_s7 }
0x35d3   :  { %v3043_v36 = vpop.permute.xlu1 %3042 }
0x35d4   :  { %v3045_v62 = vadd.f32 %v3043_v36, %v3035_v55 }
0x35d6   :  { %4927 = vtanh.f32 %v3045_v62  ;;  %v3052_v5 = vmul.f32 %v3045_v62, %v5286_v33  ;;  %v3207_v62 = vpop.f32.mrf.mxu0 }
0x35d8   :  { %v3054_v17 = vadd.f32 %v3053_v4, %v3052_v5 }
0x35dc   :  { %v4928_v2 = vpop.eup %4927 }
0x35dd   :  { %3048 = vrot.lane.b32.xlu2 %v4928_v2, %s6721_s4 }
0x3637   :  { %v3049_v24 = vpop.permute.xlu2 %3048 }
0x3638   :  { %v3051_v50 = vmul.f32 %v3049_v24, %v3032_v25 }
0x363a   :  { %v6006_v37 = vmul.f32 %v3051_v50, %v5286_v33  ;;  %v3186_v33 = vpop.f32.mrf.mxu3 }
0x363b   :  { %v3189_v35 = vadd.f32 %v5888_v45, %v3186_v33 }
0x363c   :  { %v3057_v60 = vadd.f32 %v3056_v8, %v6006_v37 }
0x363d   :  { %v3210_v6 = vadd.f32 %v3207_v62, %v3189_v35 }
0x363e   :  { %3101 = vrot.lane.b32.xlu0 %v3057_v60, %s6722_s29  ;;  %v3167_v26 = vmul.f32 %v3057_v60, %v5257_v44 }
0x36b0   :  { %v3102_v23 = vpop.permute.xlu0 %3101 }
0x36b1   :  { %4640 = vmatmul.msk.f32.vlgmr.msrb.gmra.mxu2 %vm100_vm0, %v3102_v23 }
0x36b2   :  { %3426 = vmatpush.msrb.mxu2 %v5796_v51 }
0x36b4   :  { %3427 = vmatpush.msrb.mxu2 %v5802_v52 }
0x36b9   :  { %4646 = vmatmul.msk.f32.vlgmr.msra.gmra.mxu2 %vm100_vm0, %v5594_v10 }
0x36c1   :  { %4651 = vmatmul.msk.f32.vlgmr.msrb.gmra.mxu2 %vm100_vm0, %v5578_v40 }
0x3734   :  { %v3122_v42 = vpop.f32.mrf.mxu2 }
0x3735   :  { %v3125_v3 = vadd.f32 %v3122_v42, %v3099_v43 }
0x3737   :  { %4929 = vtanh.f32 %v3125_v3  ;;  %v4641_v51 = vmul.f32 -1.442695, %v3125_v3 }
0x3739   :  { %4931 = vpow2.f32 %v4641_v51 }
0x373d   :  { %v4930_v21 = vpop.eup %4929 }
0x373e   :  { %3148 = vrot.lane.b32.xlu1 %v4930_v21, %s4979_s25 }
0x373f   :  { %v4932_v52 = vpop.eup %4931 }
0x3740   :  { %v3129_v28 = vadd.f32 1.0, %v4932_v52 }
0x3742   :  { %4933 = vrcp.f32 %v3129_v28  ;;  %v3141_v1 = vand.u32 2147483648, %v3129_v28  ;;  %vm3135_vm5 = vweird.f32 %v3129_v28  ;;  %v3139_v29 = vand.u32 2147483647, %v3129_v28 }
0x3744   :  { %v3142_v14 = vor.u32 1.1754944e-38, %v3141_v1  ;;  %vm3140_vm7 = vcmp.eq.f32.partialorder %v3139_v29, 8.507059e+37 }
0x3748   :  { %v4934_v10 = vpop.eup %4933 }
0x3749   :  { %v3131_v19 = vmul.f32 %v4934_v10, %v3129_v28  ;;  %vm3136_vm4 = vweird.f32 %v4934_v10 }
0x374a   :  { %vm3137_vm6 = vmor %vm3135_vm5, %vm3136_vm4 }
0x374b   :  { %v3132_v57 = vsub.f32 1.0, %v3131_v19 }
0x374d   :  { %v3133_v40 = vmul.f32 %v4934_v10, %v3132_v57 }
0x374f   :  { %v3134_v41 = vadd.f32 %v4934_v10, %v3133_v40 }
0x3751   :  { %v3138_v32 = vsel %vm3137_vm6, %v4934_v10, %v3134_v41 }
0x3752   :  { %v3143_v16 = vsel %vm3140_vm7, %v3142_v14, %v3138_v32 }
0x3753   :  { %v3146_v55 = vmul.f32 %v3143_v16, %v3054_v17 }
0x37b0   :  { %v3149_v59 = vpop.permute.xlu1 %3148 }
0x37b1   :  { %v3151_v25 = vmul.f32 %v3149_v59, %v3143_v16 }
0x37b3   :  { %3153 = vrot.lane.b32.xlu2 %v3151_v25, %s6720_s7 }
0x380d   :  { %v3154_v36 = vpop.permute.xlu2 %3153 }
0x380e   :  { %v3156_v2 = vadd.f32 %v3154_v36, %v3146_v55 }
0x3810   :  { %4935 = vtanh.f32 %v3156_v2  ;;  %v3163_v59 = vmul.f32 %v3156_v2, %v5259_v47  ;;  %v3318_v2 = vpop.f32.mrf.mxu3 }
0x3816   :  { %v4936_v24 = vpop.eup %4935 }
0x3817   :  { %3159 = vrot.lane.b32.xlu0 %v4936_v24, %s6721_s4 }
0x3889   :  { %v3160_v50 = vpop.permute.xlu0 %3159 }
0x388a   :  { %v3162_v8 = vmul.f32 %v3160_v50, %v3143_v16  ;;  %v3164_v16 = vmul.f32 %v3054_v17, %v5257_v44 }
0x388c   :  { %v6025_v23 = vmul.f32 %v3162_v8, %v5259_v47  ;;  %v3165_v25 = vadd.f32 %v3164_v16, %v3163_v59  ;;  %v3297_v47 = vpop.f32.mrf.mxu2 }
0x388d   :  { %v3300_v17 = vadd.f32 %v5888_v45, %v3297_v47 }
0x388e   :  { %v3168_v48 = vadd.f32 %v3167_v26, %v6025_v23 }
0x388f   :  { %v3321_v33 = vadd.f32 %v3318_v2, %v3300_v17 }
0x3890   :  { %3212 = vrot.lane.b32.xlu1 %v3168_v48, %s6722_s29  ;;  %v3278_v26 = vmul.f32 %v3168_v48, %v5228_v58 }
0x3902   :  { %v3213_v30 = vpop.permute.xlu1 %3212 }
0x3903   :  { %4644 = vmatmul.msk.f32.vlgmr.msra.gmra.mxu1 %vm100_vm0, %v3213_v30 }
0x390b   :  { %4650 = vmatmul.msk.f32.vlgmr.msrb.gmra.mxu1 %vm100_vm0, %v5532_v34 }
0x3980   :  { %v3233_v43 = vpop.f32.mrf.mxu1 }
0x3981   :  { %v3236_v42 = vadd.f32 %v3233_v43, %v3210_v6 }
0x3983   :  { %4937 = vtanh.f32 %v3236_v42  ;;  %v4645_v60 = vmul.f32 -1.442695, %v3236_v42 }
0x3985   :  { %4939 = vpow2.f32 %v4645_v60 }
0x3989   :  { %v4938_v3 = vpop.eup %4937 }
0x398a   :  { %3259 = vrot.lane.b32.xlu2 %v4938_v3, %s4979_s25 }
0x398b   :  { %v4940_v21 = vpop.eup %4939 }
0x398c   :  { %v3240_v51 = vadd.f32 1.0, %v4940_v21 }
0x398e   :  { %4941 = vrcp.f32 %v3240_v51  ;;  %v3252_v57 = vand.u32 2147483648, %v3240_v51  ;;  %vm3246_vm9 = vweird.f32 %v3240_v51  ;;  %v3250_v40 = vand.u32 2147483647, %v3240_v51 }
0x3990   :  { %v3253_v1 = vor.u32 1.1754944e-38, %v3252_v57  ;;  %vm3251_vm11 = vcmp.eq.f32.partialorder %v3250_v40, 8.507059e+37 }
0x3994   :  { %v4942_v52 = vpop.eup %4941 }
0x3995   :  { %v3242_v28 = vmul.f32 %v4942_v52, %v3240_v51  ;;  %vm3247_vm8 = vweird.f32 %v4942_v52 }
0x3996   :  { %vm3248_vm10 = vmor %vm3246_vm9, %vm3247_vm8 }
0x3997   :  { %v3243_v10 = vsub.f32 1.0, %v3242_v28 }
0x3999   :  { %v3244_v34 = vmul.f32 %v4942_v52, %v3243_v10 }
0x399b   :  { %v3245_v19 = vadd.f32 %v4942_v52, %v3244_v34 }
0x399d   :  { %v3249_v41 = vsel %vm3248_vm10, %v4942_v52, %v3245_v19  ;;  %vm3556_vm10 = vcmask 33792  }
0x399e   :  { %v3254_v32 = vsel %vm3251_vm11, %v3253_v1, %v3249_v41  ;;  %vm3960_vm11 = vcmask 36864   ;;  %3935 = vst.msk [vmem:[%s6693_s20] sm:$0x3] %vm3556_vm10, %v4981_v27 }
0x399f   :  { %v3257_v5 = vmul.f32 %v3254_v32, %v3165_v25 }
0x39e4   :  { %v3260_v29 = vpop.permute.xlu2 %3259 }
0x39e5   :  { %v3262_v14 = vmul.f32 %v3260_v29, %v3254_v32  ;;  %v3275_v29 = vmul.f32 %v3165_v25, %v5228_v58  ;;  %v3408_v25 = vpop.f32.mrf.mxu1 }
0x39e7   :  { %3264 = vrot.lane.b32.xlu0 %v3262_v14, %s6720_s7 }
0x3a59   :  { %v3265_v4 = vpop.permute.xlu0 %3264 }
0x3a5a   :  { %v3267_v55 = vadd.f32 %v3265_v4, %v3257_v5 }
0x3a5c   :  { %4943 = vtanh.f32 %v3267_v55  ;;  %v3274_v1 = vmul.f32 %v3267_v55, %v5230_v61 }
0x3a62   :  { %v4944_v36 = vpop.eup %4943 }
0x3a63   :  { %3270 = vrot.lane.b32.xlu1 %v4944_v36, %s6721_s4 }
0x3ad5   :  { %v3271_v24 = vpop.permute.xlu1 %3270 }
0x3ad6   :  { %v3273_v50 = vmul.f32 %v3271_v24, %v3254_v32  ;;  %v6051_v32 = vadd.f32 %v3275_v29, %v3274_v1 }
0x3ad8   :  { %v6040_v8 = vmul.f32 %v3273_v50, %v5230_v61  ;;  %v3411_v50 = vadd.f32 %v5888_v45, %v3408_v25 }
0x3ada   :  { %v3279_v30 = vadd.f32 %v3278_v26, %v6040_v8  ;;  %v3429_v26 = vpop.f32.mrf.mxu2 }
0x3adc   :  { %3323 = vrot.lane.b32.xlu2 %v3279_v30, %s6722_s29  ;;  %v3389_v24 = vmul.f32 %v3279_v30, %v5197_v15  ;;  %v4971_v30 = vld [vmem:[%s6718_s28 + $0x2] sm:$0x3] }
0x3add   :  { %vm4003_vm1 = vcmp.gt.f32.partialorder %v4971_v30, 0.0 }
0x3b36   :  { %v3324_v44 = vpop.permute.xlu2 %3323 }
0x3b37   :  { %4648 = vmatmul.msk.f32.vlgmr.msrb.gmra.mxu0 %vm100_vm0, %v3324_v44  ;;  %v3432_v44 = vadd.f32 %v3429_v26, %v3411_v50  ;;  %v3386_v26 = vmul.f32 %v6051_v32, %v5197_v15 }
0x3bb4   :  { %v3344_v35 = vpop.f32.mrf.mxu0 }
0x3bb5   :  { %v3347_v62 = vadd.f32 %v3344_v35, %v3321_v33  ;;  %v6082_v35 = vld [vmem:[%s6688_s14 + $0x18] sm:$0xff] }
0x3bb6   :  { %3577 = vmatpush.msra.mxu2 %v6082_v35  ;;  %3521 = vmatpush.msra.mxu0 %v6082_v35 }
0x3bb7   :  { %4945 = vtanh.f32 %v3347_v62  ;;  %v4649_v43 = vmul.f32 -1.442695, %v3347_v62 }
0x3bb9   :  { %4947 = vpow2.f32 %v4649_v43  ;;  %v6105_v43 = vld [vmem:[%s6688_s14] sm:$0xff] }
0x3bbd   :  { %v4946_v6 = vpop.eup %4945 }
0x3bbe   :  { %3370 = vrot.lane.b32.xlu0 %v4946_v6, %s4979_s25  ;;  %v6100_v6 = vld [vmem:[%s6688_s14 + $0x8] sm:$0xff] }
0x3bbf   :  { %v4948_v48 = vpop.eup %4947  ;;  %3546 = vmatpush.msra.mxu1 %v6100_v6  ;;  %3602 = vmatpush.msra.mxu3 %v6100_v6 }
0x3bc0   :  { %v3351_v42 = vadd.f32 1.0, %v4948_v48 }
0x3bc1   :  { %3547 = vmatpush.msra.mxu1 %v6105_v43  ;;  %3603 = vmatpush.msra.mxu3 %v6105_v43 }
0x3bc2   :  { %4949 = vrcp.f32 %v3351_v42  ;;  %v3363_v28 = vand.u32 2147483648, %v3351_v42  ;;  %vm3357_vm13 = vweird.f32 %v3351_v42  ;;  %v3361_v10 = vand.u32 2147483647, %v3351_v42 }
0x3bc3   :  { %3655 = vmatpush.msrb.mxu1 %v6100_v6 }
0x3bc4   :  { %v3364_v19 = vor.u32 1.1754944e-38, %v3363_v28  ;;  %vm3362_vm15 = vcmp.eq.f32.partialorder %v3361_v10, 8.507059e+37 }
0x3bc5   :  { %3656 = vmatpush.msrb.mxu1 %v6105_v43 }
0x3bc8   :  { %v4950_v3 = vpop.eup %4949 }
0x3bc9   :  { %v3353_v60 = vmul.f32 %v4950_v3, %v3351_v42  ;;  %vm3358_vm12 = vweird.f32 %v4950_v3 }
0x3bca   :  { %vm3359_vm14 = vmor %vm3357_vm13, %vm3358_vm12  ;;  %vm4013_vm13 = vcmask 1041409  }
0x3bcb   :  { %v3354_v21 = vsub.f32 1.0, %v3353_v60 }
0x3bcd   :  { %v3355_v51 = vmul.f32 %v4950_v3, %v3354_v21 }
0x3bcf   :  { %v3356_v52 = vadd.f32 %v4950_v3, %v3355_v51  ;;  %v4622_v51 = vmul.f32 -1.442695, %v5953_v56 }
0x3bd1   :  { %v3360_v34 = vsel %vm3359_vm14, %v4950_v3, %v3356_v52 }
0x3bd2   :  { %v3365_v40 = vsel %vm3362_vm15, %v3364_v19, %v3360_v34 }
0x3bd3   :  { %v3368_v14 = vmul.f32 %v3365_v40, %v6051_v32  ;;  %v3945_v32 = vlaneseq }
0x3c30   :  { %v3371_v57 = vpop.permute.xlu0 %3370 }
0x3c31   :  { %v3373_v41 = vmul.f32 %v3371_v57, %v3365_v40 }
0x3c33   :  { %3375 = vrot.lane.b32.xlu1 %v3373_v41, %s6720_s7 }
0x3ca5   :  { %v3376_v59 = vpop.permute.xlu1 %3375 }
0x3ca6   :  { %v6054_v16 = vadd.f32 %v3376_v59, %v3368_v14 }
0x3ca8   :  { %4951 = vtanh.f32 %v6054_v16 }
0x3cae   :  { %v4952_v5 = vpop.eup %4951 }
0x3caf   :  { %3381 = vrot.lane.b32.xlu2 %v4952_v5, %s6721_s4 }
0x3d09   :  { %v3382_v4 = vpop.permute.xlu2 %3381 }
0x3d0a   :  { %v3384_v36 = vmul.f32 %v3382_v4, %v3365_v40 }
0x3d0c   :  { %v3388_v61 = vmul.f32 %v3384_v36, %v5199_v18 }
0x3d0e   :  { %v3390_v55 = vadd.f32 %v3389_v24, %v3388_v61 }
0x3d10   :  { %3434 = vrot.lane.b32.xlu0 %v3390_v55, %s6722_s29 }
0x3d82   :  { %v3435_v58 = vpop.permute.xlu0 %3434 }
0x3d83   :  { %4652 = vmatmul.msk.f32.vlgmr.msrb.gmra.mxu3 %vm100_vm0, %v3435_v58 }
0x3d84   :  { %3708 = vmatpush.msrb.mxu3 %v6100_v6 }
0x3d86   :  { %3709 = vmatpush.msrb.mxu3 %v6105_v43 }
0x3e06   :  { %v3455_v47 = vpop.f32.mrf.mxu3 }
0x3e07   :  { %v3458_v17 = vadd.f32 %v3455_v47, %v3432_v44 }
0x3e09   :  { %4953 = vtanh.f32 %v3458_v17 }
0x3e0a   :  { %4955 = vtanh.f32 %v5953_v56 }
0x3e0f   :  { %v4954_v2 = vpop.eup %4953 }
0x3e10   :  { %3481 = vrot.lane.b32.xlu1 %v4954_v2, %s4979_s25  ;;  %v4956_v45 = vpop.eup %4955 }
0x3e18   :  { %3559 = vrot.lane.b32.xlu1 %v3388_v61, %s6722_s29 }
0x3e20   :  { %3528 = vrot.lane.b32.xlu1 %v5610_v46, %s6722_s29  ;;  %v4004_v46 = vsel %vm4003_vm1, 1, %v4981_v27 }
0x3e28   :  { %3665 = vrot.lane.b32.xlu1 %v6025_v23, %s6722_s29  ;;  %v4653_v23 = vmul.f32 -1.442695, %v3458_v17 }
0x3e2a   :  { %4957 = vpow2.f32 %v4653_v23 }
0x3e30   :  { %3743 = vrot.lane.b32.xlu1 %v5755_v49, %s6722_s29  ;;  %v4958_v33 = vpop.eup %4957 }
0x3e31   :  { %v3462_v49 = vadd.f32 1.0, %v4958_v33 }
0x3e33   :  { %4959 = vrcp.f32 %v3462_v49  ;;  %v3474_v21 = vand.u32 2147483648, %v3462_v49  ;;  %vm3468_vm3 = vweird.f32 %v3462_v49  ;;  %v3472_v52 = vand.u32 2147483647, %v3462_v49 }
0x3e34   :  { %4961 = vpow2.f32 %v4622_v51 }
0x3e35   :  { %v3475_v10 = vor.u32 1.1754944e-38, %v3474_v21  ;;  %vm3473_vm5 = vcmp.eq.f32.partialorder %v3472_v52, 8.507059e+37 }
0x3e38   :  { %2595 = vrot.lane.b32.xlu1 %v4956_v45, %s4979_s25 }
0x3e39   :  { %v4960_v62 = vpop.eup %4959 }
0x3e3a   :  { %v3464_v48 = vmul.f32 %v4960_v62, %v3462_v49  ;;  %vm3469_vm2 = vweird.f32 %v4960_v62  ;;  %v4962_v40 = vpop.eup %4961 }
0x3e3b   :  { %vm3470_vm4 = vmor %vm3468_vm3, %vm3469_vm2  ;;  %v2576_v41 = vadd.f32 1.0, %v4962_v40 }
0x3e3c   :  { %v3465_v42 = vsub.f32 1.0, %v3464_v48 }
0x3e3d   :  { %4963 = vrcp.f32 %v2576_v41  ;;  %vm2582_vm7 = vweird.f32 %v2576_v41  ;;  %v2586_v24 = vand.u32 2147483647, %v2576_v41 }
0x3e3e   :  { %v3466_v3 = vmul.f32 %v4960_v62, %v3465_v42 }
0x3e3f   :  { %vm2587_vm9 = vcmp.eq.f32.partialorder %v2586_v24, 8.507059e+37 }
0x3e40   :  { %3796 = vrot.lane.b32.xlu1 %v5853_v22, %s6722_s29  ;;  %v6087_v22 = vld [vmem:[%s6688_s14 + $0x10] sm:$0xff]  ;;  %v3467_v60 = vadd.f32 %v4960_v62, %v3466_v3 }
0x3e41   :  { %3578 = vmatpush.msra.mxu2 %v6087_v22  ;;  %3522 = vmatpush.msra.mxu0 %v6087_v22 }
0x3e42   :  { %v3471_v28 = vsel %vm3470_vm4, %v4960_v62, %v3467_v60  ;;  %v6168_v62 = vld [vmem:[%s6689_s15] ss:$0 sm:$0xff] }
0x3e43   :  { %3683 = vmatpush.msrb.mxu2 %v6082_v35  ;;  %3630 = vmatpush.msrb.mxu0 %v6082_v35  ;;  %v6116_v19 = vsel %vm3473_vm5, %v3475_v10, %v3471_v28  ;;  %v4964_v29 = vpop.eup %4963 }
0x3e44   :  { %v2578_v14 = vmul.f32 %v4964_v29, %v2576_v41  ;;  %vm2583_vm6 = vweird.f32 %v4964_v29 }
0x3e45   :  { %3684 = vmatpush.msrb.mxu2 %v6087_v22  ;;  %3631 = vmatpush.msrb.mxu0 %v6087_v22  ;;  %vm2584_vm8 = vmor %vm2582_vm7, %vm2583_vm6 }
0x3e46   :  { %v2579_v5 = vsub.f32 1.0, %v2578_v14 }
0x3e48   :  { %4006 = vperm.xlu1 %4690, %v4004_v46   ;;  %v6155_v46 = vshrl.u32 %v3945_v32, 7 }
0x3e4a   :  { %4693 = vset.pattern.permute.xlu2 %v6155_v46  ;;  %4694 = vset.pattern.permute.xlu0 %v6155_v46 }
0x3e50   :  { %4695 = vset.pattern.permute.xlu1 %v6155_v46 }
0x3e82   :  { %v3482_v34 = vpop.permute.xlu1 %3481 }
0x3e83   :  { %v3484_v57 = vmul.f32 %v3482_v34, %v6116_v19 }
0x3e85   :  { %3486 = vrot.lane.b32.xlu2 %v3484_v57, %s6720_s7 }
0x3e8a   :  { %v3560_v1 = vpop.permute.xlu1 %3559 }
0x3e8b   :  { %4656 = vmatmul.msk.f32.vlgmr.msra.gmra.mxu2 %vm100_vm0, %v3560_v1  ;;  %v4711_v1 = vld [vmem:[%s6690_s17] ss:$0 sm:$0xff] }
0x3e8c   :  { %3789 = vmatpush.msra.mxu2 %v6082_v35 }
0x3e8d   :  { %3584 = vrot.lane.b32.xlu2 %v5641_v38, %s6722_s29  ;;  %v2580_v38 = vmul.f32 %v4964_v29, %v2579_v5 }
0x3e8e   :  { %3790 = vmatpush.msra.mxu2 %v6087_v22 }
0x3e8f   :  { %v2581_v36 = vadd.f32 %v4964_v29, %v2580_v38 }
0x3e91   :  { %v2585_v61 = vsel %vm2584_vm8, %v4964_v29, %v2581_v36 }
0x3e92   :  { %v3529_v56 = vpop.permute.xlu1 %3528 }
0x3e93   :  { %4655 = vmatmul.msk.f32.vlgmr.msra.gmra.mxu1 %vm100_vm0, %v3529_v56 }
0x3e94   :  { %3761 = vmatpush.msra.mxu1 %v6100_v6 }
0x3e95   :  { %3612 = vrot.lane.b32.xlu2 %v6040_v8, %s6722_s29  ;;  %v2588_v8 = vand.u32 2147483648, %v2576_v41 }
0x3e96   :  { %3762 = vmatpush.msra.mxu1 %v6105_v43 }
0x3e97   :  { %v2589_v55 = vor.u32 1.1754944e-38, %v2588_v8 }
0x3e99   :  { %v6137_v58 = vsel %vm2587_vm9, %v2589_v55, %v2585_v61 }
0x3e9a   :  { %v3666_v59 = vpop.permute.xlu1 %3665 }
0x3e9b   :  { %4662 = vmatmul.msk.f32.vlgmr.msrb.gmra.mxu2 %vm100_vm0, %v3666_v59 }
0x3e9c   :  { %3895 = vmatpush.msrb.mxu2 %v6082_v35 }
0x3e9d   :  { %3690 = vrot.lane.b32.xlu2 %v5703_v11, %s6722_s29  ;;  %v3385_v11 = vmul.f32 %v6054_v16, %v5199_v18 }
0x3e9e   :  { %3896 = vmatpush.msrb.mxu2 %v6087_v22 }
0x3e9f   :  { %v3387_v44 = vadd.f32 %v3386_v26, %v3385_v11 }
0x3ea1   :  { %v3479_v47 = vmul.f32 %v6116_v19, %v3387_v44 }
0x3ea2   :  { %v6135_v4 = vpop.permute.xlu1 %3743 }
0x3eaa   :  { %v2596_v25 = vpop.permute.xlu1 %2595 }
0x3eab   :  { %v2598_v50 = vmul.f32 %v2596_v25, %v6137_v58 }
0x3ead   :  { %2600 = vrot.lane.b32.xlu1 %v2598_v50, %s6720_s7 }
0x3eb2   :  { %v3797_v15 = vpop.permute.xlu1 %3796 }
0x3edf   :  { %v3487_v17 = vpop.permute.xlu2 %3486 }
0x3ee0   :  { %v3489_v2 = vadd.f32 %v3487_v17, %v3479_v47  ;;  %v4007_v47 = vpop.permute.xlu1 %4006 }
0x3ee1   :  { %vm4008_vm14 = vcmp.eq.s32.totalorder %v4007_v47, 1 }
0x3ee2   :  { %4965 = vtanh.f32 %v3489_v2 }
0x3ee7   :  { %v3585_v45 = vpop.permute.xlu2 %3584 }
0x3ee8   :  { %v4966_v30 = vpop.eup %4965  ;;  %4657 = vmatmul.msk.f32.vlgmr.msra.gmra.mxu3 %vm100_vm0, %v3585_v45 }
0x3ee9   :  { %3492 = vrot.lane.b32.xlu0 %v4966_v30, %s6721_s4  ;;  %3814 = vmatpush.msra.mxu3 %v6100_v6  ;;  %v2489_v30 = vmul.f32 %v5902_v0, %v5402_v63 }
0x3eeb   :  { %3815 = vmatpush.msra.mxu3 %v6105_v43 }
0x3eef   :  { %v3613_v18 = vpop.permute.xlu2 %3612 }
0x3ef7   :  { %v3691_v16 = vpop.permute.xlu2 %3690 }
0x3ef8   :  { %4663 = vmatmul.msk.f32.vlgmr.msrb.gmra.mxu3 %vm100_vm0, %v3691_v16  ;;  %v2490_v16 = vmul.f32 %v5899_v31, %v5400_v20  ;;  %v4972_v31 = vld [vmem:[%s6718_s28 + $0x4] sm:$0x3] }
0x3ef9   :  { %3920 = vmatpush.msrb.mxu3 %v6100_v6  ;;  %vm4086_vm12 = vcmp.gt.f32.partialorder %v4972_v31, 0.0 }
0x3efb   :  { %3921 = vmatpush.msrb.mxu3 %v6105_v43 }
0x3f00   :  { %4669 = vmatmul.msk.f32.vlgmr.msra.gmra.mxu3 %vm100_vm0, %v3797_v15 }
0x3f0e   :  { %v3580_v48 = vpop.f32.mrf.mxu2 }
0x3f10   :  { %v3549_v57 = vpop.f32.mrf.mxu1 }
0x3f1e   :  { %v3686_v21 = vpop.f32.mrf.mxu2 }
0x3f5b   :  { %v3493_v23 = vpop.permute.xlu0 %3492 }
0x3f5c   :  { %v3495_v33 = vmul.f32 %v3493_v23, %v6116_v19  ;;  %v2491_v23 = vadd.f32 %v2490_v16, %v2489_v30 }
0x3f5e   :  { %v3496_v49 = vmul.f32 %v3495_v33, %v5168_v39 }
0x3f60   :  { %3503 = vrot.lane.b32.xlu0 %v3496_v49, %s6722_s29  ;;  %v2601_v49 = vpop.permute.xlu1 %2600 }
0x3f68   :  { %3637 = vrot.lane.b32.xlu0 %v5666_v53, %s6722_s29 }
0x3f6b   :  { %v3605_v42 = vpop.f32.mrf.mxu3 }
0x3f6c   :  { %v3606_v3 = vadd.f32 %v3605_v42, %v3580_v48  ;;  %v2593_v48 = vmul.f32 %v6137_v58, %v2491_v23  ;;  %v4087_v42 = vsel %vm4086_vm12, 1, %v4981_v27 }
0x3f6e   :  { %v3608_v60 = vadd.f32 %v6168_v62, %v3606_v3  ;;  %v2603_v63 = vadd.f32 %v2601_v49, %v2593_v48 }
0x3f70   :  { %4658 = vst.msk [vmem:[%s6691_s19 + $0x2] sm:$0x3] %vm3556_vm10, %v3608_v60  ;;  %v3944_v39 = vperm.slane %v3608_v60, 0  ;;  %3718 = vrot.lane.b32.xlu0 %v6006_v37, %s6722_s29  ;;  %v3951_v53 = vperm.slane %v3608_v60, 1  ;;  %4967 = vtanh.f32 %v2603_v63  ;;  %v4974_v63 = vld [vmem:[%s6718_s28 + $0x8] sm:$0x3] }
0x3f71   :  { %vm4250_vm2 = vcmp.gt.f32.partialorder %v4974_v63, 0.0  ;;  %v4976_v63 = vld [vmem:[%s6718_s28 + $0xc] sm:$0x3] }
0x3f72   :  { %3949 = vperm.xlu2 %4693, %v3944_v39   ;;  %vm4414_vm5 = vcmp.gt.f32.partialorder %v4976_v63, 0.0 }
0x3f76   :  { %v4968_v20 = vpop.eup %4967 }
0x3f78   :  { %3956 = vperm.xlu0 %4694, %v3951_v53  }
0x3f7a   :  { %3771 = vrot.lane.b32.xlu2 %v5985_v12, %s6722_s29 }
0x3f7b   :  { %v3711_v51 = vpop.f32.mrf.mxu3  ;;  %4696 = vset.pattern.permute.xlu2 %v4981_v27 }
0x3f7c   :  { %v3712_v52 = vadd.f32 %v3711_v51, %v3686_v21 }
0x3f7e   :  { %v6181_v28 = vadd.f32 %v6168_v62, %v3712_v52 }
0x3f80   :  { %4664 = vst.msk [vmem:[%s6691_s19 + $0x6] sm:$0x3] %vm3556_vm10, %v6181_v28  ;;  %v4119_v0 = vperm.slane %v6181_v28, 1 }
0x3f83   :  { %v3817_v59 = vpop.f32.mrf.mxu3 }
0x3fcc   :  { %v3950_v37 = vpop.permute.xlu2 %3949 }
0x3fd2   :  { %v3504_v10 = vpop.permute.xlu0 %3503 }
0x3fd3   :  { %4654 = vmatmul.msk.f32.vlgmr.msra.gmra.mxu0 %vm100_vm0, %v3504_v10 }
0x3fd4   :  { %v3772_v34 = vpop.permute.xlu2 %3771  ;;  %3736 = vmatpush.msra.mxu0 %v6082_v35 }
0x3fd5   :  { %4668 = vmatmul.msk.f32.vlgmr.msra.gmra.mxu2 %vm100_vm0, %v3772_v34 }
0x3fd6   :  { %3737 = vmatpush.msra.mxu0 %v6087_v22 }
0x3fda   :  { %v3638_v12 = vpop.permute.xlu0 %3637 }
0x3fdb   :  { %4659 = vmatmul.msk.f32.vlgmr.msrb.gmra.mxu0 %vm100_vm0, %v3613_v18  ;;  %4660 = vmatmul.msk.f32.vlgmr.msrb.gmra.mxu1 %vm100_vm0, %v3638_v12 }
0x3fdc   :  { %3867 = vmatpush.msrb.mxu1 %v6100_v6  ;;  %3842 = vmatpush.msrb.mxu0 %v6082_v35 }
0x3fde   :  { %3868 = vmatpush.msrb.mxu1 %v6105_v43  ;;  %3843 = vmatpush.msrb.mxu0 %v6087_v22  ;;  %v6214_v22 = vld [vmem:[%s6692_s16] sm:$0x1f] }
0x3fe2   :  { %v3719_v19 = vpop.permute.xlu0 %3718 }
0x3fe3   :  { %4665 = vmatmul.msk.f32.vlgmr.msra.gmra.mxu0 %vm100_vm0, %v3719_v19  ;;  %4666 = vmatmul.msk.f32.vlgmr.msra.gmra.mxu1 %vm100_vm0, %v6135_v4 }
0x3fea   :  { %v3957_v25 = vpop.permute.xlu0 %3956 }
0x4050   :  { %v3524_v40 = vpop.f32.mrf.mxu0 }
0x4051   :  { %v3550_v41 = vadd.f32 %v3549_v57, %v3524_v40 }
0x4053   :  { %v3555_v6 = vadd.f32 %v6168_v62, %v3550_v41 }
0x4055   :  { %3557 = vst.msk [vmem:[%s6691_s19] sm:$0x3] %vm3556_vm10, %v3555_v6  ;;  %v6209_v35 = vadd.f32 %v4711_v1, %v3555_v6 }
0x4057   :  { %v3938_v43 = vperm.slane %v6209_v35, 0  ;;  %v3937_v56 = vrot.slane %v6209_v35, 1 }
0x4058   :  { %v3633_v29 = vpop.f32.mrf.mxu0  ;;  %v3658_v14 = vpop.f32.mrf.mxu1 }
0x4059   :  { %v3659_v5 = vadd.f32 %v3658_v14, %v3633_v29  ;;  %v3792_v38 = vpop.f32.mrf.mxu2  ;;  %v3942_v4 = vadd.f32 %v3938_v43, %v6214_v22  ;;  %v3939_v36 = vperm.slane %v3937_v56, 0 }
0x405a   :  { %v3818_v8 = vadd.f32 %v3817_v59, %v3792_v38  ;;  %v4973_v59 = vld [vmem:[%s6718_s28 + $0x6] sm:$0x3] }
0x405b   :  { %v3661_v24 = vadd.f32 %v6168_v62, %v3659_v5  ;;  %v6220_v61 = vadd.f32 %v3950_v37, %v3942_v4  ;;  %v3943_v55 = vadd.f32 %v3939_v36, %v6214_v22  ;;  %vm4168_vm15 = vcmp.gt.f32.partialorder %v4973_v59, 0.0 }
0x405c   :  { %v6224_v50 = vadd.f32 %v6168_v62, %v3818_v8  ;;  %v4169_v5 = vsel %vm4168_vm15, 1, %v4981_v27 }
0x405d   :  { %4661 = vst.msk [vmem:[%s6691_s19 + $0x4] sm:$0x3] %vm3556_vm10, %v3661_v24  ;;  %v4030_v11 = vperm.slane %v3661_v24, 0  ;;  %v3961_v26 = vsel %vm3960_vm11, %v6220_v61, -inf  ;;  %v6232_v44 = vadd.f32 %v3957_v25, %v3943_v55  ;;  %v4037_v33 = vperm.slane %v3661_v24, 1 }
0x405e   :  { %4670 = vst.msk [vmem:[%s6691_s19 + $0xa] sm:$0x3] %vm3556_vm10, %v6224_v50  ;;  %3962 = vmax.xlane.f32.xlu2 %v3961_v26 }
0x405f   :  { %4035 = vperm.xlu1 %4695, %v4030_v11   ;;  %v3964_v17 = vsel %vm3960_vm11, %v6232_v44, -inf }
0x4060   :  { %v3739_v2 = vpop.f32.mrf.mxu0  ;;  %v3764_v45 = vpop.f32.mrf.mxu1  ;;  %3965 = vmax.xlane.f32.xlu0 %v3964_v17 }
0x4061   :  { %v3765_v18 = vadd.f32 %v3764_v45, %v3739_v2 }
0x4063   :  { %v6246_v15 = vadd.f32 %v6168_v62, %v3765_v18 }
0x4065   :  { %4667 = vst.msk [vmem:[%s6691_s19 + $0x8] sm:$0x3] %vm3556_vm10, %v6246_v15  ;;  %v4201_v38 = vperm.slane %v6246_v15, 1  ;;  %v4194_v31 = vperm.slane %v6246_v15, 0 }
0x4067   :  { %4042 = vperm.xlu1 %4695, %v4037_v33  }
0x406f   :  { %3824 = vrot.lane.b32.xlu1 %v5963_v7, %s6722_s29  ;;  %v4112_v7 = vperm.slane %v6181_v28, 0 }
0x4074   :  { %2606 = vrot.lane.b32.xlu0 %v4968_v20, %s6721_s4  ;;  %v4251_v20 = vsel %vm4250_vm2, 1, %v4981_v27 }
0x4076   :  { %3849 = vrot.lane.b32.xlu2 %v5911_v54, %s6722_s29  ;;  %v6271_v54 = vand.u32 127, %v3945_v32 }
0x407c   :  { %4124 = vperm.xlu0 %4694, %v4119_v0   ;;  %v4276_v0 = vperm.slane %v6224_v50, 0 }
0x407e   :  { %4089 = vperm.xlu2 %4696, %v4087_v42   ;;  %v4283_v42 = vperm.slane %v6224_v50, 1 }
0x4084   :  { %4698 = vset.pattern.permute.xlu0 %v4981_v27 }
0x4086   :  { %4697 = vset.pattern.permute.xlu2 %v6155_v46 }
0x408e   :  { %4117 = vperm.xlu2 %4697, %v4112_v7  }
0x4096   :  { %3877 = vrot.lane.b32.xlu2 %v5918_v9, %s6722_s29 }
0x4097   :  { %4700 = vset.pattern.permute.xlu2 %v4981_v27 }
0x40d1   :  { %v6273_v3 = vpop.xlane.xlu2 %3962  ;;  %v4036_v60 = vpop.permute.xlu1 %4035 }
0x40d2   :  { %v4011_v53 = vperm.slane %v6273_v3, %v6271_v54 }
0x40d3   :  { %v6275_v39 = vpop.xlane.xlu0 %3965 }
0x40d4   :  { %v4012_v21 = vperm.slane %v6275_v39, %v6271_v54  ;;  %vm3970_vm7 = vcmp.ge.f32.partialorder %v6232_v44, %v6275_v39 }
0x40d6   :  { %v4014_v9 = vsel %vm4013_vm13, %v4012_v21, %v4011_v53 }
0x40d7   :  { %v4016_v51 = vsel %vm4008_vm14, %v4014_v9, %v6209_v35 }
0x40d8   :  { %v4023_v52 = vrot.slane %v4016_v51, 1  ;;  %v4024_v32 = vperm.slane %v4016_v51, 0 }
0x40d9   :  { %v3850_v28 = vpop.permute.xlu2 %3849  ;;  %v4043_v37 = vpop.permute.xlu1 %4042 }
0x40da   :  { %v4025_v10 = vperm.slane %v4023_v52, 0  ;;  %4672 = vmatmul.msk.f32.vlgmr.msrb.gmra.mxu1 %vm100_vm0, %v3850_v28  ;;  %v4028_v34 = vadd.f32 %v4024_v32, %v6214_v22 }
0x40dc   :  { %v4029_v12 = vadd.f32 %v4025_v10, %v6214_v22  ;;  %v6286_v19 = vadd.f32 %v4036_v60, %v4028_v34 }
0x40de   :  { %v6288_v57 = vadd.f32 %v4043_v37, %v4029_v12  ;;  %v4046_v40 = vsel %vm3960_vm11, %v6286_v19, -inf }
0x40df   :  { %4047 = vmax.xlane.f32.xlu1 %v4046_v40 }
0x40e0   :  { %v4049_v41 = vsel %vm3960_vm11, %v6288_v57, -inf }
0x40e1   :  { %v4090_v1 = vpop.permute.xlu2 %4089  ;;  %v3825_v6 = vpop.permute.xlu1 %3824  ;;  %4050 = vmax.xlane.f32.xlu0 %v4049_v41 }
0x40e2   :  { %4671 = vmatmul.msk.f32.vlgmr.msrb.gmra.mxu0 %vm100_vm0, %v3825_v6  ;;  %vm4091_vm1 = vcmp.eq.s32.totalorder %v4090_v1, 1 }
0x40e6   :  { %v2607_v43 = vpop.permute.xlu0 %2606 }
0x40e7   :  { %v2609_v56 = vmul.f32 %v2607_v43, %v6137_v58 }
0x40e9   :  { %v4118_v35 = vpop.permute.xlu2 %4117  ;;  %v2610_v14 = vmul.f32 %v2609_v56, %v5411_v13 }
0x40ee   :  { %v4125_v58 = vpop.permute.xlu0 %4124 }
0x40f1   :  { %v3878_v29 = vpop.permute.xlu2 %3877 }
0x40f2   :  { %4674 = vmatmul.msk.f32.vlgmr.msrb.gmra.mxu2 %vm100_vm0, %v3878_v29 }
0x40f5   :  { %3902 = vrot.lane.b32.xlu0 %v2610_v14, %s6722_s29 }
0x40fd   :  { %4171 = vperm.xlu0 %4698, %v4169_v5  }
0x4105   :  { %4699 = vset.pattern.permute.xlu0 %v6155_v46 }
0x410d   :  { %4206 = vperm.xlu0 %4699, %v4201_v38  }
0x4152   :  { %v6305_v4 = vpop.xlane.xlu1 %4047 }
0x4153   :  { %v4094_v13 = vperm.slane %v6305_v4, %v6271_v54  ;;  %vm4052_vm8 = vcmp.ge.f32.partialorder %v6286_v19, %v6305_v4 }
0x4154   :  { %v6307_v36 = vpop.xlane.xlu0 %4050 }
0x4155   :  { %v4095_v8 = vperm.slane %v6307_v36, %v6271_v54 }
0x4157   :  { %v4096_v24 = vsel %vm4013_vm13, %v4095_v8, %v4094_v13  ;;  %v3870_v45 = vpop.f32.mrf.mxu1 }
0x4158   :  { %v4098_v55 = vsel %vm4091_vm1, %v4096_v24, %v4016_v51  ;;  %vm3969_vm1 = vcmp.ge.f32.partialorder %v6220_v61, %v6273_v3 }
0x4159   :  { %v4106_v25 = vperm.slane %v4098_v55, 0  ;;  %v4105_v11 = vrot.slane %v4098_v55, 1 }
0x415b   :  { %v4110_v26 = vadd.f32 %v4106_v25, %v6214_v22  ;;  %v4107_v47 = vperm.slane %v4105_v11, 0 }
0x415d   :  { %v6315_v17 = vadd.f32 %v4118_v35, %v4110_v26  ;;  %v4111_v2 = vadd.f32 %v4107_v47, %v6214_v22 }
0x415f   :  { %v3845_v30 = vpop.f32.mrf.mxu0  ;;  %v4128_v18 = vsel %vm3960_vm11, %v6315_v17, -inf  ;;  %v6320_v16 = vadd.f32 %v4125_v58, %v4111_v2  ;;  %v4975_v58 = vld [vmem:[%s6718_s28 + $0xa] sm:$0x3] }
0x4160   :  { %v3871_v23 = vadd.f32 %v3870_v45, %v3845_v30  ;;  %4129 = vmax.xlane.f32.xlu2 %v4128_v18  ;;  %vm4332_vm3 = vcmp.gt.f32.partialorder %v4975_v58, 0.0 }
0x4161   :  { %v4131_v33 = vsel %vm3960_vm11, %v6320_v16, -inf  ;;  %v4333_v25 = vsel %vm4332_vm3, 1, %v4981_v27 }
0x4162   :  { %v6325_v49 = vadd.f32 %v6168_v62, %v3871_v23  ;;  %4132 = vmax.xlane.f32.xlu1 %v4131_v33 }
0x4164   :  { %4673 = vst.msk [vmem:[%s6691_s19 + $0xc] sm:$0x3] %vm3556_vm10, %v6325_v49  ;;  %v4365_v33 = vperm.slane %v6325_v49, 1 }
0x4167   :  { %v3903_v48 = vpop.permute.xlu0 %3902 }
0x4168   :  { %4675 = vmatmul.msk.f32.vlgmr.msrb.gmra.mxu3 %vm100_vm0, %v3903_v48  ;;  %v4358_v48 = vperm.slane %v6325_v49, 0 }
0x416f   :  { %v4172_v60 = vpop.permute.xlu0 %4171 }
0x4170   :  { %vm4173_vm0 = vcmp.eq.s32.totalorder %v4172_v60, 1 }
0x4175   :  { %v3898_v12 = vpop.f32.mrf.mxu2 }
0x4178   :  { %4253 = vperm.xlu2 %4700, %v4251_v20   ;;  %v4415_v20 = vsel %vm4414_vm5, 1, %v4981_v27 }
0x417b   :  { %4199 = vperm.xlu1 %4695, %v4194_v31  }
0x417f   :  { %v4207_v28 = vpop.permute.xlu0 %4206 }
0x4180   :  { %4701 = vset.pattern.permute.xlu2 %v6155_v46 }
0x4188   :  { %4281 = vperm.xlu2 %4701, %v4276_v0  }
0x4190   :  { %4288 = vperm.xlu2 %4701, %v4283_v42  }
0x4198   :  { %4702 = vset.pattern.permute.xlu2 %v4981_v27 }
0x4199   :  { %4335 = vperm.xlu2 %4702, %v4333_v25  }
0x41d3   :  { %v6342_v7 = vpop.xlane.xlu2 %4129 }
0x41d4   :  { %v4176_v15 = vperm.slane %v6342_v7, %v6271_v54  ;;  %vm4134_vm9 = vcmp.ge.f32.partialorder %v6315_v17, %v6342_v7 }
0x41d5   :  { %v6344_v53 = vpop.xlane.xlu1 %4132  ;;  %v4136_v19 = vsel %vm4134_vm9, %v6271_v54, 5 }
0x41d6   :  { %v4177_v21 = vperm.slane %v6344_v53, %v6271_v54  ;;  %vm4135_vm9 = vcmp.ge.f32.partialorder %v6320_v16, %v6344_v53 }
0x41d8   :  { %v4178_v9 = vsel %vm4013_vm13, %v4177_v21, %v4176_v15 }
0x41d9   :  { %v4180_v51 = vsel %vm4173_vm0, %v4178_v9, %v4098_v55 }
0x41da   :  { %v4187_v52 = vrot.slane %v4180_v51, 1  ;;  %v4188_v34 = vperm.slane %v4180_v51, 0 }
0x41db   :  { %v4254_v29 = vpop.permute.xlu2 %4253 }
0x41dc   :  { %v4189_v50 = vperm.slane %v4187_v52, 0  ;;  %v4192_v1 = vadd.f32 %v4188_v34, %v6214_v22  ;;  %vm4255_vm4 = vcmp.eq.s32.totalorder %v4254_v29, 1 }
0x41de   :  { %v4193_v32 = vadd.f32 %v4189_v50, %v6214_v22 }
0x41e0   :  { %v6352_v37 = vadd.f32 %v4207_v28, %v4193_v32  ;;  %v3972_v28 = vsel %vm3970_vm7, %v6271_v54, 5 }
0x41e2   :  { %v4213_v10 = vsel %vm3960_vm11, %v6352_v37, -inf }
0x41e3   :  { %4214 = vmax.xlane.f32.xlu0 %v4213_v10  ;;  %v4282_v59 = vpop.permute.xlu2 %4281 }
0x41eb   :  { %v3923_v40 = vpop.f32.mrf.mxu3  ;;  %v4289_v45 = vpop.permute.xlu2 %4288 }
0x41ec   :  { %v3924_v41 = vadd.f32 %v3923_v40, %v3898_v12  ;;  %v6412_v40 = vsel %vm3960_vm11, %v3972_v28, 2147483647 }
0x41ed   :  { %v4200_v6 = vpop.permute.xlu1 %4199  ;;  %v3990_v39 = vshra.s32 %v6412_v40, 16 }
0x41ee   :  { %v3926_v35 = vadd.f32 %v6168_v62, %v3924_v41  ;;  %v6358_v43 = vadd.f32 %v4200_v6, %v4192_v1 }
0x41f0   :  { %4676 = vst.msk [vmem:[%s6691_s19 + $0xe] sm:$0x3] %vm3556_vm10, %v3926_v35  ;;  %v4210_v56 = vsel %vm3960_vm11, %v6358_v43, -inf  ;;  %v4440_v31 = vperm.slane %v3926_v35, 0  ;;  %v4447_v0 = vperm.slane %v3926_v35, 1  ;;  %v4054_v35 = vsel %vm4052_vm8, %v6271_v54, 5 }
0x41f1   :  { %4211 = vmax.xlane.f32.xlu1 %v4210_v56  ;;  %v6421_v56 = vcvt.s32.f32 %v3990_v39  ;;  %v6424_v29 = vsel %vm3960_vm11, %v4054_v35, 2147483647 }
0x41f3   :  { %v4336_v15 = vpop.permute.xlu2 %4335 }
0x41f4   :  { %vm4337_vm6 = vcmp.eq.s32.totalorder %v4336_v15, 1 }
0x4256   :  { %v6366_v14 = vpop.xlane.xlu0 %4214 }
0x4257   :  { %v4259_v62 = vperm.slane %v6366_v14, %v6271_v54  ;;  %vm4217_vm2 = vcmp.ge.f32.partialorder %v6352_v37, %v6366_v14 }
0x4264   :  { %v6368_v5 = vpop.xlane.xlu1 %4211 }
0x4265   :  { %v4258_v38 = vperm.slane %v6368_v5, %v6271_v54  ;;  %vm4216_vm12 = vcmp.ge.f32.partialorder %v6358_v43, %v6368_v5 }
0x4266   :  { %v4218_v58 = vsel %vm4216_vm12, %v6271_v54, 5 }
0x4267   :  { %v4260_v13 = vsel %vm4013_vm13, %v4259_v62, %v4258_v38  ;;  %v6434_v62 = vsel %vm3960_vm11, %v4136_v19, 2147483647  ;;  %v6444_v17 = vsel %vm3960_vm11, %v4218_v58, 2147483647 }
0x4268   :  { %v4262_v8 = vsel %vm4255_vm4, %v4260_v13, %v4180_v51  ;;  %v4140_v38 = vshra.s32 %v6434_v62, 16  ;;  %v4222_v7 = vshra.s32 %v6444_v17, 16 }
0x4269   :  { %v4270_v24 = vperm.slane %v4262_v8, 0  ;;  %v4269_v55 = vrot.slane %v4262_v8, 1 }
0x426a   :  { %v6441_v13 = vcvt.s32.f32 %v4140_v38 }
0x426b   :  { %v4274_v11 = vadd.f32 %v4270_v24, %v6214_v22  ;;  %v4271_v26 = vperm.slane %v4269_v55, 0  ;;  %v6450_v24 = vcvt.s32.f32 %v4222_v7 }
0x426d   :  { %v6380_v47 = vadd.f32 %v4282_v59, %v4274_v11  ;;  %v4275_v2 = vadd.f32 %v4271_v26, %v6214_v22  ;;  %v4058_v59 = vshra.s32 %v6424_v29, 16 }
0x426f   :  { %v4292_v30 = vsel %vm3960_vm11, %v6380_v47, -inf  ;;  %v6385_v18 = vadd.f32 %v4289_v45, %v4275_v2  ;;  %v6431_v4 = vcvt.s32.f32 %v4058_v59 }
0x4270   :  { %4293 = vmax.xlane.f32.xlu1 %v4292_v30 }
0x4271   :  { %v4295_v23 = vsel %vm3960_vm11, %v6385_v18, -inf }
0x4272   :  { %4296 = vmax.xlane.f32.xlu0 %v4295_v23 }
0x4286   :  { %4370 = vperm.xlu0 %4699, %v4365_v33  }
0x4289   :  { %4363 = vperm.xlu1 %4695, %v4358_v48  }
0x428e   :  { %4705 = vset.pattern.permute.xlu0 %v4981_v27 }
0x4291   :  { %4703 = vset.pattern.permute.xlu1 %v4981_v27 }
0x4292   :  { %4417 = vperm.xlu1 %4703, %v4415_v20  }
0x429a   :  { %4704 = vset.pattern.permute.xlu1 %v6155_v46 }
0x42a2   :  { %4445 = vperm.xlu1 %4704, %v4440_v31   ;;  %v3971_v31 = vsel %vm3969_vm1, %v6271_v54, 5 }
0x42a3   :  { %v3973_v61 = vsel %vm3960_vm11, %v3971_v31, 2147483647 }
0x42a4   :  { %v3975_v14 = vshra.s32 %v3973_v61, 16  ;;  %v3974_v38 = vand.u32 65535, %v3973_v61 }
0x42aa   :  { %4452 = vperm.xlu1 %4704, %v4447_v0  }
0x42e3   :  { %v6398_v49 = vpop.xlane.xlu1 %4293 }
0x42e4   :  { %v4340_v21 = vperm.slane %v6398_v49, %v6271_v54 }
0x42e5   :  { %v4297_v42 = vpop.xlane.xlu0 %4296 }
0x42e6   :  { %v4341_v60 = vperm.slane %v4297_v42, %v6271_v54  ;;  %vm4299_vm14 = vcmp.ge.f32.partialorder %v6385_v18, %v4297_v42 }
0x42e8   :  { %v4342_v9 = vsel %vm4013_vm13, %v4341_v60, %v4340_v21  ;;  %v4219_v60 = vsel %vm4217_vm2, %v6271_v54, 5 }
0x42e9   :  { %v4344_v51 = vsel %vm4337_vm6, %v4342_v9, %v4262_v8  ;;  %v4301_v8 = vsel %vm4299_vm14, %v6271_v54, 5  ;;  %v4235_v9 = vsel %vm3960_vm11, %v4219_v60, 2147483647  ;;  %vm4053_vm6 = vcmp.ge.f32.partialorder %v6288_v57, %v6307_v36 }
0x42ea   :  { %v4351_v52 = vrot.slane %v4344_v51, 1  ;;  %v4352_v46 = vperm.slane %v4344_v51, 0  ;;  %v6453_v43 = vsel %vm3960_vm11, %v4301_v8, 2147483647  ;;  %v4236_v36 = vand.u32 65535, %v4235_v9 }
0x42eb   :  { %v4319_v5 = vshra.s32 %v6453_v43, 16  ;;  %vm4298_vm14 = vcmp.ge.f32.partialorder %v6380_v47, %v6398_v49 }
0x42ec   :  { %v4353_v50 = vperm.slane %v4351_v52, 0  ;;  %v4356_v12 = vadd.f32 %v4352_v46, %v6214_v22  ;;  %v4300_v53 = vsel %vm4298_vm14, %v6271_v54, 5 }
0x42ed   :  { %v6457_v55 = vcvt.s32.f32 %v4319_v5 }
0x42ee   :  { %v4357_v32 = vadd.f32 %v4353_v50, %v6214_v22 }
0x42f8   :  { %v4371_v10 = vpop.permute.xlu0 %4370 }
0x42f9   :  { %v6408_v34 = vadd.f32 %v4371_v10, %v4357_v32 }
0x42fb   :  { %v4364_v41 = vpop.permute.xlu1 %4363  ;;  %v4377_v1 = vsel %vm3960_vm11, %v6408_v34, -inf }
0x42fc   :  { %v4372_v6 = vadd.f32 %v4364_v41, %v4356_v12  ;;  %4378 = vmax.xlane.f32.xlu0 %v4377_v1 }
0x42fe   :  { %v4374_v44 = vsel %vm3960_vm11, %v4372_v6, -inf }
0x42ff   :  { %4375 = vmax.xlane.f32.xlu2 %v4374_v44 }
0x4304   :  { %3993 = vmin.xlane.f32.xlu0 %v6421_v56  ;;  %v4418_v25 = vpop.permute.xlu1 %4417 }
0x4305   :  { %vm4419_vm15 = vcmp.eq.s32.totalorder %v4418_v25, 1 }
0x430c   :  { %4061 = vmin.xlane.f32.xlu0 %v6431_v4 }
0x4314   :  { %4143 = vmin.xlane.f32.xlu0 %v6441_v13  ;;  %v4446_v26 = vpop.permute.xlu1 %4445 }
0x431c   :  { %4225 = vmin.xlane.f32.xlu0 %v6450_v24  ;;  %v4453_v15 = vpop.permute.xlu1 %4452 }
0x4324   :  { %4322 = vmin.xlane.f32.xlu0 %v6457_v55 }
0x436f   :  { %v6460_v11 = vpop.xlane.xlu0 %4378 }
0x4370   :  { %v4423_v45 = vperm.slane %v6460_v11, %v6271_v54  ;;  %vm4381_vm1 = vcmp.ge.f32.partialorder %v6408_v34, %v6460_v11 }
0x4372   :  { %v4376_v2 = vpop.xlane.xlu2 %4375 }
0x4373   :  { %v4422_v30 = vperm.slane %v4376_v2, %v6271_v54  ;;  %vm4380_vm0 = vcmp.ge.f32.partialorder %v4372_v6, %v4376_v2  ;;  %v3976_v2 = vcvt.s32.f32 %v3974_v38 }
0x4374   :  { %v4382_v52 = vsel %vm4380_vm0, %v6271_v54, 5 }
0x4375   :  { %v4424_v18 = vsel %vm4013_vm13, %v4423_v45, %v4422_v30  ;;  %v6484_v46 = vsel %vm3960_vm11, %v4382_v52, 2147483647  ;;  %v4383_v52 = vsel %vm4381_vm1, %v6271_v54, 5 }
0x4376   :  { %v6466_v23 = vsel %vm4419_vm15, %v4424_v18, %v4344_v51  ;;  %v4237_v51 = vshra.s32 %v4235_v9, 16  ;;  %v4386_v32 = vshra.s32 %v6484_v46, 16  ;;  %v4139_v18 = vand.u32 65535, %v6434_v62 }
0x4377   :  { %v4434_v33 = vperm.slane %v6466_v23, 0  ;;  %v4433_v48 = vrot.slane %v6466_v23, 1  ;;  %v6490_v10 = vpop.xlane.xlu0 %3993  ;;  %v6558_v49 = vsel %vm3960_vm11, %v4383_v52, 2147483647 }
0x4378   :  { %v4239_v50 = vcvt.s32.f32 %v4237_v51  ;;  %v6487_v28 = vcvt.s32.f32 %v4386_v32  ;;  %vm3995_vm8 = vcmp.eq.f32.partialorder %v6421_v56, %v6490_v10  ;;  %v4141_v62 = vcvt.s32.f32 %v4139_v18 }
0x4379   :  { %v4438_v63 = vadd.f32 %v4434_v33, %v6214_v22  ;;  %v4435_v20 = vperm.slane %v4433_v48, 0  ;;  %v3989_v33 = vand.u32 65535, %v6412_v40  ;;  %v4055_v48 = vsel %vm4053_vm6, %v6271_v54, 5 }
0x437a   :  { %v4137_v56 = vsel %vm4135_vm9, %v6271_v54, 5 }
0x437b   :  { %v4454_v0 = vadd.f32 %v4446_v26, %v4438_v63  ;;  %v4439_v42 = vadd.f32 %v4435_v20, %v6214_v22  ;;  %v3977_v22 = vcvt.s32.f32 %v3975_v14  ;;  %v3991_v63 = vcvt.s32.f32 %v3989_v33 }
0x437c   :  { %v4302_v14 = vsel %vm3960_vm11, %v4300_v53, 2147483647  ;;  %v4400_v53 = vand.u32 65535, %v6558_v49 }
0x437d   :  { %v4456_v3 = vsel %vm3960_vm11, %v4454_v0, -inf  ;;  %v4455_v21 = vadd.f32 %v4453_v15, %v4439_v42  ;;  %v3996_v57 = vsel %vm3995_vm8, %v3991_v63, inf  ;;  %v4153_v15 = vsel %vm3960_vm11, %v4137_v56, 2147483647 }
0x437e   :  { %4457 = vmax.xlane.f32.xlu2 %v4456_v3  ;;  %v4385_v3 = vand.u32 65535, %v6484_v46  ;;  %v4155_v16 = vshra.s32 %v4153_v15, 16  ;;  %v4304_v51 = vshra.s32 %v4302_v14, 16  ;;  %v4057_v46 = vand.u32 65535, %v6424_v29 }
0x437f   :  { %v4459_v37 = vsel %vm3960_vm11, %v4455_v21, -inf  ;;  %v6492_v41 = vpop.xlane.xlu0 %4061  ;;  %v4000_v29 = vcvt.f32.s32 %v6490_v10  ;;  %v4221_v63 = vand.u32 65535, %v6444_v17 }
0x4380   :  { %4460 = vmax.xlane.f32.xlu1 %v4459_v37  ;;  %v4157_v37 = vcvt.s32.f32 %v4155_v16  ;;  %v4306_v47 = vcvt.s32.f32 %v4304_v51  ;;  %vm4063_vm2 = vcmp.eq.f32.partialorder %v6431_v4, %v6492_v41  ;;  %v4059_v34 = vcvt.s32.f32 %v4057_v46  ;;  %v4977_v51 = vld [vmem:[%s6718_s28 + $0xe] sm:$0x3] }
0x4381   :  { %vm4496_vm9 = vcmp.gt.f32.partialorder %v4977_v51, 0.0 }
0x4382   :  { %v4064_v11 = vsel %vm4063_vm2, %v4059_v34, inf }
0x4386   :  { %3978 = vmin.xlane.f32.xlu2 %v3977_v22 }
0x4387   :  { %v6518_v30 = vpop.xlane.xlu0 %4143 }
0x4388   :  { %4240 = vmin.xlane.f32.xlu1 %v4239_v50  ;;  %vm4145_vm7 = vcmp.eq.f32.partialorder %v6441_v13, %v6518_v30  ;;  %v4238_v13 = vcvt.s32.f32 %v4236_v36 }
0x4389   :  { %v4146_v31 = vsel %vm4145_vm7, %v4141_v62, inf  ;;  %v4154_v62 = vand.u32 65535, %v4153_v15 }
0x438f   :  { %v6582_v33 = vpop.xlane.xlu0 %4225 }
0x4390   :  { %4389 = vmin.xlane.f32.xlu1 %v6487_v28 }
0x4397   :  { %v6590_v56 = vpop.xlane.xlu0 %4322 }
0x43f1   :  { %v4458_v12 = vpop.xlane.xlu2 %4457 }
0x43f2   :  { %vm4462_vm3 = vcmp.ge.f32.partialorder %v4454_v0, %v4458_v12  ;;  %v4504_v39 = vperm.slane %v4458_v12, %v6271_v54  ;;  %v6537_v0 = vsel %vm3960_vm11, %v4055_v48, 2147483647 }
0x43f3   :  { %v4464_v1 = vsel %vm4462_vm3, %v6271_v54, 5  ;;  %v4461_v6 = vpop.xlane.xlu1 %4460  ;;  %v4073_v40 = vshra.s32 %v6537_v0, 16  ;;  %vm4227_vm3 = vcmp.eq.f32.partialorder %v6450_v24, %v6582_v33 }
0x43f4   :  { %v6496_v44 = vsel %vm3960_vm11, %v4464_v1, 2147483647  ;;  %vm4463_vm4 = vcmp.ge.f32.partialorder %v4455_v21, %v4461_v6  ;;  %v4505_v35 = vperm.slane %v4461_v6, %v6271_v54  ;;  %v4387_v21 = vcvt.s32.f32 %v4385_v3 }
0x43f5   :  { %v4465_v59 = vsel %vm4463_vm4, %v6271_v54, 5  ;;  %v4468_v19 = vshra.s32 %v6496_v44, 16  ;;  %v4075_v60 = vcvt.s32.f32 %v4073_v40 }
0x43f6   :  { %v6503_v58 = vsel %vm3960_vm11, %v4465_v59, 2147483647  ;;  %v6506_v7 = vsel %vm4013_vm13, %v4505_v35, %v4504_v39 }
0x43f7   :  { %v6508_v8 = vcvt.s32.f32 %v4468_v19  ;;  %v4483_v5 = vshra.s32 %v6503_v58, 16  ;;  %v4482_v32 = vand.u32 65535, %v6503_v58  ;;  %v4001_v19 = vshll.u32 %v4000_v29, 16 }
0x43f9   :  { %4471 = vmin.xlane.f32.xlu0 %v6508_v8  ;;  %v6512_v25 = vpop.xlane.xlu2 %3978  ;;  %v6514_v26 = vcvt.s32.f32 %v4483_v5  ;;  %v4484_v12 = vcvt.s32.f32 %v4482_v32 }
0x43fa   :  { %vm3980_vm5 = vcmp.eq.f32.partialorder %v3977_v22, %v6512_v25  ;;  %v4401_v22 = vshra.s32 %v6558_v49, 16  ;;  %v3985_v39 = vcvt.f32.s32 %v6512_v25 }
0x43fb   :  { %4486 = vmin.xlane.f32.xlu1 %v6514_v26  ;;  %v3981_v45 = vsel %vm3980_vm5, %v3976_v2, inf  ;;  %v6534_v20 = vpop.xlane.xlu1 %4240  ;;  %v4072_v2 = vand.u32 65535, %v6537_v0  ;;  %v4156_v0 = vcvt.s32.f32 %v4154_v62  ;;  %vm4324_vm5 = vcmp.eq.f32.partialorder %v6457_v55, %v6590_v56 }
0x43fc   :  { %3982 = vmin.xlane.f32.xlu2 %v3981_v45  ;;  %vm4242_vm12 = vcmp.eq.f32.partialorder %v4239_v50, %v6534_v20  ;;  %v6561_v50 = vcvt.s32.f32 %v4401_v22  ;;  %v3986_v4 = vshll.u32 %v3985_v39, 16  ;;  %v4402_v55 = vcvt.s32.f32 %v4400_v53 }
0x43fd   :  { %v4243_v42 = vsel %vm4242_vm12, %v4238_v13, inf  ;;  %v4074_v25 = vcvt.s32.f32 %v4072_v2  ;;  %v4303_v13 = vand.u32 65535, %v4302_v14  ;;  %v4329_v62 = vcvt.f32.s32 %v6590_v56 }
0x43ff   :  { %v4305_v24 = vcvt.s32.f32 %v4303_v13 }
0x4403   :  { %4147 = vmin.xlane.f32.xlu1 %v4146_v31  ;;  %v6545_v61 = vpop.xlane.xlu1 %4389 }
0x4404   :  { %3997 = vmin.xlane.f32.xlu2 %v3996_v57  ;;  %vm4391_vm15 = vcmp.eq.f32.partialorder %v6487_v28, %v6545_v61  ;;  %v4223_v57 = vcvt.s32.f32 %v4221_v63 }
0x4405   :  { %v4392_v9 = vsel %vm4391_vm15, %v4387_v21, inf  ;;  %v4467_v21 = vand.u32 65535, %v6496_v44  ;;  %v4497_v44 = vsel %vm4496_vm9, 1, %v4981_v27  ;;  %v4232_v27 = vcvt.f32.s32 %v6582_v33 }
0x4406   :  { %v4228_v40 = vsel %vm4227_vm3, %v4223_v57, inf }
0x440b   :  { %4244 = vmin.xlane.f32.xlu1 %v4243_v42  ;;  %v4318_v42 = vand.u32 65535, %v6453_v43 }
0x440c   :  { %4076 = vmin.xlane.f32.xlu2 %v4075_v60 }
0x4413   :  { %4393 = vmin.xlane.f32.xlu1 %v4392_v9  ;;  %v4469_v9 = vcvt.s32.f32 %v4467_v21 }
0x4414   :  { %4158 = vmin.xlane.f32.xlu2 %v4157_v37 }
0x441c   :  { %4307 = vmin.xlane.f32.xlu2 %v4306_v47 }
0x4424   :  { %4404 = vmin.xlane.f32.xlu2 %v6561_v50 }
0x442c   :  { %4065 = vmin.xlane.f32.xlu2 %v4064_v11 }
0x446c   :  { %v6598_v16 = vpop.xlane.xlu0 %4471 }
0x446d   :  { %vm4473_vm7 = vcmp.eq.f32.partialorder %v6508_v8, %v6598_v16 }
0x446e   :  { %v6568_v28 = vpop.xlane.xlu1 %4486  ;;  %v4474_v14 = vsel %vm4473_vm7, %v4469_v9, inf }
0x446f   :  { %vm4488_vm11 = vcmp.eq.f32.partialorder %v6514_v26, %v6568_v28  ;;  %v3983_v1 = vpop.xlane.xlu2 %3982  ;;  %v4493_v21 = vcvt.f32.s32 %v6568_v28 }
0x4470   :  { %v4489_v6 = vsel %vm4488_vm11, %v4484_v12, inf  ;;  %v3984_v35 = vcvt.f32.s32 %v3983_v1  ;;  %v4150_v1 = vcvt.f32.s32 %v6518_v30 }
0x4471   :  { %4490 = vmin.xlane.f32.xlu1 %v4489_v6  ;;  %v4247_v6 = vcvt.f32.s32 %v6534_v20 }
0x4472   :  { %v3987_v38 = vadd.s32 %v3986_v4, %v3984_v35 }
0x4474   :  { %v4017_v45 = vperm.slane %v3987_v38, %v6271_v54  ;;  %v4248_v38 = vshll.u32 %v4247_v6, 16 }
0x4476   :  { %v4148_v8 = vpop.xlane.xlu1 %4147 }
0x4477   :  { %v3998_v59 = vpop.xlane.xlu2 %3997  ;;  %v4149_v29 = vcvt.f32.s32 %v4148_v8 }
0x4478   :  { %v3999_v5 = vcvt.f32.s32 %v3998_v59 }
0x447a   :  { %v4002_v58 = vadd.s32 %v4001_v19, %v3999_v5  ;;  %v4151_v19 = vshll.u32 %v4150_v1, 16 }
0x447c   :  { %v4018_v26 = vperm.slane %v4002_v58, %v6271_v54  ;;  %v4233_v58 = vshll.u32 %v4232_v27, 16  ;;  %v4152_v2 = vadd.s32 %v4151_v19, %v4149_v29 }
0x447e   :  { %v4019_v18 = vsel %vm4013_vm13, %v4018_v26, %v4017_v45  ;;  %v4181_v63 = vperm.slane %v4152_v2, %v6271_v54 }
0x447f   :  { %4677 = vst.msk [vmem:[%s6693_s20 + $0x2] sm:$0x3] %vm3556_vm10, %v4019_v18  ;;  %v4077_v10 = vpop.xlane.xlu2 %4076 }
0x4480   :  { %vm4078_vm0 = vcmp.eq.f32.partialorder %v4075_v60, %v4077_v10  ;;  %v4320_v60 = vcvt.s32.f32 %v4318_v42  ;;  %v4083_v49 = vcvt.f32.s32 %v4077_v10 }
0x4481   :  { %v4079_v48 = vsel %vm4078_vm0, %v4074_v25, inf }
0x4482   :  { %4080 = vmin.xlane.f32.xlu0 %v4079_v48  ;;  %v4325_v3 = vsel %vm4324_vm5, %v4320_v60, inf  ;;  %v4084_v11 = vshll.u32 %v4083_v49, 16  ;;  %v4494_v49 = vshll.u32 %v4493_v21, 16 }
0x4487   :  { %v6587_v31 = vpop.xlane.xlu2 %4158 }
0x4488   :  { %vm4160_vm4 = vcmp.eq.f32.partialorder %v4157_v37, %v6587_v31  ;;  %v4165_v4 = vcvt.f32.s32 %v6587_v31 }
0x4489   :  { %v4161_v36 = vsel %vm4160_vm4, %v4156_v0, inf }
0x448a   :  { %4162 = vmin.xlane.f32.xlu2 %v4161_v36  ;;  %4229 = vmin.xlane.f32.xlu0 %v4228_v40  ;;  %v4166_v26 = vshll.u32 %v4165_v4, 16  ;;  %v4712_v4 = vld [vmem:[%s6694_s18] ss:$0 sm:$0xff] }
0x448f   :  { %v6595_v17 = vpop.xlane.xlu2 %4307 }
0x4490   :  { %vm4309_vm6 = vcmp.eq.f32.partialorder %v4306_v47, %v6595_v17  ;;  %v4068_v47 = vcvt.f32.s32 %v6492_v41  ;;  %v4314_v0 = vcvt.f32.s32 %v6595_v17 }
0x4491   :  { %v4310_v15 = vsel %vm4309_vm6, %v4305_v24, inf  ;;  %v4330_v24 = vshll.u32 %v4329_v62, 16 }
0x4492   :  { %4311 = vmin.xlane.f32.xlu2 %v4310_v15  ;;  %4326 = vmin.xlane.f32.xlu0 %v4325_v3  ;;  %v4069_v46 = vshll.u32 %v4068_v47, 16  ;;  %v4315_v60 = vshll.u32 %v4314_v0, 16  ;;  %v4396_v3 = vcvt.f32.s32 %v6545_v61 }
0x4494   :  { %v4397_v47 = vshll.u32 %v4396_v3, 16 }
0x4497   :  { %v6604_v43 = vpop.xlane.xlu2 %4404 }
0x4498   :  { %vm4406_vm8 = vcmp.eq.f32.partialorder %v6561_v50, %v6604_v43  ;;  %v4245_v50 = vpop.xlane.xlu1 %4244  ;;  %v4411_v51 = vcvt.f32.s32 %v6604_v43 }
0x4499   :  { %v4407_v37 = vsel %vm4406_vm8, %v4402_v55, inf  ;;  %v4246_v35 = vcvt.f32.s32 %v4245_v50 }
0x449a   :  { %4408 = vmin.xlane.f32.xlu2 %v4407_v37  ;;  %4475 = vmin.xlane.f32.xlu0 %v4474_v14  ;;  %v4478_v37 = vcvt.f32.s32 %v6598_v16  ;;  %v4412_v50 = vshll.u32 %v4411_v51, 16 }
0x449b   :  { %v4249_v45 = vadd.s32 %v4248_v38, %v4246_v35 }
0x449c   :  { %v4479_v61 = vshll.u32 %v4478_v37, 16 }
0x449d   :  { %v4264_v31 = vperm.slane %v4249_v45, %v6271_v54 }
0x449f   :  { %v4066_v52 = vpop.xlane.xlu2 %4065 }
0x44a0   :  { %v4067_v22 = vcvt.f32.s32 %v4066_v52  ;;  %v4394_v25 = vpop.xlane.xlu1 %4393 }
0x44a1   :  { %v4395_v14 = vcvt.f32.s32 %v4394_v25 }
0x44a2   :  { %v4070_v32 = vadd.s32 %v4069_v46, %v4067_v22 }
0x44a3   :  { %v4398_v46 = vadd.s32 %v4397_v47, %v4395_v14 }
0x44a4   :  { %v4099_v41 = vperm.slane %v4070_v32, %v6271_v54 }
0x44a5   :  { %v4427_v1 = vperm.slane %v4398_v46, %v6271_v54 }
0x44b2   :  { %4499 = vperm.xlu2 %4702, %v4497_v44  }
0x44e4   :  { %v4491_v53 = vpop.xlane.xlu1 %4490 }
0x44e5   :  { %v4492_v44 = vcvt.f32.s32 %v4491_v53 }
0x44e7   :  { %v4495_v43 = vadd.s32 %v4494_v49, %v4492_v44 }
0x44e9   :  { %v4510_v6 = vperm.slane %v4495_v43, %v6271_v54 }
0x44f5   :  { %v4081_v34 = vpop.xlane.xlu0 %4080 }
0x44f6   :  { %v4082_v12 = vcvt.f32.s32 %v4081_v34 }
0x44f8   :  { %v4085_v39 = vadd.s32 %v4084_v11, %v4082_v12 }
0x44fa   :  { %v4100_v59 = vperm.slane %v4085_v39, %v6271_v54 }
0x44fc   :  { %v4101_v5 = vsel %vm4013_vm13, %v4100_v59, %v4099_v41 }
0x44fd   :  { %4678 = vst.msk [vmem:[%s6693_s20 + $0x4] sm:$0x3] %vm3556_vm10, %v4101_v5  ;;  %v4163_v30 = vpop.xlane.xlu2 %4162  ;;  %v4230_v20 = vpop.xlane.xlu0 %4229 }
0x44fe   :  { %v4164_v18 = vcvt.f32.s32 %v4163_v30  ;;  %v4231_v10 = vcvt.f32.s32 %v4230_v20 }
0x4500   :  { %v4167_v33 = vadd.s32 %v4166_v26, %v4164_v18  ;;  %v4234_v48 = vadd.s32 %v4233_v58, %v4231_v10 }
0x4502   :  { %v4182_v57 = vperm.slane %v4167_v33, %v6271_v54  ;;  %v4263_v36 = vperm.slane %v4234_v48, %v6271_v54 }
0x4504   :  { %v4183_v40 = vsel %vm4013_vm13, %v4182_v57, %v4181_v63  ;;  %v4265_v13 = vsel %vm4013_vm13, %v4264_v31, %v4263_v36 }
0x4505   :  { %4679 = vst.msk [vmem:[%s6693_s20 + $0x6] sm:$0x3] %vm3556_vm10, %v4183_v40  ;;  %v4312_v56 = vpop.xlane.xlu2 %4311  ;;  %v4327_v42 = vpop.xlane.xlu0 %4326 }
0x4506   :  { %4680 = vst.msk [vmem:[%s6693_s20 + $0x8] sm:$0x3] %vm3556_vm10, %v4265_v13  ;;  %v4313_v17 = vcvt.f32.s32 %v4312_v56  ;;  %v4328_v15 = vcvt.f32.s32 %v4327_v42 }
0x4508   :  { %v4316_v55 = vadd.s32 %v4315_v60, %v4313_v17  ;;  %v4331_v9 = vadd.s32 %v4330_v24, %v4328_v15 }
0x450a   :  { %v4345_v8 = vperm.slane %v4316_v55, %v6271_v54  ;;  %v4346_v52 = vperm.slane %v4331_v9, %v6271_v54 }
0x450c   :  { %v4347_v22 = vsel %vm4013_vm13, %v4346_v52, %v4345_v8 }
0x450d   :  { %4681 = vst.msk [vmem:[%s6693_s20 + $0xa] sm:$0x3] %vm3556_vm10, %v4347_v22  ;;  %v4409_v28 = vpop.xlane.xlu2 %4408  ;;  %v4476_v16 = vpop.xlane.xlu0 %4475 }
0x450e   :  { %v4410_v34 = vcvt.f32.s32 %v4409_v28  ;;  %v4477_v11 = vcvt.f32.s32 %v4476_v16 }
0x4510   :  { %v4413_v32 = vadd.s32 %v4412_v50, %v4410_v34  ;;  %v4480_v12 = vadd.s32 %v4479_v61, %v4477_v11 }
0x4512   :  { %v4428_v39 = vperm.slane %v4413_v32, %v6271_v54  ;;  %v4509_v27 = vperm.slane %v4480_v12, %v6271_v54 }
0x4514   :  { %v4429_v29 = vsel %vm4013_vm13, %v4428_v39, %v4427_v1  ;;  %v4511_v35 = vsel %vm4013_vm13, %v4510_v6, %v4509_v27 }
0x4515   :  { %4682 = vst.msk [vmem:[%s6693_s20 + $0xc] sm:$0x3] %vm3556_vm10, %v4429_v29  ;;  %v4500_v41 = vpop.permute.xlu2 %4499 }
0x4516   :  { %4683 = vst.msk [vmem:[%s6693_s20 + $0xe] sm:$0x3] %vm3556_vm10, %v4511_v35  ;;  %vm4501_vm12 = vcmp.eq.s32.totalorder %v4500_v41, 1 }
0x4517   :  { %v4508_v54 = vsel %vm4501_vm12, %v6506_v7, %v6466_v23 }
0x4518   :  { %v4518_v59 = vadd.f32 %v4712_v4, %v4508_v54 }
0x451a   :  { %4519 = vst.msk [vmem:[%s6695_s21] sm:$0x3] %vm3556_vm10, %v4518_v59 }

</bundles_post_ra>
